<compile_context>
chip_gen: v5e
topology: v5e:2x2
jax: 0.10.0
libtpu: 0.0.40
codegen_flags: <defaults>
</compile_context>

<pallas_src>
import functools

import jax
import jax.numpy as jnp
from jax.experimental import pallas as pl
from jax.experimental.pallas import tpu as pltpu


def _fused_conv3_kernel(x_ref, w1_ref, b1_ref, w2_ref, b2_ref, w3_ref, b3_ref,
                        o_ref, act_ref, *, H, W, C):
    """Fused conv(1->C)+ReLU -> conv(C->C)+ReLU -> conv(C->1) for one image.

    x_ref  : (1, H+2, W+2, 1)  zero-padded single-channel input
    w1_ref : (9, C)            layer-1 taps, row = dy*3+dx
    b1_ref : (1, C)
    w2_ref : (9*C, C)          layer-2 weights, im2col layout (row = tap*C + cin)
    b2_ref : (1, C)
    w3_ref : (9, C)            layer-3 taps, row = dy*3+dx, col = cin
    b3_ref : (1, 1)
    o_ref  : (1, H, W)         single-channel output
    act_ref: (H+2, W+2, C)     VMEM scratch: padded activation, halo kept at 0
    """
    f32 = jnp.float32

    # Zero the scratch once per image: the 1-pixel halo provides the zero
    # padding for layers 2 and 3; the interior is overwritten below.
    act_ref[...] = jnp.zeros_like(act_ref)

    # ---- Layer 1: Conv2d(1 -> C) + ReLU.  Cin == 1 -> 9 VPU outer-product
    # multiply-accumulates; no degenerate K=1 MXU matmuls. ----
    acc1 = jnp.zeros((H, W, C), f32)
    for dy in range(3):
        for dx in range(3):
            t = dy * 3 + dx
            patch = x_ref[0, dy:dy + H, dx:dx + W, :]          # (H, W, 1)
            tap = w1_ref[t:t + 1, :].reshape(1, 1, C)          # (1, 1, C)
            acc1 = acc1 + patch * tap
    act_ref[1:H + 1, 1:W + 1, :] = jnp.maximum(
        acc1 + b1_ref[...].reshape(1, 1, C), 0.0)

    # ---- Layer 2: Conv2d(C -> C) + ReLU as ONE im2col matmul (MXU, K=9*C). ----
    cols = [act_ref[dy:dy + H, dx:dx + W, :]                   # 9 x (H, W, C)
            for dy in range(3) for dx in range(3)]
    patches = jnp.concatenate(cols, axis=-1).reshape(H * W, 9 * C)
    h2 = jnp.dot(patches, w2_ref[...], preferred_element_type=f32)  # (H*W, C)
    h2 = jnp.maximum(h2 + b2_ref[...], 0.0)
    act_ref[1:H + 1, 1:W + 1, :] = h2.reshape(H, W, C)

    # ---- Layer 3: Conv2d(C -> 1).  Cout == 1 -> 9 VPU multiply-accumulates
    # and a single channel (lane) reduction; avoids an N=1 MXU matmul. ----
    acc3 = jnp.zeros((H, W, C), f32)
    for dy in range(3):
        for dx in range(3):
            t = dy * 3 + dx
            tap = w3_ref[t:t + 1, :].reshape(1, 1, C)          # (1, 1, C)
            acc3 = acc3 + act_ref[dy:dy + H, dx:dx + W, :] * tap
    y = jnp.sum(acc3, axis=-1) + b3_ref[...]                   # (H, W)
    o_ref[...] = y.reshape(1, H, W).astype(o_ref.dtype)


def high_frequency_conv_layer(x_nchw, params):
    """Forward pass matching HighFrequencyConvLayer.  x_nchw: (N, 1, H, W)."""
    w1, b1, w2, b2, w3, b3 = params
    N, Cin, H, W = x_nchw.shape
    assert Cin == 1, "HighFrequencyConvLayer expects a single input channel"
    C = w1.shape[-1]

    # NCHW -> NHWC and pad spatial once (the only HBM-side prep).
    x = jnp.transpose(x_nchw, (0, 2, 3, 1))                    # (N, H, W, 1)
    x_pad = jnp.pad(x, ((0, 0), (1, 1), (1, 1), (0, 0)))       # (N, H+2, W+2, 1)

    # Repack weights for the kernel (row-major reshapes, layout-preserving).
    w1k = w1.reshape(9, C)          # (3,3,1,C)  -> (9, C),   row = dy*3+dx
    w2k = w2.reshape(9 * C, C)      # (3,3,C,C)  -> (9C, C),  row = tap*C+cin
    w3k = w3.reshape(9, C)          # (3,3,C,1)  -> (9, C),   row = dy*3+dx
    b1k = b1.reshape(1, C)
    b2k = b2.reshape(1, C)
    b3k = b3.reshape(1, 1)

    kern = functools.partial(_fused_conv3_kernel, H=H, W=W, C=C)
    out = pl.pallas_call(
        kern,
        out_shape=jax.ShapeDtypeStruct((N, H, W), x_nchw.dtype),
        grid=(N,),
        in_specs=[
            pl.BlockSpec((1, H + 2, W + 2, 1), lambda n: (n, 0, 0, 0)),
            pl.BlockSpec((9, C), lambda n: (0, 0)),
            pl.BlockSpec((1, C), lambda n: (0, 0)),
            pl.BlockSpec((9 * C, C), lambda n: (0, 0)),
            pl.BlockSpec((1, C), lambda n: (0, 0)),
            pl.BlockSpec((9, C), lambda n: (0, 0)),
            pl.BlockSpec((1, 1), lambda n: (0, 0)),
        ],
        out_specs=pl.BlockSpec((1, H, W), lambda n: (n, 0, 0)),
        scratch_shapes=[pltpu.VMEM((H + 2, W + 2, C), jnp.float32)],
        compiler_params=pltpu.CompilerParams(
            dimension_semantics=("parallel",)),
    )(x_pad, w1k, b1k, w2k, b2k, w3k, b3k)

    return out.reshape(N, 1, H, W)


def init_params(key):
    """Deterministic synthetic params (shapes match the PyTorch module)."""
    k1, k2, k3, k4, k5, k6 = jax.random.split(key, 6)
    # (kh, kw, Cin, Cout) layout (PyTorch's (Cout, Cin, kh, kw) transposed).
    w1 = jax.random.normal(k1, (3, 3, 1, 32), jnp.float32) * 0.2
    b1 = jax.random.normal(k2, (32,), jnp.float32) * 0.05
    w2 = jax.random.normal(k3, (3, 3, 32, 32), jnp.float32) * 0.05
    b2 = jax.random.normal(k4, (32,), jnp.float32) * 0.05
    w3 = jax.random.normal(k5, (3, 3, 32, 1), jnp.float32) * 0.05
    b3 = jax.random.normal(k6, (1,), jnp.float32) * 0.05
    return (w1, b1, w2, b2, w3, b3)


def _ref_forward(x_nchw, params):
    """Pure-JAX reference (lax conv) for correctness check."""
    w1, b1, w2, b2, w3, b3 = params

    def conv(x, w, b, relu):
        y = jax.lax.conv_general_dilated(
            x, w, window_strides=(1, 1), padding="SAME",
            dimension_numbers=("NHWC", "HWIO", "NHWC"),
        ) + b[None, None, None, :]
        return jnp.maximum(y, 0.0) if relu else y

    x = jnp.transpose(x_nchw, (0, 2, 3, 1))
    h = conv(x, w1, b1, True)
    h = conv(h, w2, b2, True)
    y = conv(h, w3, b3, False)
    return jnp.transpose(y, (0, 3, 1, 2))


if __name__ == "__main__":
    key = jax.random.PRNGKey(0)
    k_x, k_p = jax.random.split(key)

    # Small shapes consistent with the module: N=2, Cin=1 (Conv2d(1,...) needs
    # a single input channel), 16x16 spatial.
    x = jax.random.normal(k_x, (2, 1, 16, 16), jnp.float32)
    params = init_params(k_p)

    out = high_frequency_conv_layer(x, params)
    out = jax.block_until_ready(out)

    assert out.shape == (2, 1, 16, 16), out.shape

    ref = _ref_forward(x, params)
    assert jnp.allclose(out, ref, atol=1e-4, rtol=1e-4), "mismatch vs reference"

    print("KERNEL_OK")
</pallas_src>

<mosaic_0001>
module attributes {stable_mosaic.version = 11 : i64} {
  func.func @_fused_conv3_kernel(%arg0: i32, %arg1: memref<1x18x18x1xf32, #tpu.memory_space<vmem>>, %arg2: memref<9x32xf32, #tpu.memory_space<vmem>>, %arg3: memref<1x32xf32, #tpu.memory_space<vmem>>, %arg4: memref<288x32xf32, #tpu.memory_space<vmem>>, %arg5: memref<1x32xf32, #tpu.memory_space<vmem>>, %arg6: memref<9x32xf32, #tpu.memory_space<vmem>>, %arg7: memref<1x1xf32, #tpu.memory_space<vmem>>, %arg8: memref<1x16x16xf32, #tpu.memory_space<vmem>>, %arg9: memref<18x18x32xf32, #tpu.memory_space<vmem>>) attributes {dimension_semantics = [#tpu.dimension_semantics<parallel>], iteration_bounds = array<i64: 2>, scalar_prefetch = 0 : i64, scratch_operands = 1 : i64, tpu.core_type = #tpu.core_type<tc>, window_params = [{transform_indices = @transform_0, window_bounds = array<i64: 1, 18, 18, 1>}, {pipeline_mode = #tpu.pipeline_mode<synchronous>, transform_indices = @transform_1, window_bounds = array<i64: 9, 32>}, {pipeline_mode = #tpu.pipeline_mode<synchronous>, transform_indices = @transform_2, window_bounds = array<i64: 1, 32>}, {pipeline_mode = #tpu.pipeline_mode<synchronous>, transform_indices = @transform_3, window_bounds = array<i64: 288, 32>}, {pipeline_mode = #tpu.pipeline_mode<synchronous>, transform_indices = @transform_4, window_bounds = array<i64: 1, 32>}, {pipeline_mode = #tpu.pipeline_mode<synchronous>, transform_indices = @transform_5, window_bounds = array<i64: 9, 32>}, {pipeline_mode = #tpu.pipeline_mode<synchronous>, transform_indices = @transform_6, window_bounds = array<i64: 1, 1>}, {transform_indices = @transform_7, window_bounds = array<i64: 1, 16, 16>}]} {
    %cst = arith.constant 0.000000e+00 : f32
    %0 = vector.broadcast %cst : f32 to vector<18x18x32xf32>
    %c0 = arith.constant 0 : index
    %c0_0 = arith.constant 0 : index
    %c0_1 = arith.constant 0 : index
    %1 = vector.load %arg9[%c0, %c0_0, %c0_1] : memref<18x18x32xf32, #tpu.memory_space<vmem>>, vector<18x18x32xf32>
    tpu.vector_store %arg9[%c0, %c0_0, %c0_1], %0 {strides = array<i32>} : memref<18x18x32xf32, #tpu.memory_space<vmem>>, vector<18x18x32xf32>,
    %cst_2 = arith.constant 0.000000e+00 : f32
    %2 = vector.broadcast %cst_2 : f32 to vector<16x16x32xf32>
    %c0_3 = arith.constant 0 : index
    %c0_4 = arith.constant 0 : index
    %c0_5 = arith.constant 0 : index
    %c0_6 = arith.constant 0 : index
    %3 = vector.load %arg1[%c0_3, %c0_4, %c0_5, %c0_6] : memref<1x18x18x1xf32, #tpu.memory_space<vmem>>, vector<1x16x16x1xf32>
    %4 = vector.shape_cast %3 : vector<1x16x16x1xf32> to vector<16x16x1xf32>
    %c0_7 = arith.constant 0 : index
    %c0_8 = arith.constant 0 : index
    %5 = vector.load %arg2[%c0_7, %c0_8] : memref<9x32xf32, #tpu.memory_space<vmem>>, vector<1x32xf32>
    %6 = vector.shape_cast %5 : vector<1x32xf32> to vector<1x1x32xf32>
    %7 = vector.broadcast %4 : vector<16x16x1xf32> to vector<16x16x32xf32>
    %8 = vector.broadcast %6 : vector<1x1x32xf32> to vector<16x16x32xf32>
    %9 = arith.mulf %7, %8 : vector<16x16x32xf32>
    %10 = arith.addf %2, %9 : vector<16x16x32xf32>
    %c0_9 = arith.constant 0 : index
    %c0_10 = arith.constant 0 : index
    %c1 = arith.constant 1 : index
    %c0_11 = arith.constant 0 : index
    %11 = vector.load %arg1[%c0_9, %c0_10, %c1, %c0_11] : memref<1x18x18x1xf32, #tpu.memory_space<vmem>>, vector<1x16x16x1xf32>
    %12 = vector.shape_cast %11 : vector<1x16x16x1xf32> to vector<16x16x1xf32>
    %c1_12 = arith.constant 1 : index
    %c0_13 = arith.constant 0 : index
    %13 = vector.load %arg2[%c1_12, %c0_13] : memref<9x32xf32, #tpu.memory_space<vmem>>, vector<1x32xf32>
    %14 = vector.shape_cast %13 : vector<1x32xf32> to vector<1x1x32xf32>
    %15 = vector.broadcast %12 : vector<16x16x1xf32> to vector<16x16x32xf32>
    %16 = vector.broadcast %14 : vector<1x1x32xf32> to vector<16x16x32xf32>
    %17 = arith.mulf %15, %16 : vector<16x16x32xf32>
    %18 = arith.addf %10, %17 : vector<16x16x32xf32>
    %c0_14 = arith.constant 0 : index
    %c0_15 = arith.constant 0 : index
    %c2 = arith.constant 2 : index
    %c0_16 = arith.constant 0 : index
    %19 = vector.load %arg1[%c0_14, %c0_15, %c2, %c0_16] : memref<1x18x18x1xf32, #tpu.memory_space<vmem>>, vector<1x16x16x1xf32>
    %20 = vector.shape_cast %19 : vector<1x16x16x1xf32> to vector<16x16x1xf32>
    %c2_17 = arith.constant 2 : index
    %c0_18 = arith.constant 0 : index
    %21 = vector.load %arg2[%c2_17, %c0_18] : memref<9x32xf32, #tpu.memory_space<vmem>>, vector<1x32xf32>
    %22 = vector.shape_cast %21 : vector<1x32xf32> to vector<1x1x32xf32>
    %23 = vector.broadcast %20 : vector<16x16x1xf32> to vector<16x16x32xf32>
    %24 = vector.broadcast %22 : vector<1x1x32xf32> to vector<16x16x32xf32>
    %25 = arith.mulf %23, %24 : vector<16x16x32xf32>
    %26 = arith.addf %18, %25 : vector<16x16x32xf32>
    %c0_19 = arith.constant 0 : index
    %c1_20 = arith.constant 1 : index
    %c0_21 = arith.constant 0 : index
    %c0_22 = arith.constant 0 : index
    %27 = vector.load %arg1[%c0_19, %c1_20, %c0_21, %c0_22] : memref<1x18x18x1xf32, #tpu.memory_space<vmem>>, vector<1x16x16x1xf32>
    %28 = vector.shape_cast %27 : vector<1x16x16x1xf32> to vector<16x16x1xf32>
    %c3 = arith.constant 3 : index
    %c0_23 = arith.constant 0 : index
    %29 = vector.load %arg2[%c3, %c0_23] : memref<9x32xf32, #tpu.memory_space<vmem>>, vector<1x32xf32>
    %30 = vector.shape_cast %29 : vector<1x32xf32> to vector<1x1x32xf32>
    %31 = vector.broadcast %28 : vector<16x16x1xf32> to vector<16x16x32xf32>
    %32 = vector.broadcast %30 : vector<1x1x32xf32> to vector<16x16x32xf32>
    %33 = arith.mulf %31, %32 : vector<16x16x32xf32>
    %34 = arith.addf %26, %33 : vector<16x16x32xf32>
    %c0_24 = arith.constant 0 : index
    %c1_25 = arith.constant 1 : index
    %c1_26 = arith.constant 1 : index
    %c0_27 = arith.constant 0 : index
    %35 = vector.load %arg1[%c0_24, %c1_25, %c1_26, %c0_27] : memref<1x18x18x1xf32, #tpu.memory_space<vmem>>, vector<1x16x16x1xf32>
    %36 = vector.shape_cast %35 : vector<1x16x16x1xf32> to vector<16x16x1xf32>
    %c4 = arith.constant 4 : index
    %c0_28 = arith.constant 0 : index
    %37 = vector.load %arg2[%c4, %c0_28] : memref<9x32xf32, #tpu.memory_space<vmem>>, vector<1x32xf32>
    %38 = vector.shape_cast %37 : vector<1x32xf32> to vector<1x1x32xf32>
    %39 = vector.broadcast %36 : vector<16x16x1xf32> to vector<16x16x32xf32>
    %40 = vector.broadcast %38 : vector<1x1x32xf32> to vector<16x16x32xf32>
    %41 = arith.mulf %39, %40 : vector<16x16x32xf32>
    %42 = arith.addf %34, %41 : vector<16x16x32xf32>
    %c0_29 = arith.constant 0 : index
    %c1_30 = arith.constant 1 : index
    %c2_31 = arith.constant 2 : index
    %c0_32 = arith.constant 0 : index
    %43 = vector.load %arg1[%c0_29, %c1_30, %c2_31, %c0_32] : memref<1x18x18x1xf32, #tpu.memory_space<vmem>>, vector<1x16x16x1xf32>
    %44 = vector.shape_cast %43 : vector<1x16x16x1xf32> to vector<16x16x1xf32>
    %c5 = arith.constant 5 : index
    %c0_33 = arith.constant 0 : index
    %45 = vector.load %arg2[%c5, %c0_33] : memref<9x32xf32, #tpu.memory_space<vmem>>, vector<1x32xf32>
    %46 = vector.shape_cast %45 : vector<1x32xf32> to vector<1x1x32xf32>
    %47 = vector.broadcast %44 : vector<16x16x1xf32> to vector<16x16x32xf32>
    %48 = vector.broadcast %46 : vector<1x1x32xf32> to vector<16x16x32xf32>
    %49 = arith.mulf %47, %48 : vector<16x16x32xf32>
    %50 = arith.addf %42, %49 : vector<16x16x32xf32>
    %c0_34 = arith.constant 0 : index
    %c2_35 = arith.constant 2 : index
    %c0_36 = arith.constant 0 : index
    %c0_37 = arith.constant 0 : index
    %51 = vector.load %arg1[%c0_34, %c2_35, %c0_36, %c0_37] : memref<1x18x18x1xf32, #tpu.memory_space<vmem>>, vector<1x16x16x1xf32>
    %52 = vector.shape_cast %51 : vector<1x16x16x1xf32> to vector<16x16x1xf32>
    %c6 = arith.constant 6 : index
    %c0_38 = arith.constant 0 : index
    %53 = vector.load %arg2[%c6, %c0_38] : memref<9x32xf32, #tpu.memory_space<vmem>>, vector<1x32xf32>
    %54 = vector.shape_cast %53 : vector<1x32xf32> to vector<1x1x32xf32>
    %55 = vector.broadcast %52 : vector<16x16x1xf32> to vector<16x16x32xf32>
    %56 = vector.broadcast %54 : vector<1x1x32xf32> to vector<16x16x32xf32>
    %57 = arith.mulf %55, %56 : vector<16x16x32xf32>
    %58 = arith.addf %50, %57 : vector<16x16x32xf32>
    %c0_39 = arith.constant 0 : index
    %c2_40 = arith.constant 2 : index
    %c1_41 = arith.constant 1 : index
    %c0_42 = arith.constant 0 : index
    %59 = vector.load %arg1[%c0_39, %c2_40, %c1_41, %c0_42] : memref<1x18x18x1xf32, #tpu.memory_space<vmem>>, vector<1x16x16x1xf32>
    %60 = vector.shape_cast %59 : vector<1x16x16x1xf32> to vector<16x16x1xf32>
    %c7 = arith.constant 7 : index
    %c0_43 = arith.constant 0 : index
    %61 = vector.load %arg2[%c7, %c0_43] : memref<9x32xf32, #tpu.memory_space<vmem>>, vector<1x32xf32>
    %62 = vector.shape_cast %61 : vector<1x32xf32> to vector<1x1x32xf32>
    %63 = vector.broadcast %60 : vector<16x16x1xf32> to vector<16x16x32xf32>
    %64 = vector.broadcast %62 : vector<1x1x32xf32> to vector<16x16x32xf32>
    %65 = arith.mulf %63, %64 : vector<16x16x32xf32>
    %66 = arith.addf %58, %65 : vector<16x16x32xf32>
    %c0_44 = arith.constant 0 : index
    %c2_45 = arith.constant 2 : index
    %c2_46 = arith.constant 2 : index
    %c0_47 = arith.constant 0 : index
    %67 = vector.load %arg1[%c0_44, %c2_45, %c2_46, %c0_47] : memref<1x18x18x1xf32, #tpu.memory_space<vmem>>, vector<1x16x16x1xf32>
    %68 = vector.shape_cast %67 : vector<1x16x16x1xf32> to vector<16x16x1xf32>
    %c8 = arith.constant 8 : index
    %c0_48 = arith.constant 0 : index
    %69 = vector.load %arg2[%c8, %c0_48] : memref<9x32xf32, #tpu.memory_space<vmem>>, vector<1x32xf32>
    %70 = vector.shape_cast %69 : vector<1x32xf32> to vector<1x1x32xf32>
    %71 = vector.broadcast %68 : vector<16x16x1xf32> to vector<16x16x32xf32>
    %72 = vector.broadcast %70 : vector<1x1x32xf32> to vector<16x16x32xf32>
    %73 = arith.mulf %71, %72 : vector<16x16x32xf32>
    %74 = arith.addf %66, %73 : vector<16x16x32xf32>
    %c0_49 = arith.constant 0 : index
    %c0_50 = arith.constant 0 : index
    %75 = vector.load %arg3[%c0_49, %c0_50] : memref<1x32xf32, #tpu.memory_space<vmem>>, vector<1x32xf32>
    %76 = vector.shape_cast %75 : vector<1x32xf32> to vector<1x1x32xf32>
    %77 = vector.broadcast %76 : vector<1x1x32xf32> to vector<16x16x32xf32>
    %78 = arith.addf %74, %77 : vector<16x16x32xf32>
    %cst_51 = arith.constant 0.000000e+00 : f32
    %79 = vector.broadcast %cst_51 : f32 to vector<16x16x32xf32>
    %80 = arith.maximumf %78, %79 : vector<16x16x32xf32>
    %c1_52 = arith.constant 1 : index
    %c1_53 = arith.constant 1 : index
    %c0_54 = arith.constant 0 : index
    %81 = vector.load %arg9[%c1_52, %c1_53, %c0_54] : memref<18x18x32xf32, #tpu.memory_space<vmem>>, vector<16x16x32xf32>
    tpu.vector_store %arg9[%c1_52, %c1_53, %c0_54], %80 {strides = array<i32>} : memref<18x18x32xf32, #tpu.memory_space<vmem>>, vector<16x16x32xf32>,
    %c0_55 = arith.constant 0 : index
    %c0_56 = arith.constant 0 : index
    %c0_57 = arith.constant 0 : index
    %82 = vector.load %arg9[%c0_55, %c0_56, %c0_57] : memref<18x18x32xf32, #tpu.memory_space<vmem>>, vector<16x16x32xf32>
    %c0_58 = arith.constant 0 : index
    %c1_59 = arith.constant 1 : index
    %c0_60 = arith.constant 0 : index
    %83 = vector.load %arg9[%c0_58, %c1_59, %c0_60] : memref<18x18x32xf32, #tpu.memory_space<vmem>>, vector<16x16x32xf32>
    %c0_61 = arith.constant 0 : index
    %c2_62 = arith.constant 2 : index
    %c0_63 = arith.constant 0 : index
    %84 = vector.load %arg9[%c0_61, %c2_62, %c0_63] : memref<18x18x32xf32, #tpu.memory_space<vmem>>, vector<16x16x32xf32>
    %c1_64 = arith.constant 1 : index
    %c0_65 = arith.constant 0 : index
    %c0_66 = arith.constant 0 : index
    %85 = vector.load %arg9[%c1_64, %c0_65, %c0_66] : memref<18x18x32xf32, #tpu.memory_space<vmem>>, vector<16x16x32xf32>
    %c1_67 = arith.constant 1 : index
    %c1_68 = arith.constant 1 : index
    %c0_69 = arith.constant 0 : index
    %86 = vector.load %arg9[%c1_67, %c1_68, %c0_69] : memref<18x18x32xf32, #tpu.memory_space<vmem>>, vector<16x16x32xf32>
    %c1_70 = arith.constant 1 : index
    %c2_71 = arith.constant 2 : index
    %c0_72 = arith.constant 0 : index
    %87 = vector.load %arg9[%c1_70, %c2_71, %c0_72] : memref<18x18x32xf32, #tpu.memory_space<vmem>>, vector<16x16x32xf32>
    %c2_73 = arith.constant 2 : index
    %c0_74 = arith.constant 0 : index
    %c0_75 = arith.constant 0 : index
    %88 = vector.load %arg9[%c2_73, %c0_74, %c0_75] : memref<18x18x32xf32, #tpu.memory_space<vmem>>, vector<16x16x32xf32>
    %c2_76 = arith.constant 2 : index
    %c1_77 = arith.constant 1 : index
    %c0_78 = arith.constant 0 : index
    %89 = vector.load %arg9[%c2_76, %c1_77, %c0_78] : memref<18x18x32xf32, #tpu.memory_space<vmem>>, vector<16x16x32xf32>
    %c2_79 = arith.constant 2 : index
    %c2_80 = arith.constant 2 : index
    %c0_81 = arith.constant 0 : index
    %90 = vector.load %arg9[%c2_79, %c2_80, %c0_81] : memref<18x18x32xf32, #tpu.memory_space<vmem>>, vector<16x16x32xf32>
    %91 = tpu.concatenate %82, %83, %84, %85, %86, %87, %88, %89, %90 in 2 : vector<16x16x32xf32>, vector<16x16x32xf32>, vector<16x16x32xf32>, vector<16x16x32xf32>, vector<16x16x32xf32>, vector<16x16x32xf32>, vector<16x16x32xf32>, vector<16x16x32xf32>, vector<16x16x32xf32> -> vector<16x16x288xf32>
    %92 = vector.shape_cast %91 : vector<16x16x288xf32> to vector<256x288xf32>
    %c0_82 = arith.constant 0 : index
    %c0_83 = arith.constant 0 : index
    %93 = vector.load %arg4[%c0_82, %c0_83] : memref<288x32xf32, #tpu.memory_space<vmem>>, vector<288x32xf32>
    %cst_84 = arith.constant dense<0.000000e+00> : vector<256x32xf32>
    %94 = tpu.matmul %92, %93, %cst_84 {dimension_numbers = #tpu.dot_dimension_numbers<[1], [0], [0], [1], [0, 0, 1, 1], [], []>} : vector<256x288xf32>, vector<288x32xf32>, vector<256x32xf32> -> vector<256x32xf32>
    %c0_85 = arith.constant 0 : index
    %c0_86 = arith.constant 0 : index
    %95 = vector.load %arg5[%c0_85, %c0_86] : memref<1x32xf32, #tpu.memory_space<vmem>>, vector<1x32xf32>
    %96 = vector.broadcast %95 : vector<1x32xf32> to vector<256x32xf32>
    %97 = arith.addf %94, %96 : vector<256x32xf32>
    %cst_87 = arith.constant 0.000000e+00 : f32
    %98 = vector.broadcast %cst_87 : f32 to vector<256x32xf32>
    %99 = arith.maximumf %97, %98 : vector<256x32xf32>
    %100 = vector.shape_cast %99 : vector<256x32xf32> to vector<16x16x32xf32>
    %c1_88 = arith.constant 1 : index
    %c1_89 = arith.constant 1 : index
    %c0_90 = arith.constant 0 : index
    %101 = vector.load %arg9[%c1_88, %c1_89, %c0_90] : memref<18x18x32xf32, #tpu.memory_space<vmem>>, vector<16x16x32xf32>
    tpu.vector_store %arg9[%c1_88, %c1_89, %c0_90], %100 {strides = array<i32>} : memref<18x18x32xf32, #tpu.memory_space<vmem>>, vector<16x16x32xf32>,
    %cst_91 = arith.constant 0.000000e+00 : f32
    %102 = vector.broadcast %cst_91 : f32 to vector<16x16x32xf32>
    %c0_92 = arith.constant 0 : index
    %c0_93 = arith.constant 0 : index
    %103 = vector.load %arg6[%c0_92, %c0_93] : memref<9x32xf32, #tpu.memory_space<vmem>>, vector<1x32xf32>
    %104 = vector.shape_cast %103 : vector<1x32xf32> to vector<1x1x32xf32>
    %c0_94 = arith.constant 0 : index
    %c0_95 = arith.constant 0 : index
    %c0_96 = arith.constant 0 : index
    %105 = vector.load %arg9[%c0_94, %c0_95, %c0_96] : memref<18x18x32xf32, #tpu.memory_space<vmem>>, vector<16x16x32xf32>
    %106 = vector.broadcast %104 : vector<1x1x32xf32> to vector<16x16x32xf32>
    %107 = arith.mulf %105, %106 : vector<16x16x32xf32>
    %108 = arith.addf %102, %107 : vector<16x16x32xf32>
    %c1_97 = arith.constant 1 : index
    %c0_98 = arith.constant 0 : index
    %109 = vector.load %arg6[%c1_97, %c0_98] : memref<9x32xf32, #tpu.memory_space<vmem>>, vector<1x32xf32>
    %110 = vector.shape_cast %109 : vector<1x32xf32> to vector<1x1x32xf32>
    %c0_99 = arith.constant 0 : index
    %c1_100 = arith.constant 1 : index
    %c0_101 = arith.constant 0 : index
    %111 = vector.load %arg9[%c0_99, %c1_100, %c0_101] : memref<18x18x32xf32, #tpu.memory_space<vmem>>, vector<16x16x32xf32>
    %112 = vector.broadcast %110 : vector<1x1x32xf32> to vector<16x16x32xf32>
    %113 = arith.mulf %111, %112 : vector<16x16x32xf32>
    %114 = arith.addf %108, %113 : vector<16x16x32xf32>
    %c2_102 = arith.constant 2 : index
    %c0_103 = arith.constant 0 : index
    %115 = vector.load %arg6[%c2_102, %c0_103] : memref<9x32xf32, #tpu.memory_space<vmem>>, vector<1x32xf32>
    %116 = vector.shape_cast %115 : vector<1x32xf32> to vector<1x1x32xf32>
    %c0_104 = arith.constant 0 : index
    %c2_105 = arith.constant 2 : index
    %c0_106 = arith.constant 0 : index
    %117 = vector.load %arg9[%c0_104, %c2_105, %c0_106] : memref<18x18x32xf32, #tpu.memory_space<vmem>>, vector<16x16x32xf32>
    %118 = vector.broadcast %116 : vector<1x1x32xf32> to vector<16x16x32xf32>
    %119 = arith.mulf %117, %118 : vector<16x16x32xf32>
    %120 = arith.addf %114, %119 : vector<16x16x32xf32>
    %c3_107 = arith.constant 3 : index
    %c0_108 = arith.constant 0 : index
    %121 = vector.load %arg6[%c3_107, %c0_108] : memref<9x32xf32, #tpu.memory_space<vmem>>, vector<1x32xf32>
    %122 = vector.shape_cast %121 : vector<1x32xf32> to vector<1x1x32xf32>
    %c1_109 = arith.constant 1 : index
    %c0_110 = arith.constant 0 : index
    %c0_111 = arith.constant 0 : index
    %123 = vector.load %arg9[%c1_109, %c0_110, %c0_111] : memref<18x18x32xf32, #tpu.memory_space<vmem>>, vector<16x16x32xf32>
    %124 = vector.broadcast %122 : vector<1x1x32xf32> to vector<16x16x32xf32>
    %125 = arith.mulf %123, %124 : vector<16x16x32xf32>
    %126 = arith.addf %120, %125 : vector<16x16x32xf32>
    %c4_112 = arith.constant 4 : index
    %c0_113 = arith.constant 0 : index
    %127 = vector.load %arg6[%c4_112, %c0_113] : memref<9x32xf32, #tpu.memory_space<vmem>>, vector<1x32xf32>
    %128 = vector.shape_cast %127 : vector<1x32xf32> to vector<1x1x32xf32>
    %c1_114 = arith.constant 1 : index
    %c1_115 = arith.constant 1 : index
    %c0_116 = arith.constant 0 : index
    %129 = vector.load %arg9[%c1_114, %c1_115, %c0_116] : memref<18x18x32xf32, #tpu.memory_space<vmem>>, vector<16x16x32xf32>
    %130 = vector.broadcast %128 : vector<1x1x32xf32> to vector<16x16x32xf32>
    %131 = arith.mulf %129, %130 : vector<16x16x32xf32>
    %132 = arith.addf %126, %131 : vector<16x16x32xf32>
    %c5_117 = arith.constant 5 : index
    %c0_118 = arith.constant 0 : index
    %133 = vector.load %arg6[%c5_117, %c0_118] : memref<9x32xf32, #tpu.memory_space<vmem>>, vector<1x32xf32>
    %134 = vector.shape_cast %133 : vector<1x32xf32> to vector<1x1x32xf32>
    %c1_119 = arith.constant 1 : index
    %c2_120 = arith.constant 2 : index
    %c0_121 = arith.constant 0 : index
    %135 = vector.load %arg9[%c1_119, %c2_120, %c0_121] : memref<18x18x32xf32, #tpu.memory_space<vmem>>, vector<16x16x32xf32>
    %136 = vector.broadcast %134 : vector<1x1x32xf32> to vector<16x16x32xf32>
    %137 = arith.mulf %135, %136 : vector<16x16x32xf32>
    %138 = arith.addf %132, %137 : vector<16x16x32xf32>
    %c6_122 = arith.constant 6 : index
    %c0_123 = arith.constant 0 : index
    %139 = vector.load %arg6[%c6_122, %c0_123] : memref<9x32xf32, #tpu.memory_space<vmem>>, vector<1x32xf32>
    %140 = vector.shape_cast %139 : vector<1x32xf32> to vector<1x1x32xf32>
    %c2_124 = arith.constant 2 : index
    %c0_125 = arith.constant 0 : index
    %c0_126 = arith.constant 0 : index
    %141 = vector.load %arg9[%c2_124, %c0_125, %c0_126] : memref<18x18x32xf32, #tpu.memory_space<vmem>>, vector<16x16x32xf32>
    %142 = vector.broadcast %140 : vector<1x1x32xf32> to vector<16x16x32xf32>
    %143 = arith.mulf %141, %142 : vector<16x16x32xf32>
    %144 = arith.addf %138, %143 : vector<16x16x32xf32>
    %c7_127 = arith.constant 7 : index
    %c0_128 = arith.constant 0 : index
    %145 = vector.load %arg6[%c7_127, %c0_128] : memref<9x32xf32, #tpu.memory_space<vmem>>, vector<1x32xf32>
    %146 = vector.shape_cast %145 : vector<1x32xf32> to vector<1x1x32xf32>
    %c2_129 = arith.constant 2 : index
    %c1_130 = arith.constant 1 : index
    %c0_131 = arith.constant 0 : index
    %147 = vector.load %arg9[%c2_129, %c1_130, %c0_131] : memref<18x18x32xf32, #tpu.memory_space<vmem>>, vector<16x16x32xf32>
    %148 = vector.broadcast %146 : vector<1x1x32xf32> to vector<16x16x32xf32>
    %149 = arith.mulf %147, %148 : vector<16x16x32xf32>
    %150 = arith.addf %144, %149 : vector<16x16x32xf32>
    %c8_132 = arith.constant 8 : index
    %c0_133 = arith.constant 0 : index
    %151 = vector.load %arg6[%c8_132, %c0_133] : memref<9x32xf32, #tpu.memory_space<vmem>>, vector<1x32xf32>
    %152 = vector.shape_cast %151 : vector<1x32xf32> to vector<1x1x32xf32>
    %c2_134 = arith.constant 2 : index
    %c2_135 = arith.constant 2 : index
    %c0_136 = arith.constant 0 : index
    %153 = vector.load %arg9[%c2_134, %c2_135, %c0_136] : memref<18x18x32xf32, #tpu.memory_space<vmem>>, vector<16x16x32xf32>
    %154 = vector.broadcast %152 : vector<1x1x32xf32> to vector<16x16x32xf32>
    %155 = arith.mulf %153, %154 : vector<16x16x32xf32>
    %156 = arith.addf %150, %155 : vector<16x16x32xf32>
    %cst_137 = arith.constant dense<0.000000e+00> : vector<16x16xf32>
    %157 = vector.multi_reduction <add>, %156, %cst_137 [2] : vector<16x16x32xf32> to vector<16x16xf32>
    %c0_138 = arith.constant 0 : index
    %c0_139 = arith.constant 0 : index
    %158 = vector.load %arg7[%c0_138, %c0_139] : memref<1x1xf32, #tpu.memory_space<vmem>>, vector<1x1xf32>
    %159 = vector.broadcast %158 : vector<1x1xf32> to vector<16x16xf32>
    %160 = arith.addf %157, %159 : vector<16x16xf32>
    %161 = vector.shape_cast %160 : vector<16x16xf32> to vector<1x16x16xf32>
    %c0_140 = arith.constant 0 : index
    %c0_141 = arith.constant 0 : index
    %c0_142 = arith.constant 0 : index
    %162 = vector.load %arg8[%c0_140, %c0_141, %c0_142] : memref<1x16x16xf32, #tpu.memory_space<vmem>>, vector<1x16x16xf32>
    tpu.vector_store %arg8[%c0_140, %c0_141, %c0_142], %161 {strides = array<i32>} : memref<1x16x16xf32, #tpu.memory_space<vmem>>, vector<1x16x16xf32>,
    return
  }
  func.func @transform_0(%arg0: i32) -> (i32, i32, i32, i32) {
    %c0_i32 = arith.constant 0 : i32
    %c0_i32_0 = arith.constant 0 : i32
    %c0_i32_1 = arith.constant 0 : i32
    %c0_i32_2 = arith.constant 0 : i32
    return %arg0, %c0_i32, %c0_i32_0, %c0_i32_1 : i32, i32, i32, i32
  }
  func.func @transform_1(%arg0: i32) -> (i32, i32) {
    %c0_i32 = arith.constant 0 : i32
    %c0_i32_0 = arith.constant 0 : i32
    %c0_i32_1 = arith.constant 0 : i32
    return %c0_i32, %c0_i32_0 : i32, i32
  }
  func.func @transform_2(%arg0: i32) -> (i32, i32) {
    %c0_i32 = arith.constant 0 : i32
    %c0_i32_0 = arith.constant 0 : i32
    %c0_i32_1 = arith.constant 0 : i32
    return %c0_i32, %c0_i32_0 : i32, i32
  }
  func.func @transform_3(%arg0: i32) -> (i32, i32) {
    %c0_i32 = arith.constant 0 : i32
    %c0_i32_0 = arith.constant 0 : i32
    %c0_i32_1 = arith.constant 0 : i32
    return %c0_i32, %c0_i32_0 : i32, i32
  }
  func.func @transform_4(%arg0: i32) -> (i32, i32) {
    %c0_i32 = arith.constant 0 : i32
    %c0_i32_0 = arith.constant 0 : i32
    %c0_i32_1 = arith.constant 0 : i32
    return %c0_i32, %c0_i32_0 : i32, i32
  }
  func.func @transform_5(%arg0: i32) -> (i32, i32) {
    %c0_i32 = arith.constant 0 : i32
    %c0_i32_0 = arith.constant 0 : i32
    %c0_i32_1 = arith.constant 0 : i32
    return %c0_i32, %c0_i32_0 : i32, i32
  }
  func.func @transform_6(%arg0: i32) -> (i32, i32) {
    %c0_i32 = arith.constant 0 : i32
    %c0_i32_0 = arith.constant 0 : i32
    %c0_i32_1 = arith.constant 0 : i32
    return %c0_i32, %c0_i32_0 : i32, i32
  }
  func.func @transform_7(%arg0: i32) -> (i32, i32, i32) {
    %c0_i32 = arith.constant 0 : i32
    %c0_i32_0 = arith.constant 0 : i32
    %c0_i32_1 = arith.constant 0 : i32
    return %arg0, %c0_i32, %c0_i32_0 : i32, i32, i32
  }
}

</mosaic_0001>

<bundles_post_ra>
// kernel: tpu_custom_call.1
= control target key start
LH: loop header
LB: loop body
LE: loop exit
PB: predicated region body
PF: predicated region fallthrough
CT: control target
= control target key end

     0   :  { %s11191_s0 = inlined_call_operand.vmem [shape: f32[2,18,18,1], index: 0, kind: input, shape index: {}]   ;;  %s11192_s1 = inlined_call_operand.vmem [shape: f32[9,32], index: 1, kind: input, shape index: {}]   ;;  %s11193_s2 = inlined_call_operand.vmem [shape: f32[1,32], index: 2, kind: input, shape index: {}]   ;;  %s11194_s3 = inlined_call_operand.vmem [shape: f32[288,32], index: 3, kind: input, shape index: {}]   ;;  %s11195_s4 = inlined_call_operand.vmem [shape: f32[1,32], index: 4, kind: input, shape index: {}]   ;;  %s11196_s5 = inlined_call_operand.vmem [shape: f32[9,32], index: 5, kind: input, shape index: {}]   ;;  %s11197_s6 = inlined_call_operand.<no memory space> [shape: f32[1,1], index: 6, kind: input, shape index: {}]   ;;  %s11198_s7 = inlined_call_operand.hbm [shape: f32[2,16,16], index: 7, kind: output, shape index: {}]  }
   0x1   :  { %v12_v0 = vstv %s11197_s6 }
   0x2   :  { %13 = vst [vmem:[#allocation3] sm:$0x1] %v12_v0 }
   0x3   :  { %14 = vsyncpa [#allocation5], 0 }
   0x4   :  { %16 = vsyncpa [#allocation5 + $0x1], 0  ;;  %s6693_s26 = smov 0   ;;  %s6695_s27 = smov 0  }
   0x5   :  { %s6697_s28 = smov 0   ;;  %s6699_s29 = smov 0  }
   0x6 LB: > { %s6714_s6 = sadd.s32 4294967295, %s6641_s29   ;;  %s5755_s30 = sadd.s32 4294967294, %s6641_s29   ;;  %s6641_s29 = sphi %s6699_s29, %s11881_s29   ;;  %s6637_s28 = sphi %s6697_s28, %s11880_s28   ;;  %s6633_s27 = sphi %s6695_s27, %s11879_s27   ;;  %s6629_s26 = sphi %s6693_s26, %s11878_s26  }
   0x7   : > { %s6718_s8 = sadd.s32 1, %s6641_s29   ;;  %s181_s9 = sadd.s32 1, %s6637_s28 }
   0x8   : > { %s178_s10 = ssub.s32 %s6641_s29, %s6718_s8  ;;  %p191_p0 = scmp.ne.s32.totalorder %s6637_s28, %s6633_s27 }
   0x9   : > { %p179_p1 = scmp.eq.s32.totalorder %s178_s10, 0  ;;  %p192_p2 = scmp.eq.s32.totalorder %s6714_s6, 1 }
   0xa   : > { %p197_p3 = scmp.ne.s32.totalorder %s6633_s27, %s6629_s26  ;;  %p198_p4 = scmp.eq.s32.totalorder %s5755_s30, 1 }
   0xb   : > { %s6729_s11 = scalar_select %p179_p1, %s6637_s28, %s181_s9  }
   0xc   : > { %p6731_p5 = por %p192_p2, %p191_p0  ;;  %p6735_p6 = por %p198_p4, %p197_p3 }
   0xd   : > { %p5758_p7 = scmp.ge.s32.totalorder %s6641_s29, 1  ;;  %p242_p8 = scmp.lt.s32.totalorder %s6641_s29, 3 }
   0xf   : > { %p243_p9 = pnand %p5758_p7, %p242_p8 }
  0x11   : > { %246 = sbr.rel (%p243_p9) target bundleno = 1646 (0x66e), region = 48 }
  0x16   : > { %p274_p10 = scmp.lt.s32.totalorder %s6714_s6, 1  ;;  %v6643_v1 = vmov 0   ;;  %vm279_vm0 = vcmask 261120   ;;  %vm282_vm1 = vcmask 254976   ;;  %s6645_s17 = smov 32   ;;  %vm3849_vm2 = vcmask 523264  }
  0x17   : > { %6076 = vset.pattern.permute.xlu2 %v6643_v1  ;;  %6075 = vset.pattern.permute.xlu1 %v6643_v1  ;;  %s6646_s20 = smov 64   ;;  %s6647_s21 = smov 96   ;;  %vm3882_vm3 = vcmask 785408   ;;  %vm5604_vm4 = vcmask 130112   ;;  %vm5651_vm5 = vcmask 1041409   ;;  %vm5653_vm6 = vcmask 1042434  }
  0x18   : > { %6074 = vset.pattern.permute.xlu0 %v6643_v1  ;;  %s275_s14 = scalar_select %p274_p10, %s6714_s6, 1  ;;  %vm5655_vm7 = vcmask 1043459   ;;  %vm5657_vm8 = vcmask 1044484   ;;  %vm5659_vm9 = vcmask 1045509   ;;  %vm5661_vm10 = vcmask 1046534  }
  0x19   : > { %vm5663_vm11 = vcmask 1047559   ;;  %vm5674_vm12 = vcmask 130048   ;;  %s6599_s9 = scalar_lea.hbm %s11198_s7, 32 }
  0x1a   : > { %s6027_s15 = smul.u32 432, %s275_s14  ;;  %s271_s14 = sand.u32 1, %s6633_s27  }
  0x1b   : > { %s5678_s22 = scalar_lea.sflag [#allocation5], %s271_s14 }
  0x1c   : > { %s6746_s18 = scalar_lea.vmem %s11191_s0, %s6027_s15  ;;  %s5759_s15 = sshll.u32 %s271_s14, 4 }
  0x1d   : > { %v6749_v2 = vld [vmem:[%s6746_s18 + $0x30] sm:$0xff]  ;;  %v6752_v3 = vld [vmem:[%s6746_s18 + $0x18] sm:$0xff]  ;;  %v335_v4 = vld [vmem:[%s6746_s18] sm:$0xff]  ;;  %s11099_s16 = scalar_lea.vmem [#allocation4], %s5759_s15 }
  0x1e   : > { %390 = vperm.xlu2 %6076, %v6749_v2   ;;  %380 = vperm.xlu1 %6075, %v6752_v3   ;;  %v6758_v5 = vld [vmem:[%s6746_s18 + $0x38] sm:$0xff]  ;;  %v6761_v6 = vld [vmem:[%s6746_s18 + $0x20] sm:$0xff]  ;;  %v336_v7 = vld [vmem:[%s6746_s18 + $0x8] sm:$0xff] }
  0x1f   : > { %370 = vperm.xlu0 %6074, %v335_v4   ;;  %v6767_v8 = vld [vmem:[%s6746_s18 + $0x60] sm:$0xff]  ;;  %v6770_v9 = vld [vmem:[%s6746_s18 + $0x50] sm:$0xff]  ;;  %v6773_v10 = vld [vmem:[%s6746_s18 + $0x48] sm:$0xff] }
  0x20   : > { %v6779_v11 = vld [vmem:[%s6746_s18 + $0x80] sm:$0xff]  ;;  %v6782_v12 = vld [vmem:[%s6746_s18 + $0x78] sm:$0xff]  ;;  %v6785_v13 = vld [vmem:[%s6746_s18 + $0x68] sm:$0xff] }
  0x21   : > { %v6791_v14 = vld [vmem:[%s6746_s18 + $0xa8] sm:$0xff]  ;;  %v6794_v15 = vld [vmem:[%s6746_s18 + $0x98] sm:$0xff]  ;;  %v6797_v16 = vld [vmem:[%s6746_s18 + $0x90] sm:$0xff] }
  0x22   : > { %v6803_v17 = vld [vmem:[%s6746_s18 + $0xc8] sm:$0xff]  ;;  %v6806_v18 = vld [vmem:[%s6746_s18 + $0xc0] sm:$0xff]  ;;  %v6809_v19 = vld [vmem:[%s6746_s18 + $0xb0] sm:$0xff] }
  0x23   : > { %v6815_v20 = vld [vmem:[%s6746_s18 + $0xf0] sm:$0xff]  ;;  %v6818_v21 = vld [vmem:[%s6746_s18 + $0xe0] sm:$0xff]  ;;  %v6821_v22 = vld [vmem:[%s6746_s18 + $0xd8] sm:$0xff] }
  0x24   : > { %v6827_v23 = vld [vmem:[%s6746_s18 + $0x110] sm:$0xff]  ;;  %v6830_v24 = vld [vmem:[%s6746_s18 + $0x108] sm:$0xff]  ;;  %v6833_v25 = vld [vmem:[%s6746_s18 + $0xf8] sm:$0xff] }
  0x25   : > { %v6839_v26 = vld [vmem:[%s6746_s18 + $0x138] sm:$0xff]  ;;  %v6842_v27 = vld [vmem:[%s6746_s18 + $0x128] sm:$0xff]  ;;  %v6845_v28 = vld [vmem:[%s6746_s18 + $0x120] sm:$0xff] }
  0x26   : > { %395 = vperm.xlu2 %6076, %v6758_v5   ;;  %385 = vperm.xlu1 %6075, %v6761_v6   ;;  %v6851_v29 = vld [vmem:[%s6746_s18 + $0x158] sm:$0xff]  ;;  %v6854_v30 = vld [vmem:[%s6746_s18 + $0x150] sm:$0xff]  ;;  %v6857_v31 = vld [vmem:[%s6746_s18 + $0x140] sm:$0xff] }
  0x27   : > { %375 = vperm.xlu0 %6074, %v336_v7   ;;  %v593_v32 = vld [vmem:[%s6746_s18 + $0x1] sm:$0xff]  ;;  %v6864_v33 = vld [vmem:[%s6746_s18 + $0x170] sm:$0xff]  ;;  %v6875_v36 = vld [vmem:[%s6746_s18 + $0x19] sm:$0xff] }
  0x28   : > { %v6867_v34 = vld [vmem:[%s6746_s18 + $0x168] sm:$0xff]  ;;  %v6886_v40 = vld [vmem:[%s6746_s18 + $0x39] sm:$0xff]  ;;  %v6889_v41 = vld [vmem:[%s6746_s18 + $0x31] sm:$0xff] }
  0x29   : > { %v6872_v35 = vld [vmem:[%s6746_s18 + $0x21] sm:$0xff]  ;;  %v594_v37 = vld [vmem:[%s6746_s18 + $0x9] sm:$0xff]  ;;  %v6903_v45 = vld [vmem:[%s6746_s18 + $0x51] sm:$0xff] }
  0x2a   : > { %v6883_v39 = vld [vmem:[%s6746_s18 + $0x49] sm:$0xff]  ;;  %v6900_v44 = vld [vmem:[%s6746_s18 + $0x61] sm:$0xff]  ;;  %v6911_v47 = vld [vmem:[%s6746_s18 + $0x91] sm:$0xff] }
  0x2b   : > { %v6897_v43 = vld [vmem:[%s6746_s18 + $0x69] sm:$0xff]  ;;  %v6914_v48 = vld [vmem:[%s6746_s18 + $0x81] sm:$0xff]  ;;  %v6917_v49 = vld [vmem:[%s6746_s18 + $0x79] sm:$0xff] }
  0x2c   : > { %v6929_v53 = vld [vmem:[%s6746_s18 + $0xb1] sm:$0xff]  ;;  %v6932_v54 = vld [vmem:[%s6746_s18 + $0xa9] sm:$0xff]  ;;  %v6935_v55 = vld [vmem:[%s6746_s18 + $0x99] sm:$0xff] }
  0x2d   : > { %v6947_v59 = vld [vmem:[%s6746_s18 + $0xd9] sm:$0xff]  ;;  %v6950_v60 = vld [vmem:[%s6746_s18 + $0xc9] sm:$0xff]  ;;  %v6953_v61 = vld [vmem:[%s6746_s18 + $0xc1] sm:$0xff] }
  0x2e   : > { %410 = vperm.xlu2 %6076, %v6767_v8   ;;  %405 = vperm.xlu1 %6075, %v6770_v9   ;;  %v6965_v1 = vld [vmem:[%s6746_s18 + $0xf9] sm:$0xff]  ;;  %v6968_v4 = vld [vmem:[%s6746_s18 + $0xf1] sm:$0xff]  ;;  %v6971_v7 = vld [vmem:[%s6746_s18 + $0xe1] sm:$0xff] }
  0x2f   : > { %400 = vperm.xlu0 %6074, %v6773_v10  }
  0x36   : > { %425 = vperm.xlu2 %6076, %v6779_v11   ;;  %420 = vperm.xlu1 %6075, %v6782_v12  }
  0x37   : > { %415 = vperm.xlu0 %6074, %v6785_v13  }
  0x3e   : > { %440 = vperm.xlu2 %6076, %v6791_v14   ;;  %435 = vperm.xlu1 %6075, %v6794_v15  }
  0x3f   : > { %430 = vperm.xlu0 %6074, %v6797_v16  }
  0x46   : > { %455 = vperm.xlu2 %6076, %v6803_v17   ;;  %450 = vperm.xlu1 %6075, %v6806_v18  }
  0x47   : > { %445 = vperm.xlu0 %6074, %v6809_v19  }
  0x4e   : > { %470 = vperm.xlu2 %6076, %v6815_v20   ;;  %465 = vperm.xlu1 %6075, %v6818_v21  }
  0x4f   : > { %460 = vperm.xlu0 %6074, %v6821_v22  }
  0x56   : > { %485 = vperm.xlu2 %6076, %v6827_v23   ;;  %480 = vperm.xlu1 %6075, %v6830_v24  }
  0x57   : > { %475 = vperm.xlu0 %6074, %v6833_v25  }
  0x5e   : > { %500 = vperm.xlu2 %6076, %v6839_v26   ;;  %495 = vperm.xlu1 %6075, %v6842_v27  }
  0x5f   : > { %490 = vperm.xlu0 %6074, %v6845_v28  }
  0x66   : > { %515 = vperm.xlu2 %6076, %v6851_v29   ;;  %510 = vperm.xlu1 %6075, %v6854_v30  }
  0x67   : > { %505 = vperm.xlu0 %6074, %v6857_v31  }
  0x6e   : > { %628 = vperm.xlu2 %6076, %v593_v32   ;;  %525 = vperm.xlu1 %6075, %v6864_v33  }
  0x6f   : > { %520 = vperm.xlu0 %6074, %v6867_v34  }
  0x76   : > { %643 = vperm.xlu2 %6076, %v6872_v35   ;;  %638 = vperm.xlu1 %6075, %v6875_v36  }
  0x77   : > { %633 = vperm.xlu0 %6074, %v594_v37  }
  0x78   : > { %v6880_v38 = vpop.permute.xlu2 %390 }
  0x79   : > { %11254 = vst [vmem:[#allocation7_spill] sm:$0xff] %v6880_v38  ;;  %v851_v38 = vld [vmem:[%s6746_s18 + $0x2] sm:$0xff] }
  0x7e   : > { %658 = vperm.xlu2 %6076, %v6883_v39   ;;  %653 = vperm.xlu1 %6075, %v6886_v40  }
  0x7f   : > { %648 = vperm.xlu0 %6074, %v6889_v41  }
  0x80   : > { %v6894_v42 = vpop.permute.xlu2 %395 }
  0x81   : > { %11255 = vst [vmem:[#allocation8_spill] sm:$0xff] %v6894_v42  ;;  %v852_v42 = vld [vmem:[%s6746_s18 + $0xa] sm:$0xff] }
  0x86   : > { %673 = vperm.xlu2 %6076, %v6897_v43   ;;  %668 = vperm.xlu1 %6075, %v6900_v44  }
  0x87   : > { %663 = vperm.xlu0 %6074, %v6903_v45  }
  0x88   : > { %v6908_v46 = vpop.permute.xlu2 %410 }
  0x89   : > { %11256 = vst [vmem:[#allocation9_spill] sm:$0xff] %v6908_v46  ;;  %v7025_v46 = vld [vmem:[%s6746_s18 + $0x151] sm:$0xff] }
  0x8a   : > { %11278 = vst [vmem:[#allocation31_spill] sm:$0xff] %v7025_v46 }
  0x8e   : > { %688 = vperm.xlu2 %6076, %v6911_v47   ;;  %683 = vperm.xlu1 %6075, %v6914_v48  }
  0x8f   : > { %678 = vperm.xlu0 %6074, %v6917_v49  }
  0x90   : > { %v6922_v50 = vpop.permute.xlu2 %425  ;;  %v6924_v51 = vpop.permute.xlu1 %380 }
  0x91   : > { %11257 = vst [vmem:[#allocation10_spill] sm:$0xff] %v6922_v50  ;;  %v6926_v52 = vpop.permute.xlu0 %370  ;;  %v7022_v50 = vld [vmem:[%s6746_s18 + $0x159] sm:$0xff] }
  0x92   : > { %11258 = vst [vmem:[#allocation11_spill] sm:$0xff] %v6924_v51  ;;  %v7019_v51 = vld [vmem:[%s6746_s18 + $0x169] sm:$0xff] }
  0x93   : > { %11259 = vst [vmem:[#allocation12_spill] sm:$0xff] %v6926_v52  ;;  %v7007_v52 = vld [vmem:[%s6746_s18 + $0x129] sm:$0xff] }
  0x94   : > { %11276 = vst [vmem:[#allocation29_spill] sm:$0xff] %v7019_v51 }
  0x95   : > { %11277 = vst [vmem:[#allocation30_spill] sm:$0xff] %v7022_v50 }
  0x96   : > { %703 = vperm.xlu2 %6076, %v6929_v53   ;;  %698 = vperm.xlu1 %6075, %v6932_v54  }
  0x97   : > { %693 = vperm.xlu0 %6074, %v6935_v55  }
  0x98   : > { %v6940_v56 = vpop.permute.xlu2 %440  ;;  %v6942_v57 = vpop.permute.xlu1 %385 }
  0x99   : > { %11260 = vst [vmem:[#allocation13_spill] sm:$0xff] %v6940_v56  ;;  %v6944_v58 = vpop.permute.xlu0 %375  ;;  %v7004_v56 = vld [vmem:[%s6746_s18 + $0x139] sm:$0xff] }
  0x9a   : > { %11261 = vst [vmem:[#allocation14_spill] sm:$0xff] %v6942_v57  ;;  %v7001_v57 = vld [vmem:[%s6746_s18 + $0x141] sm:$0xff] }
  0x9b   : > { %11262 = vst [vmem:[#allocation15_spill] sm:$0xff] %v6944_v58  ;;  %v6989_v58 = vld [vmem:[%s6746_s18 + $0x109] sm:$0xff] }
  0x9c   : > { %11272 = vst [vmem:[#allocation25_spill] sm:$0xff] %v7001_v57 }
  0x9e   : > { %718 = vperm.xlu2 %6076, %v6947_v59   ;;  %713 = vperm.xlu1 %6075, %v6950_v60  }
  0x9f   : > { %708 = vperm.xlu0 %6074, %v6953_v61  }
  0xa0   : > { %v6958_v62 = vpop.permute.xlu2 %455  ;;  %v6960_v63 = vpop.permute.xlu1 %405 }
  0xa1   : > { %11263 = vst [vmem:[#allocation16_spill] sm:$0xff] %v6958_v62  ;;  %v6962_v0 = vpop.permute.xlu0 %400  ;;  %v6986_v62 = vld [vmem:[%s6746_s18 + $0x111] sm:$0xff] }
  0xa2   : > { %11264 = vst [vmem:[#allocation17_spill] sm:$0xff] %v6960_v63  ;;  %v6983_v63 = vld [vmem:[%s6746_s18 + $0x121] sm:$0xff] }
  0xa3   : > { %11265 = vst [vmem:[#allocation18_spill] sm:$0xff] %v6962_v0 }
  0xa6   : > { %733 = vperm.xlu2 %6076, %v6965_v1   ;;  %728 = vperm.xlu1 %6075, %v6968_v4  }
  0xa7   : > { %723 = vperm.xlu0 %6074, %v6971_v7  }
  0xa8   : > { %v6976_v32 = vpop.permute.xlu2 %470  ;;  %v6978_v37 = vpop.permute.xlu1 %420 }
  0xa9   : > { %11266 = vst [vmem:[#allocation19_spill] sm:$0xff] %v6976_v32  ;;  %v6980_v0 = vpop.permute.xlu0 %415 }
  0xaa   : > { %11267 = vst [vmem:[#allocation20_spill] sm:$0xff] %v6978_v37 }
  0xab   : > { %11268 = vst [vmem:[#allocation21_spill] sm:$0xff] %v6980_v0 }
  0xae   : > { %748 = vperm.xlu2 %6076, %v6983_v63   ;;  %743 = vperm.xlu1 %6075, %v6986_v62  }
  0xaf   : > { %738 = vperm.xlu0 %6074, %v6989_v58  }
  0xb0   : > { %v6994_v32 = vpop.permute.xlu2 %485  ;;  %v6996_v37 = vpop.permute.xlu1 %435 }
  0xb1   : > { %11269 = vst [vmem:[#allocation22_spill] sm:$0xff] %v6994_v32  ;;  %v6998_v0 = vpop.permute.xlu0 %430 }
  0xb2   : > { %11270 = vst [vmem:[#allocation23_spill] sm:$0xff] %v6996_v37 }
  0xb3   : > { %11271 = vst [vmem:[#allocation24_spill] sm:$0xff] %v6998_v0 }
  0xb6   : > { %763 = vperm.xlu2 %6076, %v7001_v57   ;;  %758 = vperm.xlu1 %6075, %v7004_v56   ;;  %v7039_v57 = vld [vmem:[%s6746_s18 + $0x171] sm:$0xff] }
  0xb7   : > { %753 = vperm.xlu0 %6074, %v7007_v52   ;;  %11282 = vst [vmem:[#allocation35_spill] sm:$0xff] %v7039_v57 }
  0xb8   : > { %v7012_v32 = vpop.permute.xlu2 %500  ;;  %v7014_v37 = vpop.permute.xlu1 %450 }
  0xb9   : > { %11273 = vst [vmem:[#allocation26_spill] sm:$0xff] %v7012_v32  ;;  %v7016_v0 = vpop.permute.xlu0 %445 }
  0xba   : > { %11274 = vst [vmem:[#allocation27_spill] sm:$0xff] %v7014_v37 }
  0xbb   : > { %11275 = vst [vmem:[#allocation28_spill] sm:$0xff] %v7016_v0 }
  0xbe   : > { %778 = vperm.xlu2 %6076, %v7019_v51   ;;  %773 = vperm.xlu1 %6075, %v7022_v50   ;;  %v7055_v50 = vld [vmem:[%s6746_s18 + $0x1a] sm:$0xff] }
  0xbf   : > { %768 = vperm.xlu0 %6074, %v7025_v46   ;;  %11288 = vst [vmem:[#allocation41_spill] sm:$0xff] %v7055_v50 }
  0xc0   : > { %v7030_v32 = vpop.permute.xlu2 %515  ;;  %v7032_v37 = vpop.permute.xlu1 %465 }
  0xc1   : > { %11279 = vst [vmem:[#allocation32_spill] sm:$0xff] %v7030_v32  ;;  %v7034_v0 = vpop.permute.xlu0 %460 }
  0xc2   : > { %11280 = vst [vmem:[#allocation33_spill] sm:$0xff] %v7032_v37  ;;  %v7049_v37 = vld [vmem:[%s6746_s18 + $0x32] sm:$0xff] }
  0xc3   : > { %11281 = vst [vmem:[#allocation34_spill] sm:$0xff] %v7034_v0  ;;  %v7052_v0 = vld [vmem:[%s6746_s18 + $0x22] sm:$0xff] }
  0xc4   : > { %11286 = vst [vmem:[#allocation39_spill] sm:$0xff] %v7049_v37 }
  0xc5   : > { %11287 = vst [vmem:[#allocation40_spill] sm:$0xff] %v7052_v0 }
  0xc6   : > { %891 = vperm.xlu2 %6076, %v852_v42   ;;  %886 = vperm.xlu1 %6075, %v851_v38  }
  0xc7   : > { %783 = vperm.xlu0 %6074, %v7039_v57   ;;  %v7073_v57 = vld [vmem:[%s6746_s18 + $0x3a] sm:$0xff] }
  0xc8   : > { %v7042_v51 = vpop.permute.xlu2 %628  ;;  %v7044_v46 = vpop.permute.xlu1 %480  ;;  %11294 = vst [vmem:[#allocation47_spill] sm:$0xff] %v7073_v57 }
  0xc9   : > { %11283 = vst [vmem:[#allocation36_spill] sm:$0xff] %v7042_v51  ;;  %v7046_v32 = vpop.permute.xlu0 %475  ;;  %v7070_v51 = vld [vmem:[%s6746_s18 + $0x4a] sm:$0xff] }
  0xca   : > { %11284 = vst [vmem:[#allocation37_spill] sm:$0xff] %v7044_v46  ;;  %v7067_v46 = vld [vmem:[%s6746_s18 + $0x52] sm:$0xff] }
  0xcb   : > { %11285 = vst [vmem:[#allocation38_spill] sm:$0xff] %v7046_v32 }
  0xcc   : > { %11292 = vst [vmem:[#allocation45_spill] sm:$0xff] %v7067_v46 }
  0xcd   : > { %11293 = vst [vmem:[#allocation46_spill] sm:$0xff] %v7070_v51 }
  0xce   : > { %906 = vperm.xlu2 %6076, %v7049_v37   ;;  %901 = vperm.xlu1 %6075, %v7052_v0   ;;  %v7085_v37 = vld [vmem:[%s6746_s18 + $0x7a] sm:$0xff]  ;;  %v7091_v0 = vld [vmem:[%s6746_s18 + $0x62] sm:$0xff] }
  0xcf   : > { %896 = vperm.xlu0 %6074, %v7055_v50   ;;  %11298 = vst [vmem:[#allocation51_spill] sm:$0xff] %v7085_v37  ;;  %v7088_v50 = vld [vmem:[%s6746_s18 + $0x6a] sm:$0xff] }
  0xd0   : > { %v7060_v38 = vpop.permute.xlu2 %643  ;;  %v7062_v42 = vpop.permute.xlu1 %495  ;;  %11299 = vst [vmem:[#allocation52_spill] sm:$0xff] %v7088_v50 }
  0xd1   : > { %11289 = vst [vmem:[#allocation42_spill] sm:$0xff] %v7060_v38  ;;  %v7064_v32 = vpop.permute.xlu0 %490 }
  0xd2   : > { %11290 = vst [vmem:[#allocation43_spill] sm:$0xff] %v7062_v42 }
  0xd3   : > { %11291 = vst [vmem:[#allocation44_spill] sm:$0xff] %v7064_v32 }
  0xd4   : > { %11300 = vst [vmem:[#allocation53_spill] sm:$0xff] %v7091_v0 }
  0xd6   : > { %921 = vperm.xlu2 %6076, %v7067_v46   ;;  %916 = vperm.xlu1 %6075, %v7070_v51   ;;  %v7103_v46 = vld [vmem:[%s6746_s18 + $0x9a] sm:$0xff]  ;;  %v7109_v51 = vld [vmem:[%s6746_s18 + $0x82] sm:$0xff] }
  0xd7   : > { %911 = vperm.xlu0 %6074, %v7073_v57   ;;  %11304 = vst [vmem:[#allocation57_spill] sm:$0xff] %v7103_v46  ;;  %v7106_v57 = vld [vmem:[%s6746_s18 + $0x92] sm:$0xff] }
  0xd8   : > { %v7078_v38 = vpop.permute.xlu2 %658  ;;  %v7080_v42 = vpop.permute.xlu1 %510  ;;  %11305 = vst [vmem:[#allocation58_spill] sm:$0xff] %v7106_v57 }
  0xd9   : > { %11295 = vst [vmem:[#allocation48_spill] sm:$0xff] %v7078_v38  ;;  %v7082_v32 = vpop.permute.xlu0 %505 }
  0xda   : > { %11296 = vst [vmem:[#allocation49_spill] sm:$0xff] %v7080_v42 }
  0xdb   : > { %11297 = vst [vmem:[#allocation50_spill] sm:$0xff] %v7082_v32 }
  0xdc   : > { %11306 = vst [vmem:[#allocation59_spill] sm:$0xff] %v7109_v51 }
  0xde   : > { %936 = vperm.xlu2 %6076, %v7085_v37   ;;  %931 = vperm.xlu1 %6075, %v7088_v50   ;;  %v7121_v37 = vld [vmem:[%s6746_s18 + $0xc2] sm:$0xff]  ;;  %v7127_v50 = vld [vmem:[%s6746_s18 + $0xaa] sm:$0xff] }
  0xdf   : > { %926 = vperm.xlu0 %6074, %v7091_v0   ;;  %11310 = vst [vmem:[#allocation63_spill] sm:$0xff] %v7121_v37  ;;  %v7124_v0 = vld [vmem:[%s6746_s18 + $0xb2] sm:$0xff] }
  0xe0   : > { %v7096_v38 = vpop.permute.xlu2 %673  ;;  %v7098_v42 = vpop.permute.xlu1 %525  ;;  %11311 = vst [vmem:[#allocation64_spill] sm:$0xff] %v7124_v0 }
  0xe1   : > { %11301 = vst [vmem:[#allocation54_spill] sm:$0xff] %v7096_v38  ;;  %v7100_v32 = vpop.permute.xlu0 %520 }
  0xe2   : > { %11302 = vst [vmem:[#allocation55_spill] sm:$0xff] %v7098_v42 }
  0xe3   : > { %11303 = vst [vmem:[#allocation56_spill] sm:$0xff] %v7100_v32 }
  0xe4   : > { %11312 = vst [vmem:[#allocation65_spill] sm:$0xff] %v7127_v50 }
  0xe6   : > { %951 = vperm.xlu2 %6076, %v7103_v46   ;;  %946 = vperm.xlu1 %6075, %v7106_v57   ;;  %v7139_v46 = vld [vmem:[%s6746_s18 + $0xe2] sm:$0xff]  ;;  %v7145_v57 = vld [vmem:[%s6746_s18 + $0xca] sm:$0xff] }
  0xe7   : > { %941 = vperm.xlu0 %6074, %v7109_v51   ;;  %11316 = vst [vmem:[#allocation69_spill] sm:$0xff] %v7139_v46  ;;  %v7142_v51 = vld [vmem:[%s6746_s18 + $0xda] sm:$0xff] }
  0xe8   : > { %v7114_v38 = vpop.permute.xlu2 %688  ;;  %v7116_v42 = vpop.permute.xlu1 %638  ;;  %11317 = vst [vmem:[#allocation70_spill] sm:$0xff] %v7142_v51 }
  0xe9   : > { %11307 = vst [vmem:[#allocation60_spill] sm:$0xff] %v7114_v38  ;;  %v7118_v32 = vpop.permute.xlu0 %633 }
  0xea   : > { %11308 = vst [vmem:[#allocation61_spill] sm:$0xff] %v7116_v42 }
  0xeb   : > { %11309 = vst [vmem:[#allocation62_spill] sm:$0xff] %v7118_v32 }
  0xec   : > { %11318 = vst [vmem:[#allocation71_spill] sm:$0xff] %v7145_v57 }
  0xee   : > { %966 = vperm.xlu2 %6076, %v7121_v37   ;;  %961 = vperm.xlu1 %6075, %v7124_v0   ;;  %v7157_v37 = vld [vmem:[%s6746_s18 + $0x10a] sm:$0xff]  ;;  %v7163_v0 = vld [vmem:[%s6746_s18 + $0xf2] sm:$0xff] }
  0xef   : > { %956 = vperm.xlu0 %6074, %v7127_v50   ;;  %11322 = vst [vmem:[#allocation75_spill] sm:$0xff] %v7157_v37  ;;  %v7160_v50 = vld [vmem:[%s6746_s18 + $0xfa] sm:$0xff] }
  0xf0   : > { %v7132_v38 = vpop.permute.xlu2 %703  ;;  %v7134_v42 = vpop.permute.xlu1 %653  ;;  %11323 = vst [vmem:[#allocation76_spill] sm:$0xff] %v7160_v50 }
  0xf1   : > { %11313 = vst [vmem:[#allocation66_spill] sm:$0xff] %v7132_v38  ;;  %v7136_v32 = vpop.permute.xlu0 %648 }
  0xf2   : > { %11314 = vst [vmem:[#allocation67_spill] sm:$0xff] %v7134_v42 }
  0xf3   : > { %11315 = vst [vmem:[#allocation68_spill] sm:$0xff] %v7136_v32 }
  0xf4   : > { %11324 = vst [vmem:[#allocation77_spill] sm:$0xff] %v7163_v0 }
  0xf6   : > { %981 = vperm.xlu2 %6076, %v7139_v46   ;;  %976 = vperm.xlu1 %6075, %v7142_v51   ;;  %v7175_v46 = vld [vmem:[%s6746_s18 + $0x12a] sm:$0xff]  ;;  %v7181_v51 = vld [vmem:[%s6746_s18 + $0x112] sm:$0xff] }
  0xf7   : > { %971 = vperm.xlu0 %6074, %v7145_v57   ;;  %11328 = vst [vmem:[#allocation81_spill] sm:$0xff] %v7175_v46  ;;  %v7178_v57 = vld [vmem:[%s6746_s18 + $0x122] sm:$0xff] }
  0xf8   : > { %v7150_v38 = vpop.permute.xlu2 %718  ;;  %v7152_v42 = vpop.permute.xlu1 %668  ;;  %11329 = vst [vmem:[#allocation82_spill] sm:$0xff] %v7178_v57 }
  0xf9   : > { %11319 = vst [vmem:[#allocation72_spill] sm:$0xff] %v7150_v38  ;;  %v7154_v32 = vpop.permute.xlu0 %663 }
  0xfa   : > { %11320 = vst [vmem:[#allocation73_spill] sm:$0xff] %v7152_v42 }
  0xfb   : > { %11321 = vst [vmem:[#allocation74_spill] sm:$0xff] %v7154_v32 }
  0xfc   : > { %11330 = vst [vmem:[#allocation83_spill] sm:$0xff] %v7181_v51 }
  0xfe   : > { %996 = vperm.xlu2 %6076, %v7157_v37   ;;  %991 = vperm.xlu1 %6075, %v7160_v50   ;;  %v7193_v37 = vld [vmem:[%s6746_s18 + $0x152] sm:$0xff]  ;;  %v7199_v50 = vld [vmem:[%s6746_s18 + $0x13a] sm:$0xff] }
  0xff   : > { %986 = vperm.xlu0 %6074, %v7163_v0   ;;  %11334 = vst [vmem:[#allocation87_spill] sm:$0xff] %v7193_v37  ;;  %v7196_v0 = vld [vmem:[%s6746_s18 + $0x142] sm:$0xff] }
 0x100   : > { %v7168_v38 = vpop.permute.xlu2 %733  ;;  %v7170_v42 = vpop.permute.xlu1 %683  ;;  %11335 = vst [vmem:[#allocation88_spill] sm:$0xff] %v7199_v50 }
 0x101   : > { %11325 = vst [vmem:[#allocation78_spill] sm:$0xff] %v7168_v38  ;;  %v7172_v32 = vpop.permute.xlu0 %678 }
 0x102   : > { %11326 = vst [vmem:[#allocation79_spill] sm:$0xff] %v7170_v42 }
 0x103   : > { %11327 = vst [vmem:[#allocation80_spill] sm:$0xff] %v7172_v32 }
 0x106   : > { %1011 = vperm.xlu2 %6076, %v7175_v46   ;;  %1006 = vperm.xlu1 %6075, %v7178_v57   ;;  %v7217_v57 = vld [vmem:[%s6746_s18 + $0x15a] sm:$0xff] }
 0x107   : > { %1001 = vperm.xlu0 %6074, %v7181_v51  }
 0x108   : > { %v7186_v38 = vpop.permute.xlu2 %748  ;;  %v7188_v42 = vpop.permute.xlu1 %698 }
 0x109   : > { %11331 = vst [vmem:[#allocation84_spill] sm:$0xff] %v7186_v38  ;;  %v7190_v32 = vpop.permute.xlu0 %693 }
 0x10a   : > { %11332 = vst [vmem:[#allocation85_spill] sm:$0xff] %v7188_v42  ;;  %v7211_v42 = vld [vmem:[%s6746_s18 + $0x172] sm:$0xff] }
 0x10b   : > { %11333 = vst [vmem:[#allocation86_spill] sm:$0xff] %v7190_v32  ;;  %v7214_v32 = vld [vmem:[%s6746_s18 + $0x16a] sm:$0xff] }
 0x10c   : > { %11339 = vst [vmem:[#allocation92_spill] sm:$0xff] %v7211_v42 }
 0x10e   : > { %1026 = vperm.xlu2 %6076, %v7193_v37   ;;  %1021 = vperm.xlu1 %6075, %v7196_v0  }
 0x10f   : > { %1016 = vperm.xlu0 %6074, %v7199_v50  }
 0x110   : > { %v7204_v46 = vpop.permute.xlu2 %763  ;;  %v7206_v51 = vpop.permute.xlu1 %713 }
 0x111   : > { %11336 = vst [vmem:[#allocation89_spill] sm:$0xff] %v7204_v46  ;;  %v7208_v38 = vpop.permute.xlu0 %708 }
 0x112   : > { %11337 = vst [vmem:[#allocation90_spill] sm:$0xff] %v7206_v51 }
 0x113   : > { %11338 = vst [vmem:[#allocation91_spill] sm:$0xff] %v7208_v38 }
 0x116   : > { %1041 = vperm.xlu2 %6076, %v7211_v42   ;;  %1036 = vperm.xlu1 %6075, %v7214_v32  }
 0x117   : > { %1031 = vperm.xlu0 %6074, %v7217_v57  }
 0x118   : > { %v7222_v37 = vpop.permute.xlu2 %778  ;;  %v7224_v50 = vpop.permute.xlu1 %728 }
 0x119   : > { %11340 = vst [vmem:[#allocation93_spill] sm:$0xff] %v7224_v50  ;;  %v7226_v46 = vpop.permute.xlu0 %723 }
 0x11a   : > { %11341 = vst [vmem:[#allocation94_spill] sm:$0xff] %v7226_v46 }
 0x11e   : > { %1155 = vperm.xlu2 %6076, %v6749_v2   ;;  %1150 = vperm.xlu1 %6075, %v6761_v6  }
 0x11f   : > { %1145 = vperm.xlu0 %6074, %v6752_v3  }
 0x120   : > { %v7231_v38 = vpop.permute.xlu2 %891  ;;  %v7233_v51 = vpop.permute.xlu1 %743 }
 0x121   : > { %v7235_v42 = vpop.permute.xlu0 %738 }
 0x126   : > { %1170 = vperm.xlu2 %6076, %v6770_v9   ;;  %1165 = vperm.xlu1 %6075, %v6773_v10  }
 0x127   : > { %1160 = vperm.xlu0 %6074, %v6758_v5  }
 0x128   : > { %v7240_v50 = vpop.permute.xlu2 %906  ;;  %v7242_v46 = vpop.permute.xlu1 %758 }
 0x129   : > { %v7244_v2 = vpop.permute.xlu0 %753 }
 0x12e   : > { %1185 = vperm.xlu2 %6076, %v6782_v12   ;;  %1180 = vperm.xlu1 %6075, %v6785_v13  }
 0x12f   : > { %1175 = vperm.xlu0 %6074, %v6767_v8  }
 0x130   : > { %v7249_v3 = vpop.permute.xlu2 %921  ;;  %v7251_v6 = vpop.permute.xlu1 %773 }
 0x131   : > { %v7253_v9 = vpop.permute.xlu0 %768 }
 0x136   : > { %1200 = vperm.xlu2 %6076, %v6794_v15   ;;  %1195 = vperm.xlu1 %6075, %v6797_v16  }
 0x137   : > { %1190 = vperm.xlu0 %6074, %v6779_v11  }
 0x138   : > { %v7258_v5 = vpop.permute.xlu2 %936  ;;  %v7260_v10 = vpop.permute.xlu1 %886 }
 0x139   : > { %v7262_v12 = vpop.permute.xlu0 %783 }
 0x13e   : > { %1215 = vperm.xlu2 %6076, %v6806_v18   ;;  %1210 = vperm.xlu1 %6075, %v6809_v19  }
 0x13f   : > { %1205 = vperm.xlu0 %6074, %v6791_v14  }
 0x140   : > { %v7267_v8 = vpop.permute.xlu2 %951  ;;  %v7269_v13 = vpop.permute.xlu1 %901 }
 0x141   : > { %11342 = vst [vmem:[#allocation95_spill] sm:$0xff] %v7267_v8  ;;  %v7271_v15 = vpop.permute.xlu0 %896  ;;  %v11599_v8 = vld [vmem:[#allocation89_spill] sm:$0xff] }
 0x142   : > { %11343 = vst [vmem:[#allocation96_spill] sm:$0xff] %v7269_v13 }
 0x143   : > { %11344 = vst [vmem:[#allocation97_spill] sm:$0xff] %v7271_v15 }
 0x146   : > { %1230 = vperm.xlu2 %6076, %v6818_v21   ;;  %1225 = vperm.xlu1 %6075, %v6821_v22  }
 0x147   : > { %1220 = vperm.xlu0 %6074, %v6803_v17  }
 0x148   : > { %v7276_v11 = vpop.permute.xlu2 %966  ;;  %v7278_v16 = vpop.permute.xlu1 %916 }
 0x149   : > { %11345 = vst [vmem:[#allocation98_spill] sm:$0xff] %v7276_v11  ;;  %v7280_v18 = vpop.permute.xlu0 %911  ;;  %v11592_v11 = vld [vmem:[#allocation74_spill] sm:$0xff] }
 0x14a   : > { %11346 = vst [vmem:[#allocation99_spill] sm:$0xff] %v7278_v16  ;;  %v11591_v16 = vld [vmem:[#allocation73_spill] sm:$0xff] }
 0x14b   : > { %11347 = vst [vmem:[#allocation100_spill] sm:$0xff] %v7280_v18 }
 0x14e   : > { %1245 = vperm.xlu2 %6076, %v6830_v24   ;;  %1240 = vperm.xlu1 %6075, %v6833_v25  }
 0x14f   : > { %1235 = vperm.xlu0 %6074, %v6815_v20  }
 0x150   : > { %v7285_v14 = vpop.permute.xlu2 %981  ;;  %v7287_v19 = vpop.permute.xlu1 %931 }
 0x151   : > { %11348 = vst [vmem:[#allocation101_spill] sm:$0xff] %v7285_v14  ;;  %v7289_v21 = vpop.permute.xlu0 %926 }
 0x152   : > { %11349 = vst [vmem:[#allocation102_spill] sm:$0xff] %v7287_v19 }
 0x153   : > { %11350 = vst [vmem:[#allocation103_spill] sm:$0xff] %v7289_v21 }
 0x156   : > { %1260 = vperm.xlu2 %6076, %v6842_v27   ;;  %1255 = vperm.xlu1 %6075, %v6845_v28  }
 0x157   : > { %1250 = vperm.xlu0 %6074, %v6827_v23  }
 0x158   : > { %v7294_v17 = vpop.permute.xlu2 %996  ;;  %v7296_v22 = vpop.permute.xlu1 %946 }
 0x159   : > { %11351 = vst [vmem:[#allocation104_spill] sm:$0xff] %v7294_v17  ;;  %v7298_v24 = vpop.permute.xlu0 %941 }
 0x15a   : > { %11352 = vst [vmem:[#allocation105_spill] sm:$0xff] %v7296_v22 }
 0x15b   : > { %11353 = vst [vmem:[#allocation106_spill] sm:$0xff] %v7298_v24  ;;  %v11566_v24 = vld [vmem:[#allocation37_spill] sm:$0xff] }
 0x15e   : > { %1275 = vperm.xlu2 %6076, %v6854_v30   ;;  %1270 = vperm.xlu1 %6075, %v6857_v31   ;;  %v7319_v31 = vld [vmem:[%s6746_s18 + $0x188] sm:$0xff] }
 0x15f   : > { %1265 = vperm.xlu0 %6074, %v6839_v26   ;;  %v7322_v26 = vld [vmem:[%s6746_s18 + $0x180] sm:$0xff] }
 0x160   : > { %v7303_v20 = vpop.permute.xlu2 %1011  ;;  %v7305_v25 = vpop.permute.xlu1 %961 }
 0x161   : > { %11354 = vst [vmem:[#allocation107_spill] sm:$0xff] %v7303_v20  ;;  %v7307_v27 = vpop.permute.xlu0 %956  ;;  %v11565_v20 = vld [vmem:[#allocation34_spill] sm:$0xff] }
 0x162   : > { %11355 = vst [vmem:[#allocation108_spill] sm:$0xff] %v7305_v25 }
 0x163   : > { %11356 = vst [vmem:[#allocation109_spill] sm:$0xff] %v7307_v27 }
 0x166   : > { %1290 = vperm.xlu2 %6076, %v6864_v33   ;;  %1285 = vperm.xlu1 %6075, %v6867_v34  }
 0x167   : > { %1280 = vperm.xlu0 %6074, %v6851_v29  }
 0x168   : > { %v7312_v23 = vpop.permute.xlu2 %1026  ;;  %v7314_v28 = vpop.permute.xlu1 %976 }
 0x169   : > { %11357 = vst [vmem:[#allocation110_spill] sm:$0xff] %v7312_v23  ;;  %v7316_v30 = vpop.permute.xlu0 %971 }
 0x16a   : > { %11358 = vst [vmem:[#allocation111_spill] sm:$0xff] %v7314_v28 }
 0x16b   : > { %11359 = vst [vmem:[#allocation112_spill] sm:$0xff] %v7316_v30 }
 0x16e   : > { %1403 = vperm.xlu2 %6076, %v6875_v36   ;;  %1300 = vperm.xlu1 %6075, %v7319_v31  }
 0x16f   : > { %1295 = vperm.xlu0 %6074, %v7322_v26  }
 0x170   : > { %v7327_v33 = vpop.permute.xlu2 %1041  ;;  %v7329_v34 = vpop.permute.xlu1 %991 }
 0x171   : > { %11360 = vst [vmem:[#allocation113_spill] sm:$0xff] %v7327_v33  ;;  %v7331_v29 = vpop.permute.xlu0 %986 }
 0x172   : > { %11361 = vst [vmem:[#allocation114_spill] sm:$0xff] %v7329_v34 }
 0x173   : > { %11362 = vst [vmem:[#allocation115_spill] sm:$0xff] %v7331_v29 }
 0x176   : > { %1418 = vperm.xlu2 %6076, %v6886_v40   ;;  %1413 = vperm.xlu1 %6075, %v6889_v41  }
 0x177   : > { %1408 = vperm.xlu0 %6074, %v6872_v35  }
 0x178   : > { %v7336_v30 = vpop.permute.xlu2 %1155  ;;  %v7338_v28 = vpop.permute.xlu1 %1006 }
 0x179   : > { %11363 = vst [vmem:[#allocation116_spill] sm:$0xff] %v7336_v30  ;;  %v7340_v36 = vpop.permute.xlu0 %1001  ;;  %v11558_v30 = vld [vmem:[#allocation26_spill] sm:$0xff] }
 0x17a   : > { %11364 = vst [vmem:[#allocation117_spill] sm:$0xff] %v7338_v28  ;;  %v11557_v28 = vld [vmem:[#allocation42_spill] sm:$0xff] }
 0x17b   : > { %11365 = vst [vmem:[#allocation118_spill] sm:$0xff] %v7340_v36 }
 0x17e   : > { %1433 = vperm.xlu2 %6076, %v6900_v44   ;;  %1428 = vperm.xlu1 %6075, %v6903_v45  }
 0x17f   : > { %1423 = vperm.xlu0 %6074, %v6883_v39  }
 0x180   : > { %v7345_v34 = vpop.permute.xlu2 %1170  ;;  %v7347_v29 = vpop.permute.xlu1 %1021 }
 0x181   : > { %11366 = vst [vmem:[#allocation119_spill] sm:$0xff] %v7345_v34  ;;  %v7349_v40 = vpop.permute.xlu0 %1016 }
 0x182   : > { %11367 = vst [vmem:[#allocation120_spill] sm:$0xff] %v7347_v29 }
 0x183   : > { %11368 = vst [vmem:[#allocation121_spill] sm:$0xff] %v7349_v40  ;;  %v11554_v40 = vld [vmem:[#allocation23_spill] sm:$0xff] }
 0x186   : > { %1448 = vperm.xlu2 %6076, %v6914_v48   ;;  %1443 = vperm.xlu1 %6075, %v6917_v49  }
 0x187   : > { %1438 = vperm.xlu0 %6074, %v6897_v43  }
 0x188   : > { %v7354_v35 = vpop.permute.xlu2 %1185  ;;  %v7356_v41 = vpop.permute.xlu1 %1036 }
 0x189   : > { %11369 = vst [vmem:[#allocation122_spill] sm:$0xff] %v7354_v35  ;;  %v7358_v44 = vpop.permute.xlu0 %1031 }
 0x18a   : > { %11370 = vst [vmem:[#allocation123_spill] sm:$0xff] %v7356_v41 }
 0x18b   : > { %11371 = vst [vmem:[#allocation124_spill] sm:$0xff] %v7358_v44  ;;  %v11389_v44 = vld [vmem:[#allocation25_spill] sm:$0xff] }
 0x18e   : > { %1463 = vperm.xlu2 %6076, %v6932_v54   ;;  %1458 = vperm.xlu1 %6075, %v6935_v55  }
 0x18f   : > { %1453 = vperm.xlu0 %6074, %v6911_v47  }
 0x190   : > { %v7363_v39 = vpop.permute.xlu2 %1200  ;;  %v7365_v45 = vpop.permute.xlu1 %1150 }
 0x191   : > { %11372 = vst [vmem:[#allocation125_spill] sm:$0xff] %v7363_v39  ;;  %v7367_v48 = vpop.permute.xlu0 %1145 }
 0x192   : > { %11373 = vst [vmem:[#allocation126_spill] sm:$0xff] %v7365_v45 }
 0x193   : > { %11374 = vst [vmem:[#allocation127_spill] sm:$0xff] %v7367_v48  ;;  %v11550_v48 = vld [vmem:[#allocation19_spill] sm:$0xff] }
 0x196   : > { %1478 = vperm.xlu2 %6076, %v6950_v60   ;;  %1473 = vperm.xlu1 %6075, %v6953_v61  }
 0x197   : > { %1468 = vperm.xlu0 %6074, %v6929_v53  }
 0x198   : > { %v7372_v43 = vpop.permute.xlu2 %1215  ;;  %v7374_v49 = vpop.permute.xlu1 %1165 }
 0x199   : > { %11375 = vst [vmem:[#allocation128_spill] sm:$0xff] %v7372_v43  ;;  %v7376_v54 = vpop.permute.xlu0 %1160  ;;  %v5936_v43 = vld [vmem:[%s6746_s18 + $0xe2] sm:$0xff] }
 0x19a   : > { %11376 = vst [vmem:[#allocation129_spill] sm:$0xff] %v7374_v49 }
 0x19b   : > { %11377 = vst [vmem:[#allocation130_spill] sm:$0xff] %v7376_v54 }
 0x19e   : > { %1493 = vperm.xlu2 %6076, %v6968_v4   ;;  %1488 = vperm.xlu1 %6075, %v6971_v7   ;;  %v11388_v7 = vld [vmem:[#allocation31_spill] sm:$0xff] }
 0x19f   : > { %1483 = vperm.xlu0 %6074, %v6947_v59  }
 0x1a0   : > { %v7381_v47 = vpop.permute.xlu2 %1230  ;;  %v7383_v55 = vpop.permute.xlu1 %1180 }
 0x1a1   : > { %11378 = vst [vmem:[#allocation131_spill] sm:$0xff] %v7381_v47  ;;  %v7385_v60 = vpop.permute.xlu0 %1175  ;;  %v11548_v47 = vld [vmem:[#allocation17_spill] sm:$0xff] }
 0x1a2   : > { %11379 = vst [vmem:[#allocation132_spill] sm:$0xff] %v7383_v55 }
 0x1a3   : > { %11380 = vst [vmem:[#allocation133_spill] sm:$0xff] %v7385_v60 }
 0x1a6   : > { %1508 = vperm.xlu2 %6076, %v6986_v62   ;;  %1503 = vperm.xlu1 %6075, %v6989_v58  }
 0x1a7   : > { %1498 = vperm.xlu0 %6074, %v6965_v1   ;;  %v11387_v1 = vld [vmem:[#allocation30_spill] sm:$0xff] }
 0x1a8   : > { %v7390_v53 = vpop.permute.xlu2 %1245  ;;  %v7392_v61 = vpop.permute.xlu1 %1195 }
 0x1a9   : > { %11381 = vst [vmem:[#allocation134_spill] sm:$0xff] %v7390_v53  ;;  %v7394_v4 = vpop.permute.xlu0 %1190  ;;  %v11410_v53 = vld [vmem:[#allocation53_spill] sm:$0xff] }
 0x1aa   : > { %11382 = vst [vmem:[#allocation135_spill] sm:$0xff] %v7392_v61 }
 0x1ab   : > { %11383 = vst [vmem:[#allocation136_spill] sm:$0xff] %v7394_v4 }
 0x1ae   : > { %1523 = vperm.xlu2 %6076, %v7004_v56   ;;  %1518 = vperm.xlu1 %6075, %v7007_v52  }
 0x1af   : > { %1513 = vperm.xlu0 %6074, %v6983_v63   ;;  %v7415_v63 = vld [vmem:[%s6746_s18 + $0x181] sm:$0xff] }
 0x1b0   : > { %v7399_v59 = vpop.permute.xlu2 %1260  ;;  %v7401_v62 = vpop.permute.xlu1 %1210 }
 0x1b1   : > { %11384 = vst [vmem:[#allocation137_spill] sm:$0xff] %v7399_v59  ;;  %v7403_v58 = vpop.permute.xlu0 %1205  ;;  %v11393_v59 = vld [vmem:[#allocation35_spill] sm:$0xff] }
 0x1b2   : > { %11385 = vst [vmem:[#allocation138_spill] sm:$0xff] %v7401_v62  ;;  %v11394_v62 = vld [vmem:[#allocation29_spill] sm:$0xff] }
 0x1b3   : > { %11386 = vst [vmem:[#allocation139_spill] sm:$0xff] %v7403_v58 }
 0x1b6   : > { %1538 = vperm.xlu2 %6076, %v11387_v1   ;;  %1533 = vperm.xlu1 %6075, %v11388_v7  }
 0x1b7   : > { %1528 = vperm.xlu0 %6074, %v11389_v44   ;;  %v7427_v44 = vld [vmem:[%s6746_s18 + $0x189] sm:$0xff] }
 0x1b8   : > { %v7408_v41 = vpop.permute.xlu2 %1275  ;;  %v7410_v56 = vpop.permute.xlu1 %1225 }
 0x1b9   : > { %11390 = vst [vmem:[#allocation30_spill] sm:$0xff] %v7408_v41  ;;  %v7412_v52 = vpop.permute.xlu0 %1220  ;;  %v11398_v41 = vld [vmem:[#allocation40_spill] sm:$0xff] }
 0x1ba   : > { %11391 = vst [vmem:[#allocation31_spill] sm:$0xff] %v7410_v56  ;;  %v11399_v56 = vld [vmem:[#allocation41_spill] sm:$0xff] }
 0x1bb   : > { %11392 = vst [vmem:[#allocation25_spill] sm:$0xff] %v7412_v52 }
 0x1be   : > { %1553 = vperm.xlu2 %6076, %v7415_v63   ;;  %1548 = vperm.xlu1 %6075, %v11393_v59  }
 0x1bf   : > { %1543 = vperm.xlu0 %6074, %v11394_v62   ;;  %v11403_v62 = vld [vmem:[#allocation46_spill] sm:$0xff] }
 0x1c0   : > { %v7420_v58 = vpop.permute.xlu2 %1290  ;;  %v7422_v1 = vpop.permute.xlu1 %1240 }
 0x1c1   : > { %11395 = vst [vmem:[#allocation35_spill] sm:$0xff] %v7420_v58  ;;  %v7424_v7 = vpop.permute.xlu0 %1235  ;;  %v11404_v58 = vld [vmem:[#allocation47_spill] sm:$0xff] }
 0x1c2   : > { %11396 = vst [vmem:[#allocation29_spill] sm:$0xff] %v7422_v1  ;;  %v11405_v1 = vld [vmem:[#allocation39_spill] sm:$0xff] }
 0x1c3   : > { %11397 = vst [vmem:[#allocation140_spill] sm:$0xff] %v7424_v7 }
 0x1c6   : > { %1666 = vperm.xlu2 %6076, %v11398_v41   ;;  %1661 = vperm.xlu1 %6075, %v11399_v56   ;;  %v11409_v56 = vld [vmem:[#allocation52_spill] sm:$0xff] }
 0x1c7   : > { %1558 = vperm.xlu0 %6074, %v7427_v44  }
 0x1c8   : > { %v7432_v52 = vpop.permute.xlu2 %1403  ;;  %v7434_v4 = vpop.permute.xlu1 %1255 }
 0x1c9   : > { %11400 = vst [vmem:[#allocation40_spill] sm:$0xff] %v7432_v52  ;;  %v7436_v59 = vpop.permute.xlu0 %1250  ;;  %v11411_v52 = vld [vmem:[#allocation45_spill] sm:$0xff] }
 0x1ca   : > { %11401 = vst [vmem:[#allocation41_spill] sm:$0xff] %v7434_v4 }
 0x1cb   : > { %11402 = vst [vmem:[#allocation141_spill] sm:$0xff] %v7436_v59 }
 0x1ce   : > { %1681 = vperm.xlu2 %6076, %v11403_v62   ;;  %1676 = vperm.xlu1 %6075, %v11404_v58   ;;  %v11415_v58 = vld [vmem:[#allocation58_spill] sm:$0xff] }
 0x1cf   : > { %1671 = vperm.xlu0 %6074, %v11405_v1   ;;  %v11416_v1 = vld [vmem:[#allocation59_spill] sm:$0xff] }
 0x1d0   : > { %v7441_v7 = vpop.permute.xlu2 %1418  ;;  %v7443_v61 = vpop.permute.xlu1 %1270 }
 0x1d1   : > { %11406 = vst [vmem:[#allocation46_spill] sm:$0xff] %v7441_v7  ;;  %v7445_v41 = vpop.permute.xlu0 %1265  ;;  %v11417_v7 = vld [vmem:[#allocation51_spill] sm:$0xff] }
 0x1d2   : > { %11407 = vst [vmem:[#allocation47_spill] sm:$0xff] %v7443_v61 }
 0x1d3   : > { %11408 = vst [vmem:[#allocation39_spill] sm:$0xff] %v7445_v41 }
 0x1d6   : > { %1696 = vperm.xlu2 %6076, %v11409_v56   ;;  %1691 = vperm.xlu1 %6075, %v11410_v53   ;;  %v11421_v53 = vld [vmem:[#allocation64_spill] sm:$0xff] }
 0x1d7   : > { %1686 = vperm.xlu0 %6074, %v11411_v52   ;;  %v11422_v52 = vld [vmem:[#allocation65_spill] sm:$0xff] }
 0x1d8   : > { %v7450_v4 = vpop.permute.xlu2 %1433  ;;  %v7452_v59 = vpop.permute.xlu1 %1285 }
 0x1d9   : > { %11412 = vst [vmem:[#allocation52_spill] sm:$0xff] %v7450_v4  ;;  %v7454_v62 = vpop.permute.xlu0 %1280  ;;  %v11423_v4 = vld [vmem:[#allocation57_spill] sm:$0xff] }
 0x1da   : > { %11413 = vst [vmem:[#allocation53_spill] sm:$0xff] %v7452_v59 }
 0x1db   : > { %11414 = vst [vmem:[#allocation45_spill] sm:$0xff] %v7454_v62 }
 0x1de   : > { %1711 = vperm.xlu2 %6076, %v11415_v58   ;;  %1706 = vperm.xlu1 %6075, %v11416_v1   ;;  %v11427_v1 = vld [vmem:[#allocation70_spill] sm:$0xff] }
 0x1df   : > { %1701 = vperm.xlu0 %6074, %v11417_v7   ;;  %v11428_v7 = vld [vmem:[#allocation71_spill] sm:$0xff] }
 0x1e0   : > { %v7459_v61 = vpop.permute.xlu2 %1448  ;;  %v7461_v41 = vpop.permute.xlu1 %1300 }
 0x1e1   : > { %11418 = vst [vmem:[#allocation58_spill] sm:$0xff] %v7459_v61  ;;  %v7463_v56 = vpop.permute.xlu0 %1295  ;;  %v11429_v61 = vld [vmem:[#allocation63_spill] sm:$0xff] }
 0x1e2   : > { %11419 = vst [vmem:[#allocation59_spill] sm:$0xff] %v7461_v41 }
 0x1e3   : > { %11420 = vst [vmem:[#allocation51_spill] sm:$0xff] %v7463_v56 }
 0x1e6   : > { %1726 = vperm.xlu2 %6076, %v11421_v53   ;;  %1721 = vperm.xlu1 %6075, %v11422_v52   ;;  %v11433_v52 = vld [vmem:[#allocation76_spill] sm:$0xff] }
 0x1e7   : > { %1716 = vperm.xlu0 %6074, %v11423_v4   ;;  %v11434_v4 = vld [vmem:[#allocation77_spill] sm:$0xff] }
 0x1e8   : > { %v7468_v59 = vpop.permute.xlu2 %1463  ;;  %v7470_v62 = vpop.permute.xlu1 %1413 }
 0x1e9   : > { %11424 = vst [vmem:[#allocation64_spill] sm:$0xff] %v7468_v59  ;;  %v7472_v58 = vpop.permute.xlu0 %1408  ;;  %v11435_v59 = vld [vmem:[#allocation69_spill] sm:$0xff] }
 0x1ea   : > { %11425 = vst [vmem:[#allocation65_spill] sm:$0xff] %v7470_v62 }
 0x1eb   : > { %11426 = vst [vmem:[#allocation57_spill] sm:$0xff] %v7472_v58  ;;  %v11547_v58 = vld [vmem:[#allocation16_spill] sm:$0xff] }
 0x1ee   : > { %1741 = vperm.xlu2 %6076, %v11427_v1   ;;  %1736 = vperm.xlu1 %6075, %v11428_v7   ;;  %v11439_v7 = vld [vmem:[#allocation82_spill] sm:$0xff] }
 0x1ef   : > { %1731 = vperm.xlu0 %6074, %v11429_v61   ;;  %v11440_v61 = vld [vmem:[#allocation83_spill] sm:$0xff] }
 0x1f0   : > { %v7477_v41 = vpop.permute.xlu2 %1478  ;;  %v7479_v56 = vpop.permute.xlu1 %1428 }
 0x1f1   : > { %11430 = vst [vmem:[#allocation70_spill] sm:$0xff] %v7477_v41  ;;  %v7481_v53 = vpop.permute.xlu0 %1423  ;;  %v11441_v41 = vld [vmem:[#allocation75_spill] sm:$0xff] }
 0x1f2   : > { %11431 = vst [vmem:[#allocation71_spill] sm:$0xff] %v7479_v56 }
 0x1f3   : > { %11432 = vst [vmem:[#allocation63_spill] sm:$0xff] %v7481_v53 }
 0x1f6   : > { %1756 = vperm.xlu2 %6076, %v11433_v52   ;;  %1751 = vperm.xlu1 %6075, %v11434_v4  }
 0x1f7   : > { %1746 = vperm.xlu0 %6074, %v11435_v59   ;;  %v11445_v59 = vld [vmem:[#allocation88_spill] sm:$0xff] }
 0x1f8   : > { %v7486_v62 = vpop.permute.xlu2 %1493  ;;  %v7488_v60 = vpop.permute.xlu1 %1443 }
 0x1f9   : > { %11436 = vst [vmem:[#allocation76_spill] sm:$0xff] %v7486_v62  ;;  %v7490_v1 = vpop.permute.xlu0 %1438 }
 0x1fa   : > { %11437 = vst [vmem:[#allocation77_spill] sm:$0xff] %v7488_v60  ;;  %v11446_v60 = vld [vmem:[#allocation81_spill] sm:$0xff] }
 0x1fb   : > { %11438 = vst [vmem:[#allocation69_spill] sm:$0xff] %v7490_v1  ;;  %v5864_v1 = vld [vmem:[%s6746_s18 + $0x80] sm:$0xff] }
 0x1fe   : > { %1771 = vperm.xlu2 %6076, %v11439_v7   ;;  %1766 = vperm.xlu1 %6075, %v11440_v61   ;;  %v11450_v61 = vld [vmem:[#allocation87_spill] sm:$0xff] }
 0x1ff   : > { %1761 = vperm.xlu0 %6074, %v11441_v41  }
 0x200   : > { %v7495_v56 = vpop.permute.xlu2 %1508  ;;  %v7497_v52 = vpop.permute.xlu1 %1458 }
 0x201   : > { %11442 = vst [vmem:[#allocation82_spill] sm:$0xff] %v7495_v56  ;;  %v7499_v4 = vpop.permute.xlu0 %1453  ;;  %v5861_v56 = vld [vmem:[%s6746_s18 + $0x60] sm:$0xff] }
 0x202   : > { %11443 = vst [vmem:[#allocation83_spill] sm:$0xff] %v7497_v52 }
 0x203   : > { %11444 = vst [vmem:[#allocation75_spill] sm:$0xff] %v7499_v4 }
 0x206   : > { %1786 = vperm.xlu2 %6076, %v7196_v0   ;;  %1781 = vperm.xlu1 %6075, %v11445_v59  }
 0x207   : > { %1776 = vperm.xlu0 %6074, %v11446_v60  }
 0x208   : > { %v7504_v62 = vpop.permute.xlu2 %1523  ;;  %v7506_v7 = vpop.permute.xlu1 %1473 }
 0x209   : > { %11447 = vst [vmem:[#allocation88_spill] sm:$0xff] %v7504_v62  ;;  %v7508_v41 = vpop.permute.xlu0 %1468  ;;  %v7520_v62 = vld [vmem:[%s6746_s18 + $0x18a] sm:$0xff] }
 0x20a   : > { %11448 = vst [vmem:[#allocation81_spill] sm:$0xff] %v7506_v7  ;;  %v7523_v7 = vld [vmem:[%s6746_s18 + $0x182] sm:$0xff] }
 0x20b   : > { %11449 = vst [vmem:[#allocation142_spill] sm:$0xff] %v7508_v41  ;;  %v5857_v41 = vld [vmem:[%s6746_s18 + $0x30] sm:$0xff] }
 0x20c   : > { %11454 = vst [vmem:[#allocation145_spill] sm:$0xff] %v7520_v62 }
 0x20d   : > { %11455 = vst [vmem:[#allocation146_spill] sm:$0xff] %v7523_v7 }
 0x20e   : > { %1801 = vperm.xlu2 %6076, %v7214_v32   ;;  %1796 = vperm.xlu1 %6075, %v7217_v57   ;;  %v11456_v32 = vld [vmem:[#allocation92_spill] sm:$0xff] }
 0x20f   : > { %1791 = vperm.xlu0 %6074, %v11450_v61  }
 0x210   : > { %v7513_v0 = vpop.permute.xlu2 %1538  ;;  %v7515_v59 = vpop.permute.xlu1 %1488 }
 0x211   : > { %11451 = vst [vmem:[#allocation87_spill] sm:$0xff] %v7513_v0  ;;  %v7517_v60 = vpop.permute.xlu0 %1483 }
 0x212   : > { %11452 = vst [vmem:[#allocation143_spill] sm:$0xff] %v7515_v59  ;;  %v5858_v59 = vld [vmem:[%s6746_s18 + $0x38] sm:$0xff] }
 0x213   : > { %11453 = vst [vmem:[#allocation144_spill] sm:$0xff] %v7517_v60  ;;  %v5859_v60 = vld [vmem:[%s6746_s18 + $0x48] sm:$0xff] }
 0x216   : > { %1816 = vperm.xlu2 %6076, %v7520_v62   ;;  %1811 = vperm.xlu1 %6075, %v7523_v7   ;;  %v11559_v7 = vld [vmem:[#allocation27_spill] sm:$0xff] }
 0x217   : > { %1806 = vperm.xlu0 %6074, %v11456_v32  }
 0x218   : > { %v7528_v57 = vpop.permute.xlu2 %1553  ;;  %v7530_v61 = vpop.permute.xlu1 %1503 }
 0x219   : > { %11457 = vst [vmem:[#allocation92_spill] sm:$0xff] %v7528_v57  ;;  %v7532_v0 = vpop.permute.xlu0 %1498  ;;  %v5862_v57 = vld [vmem:[%s6746_s18 + $0x68] sm:$0xff] }
 0x21a   : > { %11458 = vst [vmem:[#allocation147_spill] sm:$0xff] %v7530_v61  ;;  %v5860_v61 = vld [vmem:[%s6746_s18 + $0x50] sm:$0xff] }
 0x21b   : > { %11459 = vst [vmem:[#allocation148_spill] sm:$0xff] %v7532_v0  ;;  %v5865_v0 = vld [vmem:[%s6746_s18 + $0x90] sm:$0xff] }
 0x21e   : > { %1930 = vperm.xlu2 %6076, %v5859_v60   ;;  %1925 = vperm.xlu1 %6075, %v5858_v59  }
 0x21f   : > { %1920 = vperm.xlu0 %6074, %v5857_v41  }
 0x220   : > { %v7537_v4 = vpop.permute.xlu2 %1666  ;;  %v7539_v52 = vpop.permute.xlu1 %1518 }
 0x221   : > { %11460 = vst [vmem:[#allocation149_spill] sm:$0xff] %v7537_v4  ;;  %v7541_v32 = vpop.permute.xlu0 %1513 }
 0x222   : > { %11461 = vst [vmem:[#allocation150_spill] sm:$0xff] %v7539_v52  ;;  %v5863_v52 = vld [vmem:[%s6746_s18 + $0x78] sm:$0xff] }
 0x223   : > { %11462 = vst [vmem:[#allocation151_spill] sm:$0xff] %v7541_v32  ;;  %v5868_v32 = vld [vmem:[%s6746_s18 + $0xb0] sm:$0xff] }
 0x226   : > { %1945 = vperm.xlu2 %6076, %v5862_v57   ;;  %1940 = vperm.xlu1 %6075, %v5861_v56  }
 0x227   : > { %1935 = vperm.xlu0 %6074, %v5860_v61  }
 0x228   : > { %v7546_v60 = vpop.permute.xlu2 %1681  ;;  %v7548_v59 = vpop.permute.xlu1 %1533 }
 0x229   : > { %11463 = vst [vmem:[#allocation152_spill] sm:$0xff] %v7546_v60  ;;  %v7550_v41 = vpop.permute.xlu0 %1528  ;;  %v5867_v60 = vld [vmem:[%s6746_s18 + $0xa8] sm:$0xff] }
 0x22a   : > { %11464 = vst [vmem:[#allocation153_spill] sm:$0xff] %v7548_v59  ;;  %v5866_v59 = vld [vmem:[%s6746_s18 + $0x98] sm:$0xff] }
 0x22b   : > { %11465 = vst [vmem:[#allocation154_spill] sm:$0xff] %v7550_v41  ;;  %v5871_v41 = vld [vmem:[%s6746_s18 + $0xd8] sm:$0xff] }
 0x22e   : > { %1960 = vperm.xlu2 %6076, %v5865_v0   ;;  %1955 = vperm.xlu1 %6075, %v5864_v1  }
 0x22f   : > { %1950 = vperm.xlu0 %6074, %v5863_v52  }
 0x230   : > { %v7555_v57 = vpop.permute.xlu2 %1696  ;;  %v7557_v56 = vpop.permute.xlu1 %1548 }
 0x231   : > { %11466 = vst [vmem:[#allocation155_spill] sm:$0xff] %v7555_v57  ;;  %v7559_v61 = vpop.permute.xlu0 %1543  ;;  %v5870_v57 = vld [vmem:[%s6746_s18 + $0xc8] sm:$0xff] }
 0x232   : > { %11467 = vst [vmem:[#allocation156_spill] sm:$0xff] %v7557_v56  ;;  %v5869_v56 = vld [vmem:[%s6746_s18 + $0xc0] sm:$0xff] }
 0x233   : > { %11468 = vst [vmem:[#allocation157_spill] sm:$0xff] %v7559_v61  ;;  %v5874_v61 = vld [vmem:[%s6746_s18 + $0xf8] sm:$0xff] }
 0x236   : > { %1975 = vperm.xlu2 %6076, %v5868_v32   ;;  %1970 = vperm.xlu1 %6075, %v5867_v60  }
 0x237   : > { %1965 = vperm.xlu0 %6074, %v5866_v59  }
 0x238   : > { %v7564_v0 = vpop.permute.xlu2 %1711  ;;  %v7566_v1 = vpop.permute.xlu1 %1661 }
 0x239   : > { %11469 = vst [vmem:[#allocation158_spill] sm:$0xff] %v7564_v0  ;;  %v7568_v52 = vpop.permute.xlu0 %1558  ;;  %v5873_v0 = vld [vmem:[%s6746_s18 + $0xf0] sm:$0xff] }
 0x23a   : > { %11470 = vst [vmem:[#allocation159_spill] sm:$0xff] %v7566_v1  ;;  %v5872_v1 = vld [vmem:[%s6746_s18 + $0xe0] sm:$0xff] }
 0x23b   : > { %11471 = vst [vmem:[#allocation160_spill] sm:$0xff] %v7568_v52  ;;  %v5877_v52 = vld [vmem:[%s6746_s18 + $0x120] sm:$0xff] }
 0x23e   : > { %1990 = vperm.xlu2 %6076, %v5871_v41   ;;  %1985 = vperm.xlu1 %6075, %v5870_v57  }
 0x23f   : > { %1980 = vperm.xlu0 %6074, %v5869_v56  }
 0x240   : > { %v7573_v32 = vpop.permute.xlu2 %1726  ;;  %v7575_v60 = vpop.permute.xlu1 %1676 }
 0x241   : > { %11472 = vst [vmem:[#allocation161_spill] sm:$0xff] %v7573_v32  ;;  %v7577_v59 = vpop.permute.xlu0 %1671  ;;  %v5876_v32 = vld [vmem:[%s6746_s18 + $0x110] sm:$0xff] }
 0x242   : > { %11473 = vst [vmem:[#allocation162_spill] sm:$0xff] %v7575_v60  ;;  %v5875_v60 = vld [vmem:[%s6746_s18 + $0x108] sm:$0xff] }
 0x243   : > { %11474 = vst [vmem:[#allocation163_spill] sm:$0xff] %v7577_v59  ;;  %v5879_v59 = vld [vmem:[%s6746_s18 + $0x138] sm:$0xff] }
 0x246   : > { %2005 = vperm.xlu2 %6076, %v5874_v61   ;;  %2000 = vperm.xlu1 %6075, %v5873_v0  }
 0x247   : > { %1995 = vperm.xlu0 %6074, %v5872_v1  }
 0x248   : > { %v7582_v41 = vpop.permute.xlu2 %1741  ;;  %v7584_v57 = vpop.permute.xlu1 %1691 }
 0x249   : > { %11475 = vst [vmem:[#allocation164_spill] sm:$0xff] %v7582_v41  ;;  %v7586_v56 = vpop.permute.xlu0 %1686  ;;  %v5880_v41 = vld [vmem:[%s6746_s18 + $0x140] sm:$0xff] }
 0x24a   : > { %11476 = vst [vmem:[#allocation165_spill] sm:$0xff] %v7584_v57  ;;  %v5878_v57 = vld [vmem:[%s6746_s18 + $0x128] sm:$0xff] }
 0x24b   : > { %11477 = vst [vmem:[#allocation166_spill] sm:$0xff] %v7586_v56 }
 0x24e   : > { %2020 = vperm.xlu2 %6076, %v5877_v52   ;;  %2015 = vperm.xlu1 %6075, %v5876_v32  }
 0x24f   : > { %2010 = vperm.xlu0 %6074, %v5875_v60   ;;  %v5883_v60 = vld [vmem:[%s6746_s18 + $0x168] sm:$0xff] }
 0x250   : > { %v7591_v61 = vpop.permute.xlu2 %1756  ;;  %v7593_v0 = vpop.permute.xlu1 %1706 }
 0x251   : > { %11478 = vst [vmem:[#allocation167_spill] sm:$0xff] %v7591_v61  ;;  %v7595_v1 = vpop.permute.xlu0 %1701  ;;  %v5882_v61 = vld [vmem:[%s6746_s18 + $0x158] sm:$0xff] }
 0x252   : > { %11479 = vst [vmem:[#allocation168_spill] sm:$0xff] %v7593_v0  ;;  %v5881_v0 = vld [vmem:[%s6746_s18 + $0x150] sm:$0xff] }
 0x253   : > { %11480 = vst [vmem:[#allocation169_spill] sm:$0xff] %v7595_v1 }
 0x256   : > { %2035 = vperm.xlu2 %6076, %v5880_v41   ;;  %2030 = vperm.xlu1 %6075, %v5879_v59  }
 0x257   : > { %2025 = vperm.xlu0 %6074, %v5878_v57   ;;  %v5884_v57 = vld [vmem:[%s6746_s18 + $0x170] sm:$0xff] }
 0x258   : > { %v7600_v56 = vpop.permute.xlu2 %1771  ;;  %v7602_v52 = vpop.permute.xlu1 %1721 }
 0x259   : > { %11481 = vst [vmem:[#allocation170_spill] sm:$0xff] %v7600_v56  ;;  %v7604_v32 = vpop.permute.xlu0 %1716  ;;  %v5900_v56 = vld [vmem:[%s6746_s18 + $0xb1] sm:$0xff] }
 0x25a   : > { %11482 = vst [vmem:[#allocation171_spill] sm:$0xff] %v7602_v52  ;;  %v5897_v52 = vld [vmem:[%s6746_s18 + $0x91] sm:$0xff] }
 0x25b   : > { %11483 = vst [vmem:[#allocation172_spill] sm:$0xff] %v7604_v32 }
 0x25e   : > { %2050 = vperm.xlu2 %6076, %v5883_v60   ;;  %2045 = vperm.xlu1 %6075, %v5882_v61  }
 0x25f   : > { %2040 = vperm.xlu0 %6074, %v5881_v0   ;;  %v5889_v0 = vld [vmem:[%s6746_s18 + $0x31] sm:$0xff] }
 0x260   : > { %v7609_v1 = vpop.permute.xlu2 %1786  ;;  %v7611_v41 = vpop.permute.xlu1 %1736 }
 0x261   : > { %11484 = vst [vmem:[#allocation173_spill] sm:$0xff] %v7609_v1  ;;  %v7613_v59 = vpop.permute.xlu0 %1731  ;;  %v5888_v1 = vld [vmem:[%s6746_s18 + $0x1a0] sm:$0xff] }
 0x262   : > { %11485 = vst [vmem:[#allocation174_spill] sm:$0xff] %v7611_v41  ;;  %v5887_v41 = vld [vmem:[%s6746_s18 + $0x198] sm:$0xff] }
 0x263   : > { %11486 = vst [vmem:[#allocation175_spill] sm:$0xff] %v7613_v59  ;;  %v5891_v59 = vld [vmem:[%s6746_s18 + $0x49] sm:$0xff] }
 0x266   : > { %2065 = vperm.xlu2 %6076, %v7319_v31   ;;  %2060 = vperm.xlu1 %6075, %v7322_v26  }
 0x267   : > { %2055 = vperm.xlu0 %6074, %v5884_v57  }
 0x268   : > { %v7618_v32 = vpop.permute.xlu2 %1801  ;;  %v7620_v60 = vpop.permute.xlu1 %1751 }
 0x269   : > { %11487 = vst [vmem:[#allocation176_spill] sm:$0xff] %v7618_v32  ;;  %v7622_v61 = vpop.permute.xlu0 %1746  ;;  %v5892_v32 = vld [vmem:[%s6746_s18 + $0x51] sm:$0xff] }
 0x26a   : > { %11488 = vst [vmem:[#allocation177_spill] sm:$0xff] %v7620_v60  ;;  %v5890_v60 = vld [vmem:[%s6746_s18 + $0x39] sm:$0xff] }
 0x26b   : > { %11489 = vst [vmem:[#allocation178_spill] sm:$0xff] %v7622_v61  ;;  %v5894_v61 = vld [vmem:[%s6746_s18 + $0x69] sm:$0xff] }
 0x26e   : > { %2178 = vperm.xlu2 %6076, %v5889_v0   ;;  %2075 = vperm.xlu1 %6075, %v5888_v1  }
 0x26f   : > { %2070 = vperm.xlu0 %6074, %v5887_v41  }
 0x270   : > { %v7627_v31 = vpop.permute.xlu2 %1816  ;;  %v7629_v26 = vpop.permute.xlu1 %1766 }
 0x271   : > { %11490 = vst [vmem:[#allocation179_spill] sm:$0xff] %v7627_v31  ;;  %v7631_v57 = vpop.permute.xlu0 %1761  ;;  %v5895_v31 = vld [vmem:[%s6746_s18 + $0x79] sm:$0xff] }
 0x272   : > { %11491 = vst [vmem:[#allocation180_spill] sm:$0xff] %v7629_v26  ;;  %v5893_v26 = vld [vmem:[%s6746_s18 + $0x61] sm:$0xff] }
 0x273   : > { %11492 = vst [vmem:[#allocation181_spill] sm:$0xff] %v7631_v57  ;;  %v5898_v57 = vld [vmem:[%s6746_s18 + $0x99] sm:$0xff] }
 0x276   : > { %2193 = vperm.xlu2 %6076, %v5892_v32   ;;  %2188 = vperm.xlu1 %6075, %v5891_v59  }
 0x277   : > { %2183 = vperm.xlu0 %6074, %v5890_v60  }
 0x278   : > { %v7636_v0 = vpop.permute.xlu2 %1930  ;;  %v7638_v1 = vpop.permute.xlu1 %1781 }
 0x279   : > { %11493 = vst [vmem:[#allocation182_spill] sm:$0xff] %v7636_v0  ;;  %v7640_v41 = vpop.permute.xlu0 %1776  ;;  %v5909_v0 = vld [vmem:[%s6746_s18 + $0x121] sm:$0xff] }
 0x27a   : > { %11494 = vst [vmem:[#allocation183_spill] sm:$0xff] %v7638_v1  ;;  %v5896_v1 = vld [vmem:[%s6746_s18 + $0x81] sm:$0xff] }
 0x27b   : > { %11495 = vst [vmem:[#allocation184_spill] sm:$0xff] %v7640_v41  ;;  %v5901_v41 = vld [vmem:[%s6746_s18 + $0xc1] sm:$0xff] }
 0x27e   : > { %2208 = vperm.xlu2 %6076, %v5895_v31   ;;  %2203 = vperm.xlu1 %6075, %v5894_v61  }
 0x27f   : > { %2198 = vperm.xlu0 %6074, %v5893_v26  }
 0x280   : > { %v7645_v32 = vpop.permute.xlu2 %1945  ;;  %v7647_v59 = vpop.permute.xlu1 %1796 }
 0x281   : > { %11496 = vst [vmem:[#allocation185_spill] sm:$0xff] %v7645_v32  ;;  %v7649_v60 = vpop.permute.xlu0 %1791  ;;  %v5905_v32 = vld [vmem:[%s6746_s18 + $0xf1] sm:$0xff] }
 0x282   : > { %11497 = vst [vmem:[#allocation186_spill] sm:$0xff] %v7647_v59  ;;  %v5899_v59 = vld [vmem:[%s6746_s18 + $0xa9] sm:$0xff] }
 0x283   : > { %11498 = vst [vmem:[#allocation187_spill] sm:$0xff] %v7649_v60  ;;  %v5904_v60 = vld [vmem:[%s6746_s18 + $0xe1] sm:$0xff] }
 0x286   : > { %2223 = vperm.xlu2 %6076, %v5898_v57   ;;  %2218 = vperm.xlu1 %6075, %v5897_v52  }
 0x287   : > { %2213 = vperm.xlu0 %6074, %v5896_v1  }
 0x288   : > { %v7654_v31 = vpop.permute.xlu2 %1960  ;;  %v7656_v61 = vpop.permute.xlu1 %1811 }
 0x289   : > { %11499 = vst [vmem:[#allocation188_spill] sm:$0xff] %v7654_v31  ;;  %v7658_v26 = vpop.permute.xlu0 %1806  ;;  %v5903_v31 = vld [vmem:[%s6746_s18 + $0xd9] sm:$0xff] }
 0x28a   : > { %11500 = vst [vmem:[#allocation189_spill] sm:$0xff] %v7656_v61  ;;  %v5902_v61 = vld [vmem:[%s6746_s18 + $0xc9] sm:$0xff] }
 0x28b   : > { %11501 = vst [vmem:[#allocation190_spill] sm:$0xff] %v7658_v26  ;;  %v5907_v26 = vld [vmem:[%s6746_s18 + $0x109] sm:$0xff] }
 0x28e   : > { %2238 = vperm.xlu2 %6076, %v5901_v41   ;;  %2233 = vperm.xlu1 %6075, %v5900_v56  }
 0x28f   : > { %2228 = vperm.xlu0 %6074, %v5899_v59  }
 0x290   : > { %v7663_v57 = vpop.permute.xlu2 %1975  ;;  %v7665_v52 = vpop.permute.xlu1 %1925 }
 0x291   : > { %11502 = vst [vmem:[#allocation191_spill] sm:$0xff] %v7663_v57  ;;  %v7667_v1 = vpop.permute.xlu0 %1920  ;;  %v5906_v57 = vld [vmem:[%s6746_s18 + $0xf9] sm:$0xff] }
 0x292   : > { %11503 = vst [vmem:[#allocation192_spill] sm:$0xff] %v7665_v52 }
 0x293   : > { %11504 = vst [vmem:[#allocation193_spill] sm:$0xff] %v7667_v1  ;;  %v5908_v1 = vld [vmem:[%s6746_s18 + $0x111] sm:$0xff] }
 0x296   : > { %2253 = vperm.xlu2 %6076, %v5904_v60   ;;  %2248 = vperm.xlu1 %6075, %v5903_v31  }
 0x297   : > { %2243 = vperm.xlu0 %6074, %v5902_v61  }
 0x298   : > { %v7672_v41 = vpop.permute.xlu2 %1990  ;;  %v7674_v56 = vpop.permute.xlu1 %1940 }
 0x299   : > { %11505 = vst [vmem:[#allocation194_spill] sm:$0xff] %v7672_v41  ;;  %v7676_v59 = vpop.permute.xlu0 %1935  ;;  %v5910_v41 = vld [vmem:[%s6746_s18 + $0x129] sm:$0xff] }
 0x29a   : > { %11506 = vst [vmem:[#allocation195_spill] sm:$0xff] %v7674_v56  ;;  %v11540_v56 = vld [vmem:[#allocation10_spill] sm:$0xff] }
 0x29b   : > { %11507 = vst [vmem:[#allocation196_spill] sm:$0xff] %v7676_v59  ;;  %v5912_v59 = vld [vmem:[%s6746_s18 + $0x141] sm:$0xff] }
 0x29e   : > { %2268 = vperm.xlu2 %6076, %v5907_v26   ;;  %2263 = vperm.xlu1 %6075, %v5906_v57  }
 0x29f   : > { %2258 = vperm.xlu0 %6074, %v5905_v32  }
 0x2a0   : > { %v7681_v60 = vpop.permute.xlu2 %2005  ;;  %v7683_v31 = vpop.permute.xlu1 %1955 }
 0x2a1   : > { %11508 = vst [vmem:[#allocation197_spill] sm:$0xff] %v7681_v60  ;;  %v7685_v61 = vpop.permute.xlu0 %1950  ;;  %v5913_v60 = vld [vmem:[%s6746_s18 + $0x151] sm:$0xff] }
 0x2a2   : > { %11509 = vst [vmem:[#allocation198_spill] sm:$0xff] %v7683_v31  ;;  %v5911_v31 = vld [vmem:[%s6746_s18 + $0x139] sm:$0xff] }
 0x2a3   : > { %11510 = vst [vmem:[#allocation199_spill] sm:$0xff] %v7685_v61 }
 0x2a6   : > { %2283 = vperm.xlu2 %6076, %v5910_v41   ;;  %2278 = vperm.xlu1 %6075, %v5909_v0  }
 0x2a7   : > { %2273 = vperm.xlu0 %6074, %v5908_v1   ;;  %v5916_v1 = vld [vmem:[%s6746_s18 + $0x171] sm:$0xff] }
 0x2a8   : > { %v7690_v26 = vpop.permute.xlu2 %2020  ;;  %v7692_v57 = vpop.permute.xlu1 %1970 }
 0x2a9   : > { %11511 = vst [vmem:[#allocation200_spill] sm:$0xff] %v7690_v26  ;;  %v7694_v32 = vpop.permute.xlu0 %1965  ;;  %v5915_v26 = vld [vmem:[%s6746_s18 + $0x169] sm:$0xff] }
 0x2aa   : > { %11512 = vst [vmem:[#allocation201_spill] sm:$0xff] %v7692_v57  ;;  %v5914_v57 = vld [vmem:[%s6746_s18 + $0x159] sm:$0xff] }
 0x2ab   : > { %11513 = vst [vmem:[#allocation202_spill] sm:$0xff] %v7694_v32 }
 0x2ae   : > { %2298 = vperm.xlu2 %6076, %v5913_v60   ;;  %2293 = vperm.xlu1 %6075, %v5912_v59  }
 0x2af   : > { %2288 = vperm.xlu0 %6074, %v5911_v31   ;;  %v5919_v31 = vld [vmem:[%s6746_s18 + $0x199] sm:$0xff] }
 0x2b0   : > { %v7699_v61 = vpop.permute.xlu2 %2035  ;;  %v7701_v41 = vpop.permute.xlu1 %1985 }
 0x2b1   : > { %11514 = vst [vmem:[#allocation203_spill] sm:$0xff] %v7699_v61  ;;  %v7703_v0 = vpop.permute.xlu0 %1980 }
 0x2b2   : > { %11515 = vst [vmem:[#allocation204_spill] sm:$0xff] %v7701_v41 }
 0x2b3   : > { %11516 = vst [vmem:[#allocation205_spill] sm:$0xff] %v7703_v0  ;;  %v5920_v0 = vld [vmem:[%s6746_s18 + $0x1a1] sm:$0xff] }
 0x2b6   : > { %2313 = vperm.xlu2 %6076, %v5916_v1   ;;  %2308 = vperm.xlu1 %6075, %v5915_v26  }
 0x2b7   : > { %2303 = vperm.xlu0 %6074, %v5914_v57   ;;  %v5922_v57 = vld [vmem:[%s6746_s18 + $0x3a] sm:$0xff] }
 0x2b8   : > { %v7708_v32 = vpop.permute.xlu2 %2050  ;;  %v7710_v60 = vpop.permute.xlu1 %2000 }
 0x2b9   : > { %11517 = vst [vmem:[#allocation206_spill] sm:$0xff] %v7708_v32  ;;  %v7712_v59 = vpop.permute.xlu0 %1995  ;;  %v5921_v32 = vld [vmem:[%s6746_s18 + $0x32] sm:$0xff] }
 0x2ba   : > { %11518 = vst [vmem:[#allocation207_spill] sm:$0xff] %v7710_v60  ;;  %v5927_v60 = vld [vmem:[%s6746_s18 + $0x7a] sm:$0xff] }
 0x2bb   : > { %11519 = vst [vmem:[#allocation208_spill] sm:$0xff] %v7712_v59  ;;  %v5924_v59 = vld [vmem:[%s6746_s18 + $0x52] sm:$0xff] }
 0x2be   : > { %2328 = vperm.xlu2 %6076, %v5919_v31   ;;  %2323 = vperm.xlu1 %6075, %v7427_v44  }
 0x2bf   : > { %2318 = vperm.xlu0 %6074, %v7415_v63  }
 0x2c0   : > { %v7717_v61 = vpop.permute.xlu2 %2065  ;;  %v7719_v1 = vpop.permute.xlu1 %2015 }
 0x2c1   : > { %11520 = vst [vmem:[#allocation209_spill] sm:$0xff] %v7717_v61  ;;  %v7721_v26 = vpop.permute.xlu0 %2010  ;;  %v5925_v61 = vld [vmem:[%s6746_s18 + $0x62] sm:$0xff] }
 0x2c2   : > { %11521 = vst [vmem:[#allocation210_spill] sm:$0xff] %v7719_v1  ;;  %v5923_v1 = vld [vmem:[%s6746_s18 + $0x4a] sm:$0xff] }
 0x2c3   : > { %11522 = vst [vmem:[#allocation211_spill] sm:$0xff] %v7721_v26  ;;  %v5928_v26 = vld [vmem:[%s6746_s18 + $0x82] sm:$0xff] }
 0x2c6   : > { %2441 = vperm.xlu2 %6076, %v5922_v57   ;;  %2436 = vperm.xlu1 %6075, %v5921_v32  }
 0x2c7   : > { %2333 = vperm.xlu0 %6074, %v5920_v0  }
 0x2c8   : > { %v7726_v31 = vpop.permute.xlu2 %2178  ;;  %v7728_v44 = vpop.permute.xlu1 %2030 }
 0x2c9   : > { %11523 = vst [vmem:[#allocation212_spill] sm:$0xff] %v7726_v31  ;;  %v7730_v63 = vpop.permute.xlu0 %2025  ;;  %v5932_v31 = vld [vmem:[%s6746_s18 + $0xb2] sm:$0xff] }
 0x2ca   : > { %11524 = vst [vmem:[#allocation213_spill] sm:$0xff] %v7728_v44  ;;  %v5926_v44 = vld [vmem:[%s6746_s18 + $0x6a] sm:$0xff] }
 0x2cb   : > { %11525 = vst [vmem:[#allocation214_spill] sm:$0xff] %v7730_v63  ;;  %v5931_v63 = vld [vmem:[%s6746_s18 + $0xaa] sm:$0xff] }
 0x2ce   : > { %2456 = vperm.xlu2 %6076, %v5925_v61   ;;  %2451 = vperm.xlu1 %6075, %v5924_v59  }
 0x2cf   : > { %2446 = vperm.xlu0 %6074, %v5923_v1  }
 0x2d0   : > { %v7735_v57 = vpop.permute.xlu2 %2193  ;;  %v7737_v32 = vpop.permute.xlu1 %2045 }
 0x2d1   : > { %11526 = vst [vmem:[#allocation215_spill] sm:$0xff] %v7735_v57  ;;  %v7739_v0 = vpop.permute.xlu0 %2040  ;;  %v5930_v57 = vld [vmem:[%s6746_s18 + $0x9a] sm:$0xff] }
 0x2d2   : > { %11527 = vst [vmem:[#allocation216_spill] sm:$0xff] %v7737_v32  ;;  %v5929_v32 = vld [vmem:[%s6746_s18 + $0x92] sm:$0xff] }
 0x2d3   : > { %11528 = vst [vmem:[#allocation217_spill] sm:$0xff] %v7739_v0 }
 0x2d6   : > { %2471 = vperm.xlu2 %6076, %v5928_v26   ;;  %2466 = vperm.xlu1 %6075, %v5927_v60   ;;  %v5934_v60 = vld [vmem:[%s6746_s18 + $0xca] sm:$0xff] }
 0x2d7   : > { %2461 = vperm.xlu0 %6074, %v5926_v44   ;;  %v5933_v44 = vld [vmem:[%s6746_s18 + $0xc2] sm:$0xff] }
 0x2d8   : > { %v7744_v61 = vpop.permute.xlu2 %2208  ;;  %v7746_v59 = vpop.permute.xlu1 %2060 }
 0x2d9   : > { %11529 = vst [vmem:[#allocation218_spill] sm:$0xff] %v7744_v61  ;;  %v7748_v1 = vpop.permute.xlu0 %2055 }
 0x2da   : > { %11530 = vst [vmem:[#allocation219_spill] sm:$0xff] %v7746_v59  ;;  %v6532_v59 = vld [vmem:[%s11192_s1] ss:$0 sm:$0xff] }
 0x2db   : > { %11531 = vst [vmem:[#allocation220_spill] sm:$0xff] %v7748_v1  ;;  %v7779_v53 = vmul.f32 %v6532_v59, %v11540_v56  ;;  %v11546_v56 = vld [vmem:[#allocation15_spill] sm:$0xff]  ;;  %v7800_v55 = vmul.f32 %v6532_v59, %v11547_v58  ;;  %v7803_v54 = vmul.f32 %v6532_v59, %v11548_v47  ;;  %v5935_v58 = vld [vmem:[%s6746_s18 + $0xda] sm:$0xff]  ;;  %v7820_v29 = vmul.f32 %v6532_v59, %v11554_v40 }
 0x2dc   : > { %v7797_v62 = vmul.f32 %v6532_v59, %v11546_v56  ;;  %v11553_v56 = vld [vmem:[#allocation22_spill] sm:$0xff]  ;;  %v11555_v47 = vld [vmem:[#allocation24_spill] sm:$0xff]  ;;  %v7846_v22 = vmul.f32 %v6532_v59, %v11566_v24 }
 0x2dd   : > { %v7816_v35 = vmul.f32 %v6532_v59, %v11553_v56  ;;  %v541_v34 = vmul.f32 %v6532_v59, %v11555_v47  ;;  %v11560_v56 = vld [vmem:[#allocation48_spill] sm:$0xff] }
 0x2de   : > { %2486 = vperm.xlu2 %6076, %v5931_v63   ;;  %2481 = vperm.xlu1 %6075, %v5930_v57   ;;  %v11537_v57 = vld [vmem:[#allocation7_spill] sm:$0xff]  ;;  %v11561_v40 = vld [vmem:[#allocation28_spill] sm:$0xff] }
 0x2df   : > { %2476 = vperm.xlu0 %6074, %v5929_v32   ;;  %v7770_v32 = vmul.f32 %v6532_v59, %v11537_v57  ;;  %v544_v23 = vmul.f32 %v6532_v59, %v11561_v40  ;;  %v11562_v47 = vld [vmem:[#allocation32_spill] sm:$0xff] }
 0x2e0   : > { %v7753_v0 = vpop.permute.xlu2 %2223  ;;  %v7755_v41 = vpop.permute.xlu1 %2075  ;;  %v7837_v27 = vmul.f32 %v6532_v59, %v11562_v47  ;;  %v11574_v24 = vld [vmem:[#allocation44_spill] sm:$0xff] }
 0x2e1   : > { %11532 = vst [vmem:[#allocation221_spill] sm:$0xff] %v7753_v0  ;;  %v7757_v26 = vpop.permute.xlu0 %2070  ;;  %v11539_v0 = vld [vmem:[#allocation9_spill] sm:$0xff]  ;;  %v553_v21 = vmul.f32 %v6532_v59, %v11574_v24 }
 0x2e2   : > { %11533 = vst [vmem:[#allocation222_spill] sm:$0xff] %v7755_v41  ;;  %v7776_v61 = vmul.f32 %v6532_v59, %v11539_v0  ;;  %v11545_v0 = vld [vmem:[#allocation14_spill] sm:$0xff] }
 0x2e3   : > { %11534 = vst [vmem:[#allocation223_spill] sm:$0xff] %v7757_v26  ;;  %v11538_v26 = vld [vmem:[#allocation8_spill] sm:$0xff]  ;;  %v532_v4 = vmul.f32 %v6532_v59, %v11545_v0  ;;  %v11552_v0 = vld [vmem:[#allocation21_spill] sm:$0xff] }
 0x2e4   : > { %v7773_v41 = vmul.f32 %v6532_v59, %v11538_v26  ;;  %v538_v39 = vmul.f32 %v6532_v59, %v11552_v0  ;;  %v7831_v0 = vmul.f32 %v6532_v59, %v11559_v7  ;;  %v547_v7 = vmul.f32 %v6532_v59, %v11565_v20 }
 0x2e6   : > { %2501 = vperm.xlu2 %6076, %v5934_v60   ;;  %2496 = vperm.xlu1 %6075, %v5933_v44   ;;  %v11542_v44 = vld [vmem:[#allocation11_spill] sm:$0xff] }
 0x2e7   : > { %2491 = vperm.xlu0 %6074, %v5932_v31   ;;  %v7784_v31 = vld [vmem:[%s11192_s1 + $0x1] ss:$0 sm:$0xff]  ;;  %v7789_v57 = vmul.f32 %v6532_v59, %v11542_v44  ;;  %v5937_v44 = vld [vmem:[%s6746_s18 + $0xf2] sm:$0xff] }
 0x2e8   : > { %v7765_v1 = vpop.permute.xlu2 %2238  ;;  %v7767_v63 = vpop.permute.xlu1 %2188  ;;  %v793_v33 = vmul.f32 %v7784_v31, %v11560_v56  ;;  %v11567_v56 = vld [vmem:[#allocation38_spill] sm:$0xff] }
 0x2e9   : > { %11535 = vst [vmem:[#allocation224_spill] sm:$0xff] %v7765_v1  ;;  %v7786_v60 = vpop.permute.xlu0 %2183  ;;  %v11543_v1 = vld [vmem:[#allocation12_spill] sm:$0xff] }
 0x2ea   : > { %11536 = vst [vmem:[#allocation225_spill] sm:$0xff] %v7767_v63  ;;  %v529_v26 = vmul.f32 %v6532_v59, %v11543_v1  ;;  %v11544_v63 = vld [vmem:[#allocation13_spill] sm:$0xff]  ;;  %v7809_v1 = vmul.f32 %v6532_v59, %v11550_v48  ;;  %v790_v48 = vmul.f32 %v7784_v31, %v11557_v28  ;;  %v11564_v28 = vld [vmem:[#allocation54_spill] sm:$0xff] }
 0x2eb   : > { %11541 = vst [vmem:[#allocation7_spill] sm:$0xff] %v7786_v60  ;;  %v7793_v52 = vmul.f32 %v6532_v59, %v11544_v63  ;;  %v11549_v60 = vld [vmem:[#allocation18_spill] sm:$0xff]  ;;  %v11551_v63 = vld [vmem:[#allocation20_spill] sm:$0xff] }
 0x2ec   : > { %v535_v49 = vmul.f32 %v6532_v59, %v11549_v60  ;;  %v7812_v45 = vmul.f32 %v6532_v59, %v11551_v63  ;;  %v11556_v60 = vld [vmem:[#allocation36_spill] sm:$0xff]  ;;  %v7828_v63 = vmul.f32 %v6532_v59, %v11558_v30  ;;  %v796_v30 = vmul.f32 %v7784_v31, %v11564_v28 }
 0x2ed   : > { %v787_v36 = vmul.f32 %v7784_v31, %v11556_v60  ;;  %v11563_v60 = vld [vmem:[#allocation33_spill] sm:$0xff]  ;;  %v7857_v28 = vadd.f32 %v790_v48, %v532_v4 }
 0x2ee   : > { %2516 = vperm.xlu2 %6076, %v5937_v44   ;;  %2511 = vperm.xlu1 %6075, %v5936_v43   ;;  %v7840_v25 = vmul.f32 %v6532_v59, %v11563_v60  ;;  %v550_v44 = vmul.f32 %v6532_v59, %v11567_v56  ;;  %v11568_v43 = vld [vmem:[#allocation60_spill] sm:$0xff]  ;;  %v7865_v19 = vadd.f32 %v793_v33, %v535_v49 }
 0x2ef   : > { %2506 = vperm.xlu0 %6074, %v5935_v58   ;;  %v799_v40 = vmul.f32 %v7784_v31, %v11568_v43  ;;  %v7855_v17 = vadd.f32 %v787_v36, %v529_v26  ;;  %11572 = vst [vmem:[#allocation11_spill] sm:$0xff] %v7857_v28  ;;  %v11573_v58 = vld [vmem:[#allocation43_spill] sm:$0xff]  ;;  %v11577_v43 = vld [vmem:[#allocation49_spill] sm:$0xff]  ;;  %v7874_v4 = vadd.f32 %v796_v30, %v538_v39  ;;  %v11583_v26 = vld [vmem:[#allocation56_spill] sm:$0xff] }
 0x2f0   : > { %v7851_v47 = vpop.permute.xlu2 %2253  ;;  %v7853_v60 = vpop.permute.xlu1 %2203  ;;  %v7860_v20 = vmul.f32 %v6532_v59, %v11573_v58  ;;  %11576 = vst [vmem:[#allocation13_spill] sm:$0xff] %v7865_v19  ;;  %v7868_v14 = vmul.f32 %v6532_v59, %v11577_v43  ;;  %v7877_v48 = vmul.f32 %v6532_v59, %v11583_v26  ;;  %v11584_v58 = vld [vmem:[#allocation61_spill] sm:$0xff]  ;;  %v11585_v28 = vld [vmem:[#allocation62_spill] sm:$0xff]  ;;  %v5940_v49 = vld [vmem:[%s6746_s18 + $0x112] sm:$0xff] }
 0x2f1   : > { %11569 = vst [vmem:[#allocation8_spill] sm:$0xff] %v7851_v47  ;;  %v7863_v56 = vpop.permute.xlu0 %2198  ;;  %v11579_v47 = vld [vmem:[#allocation50_spill] sm:$0xff]  ;;  %v789_v24 = vmul.f32 %v7784_v31, %v11584_v58  ;;  %v788_v33 = vmul.f32 %v7784_v31, %v11585_v28  ;;  %v7885_v43 = vadd.f32 %v799_v40, %v541_v34  ;;  %v11589_v30 = vld [vmem:[#allocation68_spill] sm:$0xff]  ;;  %v795_v28 = vmul.f32 %v7784_v31, %v11591_v16  ;;  %v11597_v16 = vld [vmem:[#allocation85_spill] sm:$0xff] }
 0x2f2   : > { %11570 = vst [vmem:[#allocation9_spill] sm:$0xff] %v7853_v60  ;;  %v556_v18 = vmul.f32 %v6532_v59, %v11579_v47  ;;  %v11580_v60 = vld [vmem:[#allocation55_spill] sm:$0xff]  ;;  %v11587_v19 = vld [vmem:[#allocation66_spill] sm:$0xff]  ;;  %v5938_v26 = vld [vmem:[%s6746_s18 + $0xfa] sm:$0xff]  ;;  %v794_v34 = vmul.f32 %v7784_v31, %v11592_v11  ;;  %v801_v11 = vmul.f32 %v7784_v31, %v11597_v16  ;;  %v815_v16 = vmul.f32 %v7784_v31, %v7253_v9 }
 0x2f3   : > { %11571 = vst [vmem:[#allocation10_spill] sm:$0xff] %v7855_v17  ;;  %v7872_v36 = vmul.f32 %v6532_v59, %v11580_v60  ;;  %v802_v47 = vmul.f32 %v7784_v31, %v11587_v19  ;;  %v11588_v60 = vld [vmem:[#allocation67_spill] sm:$0xff]  ;;  %v791_v59 = vmul.f32 %v7784_v31, %v11589_v30  ;;  %v11593_v40 = vld [vmem:[#allocation78_spill] sm:$0xff]  ;;  %v11596_v30 = vld [vmem:[#allocation84_spill] sm:$0xff] }
 0x2f4   : > { %11575 = vst [vmem:[#allocation12_spill] sm:$0xff] %v7863_v56  ;;  %v5939_v56 = vld [vmem:[%s6746_s18 + $0x10a] sm:$0xff]  ;;  %v792_v39 = vmul.f32 %v7784_v31, %v11588_v60  ;;  %v11595_v60 = vld [vmem:[#allocation80_spill] sm:$0xff] }
 0x2f5   : > { %11578 = vst [vmem:[#allocation14_spill] sm:$0xff] %v7868_v14  ;;  %v11594_v19 = vld [vmem:[#allocation79_spill] sm:$0xff]  ;;  %v797_v13 = vmul.f32 %v7784_v31, %v11595_v60  ;;  %v11598_v17 = vld [vmem:[#allocation86_spill] sm:$0xff]  ;;  %v820_v60 = vadd.f32 %v788_v33, %v7797_v62  ;;  %v7918_v14 = vadd.f32 %v802_v47, %v544_v23  ;;  %v7933_v23 = vadd.f32 %v795_v28, %v7776_v61 }
 0x2f6   : > { %11581 = vst [vmem:[#allocation15_spill] sm:$0xff] %v7872_v36  ;;  %v798_v15 = vmul.f32 %v7784_v31, %v11594_v19  ;;  %v811_v36 = vmul.f32 %v7784_v31, %v11596_v30  ;;  %2531 = vperm.xlu2 %6076, %v5940_v49   ;;  %2526 = vperm.xlu1 %6075, %v5939_v56   ;;  %v11600_v56 = vld [vmem:[#allocation90_spill] sm:$0xff] }
 0x2f7   : > { %11582 = vst [vmem:[#allocation16_spill] sm:$0xff] %v7874_v4  ;;  %v11590_v4 = vld [vmem:[#allocation72_spill] sm:$0xff]  ;;  %v814_v19 = vmul.f32 %v7784_v31, %v11599_v8  ;;  %2521 = vperm.xlu0 %6074, %v5938_v26   ;;  %v7921_v49 = vadd.f32 %v792_v39, %v7773_v41  ;;  %v826_v62 = vadd.f32 %v794_v34, %v7803_v54  ;;  %v7939_v41 = vld [vmem:[%s11192_s1 + $0x2] ss:$0 sm:$0xff]  ;;  %v11602_v26 = vld [vmem:[#allocation91_spill] sm:$0xff] }
 0x2f8   : > { %11586 = vst [vmem:[#allocation17_spill] sm:$0xff] %v7885_v43  ;;  %v805_v58 = vmul.f32 %v7784_v31, %v11590_v4  ;;  %v808_v43 = vmul.f32 %v7784_v31, %v11593_v40  ;;  %v7909_v4 = vadd.f32 %v789_v24, %v7789_v57  ;;  %v800_v40 = vmul.f32 %v7784_v31, %v11598_v17  ;;  %v7925_v24 = vpop.permute.xlu2 %2268  ;;  %v7927_v30 = vpop.permute.xlu1 %2218 }
 0x2f9   : > { %v804_v57 = vmul.f32 %v7784_v31, %v11600_v56  ;;  %11601 = vst [vmem:[#allocation18_spill] sm:$0xff] %v7925_v24  ;;  %v823_v17 = vadd.f32 %v791_v59, %v7770_v32  ;;  %v7941_v33 = vpop.permute.xlu0 %2213  ;;  %v7946_v39 = vadd.f32 %v798_v15, %v7779_v53  ;;  %v829_v32 = vadd.f32 %v797_v13, %v7812_v45  ;;  %v5941_v53 = vld [vmem:[%s6746_s18 + $0x122] sm:$0xff] }
 0x2fa   : > { %v7930_v8 = vadd.f32 %v805_v58, %v547_v7  ;;  %v7943_v47 = vadd.f32 %v808_v43, %v550_v44  ;;  %v7949_v7 = vadd.f32 %v811_v36, %v553_v21  ;;  %v7952_v61 = vadd.f32 %v801_v11, %v7793_v52  ;;  %v5943_v44 = vld [vmem:[%s6746_s18 + $0x13a] sm:$0xff]  ;;  %v5942_v43 = vld [vmem:[%s6746_s18 + $0x12a] sm:$0xff] }
 0x2fb   : > { %v7955_v54 = vadd.f32 %v800_v40, %v7820_v29  ;;  %v7957_v59 = vadd.f32 %v814_v19, %v556_v18  ;;  %v803_v58 = vmul.f32 %v7784_v31, %v11602_v26  ;;  %v7964_v15 = vadd.f32 %v804_v57, %v7800_v55  ;;  %v11603_v21 = vld [vmem:[#allocation93_spill] sm:$0xff]  ;;  %v11604_v45 = vld [vmem:[#allocation94_spill] sm:$0xff]  ;;  %v11609_v26 = vld [vmem:[#allocation95_spill] sm:$0xff] }
 0x2fc   : > { %v817_v13 = vmul.f32 %v7784_v31, %v7222_v37  ;;  %v807_v29 = vmul.f32 %v7784_v31, %v11603_v21  ;;  %v806_v18 = vmul.f32 %v7784_v31, %v11604_v45  ;;  %v1046_v52 = vmul.f32 %v7939_v41, %v7231_v38  ;;  %v11614_v21 = vld [vmem:[#allocation98_spill] sm:$0xff]  ;;  %v11615_v45 = vld [vmem:[#allocation99_spill] sm:$0xff] }
 0x2fd   : > { %v6644_v36 = vmov 0.0   ;;  %v810_v55 = vmul.f32 %v7784_v31, %v7233_v51  ;;  %v809_v28 = vmul.f32 %v7784_v31, %v7235_v42  ;;  %v1049_v37 = vmul.f32 %v7939_v41, %v7240_v50  ;;  %v11690_v24 = vld [vmem:[#allocation58_spill] sm:$0xff] }
 0x2fe   : > { %285 = vst.msk [vmem:[#allocation2 + $0x20] sm:$0xff] %vm279_vm0, %v6644_v36  ;;  %2546 = vperm.xlu2 %6076, %v5943_v44   ;;  %2541 = vperm.xlu1 %6075, %v5942_v43   ;;  %v813_v38 = vmul.f32 %v7784_v31, %v7242_v46  ;;  %v812_v34 = vmul.f32 %v7784_v31, %v7244_v2  ;;  %v11611_v44 = vld [vmem:[#allocation15_spill] sm:$0xff] }
 0x2ff   : > { %286 = vst.msk [vmem:[#allocation2 + $0x28] sm:$0x3] %vm282_vm1, %v6644_v36  ;;  %v1052_v51 = vmul.f32 %v7939_v41, %v7249_v3  ;;  %2536 = vperm.xlu0 %6074, %v5941_v53   ;;  %v835_v50 = vadd.f32 %v803_v58, %v7831_v0  ;;  %v816_v42 = vmul.f32 %v7784_v31, %v7251_v6  ;;  %v5944_v58 = vld [vmem:[%s6746_s18 + $0x142] sm:$0xff] }
 0x300   : > { %280 = vst.msk [vmem:[#allocation2] sm:$0xff] %vm279_vm0, %v6644_v36  ;;  %v1055_v46 = vmul.f32 %v7939_v41, %v7258_v5  ;;  %v8000_v11 = vpop.permute.xlu2 %2283  ;;  %v8002_v2 = vpop.permute.xlu1 %2233  ;;  %v8007_v3 = vadd.f32 %v817_v13, %v7877_v48  ;;  %v8010_v6 = vadd.f32 %v807_v29, %v7809_v1  ;;  %v1045_v9 = vmul.f32 %v7939_v41, %v7260_v10  ;;  %v11613_v13 = vld [vmem:[#allocation97_spill] sm:$0xff] }
 0x301   : > { %11605 = vst [vmem:[#allocation19_spill] sm:$0xff] %v8000_v11  ;;  %v818_v5 = vmul.f32 %v7784_v31, %v7262_v12  ;;  %v8016_v0 = vpop.permute.xlu0 %2228  ;;  %v838_v40 = vadd.f32 %v806_v18, %v7840_v25  ;;  %v8021_v48 = vadd.f32 %v1046_v52, %v820_v60  ;;  %v8024_v19 = vadd.f32 %v810_v55, %v7816_v35  ;;  %v5946_v25 = vld [vmem:[%s6746_s18 + $0x15a] sm:$0xff]  ;;  %v5945_v60 = vld [vmem:[%s6746_s18 + $0x152] sm:$0xff] }
 0x302   : > { %281 = vst.msk [vmem:[#allocation2 + $0x8] sm:$0xff] %vm279_vm0, %v6644_v36  ;;  %v841_v1 = vadd.f32 %v809_v28, %v7846_v22  ;;  %v8029_v10 = vadd.f32 %v1049_v37, %v823_v17  ;;  %v8032_v12 = vadd.f32 %v813_v38, %v7828_v63  ;;  %v844_v31 = vadd.f32 %v812_v34, %v7860_v20  ;;  %v11608_v22 = vld [vmem:[#allocation14_spill] sm:$0xff]  ;;  %v11616_v52 = vld [vmem:[#allocation100_spill] sm:$0xff]  ;;  %v11617_v28 = vld [vmem:[#allocation101_spill] sm:$0xff] }
 0x303   : > { %11606 = vst [vmem:[#allocation20_spill] sm:$0xff] %v8007_v3  ;;  %v8035_v56 = vadd.f32 %v1052_v51, %v826_v62  ;;  %v8042_v35 = vadd.f32 %v816_v42, %v7837_v27  ;;  %v8045_v57 = vadd.f32 %v815_v16, %v11608_v22  ;;  %v8047_v17 = vadd.f32 %v1055_v46, %v829_v32  ;;  %v11610_v20 = vld [vmem:[#allocation10_spill] sm:$0xff]  ;;  %v11612_v27 = vld [vmem:[#allocation96_spill] sm:$0xff]  ;;  %v11619_v51 = vld [vmem:[#allocation103_spill] sm:$0xff] }
 0x304   : > { %283 = vst.msk [vmem:[#allocation2 + $0x10] sm:$0x3] %vm282_vm1, %v6644_v36  ;;  %v1058_v63 = vmul.f32 %v7939_v41, %v11609_v26  ;;  %v8055_v62 = vadd.f32 %v1045_v9, %v11610_v20  ;;  %v8058_v43 = vadd.f32 %v818_v5, %v11611_v44  ;;  %v1048_v53 = vmul.f32 %v7939_v41, %v11612_v27  ;;  %v11618_v38 = vld [vmem:[#allocation102_spill] sm:$0xff]  ;;  %v11620_v46 = vld [vmem:[#allocation104_spill] sm:$0xff]  ;;  %v11621_v5 = vld [vmem:[#allocation105_spill] sm:$0xff] }
 0x305   : > { %284 = vst.msk [vmem:[#allocation2 + $0x18] sm:$0xff] %vm279_vm0, %v6644_v36  ;;  %v1047_v32 = vmul.f32 %v7939_v41, %v11613_v13  ;;  %v1061_v29 = vmul.f32 %v7939_v41, %v11614_v21  ;;  %v1051_v18 = vmul.f32 %v7939_v41, %v11615_v45  ;;  %v1050_v55 = vmul.f32 %v7939_v41, %v11616_v52  ;;  %v11626_v27 = vld [vmem:[#allocation108_spill] sm:$0xff]  ;;  %v11627_v21 = vld [vmem:[#allocation109_spill] sm:$0xff]  ;;  %v11674_v11 = vld [vmem:[#allocation7_spill] sm:$0xff] }
 0x306   : > { %287 = vst.msk [vmem:[#allocation2 + $0x30] sm:$0xff] %vm279_vm0, %v6644_v36  ;;  %2561 = vperm.xlu2 %6076, %v5946_v25   ;;  %2556 = vperm.xlu1 %6075, %v5945_v60   ;;  %v1064_v37 = vmul.f32 %v7939_v41, %v11617_v28  ;;  %v1054_v34 = vmul.f32 %v7939_v41, %v11618_v38  ;;  %v11622_v60 = vld [vmem:[#allocation106_spill] sm:$0xff]  ;;  %v11628_v38 = vld [vmem:[#allocation13_spill] sm:$0xff] }
 0x307   : > { %11607 = vst [vmem:[#allocation21_spill] sm:$0xff] %v8042_v35  ;;  %v1053_v42 = vmul.f32 %v7939_v41, %v11619_v51  ;;  %2551 = vperm.xlu0 %6074, %v5944_v58   ;;  %v8083_v16 = vadd.f32 %v1058_v63, %v7955_v54  ;;  %v1067_v9 = vmul.f32 %v7939_v41, %v11620_v46  ;;  %v11624_v58 = vld [vmem:[#allocation11_spill] sm:$0xff]  ;;  %v5951_v3 = vld [vmem:[%s6746_s18 + $0x19a] sm:$0xff] }
 0x308   : > { %288 = vst.msk [vmem:[#allocation2 + $0x38] sm:$0xff] %vm279_vm0, %v6644_v36  ;;  %v1057_v25 = vmul.f32 %v7939_v41, %v11621_v5  ;;  %v1056_v22 = vmul.f32 %v7939_v41, %v11622_v60  ;;  %v8091_v26 = vpop.permute.xlu2 %2298  ;;  %v8093_v20 = vpop.permute.xlu1 %2248  ;;  %v8098_v44 = vadd.f32 %v1048_v53, %v11624_v58  ;;  %v11625_v54 = vld [vmem:[#allocation107_spill] sm:$0xff]  ;;  %v1060_v13 = vmul.f32 %v7939_v41, %v11626_v27  ;;  %v11629_v60 = vld [vmem:[#allocation16_spill] sm:$0xff]  ;;  %v11630_v27 = vld [vmem:[#allocation110_spill] sm:$0xff] }
 0x309   : > { %289 = vst.msk [vmem:[#allocation2 + $0x40] sm:$0x3] %vm282_vm1, %v6644_v36  ;;  %v1070_v63 = vmul.f32 %v7939_v41, %v11625_v54  ;;  %v1059_v45 = vmul.f32 %v7939_v41, %v11627_v21  ;;  %v8106_v52 = vpop.permute.xlu0 %2243  ;;  %v1079_v28 = vadd.f32 %v1047_v32, %v7909_v4  ;;  %v8111_v53 = vadd.f32 %v1061_v29, %v835_v50  ;;  %v8130_v50 = vld [vmem:[%s11192_s1 + $0x3] ss:$0 sm:$0xff]  ;;  %v5948_v32 = vld [vmem:[%s6746_s18 + $0x172] sm:$0xff]  ;;  %v11635_v21 = vld [vmem:[#allocation114_spill] sm:$0xff] }
 0x30a   : > { %290 = vst.msk [vmem:[#allocation2 + $0x48] sm:$0xff] %vm279_vm0, %v6644_v36  ;;  %v8114_v51 = vadd.f32 %v1051_v18, %v11628_v38  ;;  %v1082_v46 = vadd.f32 %v1050_v55, %v7921_v49  ;;  %v8119_v5 = vadd.f32 %v1064_v37, %v838_v40  ;;  %v8122_v58 = vadd.f32 %v1054_v34, %v11629_v60  ;;  %v11631_v40 = vld [vmem:[#allocation17_spill] sm:$0xff]  ;;  %v5947_v37 = vld [vmem:[%s6746_s18 + $0x16a] sm:$0xff] }
 0x30b   : > { %291 = vst.msk [vmem:[#allocation2 + $0x50] sm:$0xff] %vm279_vm0, %v6644_v36  ;;  %v1085_v54 = vadd.f32 %v1053_v42, %v7933_v23  ;;  %v1073_v4 = vmul.f32 %v7939_v41, %v11630_v27  ;;  %v8135_v49 = vadd.f32 %v1067_v9, %v841_v1  ;;  %v8138_v29 = vadd.f32 %v1057_v25, %v11631_v40  ;;  %v11632_v23 = vld [vmem:[#allocation111_spill] sm:$0xff]  ;;  %v11633_v9 = vld [vmem:[#allocation112_spill] sm:$0xff] }
 0x30c   : > { %11623 = vst [vmem:[#allocation22_spill] sm:$0xff] %v8091_v26  ;;  %v1088_v18 = vadd.f32 %v1056_v22, %v7946_v39  ;;  %v1063_v55 = vmul.f32 %v7939_v41, %v11632_v23  ;;  %v8146_v34 = vadd.f32 %v1070_v63, %v844_v31  ;;  %v8149_v42 = vadd.f32 %v1060_v13, %v7918_v14  ;;  %v11634_v39 = vld [vmem:[#allocation113_spill] sm:$0xff]  ;;  %v11636_v60 = vld [vmem:[#allocation115_spill] sm:$0xff]  ;;  %v11637_v63 = vld [vmem:[#allocation146_spill] sm:$0xff] }
 0x30d   : > { %292 = vst.msk [vmem:[#allocation2 + $0x58] sm:$0x3] %vm282_vm1, %v6644_v36  ;;  %v1091_v1 = vadd.f32 %v1059_v45, %v7952_v61  ;;  %v1062_v25 = vmul.f32 %v7939_v41, %v11633_v9  ;;  %v1076_v22 = vmul.f32 %v7939_v41, %v11634_v39  ;;  %v1066_v38 = vmul.f32 %v7939_v41, %v11635_v21  ;;  %v11638_v61 = vld [vmem:[#allocation116_spill] sm:$0xff]  ;;  %v11639_v45 = vld [vmem:[#allocation117_spill] sm:$0xff]  ;;  %v11641_v9 = vld [vmem:[#allocation119_spill] sm:$0xff] }
 0x30e   : > { %293 = vst.msk [vmem:[#allocation2 + $0x60] sm:$0xff] %vm279_vm0, %v6644_v36  ;;  %v1065_v31 = vmul.f32 %v7939_v41, %v11636_v60  ;;  %2576 = vperm.xlu2 %6076, %v11637_v63   ;;  %2571 = vperm.xlu1 %6075, %v5948_v32   ;;  %v8166_v14 = vadd.f32 %v1073_v4, %v8045_v57  ;;  %v11640_v32 = vld [vmem:[#allocation118_spill] sm:$0xff]  ;;  %v11642_v4 = vld [vmem:[#allocation120_spill] sm:$0xff]  ;;  %v11649_v35 = vld [vmem:[#allocation127_spill] sm:$0xff] }
 0x30f   : > { %294 = vst.msk [vmem:[#allocation2 + $0x68] sm:$0xff] %vm279_vm0, %v6644_v36  ;;  %v1306_v13 = vmul.f32 %v8130_v50, %v11638_v61  ;;  %v1069_v27 = vmul.f32 %v7939_v41, %v11639_v45  ;;  %2566 = vperm.xlu0 %6074, %v5947_v37   ;;  %v8175_v40 = vadd.f32 %v1063_v55, %v7930_v8  ;;  %v11645_v55 = vld [vmem:[#allocation121_spill] sm:$0xff]  ;;  %v11646_v63 = vld [vmem:[#allocation122_spill] sm:$0xff] }
 0x310   : > { %295 = vst.msk [vmem:[#allocation2 + $0x70] sm:$0x3] %vm282_vm1, %v6644_v36  ;;  %v1068_v23 = vmul.f32 %v7939_v41, %v11640_v32  ;;  %v1309_v57 = vmul.f32 %v8130_v50, %v11641_v9  ;;  %v1072_v39 = vmul.f32 %v7939_v41, %v11642_v4  ;;  %v8183_v21 = vpop.permute.xlu2 %2313  ;;  %v8185_v60 = vpop.permute.xlu1 %2263  ;;  %v1094_v8 = vadd.f32 %v1062_v25, %v7964_v15  ;;  %v11647_v45 = vld [vmem:[#allocation125_spill] sm:$0xff] }
 0x311   : > { %296 = vst.msk [vmem:[#allocation2 + $0x78] sm:$0xff] %vm279_vm0, %v6644_v36  ;;  %v1071_v37 = vmul.f32 %v7939_v41, %v11645_v55  ;;  %v1312_v61 = vmul.f32 %v8130_v50, %v11646_v63  ;;  %v1315_v32 = vmul.f32 %v8130_v50, %v11647_v45  ;;  %v8196_v9 = vpop.permute.xlu0 %2258  ;;  %v8201_v4 = vadd.f32 %v1076_v22, %v8058_v43  ;;  %v11648_v41 = vld [vmem:[#allocation126_spill] sm:$0xff]  ;;  %v11650_v22 = vld [vmem:[#allocation128_spill] sm:$0xff] }
 0x312   : > { %297 = vst.msk [vmem:[#allocation2 + $0x80] sm:$0xff] %vm279_vm0, %v6644_v36  ;;  %v8204_v15 = vadd.f32 %v1066_v38, %v7943_v47  ;;  %v1097_v25 = vadd.f32 %v1065_v31, %v8010_v6  ;;  %v1305_v55 = vmul.f32 %v8130_v50, %v11648_v41  ;;  %v8211_v63 = vadd.f32 %v1306_v13, %v1079_v28  ;;  %v5952_v38 = vld [vmem:[%s6746_s18 + $0x1a2] sm:$0xff]  ;;  %s5990_s18 = sshll.u32 %s6714_s6, 4 }
 0x313   : > { %298 = vst.msk [vmem:[#allocation2 + $0x88] sm:$0x3] %vm282_vm1, %v6644_v36  ;;  %v8214_v45 = vadd.f32 %v1069_v27, %v7949_v7  ;;  %v1304_v43 = vmul.f32 %v8130_v50, %v11649_v35  ;;  %v1318_v47 = vmul.f32 %v8130_v50, %v11650_v22  ;;  %v1100_v6 = vadd.f32 %v1068_v23, %v8024_v19  ;;  %v11652_v7 = vld [vmem:[#allocation129_spill] sm:$0xff]  ;;  %v11654_v22 = vld [vmem:[#allocation130_spill] sm:$0xff]  ;;  %v11656_v23 = vld [vmem:[#allocation132_spill] sm:$0xff] }
 0x314   : > { %299 = vst.msk [vmem:[#allocation2 + $0x90] sm:$0xff] %vm279_vm0, %v6644_v36  ;;  %v8225_v31 = vadd.f32 %v1309_v57, %v1082_v46  ;;  %v8228_v28 = vadd.f32 %v1072_v39, %v7957_v59  ;;  %v1308_v13 = vmul.f32 %v8130_v50, %v11652_v7  ;;  %v8235_v35 = vadd.f32 %v1071_v37, %v8032_v12  ;;  %v8246_v59 = vld [vmem:[%s11192_s1 + $0x4] ss:$0 sm:$0xff]  ;;  %v8251_v46 = vld [vmem:[%s11192_s1 + $0x5] ss:$0 sm:$0xff]  ;;  %v11660_v7 = vld [vmem:[#allocation134_spill] sm:$0xff] }
 0x315   : > { %11643 = vst [vmem:[#allocation23_spill] sm:$0xff] %v8183_v21  ;;  %v8237_v27 = vadd.f32 %v1312_v61, %v1085_v54  ;;  %v8239_v41 = vadd.f32 %v1315_v32, %v1088_v18  ;;  %v1307_v19 = vmul.f32 %v8130_v50, %v11654_v22  ;;  %v1337_v12 = vadd.f32 %v1305_v55, %v8021_v48  ;;  %v11655_v54 = vld [vmem:[#allocation131_spill] sm:$0xff]  ;;  %v11657_v61 = vld [vmem:[#allocation57_spill] sm:$0xff] }
 0x316   : > { %11644 = vst [vmem:[#allocation24_spill] sm:$0xff] %v8185_v60  ;;  %v1321_v18 = vmul.f32 %v8130_v50, %v11655_v54  ;;  %v1311_v57 = vmul.f32 %v8130_v50, %v11656_v23  ;;  %2591 = vperm.xlu2 %6076, %v5952_v38   ;;  %2586 = vperm.xlu1 %6075, %v5951_v3   ;;  %v11658_v48 = vld [vmem:[#allocation145_spill] sm:$0xff]  ;;  %v11669_v21 = vld [vmem:[#allocation31_spill] sm:$0xff] }
 0x317   : > { %300 = vst.msk [vmem:[#allocation2 + $0x98] sm:$0xff] %vm279_vm0, %v6644_v36  ;;  %v8263_v39 = vadd.f32 %v1304_v43, %v8055_v62  ;;  %v8265_v37 = vadd.f32 %v1318_v47, %v1091_v1  ;;  %v1563_v32 = vmul.f32 %v8246_v59, %v11657_v61  ;;  %2581 = vperm.xlu0 %6074, %v11658_v48   ;;  %v11659_v3 = vld [vmem:[#allocation133_spill] sm:$0xff]  ;;  %v11661_v43 = vld [vmem:[#allocation135_spill] sm:$0xff] }
 0x318   : > { %301 = vst.msk [vmem:[#allocation2 + $0xa0] sm:$0x3] %vm282_vm1, %v6644_v36  ;;  %v8273_v55 = vadd.f32 %v1308_v13, %v8029_v10  ;;  %v1310_v38 = vmul.f32 %v8130_v50, %v11659_v3  ;;  %v1324_v62 = vmul.f32 %v8130_v50, %v11660_v7  ;;  %v1314_v1 = vmul.f32 %v8130_v50, %v11661_v43  ;;  %v8281_v47 = vpop.permute.xlu2 %2328  ;;  %v8283_v22 = vpop.permute.xlu1 %2278  ;;  %v11664_v10 = vld [vmem:[#allocation136_spill] sm:$0xff]  ;;  %v11665_v23 = vld [vmem:[#allocation137_spill] sm:$0xff] }
 0x319   : > { %302 = vst.msk [vmem:[#allocation2 + $0xa8] sm:$0xff] %vm279_vm0, %v6644_v36  ;;  %v8288_v54 = vadd.f32 %v1307_v19, %v8098_v44  ;;  %v1313_v13 = vmul.f32 %v8130_v50, %v11664_v10  ;;  %v1327_v61 = vmul.f32 %v8130_v50, %v11665_v23  ;;  %v11666_v48 = vld [vmem:[#allocation149_spill] sm:$0xff]  ;;  %v8301_v43 = vpop.permute.xlu0 %2273  ;;  %v8305_v44 = vadd.f32 %v1321_v18, %v1094_v8  ;;  %v11667_v10 = vld [vmem:[#allocation138_spill] sm:$0xff]  ;;  %v11671_v18 = vld [vmem:[#allocation192_spill] sm:$0xff] }
 0x31a   : > { %303 = vst.msk [vmem:[#allocation2 + $0xb0] sm:$0xff] %vm279_vm0, %v6644_v36  ;;  %v1821_v3 = vmul.f32 %v8251_v46, %v11666_v48  ;;  %v8299_v7 = vld [vmem:[%s11192_s1 + $0x6] ss:$0 sm:$0xff]  ;;  %v8308_v19 = vadd.f32 %v1311_v57, %v8035_v56  ;;  %v1317_v23 = vmul.f32 %v8130_v50, %v11667_v10  ;;  %v1595_v8 = vadd.f32 %v1563_v32, %v1337_v12  ;;  %v8325_v57 = vld [vmem:[%s11192_s1 + $0x7] ss:$0 sm:$0xff] }
 0x31b   : > { %11651 = vst [vmem:[#allocation36_spill] sm:$0xff] %v8228_v28  ;;  %v11670_v28 = vld [vmem:[#allocation25_spill] sm:$0xff]  ;;  %v2080_v56 = vmul.f32 %v8299_v7, %v11671_v18  ;;  %v8330_v10 = vadd.f32 %v1324_v62, %v1097_v25  ;;  %v1345_v32 = vadd.f32 %v1313_v13, %v8122_v58  ;;  %v8340_v18 = vadd.f32 %v1327_v61, %v1100_v6  ;;  %v11675_v58 = vld [vmem:[#allocation30_spill] sm:$0xff] }
 0x31c   : > { %304 = vst.msk [vmem:[#allocation2 + $0xb8] sm:$0x3] %vm282_vm1, %v6644_v36  ;;  %v1319_v26 = vmul.f32 %v8130_v50, %v11670_v28  ;;  %v11672_v28 = vld [vmem:[#allocation29_spill] sm:$0xff]  ;;  %v2338_v60 = vmul.f32 %v8325_v57, %v11674_v11  ;;  %v8359_v6 = vmul.f32 %v8130_v50, %v11675_v58  ;;  %v8395_v58 = vld [vmem:[%s11193_s2] ss:$0 sm:$0xff] }
 0x31d   : > { %11653 = vst [vmem:[#allocation42_spill] sm:$0xff] %v8235_v35  ;;  %v1320_v35 = vmul.f32 %v8130_v50, %v11669_v21  ;;  %v8333_v21 = vadd.f32 %v1314_v1, %v8047_v17  ;;  %v1323_v12 = vmul.f32 %v8130_v50, %v11672_v28  ;;  %v8352_v17 = vadd.f32 %v1317_v23, %v8083_v16  ;;  %v11678_v16 = vld [vmem:[#allocation63_spill] sm:$0xff] }
 0x31e   : > { %305 = vst.msk [vmem:[#allocation2 + $0xc0] sm:$0xff] %vm279_vm0, %v6644_v36  ;;  %v8369_v1 = vadd.f32 %v1319_v26, %v8149_v42 }
 0x31f   : > { %306 = vst.msk [vmem:[#allocation2 + $0xc8] sm:$0xff] %vm279_vm0, %v6644_v36  ;;  %v8366_v62 = vadd.f32 %v1320_v35, %v8111_v53  ;;  %v8376_v61 = vadd.f32 %v1323_v12, %v8119_v5  ;;  %v11681_v35 = vld [vmem:[#allocation141_spill] sm:$0xff]  ;;  %v11684_v5 = vld [vmem:[#allocation152_spill] sm:$0xff] }
 0x320   : > { %307 = vst.msk [vmem:[#allocation2 + $0xd0] sm:$0x3] %vm282_vm1, %v6644_v36  ;;  %v1325_v26 = vmul.f32 %v8130_v50, %v11681_v35  ;;  %v2442_v42 = vpop.permute.xlu2 %2441  ;;  %v1824_v28 = vmul.f32 %v8251_v46, %v11684_v5 }
 0x321   : > { %11662 = vst [vmem:[#allocation26_spill] sm:$0xff] %v8281_v47  ;;  %v11668_v47 = vld [vmem:[#allocation139_spill] sm:$0xff] }
 0x322   : > { %11663 = vst [vmem:[#allocation27_spill] sm:$0xff] %v8283_v22  ;;  %v1316_v48 = vmul.f32 %v8130_v50, %v11668_v47  ;;  %v1342_v47 = vadd.f32 %v1310_v38, %v8114_v51  ;;  %v1853_v22 = vadd.f32 %v1821_v3, %v1595_v8  ;;  %v8347_v51 = vld [vmem:[%s11192_s1 + $0x8] ss:$0 sm:$0xff]  ;;  %v11677_v38 = vld [vmem:[#allocation140_spill] sm:$0xff]  ;;  %v11683_v8 = vld [vmem:[#allocation46_spill] sm:$0xff] }
 0x323   : > { %308 = vst.msk [vmem:[#allocation2 + $0xd8] sm:$0xff] %vm279_vm0, %v6644_v36  ;;  %v1322_v11 = vmul.f32 %v8130_v50, %v11677_v38  ;;  %v11679_v3 = vld [vmem:[#allocation40_spill] sm:$0xff]  ;;  %v2596_v38 = vmul.f32 %v8347_v51, %v2442_v42  ;;  %v11688_v42 = vld [vmem:[#allocation53_spill] sm:$0xff] }
 0x324   : > { %309 = vst.msk [vmem:[#allocation2 + $0xe0] sm:$0xff] %vm279_vm0, %v6644_v36  ;;  %v8355_v25 = vadd.f32 %v1316_v48, %v8138_v29  ;;  %v1566_v29 = vmul.f32 %v8246_v59, %v11678_v16  ;;  %v2112_v13 = vadd.f32 %v2080_v56, %v1853_v22  ;;  %v1562_v23 = vmul.f32 %v8246_v59, %v11679_v3  ;;  %v11680_v48 = vld [vmem:[#allocation41_spill] sm:$0xff]  ;;  %v8386_v22 = vpop.permute.xlu1 %2293  ;;  %v8400_v16 = vpop.permute.xlu0 %2288 }
 0x325   : > { %310 = vst.msk [vmem:[#allocation2 + $0xe8] sm:$0x3] %vm282_vm1, %v6644_v36  ;;  %v1326_v53 = vmul.f32 %v8130_v50, %v11680_v48  ;;  %v1565_v56 = vmul.f32 %v8246_v59, %v11683_v8  ;;  %v8403_v3 = vadd.f32 %v1322_v11, %v8175_v40  ;;  %v11685_v48 = vld [vmem:[#allocation47_spill] sm:$0xff] }
 0x326   : > { %311 = vst.msk [vmem:[#allocation2 + $0xf0] sm:$0xff] %vm279_vm0, %v6644_v36  ;;  %v2370_v12 = vadd.f32 %v2338_v60, %v2112_v13  ;;  %v1329_v35 = vmul.f32 %v8130_v50, %v11685_v48  ;;  %v11686_v8 = vld [vmem:[#allocation39_spill] sm:$0xff]  ;;  %v11687_v13 = vld [vmem:[#allocation52_spill] sm:$0xff]  ;;  %v8421_v48 = vadd.f32 %v1562_v23, %v8263_v39 }
 0x327   : > { %312 = vst.msk [vmem:[#allocation2 + $0xf8] sm:$0xff] %vm279_vm0, %v6644_v36  ;;  %v1328_v60 = vmul.f32 %v8130_v50, %v11686_v8  ;;  %v1568_v5 = vmul.f32 %v8246_v59, %v11687_v13  ;;  %v8424_v8 = vadd.f32 %v1326_v53, %v8135_v49  ;;  %v1357_v13 = vadd.f32 %v1325_v26, %v8204_v15  ;;  %v11693_v15 = vld [vmem:[#allocation45_spill] sm:$0xff] }
 0x328   : > { %11673 = vst [vmem:[#allocation48_spill] sm:$0xff] %v8340_v18  ;;  %v11689_v18 = vld [vmem:[#allocation195_spill] sm:$0xff]  ;;  %v2628_v11 = vadd.f32 %v2596_v38, %v2370_v12  ;;  %v8440_v49 = vadd.f32 %v1329_v35, %v8146_v34  ;;  %v8447_v23 = vmul.f32 %v8130_v50, %v11693_v15  ;;  %v11697_v35 = vld [vmem:[#allocation64_spill] sm:$0xff] }
 0x329   : > { %313 = vst.msk [vmem:[#allocation2 + $0x100] sm:$0x3] %vm282_vm1, %v6644_v36  ;;  %v2083_v40 = vmul.f32 %v8299_v7, %v11689_v18  ;;  %v8453_v26 = vadd.f32 %v1568_v5, %v1342_v47  ;;  %v11700_v5 = vld [vmem:[#allocation70_spill] sm:$0xff] }
 0x32a   : > { %11676 = vst [vmem:[#allocation28_spill] sm:$0xff] %v8359_v6  ;;  %v1332_v6 = vmul.f32 %v8130_v50, %v11688_v42  ;;  %v1571_v42 = vmul.f32 %v8246_v59, %v11690_v24  ;;  %v2664_v39 = vadd.f32 %v8395_v58, %v2628_v11  ;;  %v8443_v24 = vadd.f32 %v1328_v60, %v8214_v45  ;;  %v11698_v11 = vld [vmem:[#allocation65_spill] sm:$0xff] }
 0x32b   : > { %314 = vst.msk [vmem:[#allocation2 + $0x108] sm:$0xff] %vm279_vm0, %v6644_v36  ;;  %v1574_v60 = vmul.f32 %v8246_v59, %v11697_v35  ;;  %v1564_v47 = vmul.f32 %v8246_v59, %v11698_v11  ;;  %v11704_v35 = vld [vmem:[#allocation77_spill] sm:$0xff] }
 0x32c   : > { %315 = vst.msk [vmem:[#allocation2 + $0x110] sm:$0xff] %vm279_vm0, %v6644_v36  ;;  %v8460_v45 = vadd.f32 %v1571_v42, %v1345_v32  ;;  %v11701_v32 = vld [vmem:[#allocation155_spill] sm:$0xff]  ;;  %v1570_v11 = vmul.f32 %v8246_v59, %v11704_v35 }
 0x32d   : > { %316 = vst.msk [vmem:[#allocation2 + $0x118] sm:$0x3] %vm282_vm1, %v6644_v36  ;;  %v1827_v42 = vmul.f32 %v8251_v46, %v11701_v32  ;;  %v11707_v32 = vld [vmem:[#allocation198_spill] sm:$0xff] }
 0x32e   : > { %11682 = vst [vmem:[#allocation32_spill] sm:$0xff] %v8386_v22  ;;  %v1598_v22 = vadd.f32 %v1566_v29, %v8273_v55  ;;  %v8432_v55 = vadd.f32 %v1565_v56, %v8288_v54  ;;  %v11691_v29 = vld [vmem:[#allocation12_spill] sm:$0xff]  ;;  %v11695_v54 = vld [vmem:[#allocation69_spill] sm:$0xff]  ;;  %v2696_v56 = vmax.f32 %v2664_v39, 0.0  ;;  %v11702_v39 = vld [vmem:[#allocation71_spill] sm:$0xff] }
 0x32f   : > { %317 = vst.msk [vmem:[#allocation2 + $0x120] sm:$0xff] %vm279_vm0, %v6644_v36  ;;  %v2341_v12 = vmul.f32 %v8325_v57, %v11691_v29  ;;  %v1569_v53 = vmul.f32 %v8246_v59, %v11695_v54  ;;  %v8478_v29 = vpop.permute.xlu0 %2303  ;;  %v1567_v15 = vmul.f32 %v8246_v59, %v11702_v39  ;;  %v11703_v54 = vld [vmem:[#allocation76_spill] sm:$0xff]  ;;  %v2086_v39 = vmul.f32 %v8299_v7, %v11707_v32  ;;  %v11714_v32 = vld [vmem:[#allocation81_spill] sm:$0xff] }
 0x330   : > { %318 = vst.msk [vmem:[#allocation2 + $0x128] sm:$0xff] %vm279_vm0, %v6644_v36  ;;  %v1856_v18 = vadd.f32 %v1824_v28, %v1598_v22  ;;  %v8456_v22 = vadd.f32 %v1332_v6, %v8166_v14  ;;  %v11696_v28 = vld [vmem:[#allocation59_spill] sm:$0xff]  ;;  %v2457_v14 = vpop.permute.xlu2 %2456  ;;  %v8470_v6 = vpop.permute.xlu1 %2308 }
 0x331   : > { %319 = vst.msk [vmem:[#allocation2 + $0x130] sm:$0x3] %vm282_vm1, %v6644_v36  ;;  %v1335_v38 = vmul.f32 %v8130_v50, %v11696_v28  ;;  %v2599_v50 = vmul.f32 %v8347_v51, %v2457_v14  ;;  %v1580_v28 = vmul.f32 %v8246_v59, %v11703_v54 }
 0x332   : > { %320 = vst.msk [vmem:[#allocation2 + $0x138] sm:$0xff] %vm279_vm0, %v6644_v36  ;;  %v2115_v34 = vadd.f32 %v2083_v40, %v1856_v18  ;;  %v1577_v40 = vmul.f32 %v8246_v59, %v11700_v5  ;;  %v1601_v5 = vadd.f32 %v1569_v53, %v8308_v19  ;;  %v8501_v19 = vadd.f32 %v1574_v60, %v8355_v25 }
 0x333   : > { %321 = vst.msk [vmem:[#allocation2 + $0x140] sm:$0xff] %vm279_vm0, %v6644_v36  ;;  %v8498_v35 = vadd.f32 %v1335_v38, %v8201_v4  ;;  %v8504_v53 = vadd.f32 %v1564_v47, %v8211_v63  ;;  %v2344_v4 = vmul.f32 %v8325_v57, %v7941_v33  ;;  %v8522_v38 = vadd.f32 %v1567_v15, %v8225_v31  ;;  %v4045_v33 = vld [vmem:[%s11194_s3 + $0x110] sm:$0xff] }
 0x334   : > { %11692 = vst [vmem:[#allocation33_spill] sm:$0xff] %v8443_v24  ;;  %v2373_v18 = vadd.f32 %v2341_v12, %v2115_v34  ;;  %v11705_v12 = vld [vmem:[#allocation82_spill] sm:$0xff]  ;;  %v8519_v25 = vadd.f32 %v1577_v40, %v8369_v1  ;;  %v8525_v60 = vadd.f32 %v1580_v28, %v8403_v3  ;;  %v8528_v47 = vadd.f32 %v1570_v11, %v8237_v27  ;;  %v11709_v3 = vld [vmem:[#allocation88_spill] sm:$0xff] }
 0x335   : > { %11694 = vst [vmem:[#allocation54_spill] sm:$0xff] %v8447_v23  ;;  %v1583_v34 = vmul.f32 %v8246_v59, %v11705_v12  ;;  %v11708_v12 = vld [vmem:[#allocation75_spill] sm:$0xff]  ;;  %v8545_v40 = vmul.f32 %v8246_v59, %v11709_v3  ;;  %v4044_v11 = vld [vmem:[%s11194_s3 + $0x108] sm:$0xff] }
 0x336   : > { %322 = vst.msk [vmem:[#allocation2 + $0x148] sm:$0x3] %vm282_vm1, %v6644_v36  ;;  %v2631_v54 = vadd.f32 %v2599_v50, %v2373_v18  ;;  %v1859_v18 = vadd.f32 %v1827_v42, %v1601_v5  ;;  %v11711_v50 = vld [vmem:[#allocation158_spill] sm:$0xff]  ;;  %v11713_v5 = vld [vmem:[#allocation159_spill] sm:$0xff] }
 0x337   : > { %323 = vst.msk [vmem:[#allocation2 + $0x150] sm:$0xff] %vm279_vm0, %v6644_v36  ;;  %v8535_v42 = vadd.f32 %v1583_v34, %v1357_v13  ;;  %v1830_v15 = vmul.f32 %v8251_v46, %v11711_v50  ;;  %v11719_v50 = vld [vmem:[#allocation201_spill] sm:$0xff] }
 0x338   : > { %324 = vst.msk [vmem:[#allocation2 + $0x158] sm:$0xff] %vm279_vm0, %v6644_v36  ;;  %v2667_v63 = vadd.f32 %v8395_v58, %v2631_v54  ;;  %v2118_v31 = vadd.f32 %v2086_v39, %v1859_v18  ;;  %v8551_v28 = vpop.permute.xlu1 %2323  ;;  %v1576_v39 = vmul.f32 %v8246_v59, %v11714_v32  ;;  %v11715_v54 = vld [vmem:[#allocation142_spill] sm:$0xff] }
 0x339   : > { %11699 = vst [vmem:[#allocation34_spill] sm:$0xff] %v8470_v6  ;;  %v1572_v6 = vmul.f32 %v8246_v59, %v11708_v12  ;;  %v1575_v12 = vmul.f32 %v8246_v59, %v11715_v54  ;;  %v2793_v32 = vld [vmem:[#allocation2 + $0x9] sm:$0xff]  ;;  %v11720_v54 = vld [vmem:[#allocation147_spill] sm:$0xff] }
 0x33a   : > { %2729 = vst.msk [vmem:[#allocation2 + $0x21] sm:$0xff] %vm279_vm0, %v2696_v56  ;;  %v11706_v56 = vld [vmem:[#allocation83_spill] sm:$0xff]  ;;  %v2699_v13 = vmax.f32 %v2667_v63, 0.0  ;;  %v11717_v63 = vld [vmem:[#allocation144_spill] sm:$0xff] }
 0x33b   : > { %325 = vst.msk [vmem:[#allocation2 + $0x160] sm:$0x3] %vm282_vm1, %v6644_v36  ;;  %v1573_v14 = vmul.f32 %v8246_v59, %v11706_v56  ;;  %v4046_v56 = vld [vmem:[%s11194_s3 + $0x118] sm:$0xff]  ;;  %v1604_v27 = vadd.f32 %v1572_v6, %v8333_v21  ;;  %v1820_v21 = vmul.f32 %v8251_v46, %v11713_v5  ;;  %v2376_v6 = vadd.f32 %v2344_v4, %v2118_v31  ;;  %v11718_v31 = vld [vmem:[#allocation193_spill] sm:$0xff] }
 0x33c   : > { %326 = vst.msk [vmem:[#allocation2 + $0x168] sm:$0xff] %vm279_vm0, %v6644_v36  ;;  %4385 = vmatpush.msra.mxu2 %v4046_v56  ;;  %v11716_v56 = vld [vmem:[#allocation143_spill] sm:$0xff]  ;;  %v1578_v4 = vmul.f32 %v8246_v59, %v11717_v63  ;;  %v2079_v3 = vmul.f32 %v8299_v7, %v11718_v31  ;;  %v2792_v5 = vld [vmem:[#allocation2 + $0x1] sm:$0xff]  ;;  %v11721_v63 = vld [vmem:[#allocation148_spill] sm:$0xff] }
 0x33d   : > { %327 = vst.msk [vmem:[#allocation2 + $0x170] sm:$0xff] %vm279_vm0, %v6644_v36  ;;  %v8538_v1 = vadd.f32 %v1573_v14, %v8239_v41  ;;  %v2472_v41 = vpop.permute.xlu2 %2471  ;;  %v8561_v14 = vpop.permute.xlu0 %2318  ;;  %v1579_v18 = vmul.f32 %v8246_v59, %v11716_v56  ;;  %v1582_v56 = vmul.f32 %v8246_v59, %v11720_v54  ;;  %v1862_v23 = vadd.f32 %v1830_v15, %v1604_v27  ;;  %v11723_v15 = vld [vmem:[#allocation151_spill] sm:$0xff] }
 0x33e   : > { %328 = vst.msk [vmem:[#allocation2 + $0x178] sm:$0x3] %vm282_vm1, %v6644_v36  ;;  %4386 = vmatpush.msra.mxu2 %v4045_v33  ;;  %v2602_v34 = vmul.f32 %v8347_v51, %v2472_v41  ;;  %v4043_v33 = vld [vmem:[%s11194_s3 + $0x100] sm:$0xff]  ;;  %v2089_v41 = vmul.f32 %v8299_v7, %v11719_v50  ;;  %v6077_v31 = vpack.i.bf16 %v2793_v32, %v2792_v5 }
 0x33f   : > { %329 = vst.msk [vmem:[#allocation2 + $0x180] sm:$0xff] %vm279_vm0, %v6644_v36  ;;  %v11722_v50 = vld [vmem:[#allocation212_spill] sm:$0xff]  ;;  %v8598_v27 = vadd.f32 %v1579_v18, %v8305_v44 }
 0x340   : > { %330 = vst.msk [vmem:[#allocation2 + $0x188] sm:$0xff] %vm279_vm0, %v6644_v36  ;;  %4387 = vmatpush.msra.mxu2 %v4044_v11  ;;  %v2634_v11 = vadd.f32 %v2602_v34, %v2376_v6  ;;  %v2337_v24 = vmul.f32 %v8325_v57, %v11722_v50  ;;  %v8594_v34 = vadd.f32 %v1576_v39, %v8265_v37  ;;  %v11725_v39 = vld [vmem:[#allocation162_spill] sm:$0xff]  ;;  %v2437_v32 = vpop.permute.xlu1 %2436  ;;  %v11730_v50 = vld [vmem:[#allocation204_spill] sm:$0xff] }
 0x341   : > { %11710 = vst [vmem:[#allocation37_spill] sm:$0xff] %v8545_v40  ;;  %v1852_v40 = vadd.f32 %v1820_v21, %v8421_v48  ;;  %6078 = vrot.lane.b32.xlu0 %v6077_v31, %s6645_s17  ;;  %v1610_v48 = vadd.f32 %v1578_v4, %v8366_v62  ;;  %v11727_v4 = vld [vmem:[#allocation157_spill] sm:$0xff] }
 0x342   : > { %331 = vst.msk [vmem:[#allocation2 + $0x190] sm:$0x3] %vm282_vm1, %v6644_v36  ;;  %4388 = vmatpush.msra.mxu2 %v4043_v33  ;;  %v2670_v6 = vadd.f32 %v8395_v58, %v2634_v11  ;;  %v1607_v33 = vadd.f32 %v1575_v12, %v8352_v17  ;;  %v8605_v11 = vadd.f32 %v1582_v56, %v8330_v10  ;;  %v11724_v17 = vld [vmem:[#allocation161_spill] sm:$0xff]  ;;  %v11729_v56 = vld [vmem:[#allocation196_spill] sm:$0xff] }
 0x343   : > { %11712 = vst [vmem:[#allocation38_spill] sm:$0xff] %v8551_v28  ;;  %v1581_v28 = vmul.f32 %v8246_v59, %v11721_v63  ;;  %v2111_v21 = vadd.f32 %v2079_v3, %v1852_v40  ;;  %v1833_v44 = vmul.f32 %v8251_v46, %v11724_v17  ;;  %v1823_v12 = vmul.f32 %v8251_v46, %v11725_v39  ;;  %v11726_v40 = vld [vmem:[#allocation154_spill] sm:$0xff]  ;;  %v11733_v39 = vld [vmem:[#allocation215_spill] sm:$0xff] }
 0x344   : > { %332 = vst.msk [vmem:[#allocation2 + $0x198] sm:$0xff] %vm279_vm0, %v6644_v36  ;;  %v2702_v5 = vmax.f32 %v2670_v6, 0.0  ;;  %v2595_v10 = vmul.f32 %v8347_v51, %v2437_v32  ;;  %v1590_v3 = vmul.f32 %v8246_v59, %v11727_v4  ;;  %v2082_v31 = vmul.f32 %v8299_v7, %v11729_v56 }
 0x345   : > { %333 = vst.msk [vmem:[#allocation2 + $0x1a0] sm:$0xff] %vm279_vm0, %v6644_v36  ;;  %v8608_v37 = vadd.f32 %v1581_v28, %v8376_v61  ;;  %v2487_v18 = vpop.permute.xlu2 %2486  ;;  %v2369_v54 = vadd.f32 %v2337_v24, %v2111_v21  ;;  %v1587_v28 = vmul.f32 %v8246_v59, %v11726_v40  ;;  %v11731_v21 = vld [vmem:[#allocation160_spill] sm:$0xff]  ;;  %v2350_v32 = vmul.f32 %v8325_v57, %v8106_v52 }
 0x346   : > { %334 = vst.msk [vmem:[#allocation2 + $0x1a8] sm:$0x3] %vm282_vm1, %v6644_v36  ;;  %v2347_v36 = vmul.f32 %v8325_v57, %v8016_v0  ;;  %v2121_v0 = vadd.f32 %v2089_v41, %v1862_v23  ;;  %v2605_v62 = vmul.f32 %v8347_v51, %v2487_v18  ;;  %v8617_v23 = vpop.permute.xlu0 %2333  ;;  %v11728_v41 = vld [vmem:[#allocation163_spill] sm:$0xff]  ;;  %v2340_v18 = vmul.f32 %v8325_v57, %v11733_v39 }
 0x347   : > { %2732 = vst.msk [vmem:[#allocation2 + $0x49] sm:$0xff] %vm279_vm0, %v2699_v13  ;;  %v1584_v13 = vmul.f32 %v8246_v59, %v11723_v15  ;;  %v1822_v24 = vmul.f32 %v8251_v46, %v11728_v41  ;;  %v2627_v15 = vadd.f32 %v2595_v10, %v2369_v54  ;;  %v8644_v54 = vadd.f32 %v1587_v28, %v8440_v49  ;;  %v11736_v49 = vld [vmem:[#allocation165_spill] sm:$0xff]  ;;  %v11739_v39 = vld [vmem:[#allocation207_spill] sm:$0xff] }
 0x348   : > { %v2379_v63 = vadd.f32 %v2347_v36, %v2121_v0  ;;  %2735 = vst.msk [vmem:[#allocation2 + $0x69] sm:$0xff] %vm279_vm0, %v2702_v5  ;;  %v2092_v36 = vmul.f32 %v8299_v7, %v11730_v50  ;;  %v1855_v0 = vadd.f32 %v1823_v12, %v8432_v55  ;;  %v11732_v5 = vld [vmem:[#allocation182_spill] sm:$0xff]  ;;  %v11735_v12 = vld [vmem:[#allocation225_spill] sm:$0xff]  ;;  %v8652_v52 = vadd.f32 %v1590_v3, %v8456_v22 }
 0x349   : > { %v8620_v61 = vadd.f32 %v1584_v13, %v8424_v8  ;;  %v1593_v8 = vmul.f32 %v8246_v59, %v11731_v21  ;;  %v1865_v13 = vadd.f32 %v1833_v44, %v1607_v33  ;;  %v2081_v17 = vmul.f32 %v8299_v7, %v11732_v5  ;;  %v11734_v44 = vld [vmem:[#allocation164_spill] sm:$0xff]  ;;  %v11737_v3 = vld [vmem:[#allocation166_spill] sm:$0xff]  ;;  %v11738_v5 = vld [vmem:[#allocation199_spill] sm:$0xff] }
 0x34a   : > { %v2637_v6 = vadd.f32 %v2605_v62, %v2379_v63  ;;  %v2663_v63 = vadd.f32 %v8395_v58, %v2627_v15  ;;  %v1854_v33 = vadd.f32 %v1822_v24, %v8504_v53  ;;  %v1836_v55 = vmul.f32 %v8251_v46, %v11734_v44  ;;  %v11741_v44 = vld [vmem:[#allocation185_spill] sm:$0xff] }
 0x34b   : > { %v2339_v62 = vmul.f32 %v8325_v57, %v11735_v12  ;;  %v2114_v10 = vadd.f32 %v2082_v31, %v1855_v0  ;;  %v2124_v4 = vadd.f32 %v2092_v36, %v1865_v13  ;;  %v8655_v50 = vadd.f32 %v1593_v8, %v8498_v35 }
 0x34c   : > { %v2673_v40 = vadd.f32 %v8395_v58, %v2637_v6  ;;  %v2695_v56 = vmax.f32 %v2663_v63, 0.0  ;;  %v1826_v28 = vmul.f32 %v8251_v46, %v11736_v49  ;;  %v2113_v53 = vadd.f32 %v2081_v17, %v1854_v33  ;;  %v2452_v6 = vpop.permute.xlu1 %2451  ;;  %v11740_v33 = vld [vmem:[#allocation167_spill] sm:$0xff] }
 0x34d   : > { %v2502_v24 = vpop.permute.xlu2 %2501  ;;  %v2372_v15 = vadd.f32 %v2340_v18, %v2114_v10  ;;  %v2382_v21 = vadd.f32 %v2350_v32, %v2124_v4  ;;  %v2598_v36 = vmul.f32 %v8347_v51, %v2452_v6  ;;  %v1868_v22 = vadd.f32 %v1836_v55, %v1610_v48 }
 0x34e   : > { %v2705_v41 = vmax.f32 %v2673_v40, 0.0  ;;  %v2608_v31 = vmul.f32 %v8347_v51, %v2502_v24  ;;  %v2447_v13 = vpop.permute.xlu0 %2446  ;;  %v1825_v35 = vmul.f32 %v8251_v46, %v11737_v3  ;;  %v2371_v8 = vadd.f32 %v2339_v62, %v2113_v53  ;;  %2728 = vst.msk [vmem:[#allocation2 + $0x19] sm:$0xff] %vm279_vm0, %v2695_v56  ;;  %v11742_v62 = vld [vmem:[#allocation218_spill] sm:$0xff]  ;;  %v11744_v53 = vld [vmem:[#allocation9_spill] sm:$0xff] }
 0x34f   : > { %v2597_v0 = vmul.f32 %v8347_v51, %v2447_v13  ;;  %v2085_v17 = vmul.f32 %v8299_v7, %v11738_v5  ;;  %v2095_v18 = vmul.f32 %v8299_v7, %v11739_v39  ;;  %v2630_v40 = vadd.f32 %v2598_v36, %v2372_v15  ;;  %v11745_v13 = vld [vmem:[#allocation169_spill] sm:$0xff] }
 0x350   : > { %2738 = vst.msk [vmem:[#allocation2 + $0x91] sm:$0xff] %vm279_vm0, %v2705_v41  ;;  %v2640_v32 = vadd.f32 %v2608_v31, %v2382_v21  ;;  %v1858_v63 = vadd.f32 %v1826_v28, %v8453_v26  ;;  %v1839_v48 = vmul.f32 %v8251_v46, %v11740_v33  ;;  %v2084_v55 = vmul.f32 %v8299_v7, %v11741_v44  ;;  %v11743_v26 = vld [vmem:[#allocation168_spill] sm:$0xff]  ;;  %v11746_v44 = vld [vmem:[#allocation202_spill] sm:$0xff] }
 0x351   : > { %v2629_v12 = vadd.f32 %v2597_v0, %v2371_v8  ;;  %v2343_v10 = vmul.f32 %v8325_v57, %v11742_v62  ;;  %v2353_v4 = vmul.f32 %v8325_v57, %v8196_v9  ;;  %v2666_v56 = vadd.f32 %v8395_v58, %v2630_v40  ;;  %v2795_v40 = vld [vmem:[#allocation2 + $0x21] sm:$0xff] }
 0x352   : > { %v2676_v41 = vadd.f32 %v8395_v58, %v2640_v32  ;;  %v1857_v49 = vadd.f32 %v1825_v35, %v8522_v38  ;;  %v1829_v28 = vmul.f32 %v8251_v46, %v11743_v26  ;;  %v2342_v24 = vmul.f32 %v8325_v57, %v11744_v53  ;;  %v11750_v26 = vld [vmem:[#allocation188_spill] sm:$0xff] }
 0x353   : > { %v2665_v6 = vadd.f32 %v8395_v58, %v2629_v12  ;;  %v2117_v15 = vadd.f32 %v2085_v17, %v1858_v63  ;;  %v2127_v21 = vadd.f32 %v2095_v18, %v1868_v22  ;;  %v2698_v36 = vmax.f32 %v2666_v56, 0.0  ;;  %v11747_v12 = vld [vmem:[#allocation210_spill] sm:$0xff] }
 0x354   : > { %v2708_v31 = vmax.f32 %v2676_v41, 0.0  ;;  %v1871_v9 = vadd.f32 %v1839_v48, %v8608_v37  ;;  %v1828_v3 = vmul.f32 %v8251_v46, %v11745_v13  ;;  %v2116_v8 = vadd.f32 %v2084_v55, %v1857_v49  ;;  %v2467_v35 = vpop.permute.xlu1 %2466  ;;  %v11748_v41 = vld [vmem:[#allocation170_spill] sm:$0xff]  ;;  %v11752_v13 = vld [vmem:[#allocation172_spill] sm:$0xff] }
 0x355   : > { %v2697_v0 = vmax.f32 %v2665_v6, 0.0  ;;  %v2517_v38 = vpop.permute.xlu2 %2516  ;;  %v2375_v5 = vadd.f32 %v2343_v10, %v2117_v15  ;;  %v2385_v39 = vadd.f32 %v2353_v4, %v2127_v21  ;;  %v2601_v17 = vmul.f32 %v8347_v51, %v2467_v35  ;;  %v2794_v18 = vld [vmem:[#allocation2 + $0x19] sm:$0xff]  ;;  %2731 = vst.msk [vmem:[#allocation2 + $0x39] sm:$0xff] %vm279_vm0, %v2698_v36 }
 0x356   : > { %2741 = vst.msk [vmem:[#allocation2 + $0xb1] sm:$0xff] %vm279_vm0, %v2708_v31  ;;  %v2611_v32 = vmul.f32 %v8347_v51, %v2517_v38  ;;  %v2462_v22 = vpop.permute.xlu0 %2461  ;;  %v1861_v37 = vadd.f32 %v1829_v28, %v8460_v45  ;;  %v2374_v63 = vadd.f32 %v2342_v24, %v2116_v8  ;;  %v6082_v48 = vpack.i.bf16 %v2795_v40, %v2794_v18  ;;  %v11749_v45 = vld [vmem:[#allocation171_spill] sm:$0xff]  ;;  %v11751_v24 = vld [vmem:[#allocation221_spill] sm:$0xff] }
 0x357   : > { %v2600_v33 = vmul.f32 %v8347_v51, %v2462_v22  ;;  %v2088_v55 = vmul.f32 %v8299_v7, %v11746_v44  ;;  %v2098_v62 = vmul.f32 %v8299_v7, %v11747_v12  ;;  %2730 = vst.msk [vmem:[#allocation2 + $0x31] sm:$0xff] %vm279_vm0, %v2697_v0  ;;  %v2633_v4 = vadd.f32 %v2601_v17, %v2375_v5 }
 0x358   : > { %v2643_v10 = vadd.f32 %v2611_v32, %v2385_v39  ;;  %v1842_v56 = vmul.f32 %v8251_v46, %v11748_v41  ;;  %v1832_v49 = vmul.f32 %v8251_v46, %v11749_v45  ;;  %v2087_v28 = vmul.f32 %v8299_v7, %v11750_v26  ;;  %6083 = vrot.lane.b32.xlu1 %v6082_v48, %s6645_s17  ;;  %v11753_v48 = vld [vmem:[#allocation205_spill] sm:$0xff] }
 0x359   : > { %v2632_v53 = vadd.f32 %v2600_v33, %v2374_v63  ;;  %v2346_v6 = vmul.f32 %v8325_v57, %v11751_v24  ;;  %v2356_v15 = vmul.f32 %v8325_v57, %v8301_v43  ;;  %v2669_v31 = vadd.f32 %v8395_v58, %v2633_v4 }
 0x35a   : > { %v2679_v21 = vadd.f32 %v8395_v58, %v2643_v10  ;;  %v1860_v36 = vadd.f32 %v1828_v3, %v8528_v47  ;;  %v1831_v8 = vmul.f32 %v8251_v46, %v11752_v13  ;;  %v2345_v0 = vmul.f32 %v8325_v57, %v7927_v30 }
 0x35b   : > { %v2668_v38 = vadd.f32 %v8395_v58, %v2632_v53  ;;  %v2120_v35 = vadd.f32 %v2088_v55, %v1861_v37  ;;  %v2130_v5 = vadd.f32 %v2098_v62, %v1871_v9  ;;  %v2701_v32 = vmax.f32 %v2669_v31, 0.0 }
 0x35c   : > { %v2711_v39 = vmax.f32 %v2679_v21, 0.0  ;;  %v1874_v43 = vadd.f32 %v1842_v56, %v8620_v61  ;;  %v1864_v17 = vadd.f32 %v1832_v49, %v8501_v19  ;;  %v2119_v22 = vadd.f32 %v2087_v28, %v1860_v36  ;;  %v2482_v47 = vpop.permute.xlu1 %2481  ;;  %v2797_v9 = vld [vmem:[#allocation2 + $0x39] sm:$0xff]  ;;  %v11754_v61 = vld [vmem:[#allocation213_spill] sm:$0xff]  ;;  %v11756_v28 = vld [vmem:[#allocation191_spill] sm:$0xff] }
 0x35d   : > { %v2700_v18 = vmax.f32 %v2668_v38, 0.0  ;;  %v2532_v40 = vpop.permute.xlu2 %2531  ;;  %v2378_v3 = vadd.f32 %v2346_v6, %v2120_v35  ;;  %v2388_v63 = vadd.f32 %v2356_v15, %v2130_v5  ;;  %v2604_v33 = vmul.f32 %v8347_v51, %v2482_v47  ;;  %2734 = vst.msk [vmem:[#allocation2 + $0x61] sm:$0xff] %vm279_vm0, %v2701_v32  ;;  %v11755_v49 = vld [vmem:[#allocation173_spill] sm:$0xff]  ;;  %v11757_v6 = vld [vmem:[#allocation224_spill] sm:$0xff] }
 0x35e   : > { %2744 = vst.msk [vmem:[#allocation2 + $0xd9] sm:$0xff] %vm279_vm0, %v2711_v39  ;;  %v2614_v30 = vmul.f32 %v8347_v51, %v2532_v40  ;;  %v2477_v37 = vpop.permute.xlu0 %2476  ;;  %v2091_v44 = vmul.f32 %v8299_v7, %v11753_v48  ;;  %v2101_v19 = vmul.f32 %v8299_v7, %v11754_v61  ;;  %v2377_v55 = vadd.f32 %v2345_v0, %v2119_v22  ;;  %v8731_v62 = vld [vmem:[#allocation2 + $0x32] sm:$0xff]  ;;  %v8766_v48 = vld [vmem:[#allocation2 + $0x69] sm:$0xff] }
 0x35f   : > { %v2603_v12 = vmul.f32 %v8347_v51, %v2477_v37  ;;  %v2796_v10 = vld [vmem:[#allocation2 + $0x31] sm:$0xff]  ;;  %2733 = vst.msk [vmem:[#allocation2 + $0x51] sm:$0xff] %vm279_vm0, %v2700_v18  ;;  %v2636_v41 = vadd.f32 %v2604_v33, %v2378_v3  ;;  %5953 = vmatmul.msk.f32.vlgmr.msra.gmra.mxu2 %vm279_vm0, %v8731_v62  ;;  %v1863_v45 = vadd.f32 %v1831_v8, %v8538_v1  ;;  %v11758_v1 = vld [vmem:[#allocation174_spill] sm:$0xff]  ;;  %v11760_v40 = vld [vmem:[#allocation208_spill] sm:$0xff] }
 0x360   : > { %v2646_v4 = vadd.f32 %v2614_v30, %v2388_v63  ;;  %v8736_v56 = vpack.i.bf16 %v2797_v9, %v2796_v10  ;;  %v1845_v26 = vmul.f32 %v8251_v46, %v11755_v49  ;;  %v2090_v53 = vmul.f32 %v8299_v7, %v11756_v28  ;;  %v11759_v8 = vld [vmem:[#allocation175_spill] sm:$0xff]  ;;  %v2798_v10 = vld [vmem:[#allocation2 + $0x49] sm:$0xff]  ;;  %v11762_v28 = vld [vmem:[#allocation176_spill] sm:$0xff] }
 0x361   : > { %v2635_v24 = vadd.f32 %v2603_v12, %v2377_v55  ;;  %v2349_v15 = vmul.f32 %v8325_v57, %v11757_v6  ;;  %v2359_v21 = vmul.f32 %v8325_v57, %v8400_v16  ;;  %v2672_v36 = vadd.f32 %v8395_v58, %v2636_v41  ;;  %v8772_v55 = vld [vmem:[#allocation2 + $0x3a] sm:$0xff] }
 0x362   : > { %v2682_v31 = vadd.f32 %v8395_v58, %v2646_v4  ;;  %6088 = vrot.lane.b32.xlu2 %v8736_v56, %s6645_s17  ;;  %v1835_v13 = vmul.f32 %v8251_v46, %v11758_v1  ;;  %v1834_v0 = vmul.f32 %v8251_v46, %v11759_v8  ;;  %v2348_v38 = vmul.f32 %v8325_v57, %v8002_v2 }
 0x363   : > { %v2671_v35 = vadd.f32 %v8395_v58, %v2635_v24  ;;  %v2123_v5 = vadd.f32 %v2091_v44, %v1864_v17  ;;  %v2133_v16 = vadd.f32 %v2101_v19, %v1874_v43  ;;  %v2704_v32 = vmax.f32 %v2672_v36, 0.0  ;;  %v11763_v24 = vld [vmem:[#allocation194_spill] sm:$0xff] }
 0x364   : > { %v2714_v39 = vmax.f32 %v2682_v31, 0.0  ;;  %v1877_v22 = vadd.f32 %v1845_v26, %v8644_v54  ;;  %v2122_v18 = vadd.f32 %v2090_v53, %v1863_v45  ;;  %v2094_v47 = vmul.f32 %v8299_v7, %v11760_v40  ;;  %v2497_v30 = vpop.permute.xlu1 %2496  ;;  %v8764_v9 = vld [vmem:[#allocation2 + $0x61] sm:$0xff]  ;;  %v11761_v54 = vld [vmem:[#allocation216_spill] sm:$0xff]  ;;  %v11766_v40 = vld [vmem:[#allocation178_spill] sm:$0xff] }
 0x365   : > { %v2703_v3 = vmax.f32 %v2671_v35, 0.0  ;;  %v2547_v63 = vpop.permute.xlu2 %2546  ;;  %v2381_v33 = vadd.f32 %v2349_v15, %v2123_v5  ;;  %v2391_v37 = vadd.f32 %v2359_v21, %v2133_v16  ;;  %v2607_v17 = vmul.f32 %v8347_v51, %v2497_v30  ;;  %2737 = vst.msk [vmem:[#allocation2 + $0x81] sm:$0xff] %vm279_vm0, %v2704_v32  ;;  %v11764_v21 = vld [vmem:[#allocation8_spill] sm:$0xff] }
 0x366   : > { %2747 = vst.msk [vmem:[#allocation2 + $0xf9] sm:$0xff] %vm279_vm0, %v2714_v39  ;;  %v2617_v2 = vmul.f32 %v8347_v51, %v2547_v63  ;;  %v2492_v43 = vpop.permute.xlu0 %2491  ;;  %v2104_v44 = vmul.f32 %v8299_v7, %v11761_v54  ;;  %v2380_v61 = vadd.f32 %v2348_v38, %v2122_v18  ;;  %v6097_v12 = vpack.i.bf16 %v8766_v48, %v8764_v9  ;;  %v2799_v4 = vld [vmem:[#allocation2 + $0x51] sm:$0xff] }
 0x367   : > { %v2606_v19 = vmul.f32 %v8347_v51, %v2492_v43  ;;  %2736 = vst.msk [vmem:[#allocation2 + $0x79] sm:$0xff] %vm279_vm0, %v2703_v3  ;;  %v2639_v45 = vadd.f32 %v2607_v17, %v2381_v33  ;;  %5954 = vmatmul.msk.f32.gmra.mxu2 %vm279_vm0, %v8772_v55  ;;  %v8779_v49 = vpack.i.bf16 %v2799_v4, %v2798_v10  ;;  %v11767_v17 = vld [vmem:[#allocation211_spill] sm:$0xff] }
 0x368   : > { %v2649_v41 = vadd.f32 %v2617_v2, %v2391_v37  ;;  %v1867_v26 = vadd.f32 %v1835_v13, %v8519_v25  ;;  %v1848_v53 = vmul.f32 %v8251_v46, %v11762_v28  ;;  %v2093_v6 = vmul.f32 %v8299_v7, %v11763_v24  ;;  %6098 = vrot.lane.b32.xlu1 %v6097_v12, %s6645_s17  ;;  %v11765_v13 = vld [vmem:[#allocation177_spill] sm:$0xff]  ;;  %v11768_v43 = vld [vmem:[#allocation219_spill] sm:$0xff] }
 0x369   : > { %v2638_v15 = vadd.f32 %v2606_v19, %v2380_v61  ;;  %v2352_v31 = vmul.f32 %v8325_v57, %v11764_v21  ;;  %v2362_v36 = vmul.f32 %v8325_v57, %v8478_v29  ;;  %v2675_v8 = vadd.f32 %v8395_v58, %v2639_v45  ;;  %6093 = vrot.lane.b32.xlu0 %v8779_v49, %s6645_s17  ;;  %v8815_v19 = vld [vmem:[#allocation2 + $0x4a] sm:$0xff]  ;;  %v11769_v28 = vld [vmem:[#allocation197_spill] sm:$0xff] }
 0x36a   : > { %v2685_v1 = vadd.f32 %v8395_v58, %v2649_v41  ;;  %v1866_v25 = vadd.f32 %v1834_v0, %v8594_v34  ;;  %v1838_v38 = vmul.f32 %v8251_v46, %v11765_v13  ;;  %v2351_v35 = vmul.f32 %v8325_v57, %v8093_v20 }
 0x36b   : > { %v2674_v5 = vadd.f32 %v8395_v58, %v2638_v15  ;;  %v2126_v16 = vadd.f32 %v2094_v47, %v1867_v26  ;;  %v2136_v39 = vadd.f32 %v2104_v44, %v1877_v22  ;;  %v2707_v32 = vmax.f32 %v2675_v8, 0.0 }
 0x36c   : > { %v2717_v29 = vmax.f32 %v2685_v1, 0.0  ;;  %v1880_v18 = vadd.f32 %v1848_v53, %v8652_v52  ;;  %v1837_v3 = vmul.f32 %v8251_v46, %v11766_v40  ;;  %v2125_v63 = vadd.f32 %v2093_v6, %v1866_v25  ;;  %v2512_v0 = vpop.permute.xlu1 %2511  ;;  %v8807_v2 = vld [vmem:[#allocation2 + $0x81] sm:$0xff]  ;;  %v11770_v6 = vld [vmem:[#allocation18_spill] sm:$0xff]  ;;  %v11771_v1 = vld [vmem:[#allocation179_spill] sm:$0xff] }
 0x36d   : > { %v2706_v30 = vmax.f32 %v2674_v5, 0.0  ;;  %v2562_v34 = vpop.permute.xlu2 %2561  ;;  %v2384_v33 = vadd.f32 %v2352_v31, %v2126_v16  ;;  %v2394_v37 = vadd.f32 %v2362_v36, %v2136_v39  ;;  %v2610_v47 = vmul.f32 %v8347_v51, %v2512_v0  ;;  %2740 = vst.msk [vmem:[#allocation2 + $0xa9] sm:$0xff] %vm279_vm0, %v2707_v32  ;;  %v11773_v25 = vld [vmem:[#allocation24_spill] sm:$0xff]  ;;  %v11774_v39 = vld [vmem:[#allocation181_spill] sm:$0xff]  ;;  %v11775_v40 = vld [vmem:[#allocation214_spill] sm:$0xff] }
 0x36e   : > { %2750 = vst.msk [vmem:[#allocation2 + $0x121] sm:$0xff] %vm279_vm0, %v2717_v29  ;;  %v2620_v20 = vmul.f32 %v8347_v51, %v2562_v34  ;;  %v2507_v22 = vpop.permute.xlu0 %2506  ;;  %v2097_v52 = vmul.f32 %v8299_v7, %v11767_v17  ;;  %v2107_v54 = vmul.f32 %v8299_v7, %v11768_v43  ;;  %v2383_v44 = vadd.f32 %v2351_v35, %v2125_v63  ;;  %v8817_v12 = vld [vmem:[#allocation2 + $0x79] sm:$0xff]  ;;  %v11776_v17 = vld [vmem:[#allocation222_spill] sm:$0xff] }
 0x36f   : > { %v2609_v61 = vmul.f32 %v8347_v51, %v2507_v22  ;;  %2739 = vst.msk [vmem:[#allocation2 + $0x99] sm:$0xff] %vm279_vm0, %v2706_v30  ;;  %v2642_v4 = vadd.f32 %v2610_v47, %v2384_v33  ;;  %5955 = vmatmul.msk.f32.gmra.mxu2 %vm279_vm0, %v8815_v19  ;;  %v6102_v41 = vpack.i.bf16 %v8807_v2, %v8817_v12  ;;  %v8851_v22 = vld [vmem:[#allocation2 + $0xb1] sm:$0xff] }
 0x370   : > { %v2652_v10 = vadd.f32 %v2620_v20, %v2394_v37  ;;  %v1870_v45 = vadd.f32 %v1838_v38, %v8525_v60  ;;  %v1869_v26 = vadd.f32 %v1837_v3, %v8598_v27  ;;  %v2096_v53 = vmul.f32 %v8299_v7, %v11769_v28  ;;  %v11772_v27 = vld [vmem:[#allocation180_spill] sm:$0xff] }
 0x371   : > { %v2641_v24 = vadd.f32 %v2609_v61, %v2383_v44  ;;  %v2355_v15 = vmul.f32 %v8325_v57, %v11770_v6  ;;  %v2365_v21 = vmul.f32 %v8325_v57, %v8561_v14  ;;  %v2678_v36 = vadd.f32 %v8395_v58, %v2642_v4  ;;  %6103 = vrot.lane.b32.xlu2 %v6102_v41, %s6645_s17  ;;  %v8857_v44 = vld [vmem:[#allocation2 + $0x52] sm:$0xff] }
 0x372   : > { %v2688_v31 = vadd.f32 %v8395_v58, %v2652_v10  ;;  %v1851_v60 = vmul.f32 %v8251_v46, %v11771_v1  ;;  %v1841_v8 = vmul.f32 %v8251_v46, %v11772_v27  ;;  %v2354_v13 = vmul.f32 %v8325_v57, %v11773_v25  ;;  %v8861_v10 = vld [vmem:[#allocation2 + $0x91] sm:$0xff] }
 0x373   : > { %v2677_v38 = vadd.f32 %v8395_v58, %v2641_v24  ;;  %v2129_v35 = vadd.f32 %v2097_v52, %v1870_v45  ;;  %v2139_v5 = vadd.f32 %v2107_v54, %v1880_v18  ;;  %v2710_v16 = vmax.f32 %v2678_v36, 0.0  ;;  %v11777_v24 = vld [vmem:[#allocation200_spill] sm:$0xff]  ;;  %v11781_v25 = vld [vmem:[#allocation27_spill] sm:$0xff] }
 0x374   : > { %v2720_v14 = vmax.f32 %v2688_v31, 0.0  ;;  %v1840_v29 = vmul.f32 %v8251_v46, %v11774_v39  ;;  %v2128_v32 = vadd.f32 %v2096_v53, %v1869_v26  ;;  %v2100_v3 = vmul.f32 %v8299_v7, %v11775_v40  ;;  %v2527_v34 = vpop.permute.xlu1 %2526  ;;  %v8849_v47 = vld [vmem:[#allocation2 + $0xa9] sm:$0xff] }
 0x375   : > { %v2709_v63 = vmax.f32 %v2677_v38, 0.0  ;;  %v2577_v30 = vpop.permute.xlu2 %2576  ;;  %v2387_v0 = vadd.f32 %v2355_v15, %v2129_v35  ;;  %v2397_v33 = vadd.f32 %v2365_v21, %v2139_v5  ;;  %v2613_v18 = vmul.f32 %v8347_v51, %v2527_v34  ;;  %2743 = vst.msk [vmem:[#allocation2 + $0xc9] sm:$0xff] %vm279_vm0, %v2710_v16  ;;  %v11778_v21 = vld [vmem:[#allocation19_spill] sm:$0xff]  ;;  %v11782_v16 = vld [vmem:[#allocation150_spill] sm:$0xff] }
 0x376   : > { %2753 = vst.msk [vmem:[#allocation2 + $0x141] sm:$0xff] %vm279_vm0, %v2720_v14  ;;  %v2623_v37 = vmul.f32 %v8347_v51, %v2577_v30  ;;  %v2522_v20 = vpop.permute.xlu0 %2521  ;;  %v2110_v52 = vmul.f32 %v8299_v7, %v11776_v17  ;;  %v2386_v43 = vadd.f32 %v2354_v13, %v2128_v32  ;;  %v6112_v61 = vpack.i.bf16 %v8851_v22, %v8849_v47  ;;  %v8863_v4 = vld [vmem:[#allocation2 + $0x99] sm:$0xff]  ;;  %v11783_v32 = vld [vmem:[#allocation183_spill] sm:$0xff] }
 0x377   : > { %v2612_v54 = vmul.f32 %v8347_v51, %v2522_v20  ;;  %2742 = vst.msk [vmem:[#allocation2 + $0xc1] sm:$0xff] %vm279_vm0, %v2709_v63  ;;  %v2645_v45 = vadd.f32 %v2613_v18, %v2387_v0  ;;  %5956 = vmatmul.msk.f32.gmra.mxu2 %vm279_vm0, %v8857_v44  ;;  %v6107_v26 = vpack.i.bf16 %v8863_v4, %v8861_v10  ;;  %v11784_v20 = vld [vmem:[#allocation184_spill] sm:$0xff] }
 0x378   : > { %v2655_v41 = vadd.f32 %v2623_v37, %v2397_v33  ;;  %v1883_v28 = vadd.f32 %v1851_v60, %v8655_v50  ;;  %v1873_v53 = vadd.f32 %v1841_v8, %v8535_v42  ;;  %v2099_v6 = vmul.f32 %v8299_v7, %v11777_v24  ;;  %6113 = vrot.lane.b32.xlu1 %v6112_v61, %s6645_s17  ;;  %v11779_v50 = vld [vmem:[#allocation33_spill] sm:$0xff] }
 0x379   : > { %v2644_v15 = vadd.f32 %v2612_v54, %v2386_v43  ;;  %v2358_v31 = vmul.f32 %v8325_v57, %v11778_v21  ;;  %v2368_v36 = vmul.f32 %v8325_v57, %v8617_v23  ;;  %v2681_v27 = vadd.f32 %v8395_v58, %v2645_v45  ;;  %6108 = vrot.lane.b32.xlu0 %v6107_v26, %s6645_s17  ;;  %v11780_v42 = vld [vmem:[#allocation37_spill] sm:$0xff]  ;;  %v11788_v21 = vld [vmem:[#allocation203_spill] sm:$0xff] }
 0x37a   : > { %v2691_v1 = vadd.f32 %v8395_v58, %v2655_v41  ;;  %v1618_v60 = vadd.f32 %v11780_v42, %v11779_v50  ;;  %v1872_v8 = vadd.f32 %v1840_v29, %v8605_v11  ;;  %v2357_v13 = vmul.f32 %v8325_v57, %v11781_v25  ;;  %v8901_v41 = vld [vmem:[#allocation2 + $0x62] sm:$0xff]  ;;  %v11790_v25 = vld [vmem:[#allocation123_spill] sm:$0xff] }
 0x37b   : > { %v2680_v38 = vadd.f32 %v8395_v58, %v2644_v15  ;;  %v2132_v35 = vadd.f32 %v2100_v3, %v1873_v53  ;;  %v2142_v5 = vadd.f32 %v2110_v52, %v1883_v28  ;;  %v2713_v23 = vmax.f32 %v2681_v27, 0.0  ;;  %v11785_v52 = vld [vmem:[#allocation217_spill] sm:$0xff]  ;;  %v11786_v53 = vld [vmem:[#allocation87_spill] sm:$0xff]  ;;  %v11789_v27 = vld [vmem:[#allocation22_spill] sm:$0xff] }
 0x37c   : > { %v2723_v14 = vmax.f32 %v2691_v1, 0.0  ;;  %v1585_v39 = vmul.f32 %v8246_v59, %v11782_v16  ;;  %v1844_v40 = vmul.f32 %v8251_v46, %v11783_v32  ;;  %v2131_v63 = vadd.f32 %v2099_v6, %v1872_v8  ;;  %v2542_v0 = vpop.permute.xlu1 %2541  ;;  %v2809_v18 = vld [vmem:[#allocation2 + $0xc9] sm:$0xff]  ;;  %v11787_v6 = vld [vmem:[#allocation48_spill] sm:$0xff] }
 0x37d   : > { %v2712_v30 = vmax.f32 %v2680_v38, 0.0  ;;  %v2592_v34 = vpop.permute.xlu2 %2591  ;;  %v2390_v11 = vadd.f32 %v2358_v31, %v2132_v35  ;;  %v2400_v29 = vadd.f32 %v2368_v36, %v2142_v5  ;;  %v2616_v3 = vmul.f32 %v8347_v51, %v2542_v0  ;;  %2746 = vst.msk [vmem:[#allocation2 + $0xf1] sm:$0xff] %vm279_vm0, %v2713_v23  ;;  %v11791_v35 = vld [vmem:[#allocation32_spill] sm:$0xff]  ;;  %v11796_v0 = vld [vmem:[#allocation153_spill] sm:$0xff] }
 0x37e   : > { %2756 = vst.msk [vmem:[#allocation2 + $0x169] sm:$0xff] %vm279_vm0, %v2723_v14  ;;  %v2626_v33 = vmul.f32 %v8347_v51, %v2592_v34  ;;  %v2537_v37 = vpop.permute.xlu0 %2536  ;;  %v1843_v17 = vmul.f32 %v8251_v46, %v11784_v20  ;;  %v2103_v43 = vmul.f32 %v8299_v7, %v11785_v52  ;;  %v2389_v54 = vadd.f32 %v2357_v13, %v2131_v63  ;;  %v8903_v45 = vld [vmem:[#allocation2 + $0xc1] sm:$0xff]  ;;  %v11792_v5 = vld [vmem:[#allocation36_spill] sm:$0xff]  ;;  %v11793_v14 = vld [vmem:[#allocation54_spill] sm:$0xff] }
 0x37f   : > { %v2615_v61 = vmul.f32 %v8347_v51, %v2537_v37  ;;  %2745 = vst.msk [vmem:[#allocation2 + $0xe1] sm:$0xff] %vm279_vm0, %v2712_v30  ;;  %v2648_v28 = vadd.f32 %v2616_v3, %v2390_v11  ;;  %5957 = vmatmul.msk.f32.gmra.mxu2 %vm279_vm0, %v8901_v41  ;;  %v6117_v46 = vpack.i.bf16 %v2809_v18, %v8903_v45  ;;  %v11795_v63 = vld [vmem:[#allocation28_spill] sm:$0xff]  ;;  %v6554_v34 = vld [vmem:[%s11192_s1 + $0x4] ss:$0 sm:$0xff]  ;;  %v6555_v37 = vld [vmem:[%s11192_s1 + $0x5] ss:$0 sm:$0xff] }
 0x380   : > { %v2658_v26 = vadd.f32 %v2626_v33, %v2400_v29  ;;  %v1589_v24 = vmul.f32 %v8246_v59, %v11786_v53  ;;  %v1617_v15 = vadd.f32 %v1585_v39, %v11787_v6  ;;  %v2102_v31 = vmul.f32 %v8299_v7, %v11788_v21  ;;  %v6553_v59 = vld [vmem:[%s11192_s1 + $0x2] ss:$0 sm:$0xff]  ;;  %v11797_v18 = vld [vmem:[#allocation186_spill] sm:$0xff] }
 0x381   : > { %v2647_v36 = vadd.f32 %v2615_v61, %v2389_v54  ;;  %v1876_v1 = vadd.f32 %v1844_v40, %v1618_v60  ;;  %v2361_v50 = vmul.f32 %v8325_v57, %v11789_v27  ;;  %v2684_v8 = vadd.f32 %v8395_v58, %v2648_v28  ;;  %6118 = vrot.lane.b32.xlu2 %v6117_v46, %s6645_s17  ;;  %v11794_v40 = vld [vmem:[#allocation42_spill] sm:$0xff]  ;;  %v2813_v61 = vld [vmem:[#allocation2 + $0xf9] sm:$0xff] }
 0x382   : > { %v2694_v42 = vadd.f32 %v8395_v58, %v2658_v26  ;;  %v1075_v13 = vmul.f32 %v6553_v59, %v11790_v25  ;;  %v1875_v38 = vadd.f32 %v1843_v17, %v1617_v15  ;;  %v2360_v7 = vmul.f32 %v8325_v57, %v11791_v35  ;;  %v11798_v26 = vld [vmem:[#allocation187_spill] sm:$0xff]  ;;  %v2810_v15 = vld [vmem:[#allocation2 + $0xd9] sm:$0xff]  ;;  %v11801_v25 = vld [vmem:[#allocation206_spill] sm:$0xff] }
 0x383   : > { %v2683_v60 = vadd.f32 %v8395_v58, %v2647_v36  ;;  %v1363_v23 = vadd.f32 %v11793_v14, %v11792_v5  ;;  %v2135_v16 = vadd.f32 %v2103_v43, %v1876_v1  ;;  %v2716_v32 = vmax.f32 %v2684_v8, 0.0  ;;  %v11799_v36 = vld [vmem:[#allocation220_spill] sm:$0xff] }
 0x384   : > { %v2726_v39 = vmax.f32 %v2694_v42, 0.0  ;;  %v1362_v30 = vadd.f32 %v11795_v63, %v11794_v40  ;;  %v1588_v11 = vmul.f32 %v6554_v34, %v11796_v0  ;;  %v2134_v29 = vadd.f32 %v2102_v31, %v1875_v38  ;;  %v2557_v57 = vpop.permute.xlu1 %2556  ;;  %v2812_v54 = vld [vmem:[#allocation2 + $0xf1] sm:$0xff]  ;;  %v6556_v31 = vld [vmem:[%s11192_s1 + $0x6] ss:$0 sm:$0xff]  ;;  %v11800_v42 = vld [vmem:[#allocation124_spill] sm:$0xff] }
 0x385   : > { %v2715_v33 = vmax.f32 %v2683_v60, 0.0  ;;  %v1621_v3 = vadd.f32 %v1589_v24, %v1363_v23  ;;  %v1847_v20 = vmul.f32 %v6555_v37, %v11797_v18  ;;  %v2393_v17 = vadd.f32 %v2361_v50, %v2135_v16  ;;  %2749 = vst.msk [vmem:[#allocation2 + $0x111] sm:$0xff] %vm279_vm0, %v2716_v32  ;;  %v8943_v24 = vld [vmem:[#allocation2 + $0x6a] sm:$0xff]  ;;  %v6558_v23 = vld [vmem:[%s11192_s1 + $0x7] ss:$0 sm:$0xff] }
 0x386   : > { %2759 = vst.msk [vmem:[#allocation2 + $0x189] sm:$0xff] %vm279_vm0, %v2726_v39  ;;  %v2619_v52 = vmul.f32 %v8347_v51, %v2557_v57  ;;  %v2552_v43 = vpop.permute.xlu0 %2551  ;;  %v1846_v28 = vmul.f32 %v6555_v37, %v11798_v26  ;;  %v2392_v46 = vadd.f32 %v2360_v7, %v2134_v29  ;;  %v6127_v6 = vpack.i.bf16 %v2813_v61, %v2812_v54  ;;  %v2811_v21 = vld [vmem:[#allocation2 + $0xe1] sm:$0xff]  ;;  %v11802_v60 = vld [vmem:[#allocation51_spill] sm:$0xff]  ;;  %v11806_v29 = vld [vmem:[#allocation20_spill] sm:$0xff] }
 0x387   : > { %v2618_v53 = vmul.f32 %v8347_v51, %v2552_v43  ;;  %v2106_v1 = vmul.f32 %v6556_v31, %v11799_v36  ;;  %2748 = vst.msk [vmem:[#allocation2 + $0x109] sm:$0xff] %vm279_vm0, %v2715_v33  ;;  %5958 = vmatmul.msk.f32.gmra.mxu2 %vm279_vm0, %v8943_v24  ;;  %v6122_v50 = vpack.i.bf16 %v2811_v21, %v2810_v15  ;;  %v6557_v7 = vld [vmem:[%s11192_s1 + $0x3] ss:$0 sm:$0xff]  ;;  %v11803_v16 = vld [vmem:[#allocation23_spill] sm:$0xff]  ;;  %v11807_v57 = vld [vmem:[#allocation92_spill] sm:$0xff] }
 0x388   : > { %v2651_v27 = vadd.f32 %v2619_v52, %v2393_v17  ;;  %v1074_v51 = vmul.f32 %v6553_v59, %v11800_v42  ;;  %v1620_v8 = vadd.f32 %v1588_v11, %v1362_v30  ;;  %v2105_v38 = vmul.f32 %v6556_v31, %v11801_v25  ;;  %6128 = vrot.lane.b32.xlu1 %v6127_v6, %s6645_s17  ;;  %v11804_v32 = vld [vmem:[#allocation35_spill] sm:$0xff]  ;;  %v11805_v30 = vld [vmem:[#allocation34_spill] sm:$0xff]  ;;  %v11808_v17 = vld [vmem:[#allocation21_spill] sm:$0xff] }
 0x389   : > { %v2650_v35 = vadd.f32 %v2618_v53, %v2392_v46  ;;  %v1334_v5 = vmul.f32 %v6557_v7, %v11802_v60  ;;  %v1879_v14 = vadd.f32 %v1847_v20, %v1621_v3  ;;  %v2364_v39 = vmul.f32 %v6558_v23, %v11803_v16  ;;  %6123 = vrot.lane.b32.xlu0 %v6122_v50, %s6645_s17  ;;  %v11809_v43 = vld [vmem:[#allocation156_spill] sm:$0xff]  ;;  %v11810_v6 = vld [vmem:[#allocation189_spill] sm:$0xff] }
 0x38a   : > { %v2687_v59 = vadd.f32 %v8395_v58, %v2651_v27  ;;  %v1333_v40 = vmul.f32 %v6557_v7, %v11804_v32  ;;  %v1878_v63 = vadd.f32 %v1846_v28, %v1620_v8  ;;  %v2363_v0 = vmul.f32 %v6558_v23, %v11805_v30  ;;  %v11811_v27 = vld [vmem:[#allocation190_spill] sm:$0xff] }
 0x38b   : > { %v2686_v11 = vadd.f32 %v8395_v58, %v2650_v35  ;;  %v1107_v33 = vadd.f32 %v1075_v13, %v11806_v29  ;;  %v1592_v3 = vmul.f32 %v6554_v34, %v11807_v57  ;;  %v2138_v18 = vadd.f32 %v2106_v1, %v1879_v14  ;;  %v6559_v58 = vld [vmem:[%s11192_s1 + $0x8] ss:$0 sm:$0xff] }
 0x38c   : > { %v2719_v20 = vmax.f32 %v2687_v59, 0.0  ;;  %v1106_v52 = vadd.f32 %v1074_v51, %v11808_v17  ;;  %v1591_v54 = vmul.f32 %v6554_v34, %v11809_v43  ;;  %v2137_v61 = vadd.f32 %v2105_v38, %v1878_v63  ;;  %v2572_v46 = vpop.permute.xlu1 %2571  ;;  %v2815_v36 = vld [vmem:[#allocation2 + $0x111] sm:$0xff]  ;;  %v8979_v51 = vld [vmem:[#allocation2 + $0x7a] sm:$0xff]  ;;  %v11814_v59 = vld [vmem:[#allocation26_spill] sm:$0xff] }
 0x38d   : > { %v2718_v26 = vmax.f32 %v2686_v11, 0.0  ;;  %v1366_v53 = vadd.f32 %v1334_v5, %v1107_v33  ;;  %v1850_v28 = vmul.f32 %v6555_v37, %v11810_v6  ;;  %v2396_v15 = vadd.f32 %v2364_v39, %v2138_v18  ;;  %v11812_v38 = vld [vmem:[#allocation223_spill] sm:$0xff]  ;;  %v11813_v14 = vld [vmem:[#allocation209_spill] sm:$0xff] }
 0x38e   : > { %2752 = vst.msk [vmem:[#allocation2 + $0x139] sm:$0xff] %vm279_vm0, %v2719_v20  ;;  %v2622_v13 = vmul.f32 %v6559_v58, %v2572_v46  ;;  %v2567_v21 = vpop.permute.xlu0 %2566  ;;  %v1365_v1 = vadd.f32 %v1333_v40, %v1106_v52  ;;  %v1849_v50 = vmul.f32 %v6555_v37, %v11811_v27  ;;  %v2395_v34 = vadd.f32 %v2363_v0, %v2137_v61  ;;  %v2814_v8 = vld [vmem:[#allocation2 + $0x109] sm:$0xff]  ;;  %v6560_v40 = vld [vmem:[%s11193_s2] ss:$0 sm:$0xff]  ;;  %v2819_v17 = vld [vmem:[#allocation2 + $0x141] sm:$0xff] }
 0x38f   : > { %2751 = vst.msk [vmem:[#allocation2 + $0x129] sm:$0xff] %vm279_vm0, %v2718_v26  ;;  %v2621_v42 = vmul.f32 %v6559_v58, %v2567_v21  ;;  %v1624_v25 = vadd.f32 %v1592_v3, %v1366_v53  ;;  %v2109_v35 = vmul.f32 %v6556_v31, %v11812_v38  ;;  %5959 = vmatmul.msk.f32.gmra.mxu2 %vm279_vm0, %v8979_v51  ;;  %v11815_v0 = vld [vmem:[#allocation38_spill] sm:$0xff]  ;;  %v2816_v26 = vld [vmem:[#allocation2 + $0x121] sm:$0xff] }
 0x390   : > { %v2654_v7 = vadd.f32 %v2622_v13, %v2396_v15  ;;  %v6132_v60 = vpack.i.bf16 %v2815_v36, %v2814_v8  ;;  %v1623_v5 = vadd.f32 %v1591_v54, %v1365_v1  ;;  %v2108_v16 = vmul.f32 %v6556_v31, %v11813_v14  ;;  %v3024_v6 = vld [vmem:[#allocation2 + $0x82] sm:$0xff]  ;;  %v2825_v36 = vld [vmem:[#allocation2 + $0xa] sm:$0xff] }
 0x391   : > { %v2653_v39 = vadd.f32 %v2621_v42, %v2395_v34  ;;  %v1882_v37 = vadd.f32 %v1850_v28, %v1624_v25  ;;  %v2367_v32 = vmul.f32 %v6558_v23, %v11814_v59  ;;  %v2366_v11 = vmul.f32 %v6558_v23, %v11815_v0  ;;  %v2824_v21 = vld [vmem:[#allocation2 + $0x2] sm:$0xff]  ;;  %v3025_v25 = vld [vmem:[#allocation2 + $0x92] sm:$0xff] }
 0x392   : > { %v2690_v63 = vadd.f32 %v6560_v40, %v2654_v7  ;;  %6133 = vrot.lane.b32.xlu2 %v6132_v60, %s6645_s17  ;;  %v1881_v30 = vadd.f32 %v1849_v50, %v1623_v5  ;;  %v6157_v34 = vpack.i.bf16 %v2825_v36, %v2824_v21  ;;  %v9009_v7 = vpack.i.bf16 %v8857_v44, %v8815_v19  ;;  %v2827_v60 = vld [vmem:[#allocation2 + $0x22] sm:$0xff]  ;;  %v9027_v44 = vld [vmem:[#allocation2 + $0xaa] sm:$0xff] }
 0x393   : > { %v2689_v29 = vadd.f32 %v6560_v40, %v2653_v39  ;;  %v2141_v33 = vadd.f32 %v2109_v35, %v1882_v37  ;;  %v2826_v35 = vld [vmem:[#allocation2 + $0x1a] sm:$0xff]  ;;  %v9011_v5 = vld [vmem:[#allocation2 + $0x169] sm:$0xff]  ;;  %v9031_v59 = vpack.i.bf16 %v8943_v24, %v8901_v41  ;;  %v9049_v24 = vld [vmem:[#allocation2 + $0xb2] sm:$0xff] }
 0x394   : > { %v2722_v57 = vmax.f32 %v2690_v63, 0.0  ;;  %v2140_v3 = vadd.f32 %v2108_v16, %v1881_v30  ;;  %v2587_v31 = vpop.permute.xlu1 %2586  ;;  %v3026_v16 = vld [vmem:[#allocation2 + $0x9a] sm:$0xff]  ;;  %v9015_v39 = vpack.i.bf16 %v2827_v60, %v2826_v35  ;;  %v9047_v41 = vld [vmem:[#allocation2 + $0xe2] sm:$0xff]  ;;  %v9056_v63 = vpack.i.bf16 %v3024_v6, %v8979_v51 }
 0x395   : > { %v2721_v18 = vmax.f32 %v2689_v29, 0.0  ;;  %v2818_v20 = vld [vmem:[#allocation2 + $0x139] sm:$0xff]  ;;  %v2399_v52 = vadd.f32 %v2367_v32, %v2141_v33  ;;  %v2625_v43 = vmul.f32 %v6559_v58, %v2587_v31  ;;  %v9025_v19 = vpack.i.bf16 %v3026_v16, %v3025_v25  ;;  %11816 = vst [vmem:[#allocation60_spill] sm:$0xff] %v9047_v41  ;;  %v9070_v33 = vld [vmem:[#allocation2 + $0xca] sm:$0xff] }
 0x396   : > { %2755 = vst.msk [vmem:[#allocation2 + $0x159] sm:$0xff] %vm279_vm0, %v2722_v57  ;;  %v2582_v54 = vpop.permute.xlu0 %2581  ;;  %v6142_v61 = vpack.i.bf16 %v2819_v17, %v2818_v20  ;;  %v2817_v46 = vld [vmem:[#allocation2 + $0x129] sm:$0xff]  ;;  %v2398_v53 = vadd.f32 %v2366_v11, %v2140_v3  ;;  %v9035_v32 = vpack.i.bf16 %v8772_v55, %v8731_v62  ;;  %v6192_v55 = vpack.i.bf16 %v9049_v24, %v9027_v44  ;;  %v2844_v29 = vld [vmem:[#allocation2 + $0xf2] sm:$0xff]  ;;  %v9074_v57 = vld [vmem:[#allocation2 + $0xfa] sm:$0xff] }
 0x397   : > { %2754 = vst.msk [vmem:[#allocation2 + $0x151] sm:$0xff] %vm279_vm0, %v2721_v18  ;;  %v2624_v23 = vmul.f32 %v6559_v58, %v2582_v54  ;;  %v6137_v28 = vpack.i.bf16 %v2817_v46, %v2816_v26  ;;  %v2657_v15 = vadd.f32 %v2625_v43, %v2399_v52  ;;  %5960 = vmatmul.msk.f32.gmra.mxu2 %vm279_vm0, %v3024_v6  ;;  %v9064_v30 = vld [vmem:[#allocation2 + $0x122] sm:$0xff]  ;;  %v9066_v0 = vld [vmem:[#allocation2 + $0x12a] sm:$0xff]  ;;  %v9088_v17 = vld [vmem:[#allocation2 + $0x13a] sm:$0xff] }
 0x398   : > { %6143 = vrot.lane.b32.xlu1 %v6142_v61, %s6645_s17  ;;  %v9068_v11 = vld [vmem:[#allocation2 + $0xc2] sm:$0xff]  ;;  %v6217_v51 = vpack.i.bf16 %v9066_v0, %v9064_v30  ;;  %v6207_v3 = vpack.i.bf16 %v9074_v57, %v2844_v29  ;;  %v9090_v52 = vld [vmem:[#allocation2 + $0x10a] sm:$0xff]  ;;  %v9092_v43 = vld [vmem:[#allocation2 + $0x112] sm:$0xff] }
 0x399   : > { %v2656_v13 = vadd.f32 %v2624_v23, %v2398_v53  ;;  %6138 = vrot.lane.b32.xlu0 %v6137_v28, %s6645_s17  ;;  %v2693_v1 = vadd.f32 %v6560_v40, %v2657_v15  ;;  %v6197_v18 = vpack.i.bf16 %v9070_v33, %v9068_v11  ;;  %v9094_v54 = vld [vmem:[#allocation2 + $0x142] sm:$0xff]  ;;  %v6212_v46 = vpack.i.bf16 %v9092_v43, %v9090_v52  ;;  %v9107_v53 = vld [vmem:[#allocation2 + $0x18] sm:$0xff]  ;;  %v2861_v23 = vld [vmem:[#allocation2 + $0x50] sm:$0xff] }
 0x39a   : > { %v6222_v26 = vpack.i.bf16 %v9094_v54, %v9088_v17  ;;  %v9109_v6 = vld [vmem:[#allocation2 + $0x20] sm:$0xff] }
 0x39b   : > { %v2692_v27 = vadd.f32 %v6560_v40, %v2656_v13  ;;  %v2725_v50 = vmax.f32 %v2693_v1, 0.0  ;;  %v9045_v40 = vld [vmem:[#allocation2 + $0xda] sm:$0xff]  ;;  %v2860_v13 = vld [vmem:[#allocation2 + $0x48] sm:$0xff]  ;;  %v6237_v36 = vpack.i.bf16 %v9109_v6, %v9107_v53 }
 0x39c   : > { %v6202_v62 = vpack.i.bf16 %v9047_v41, %v9045_v40  ;;  %v9115_v21 = vpack.i.bf16 %v2861_v23, %v2860_v13  ;;  %v9162_v13 = vld [vmem:[#allocation2 + $0x128] sm:$0xff] }
 0x39d   : > { %v2724_v42 = vmax.f32 %v2692_v27, 0.0  ;;  %v8996_v8 = vld [vmem:[#allocation2 + $0x159] sm:$0xff]  ;;  %2758 = vst.msk [vmem:[#allocation2 + $0x181] sm:$0xff] %vm279_vm0, %v2725_v50  ;;  %v9127_v50 = vld [vmem:[#allocation2 + $0x30] sm:$0xff] }
 0x39e   : > { %v8999_v58 = vld [vmem:[#allocation2 + $0x151] sm:$0xff]  ;;  %v9113_v15 = vld [vmem:[#allocation2 + $0x15a] sm:$0xff]  ;;  %11818 = vst [vmem:[#allocation44_spill] sm:$0xff] %v9127_v50 }
 0x39f   : > { %2757 = vst.msk [vmem:[#allocation2 + $0x171] sm:$0xff] %vm279_vm0, %v2724_v42  ;;  %v6147_v38 = vpack.i.bf16 %v8996_v8, %v8999_v58  ;;  %5961 = vmatmul.msk.f32.gmra.mxu2 %vm279_vm0, %v3025_v25  ;;  %v9111_v28 = vld [vmem:[#allocation2 + $0x152] sm:$0xff]  ;;  %v2863_v42 = vld [vmem:[#allocation2 + $0x68] sm:$0xff] }
 0x3a0   : > { %6158 = vrot.lane.b32.xlu1 %v6157_v34, %s6646_s20  ;;  %v6227_v1 = vpack.i.bf16 %v9113_v15, %v9111_v28  ;;  %v2867_v27 = vld [vmem:[#allocation2 + $0x98] sm:$0xff]  ;;  %v2862_v34 = vld [vmem:[#allocation2 + $0x60] sm:$0xff]  ;;  %11821 = vst [vmem:[#allocation55_spill] sm:$0xff] %v9162_v13 }
 0x3a1   : > { %6148 = vrot.lane.b32.xlu2 %v6147_v38, %s6645_s17  ;;  %v9129_v25 = vld [vmem:[#allocation2 + $0x38] sm:$0xff]  ;;  %v2866_v38 = vld [vmem:[#allocation2 + $0x90] sm:$0xff]  ;;  %v9133_v60 = vpack.i.bf16 %v2863_v42, %v2862_v34  ;;  %v9172_v42 = vld [vmem:[#allocation2 + $0xc8] sm:$0xff] }
 0x3a2   : > { %11819 = vst [vmem:[#allocation49_spill] sm:$0xff] %v9129_v25  ;;  %v9131_v35 = vpack.i.bf16 %v2867_v27, %v2866_v38  ;;  %v9168_v27 = vld [vmem:[#allocation2 + $0xf0] sm:$0xff]  ;;  %v9170_v34 = vld [vmem:[#allocation2 + $0xf8] sm:$0xff] }
 0x3a6   : > { %v9013_v14 = vld [vmem:[#allocation2 + $0x171] sm:$0xff] }
 0x3a7   : > { %v6152_v37 = vpack.i.bf16 %v9013_v14, %v9011_v5  ;;  %5962 = vmatmul.msk.f32.gmra.mxu2 %vm279_vm0, %v3026_v16  ;;  %v9084_v31 = vld [vmem:[#allocation2 + $0x16a] sm:$0xff]  ;;  %v9086_v20 = vld [vmem:[#allocation2 + $0x172] sm:$0xff]  ;;  %v6242_v16 = vpack.i.bf16 %v9129_v25, %v9127_v50 }
 0x3a8   : > { %6173 = vrot.lane.b32.xlu1 %v9009_v7, %s6646_s20  ;;  %11817 = vst [vmem:[#allocation43_spill] sm:$0xff] %v9086_v20  ;;  %v6232_v61 = vpack.i.bf16 %v9086_v20, %v9084_v31  ;;  %v4017_v50 = vld [vmem:[%s11194_s3 + $0x30] sm:$0xff]  ;;  %v2781_v20 = vld [vmem:[#allocation2 + $0xf8] sm:$0xff] }
 0x3a9   : > { %6163 = vrot.lane.b32.xlu2 %v9015_v39, %s6646_s20  ;;  %6153 = vrot.lane.b32.xlu0 %v6152_v37, %s6645_s17  ;;  %v9144_v37 = vld [vmem:[#allocation2 + $0xe0] sm:$0xff] }
 0x3af   : > { %5963 = vmatmul.msk.f32.gmra.mxu2 %vm279_vm0, %v9027_v44 }
 0x3b0   : > { %6188 = vrot.lane.b32.xlu1 %v9025_v19, %s6646_s20 }
 0x3b1   : > { %6178 = vrot.lane.b32.xlu2 %v9031_v59, %s6646_s20  ;;  %6168 = vrot.lane.b32.xlu0 %v9035_v32, %s6646_s20 }
 0x3b7   : > { %5964 = vmatmul.msk.f32.gmra.mxu2 %vm279_vm0, %v9049_v24 }
 0x3b8   : > { %6203 = vrot.lane.b32.xlu1 %v6202_v62, %s6646_s20  ;;  %v2864_v62 = vld [vmem:[#allocation2 + $0x78] sm:$0xff] }
 0x3b9   : > { %6193 = vrot.lane.b32.xlu2 %v6192_v55, %s6646_s20  ;;  %6183 = vrot.lane.b32.xlu0 %v9056_v63, %s6646_s20 }
 0x3bc   : > { %v9146_v55 = vpop.permute.xlu2 %6088 }
 0x3bd   : > { %11820 = vst [vmem:[#allocation50_spill] sm:$0xff] %v9146_v55 }
 0x3bf   : > { %5965 = vmatmul.msk.f32.gmra.mxu2 %vm279_vm0, %v9068_v11 }
 0x3c0   : > { %6218 = vrot.lane.b32.xlu1 %v6217_v51, %s6646_s20  ;;  %v2868_v51 = vld [vmem:[#allocation2 + $0xa8] sm:$0xff] }
 0x3c1   : > { %6208 = vrot.lane.b32.xlu2 %v6207_v3, %s6646_s20  ;;  %6198 = vrot.lane.b32.xlu0 %v6197_v18, %s6646_s20  ;;  %v2869_v3 = vld [vmem:[#allocation2 + $0xb0] sm:$0xff]  ;;  %v2865_v18 = vld [vmem:[#allocation2 + $0x80] sm:$0xff] }
 0x3c2   : > { %v9154_v23 = vpack.i.bf16 %v2865_v18, %v2864_v62  ;;  %v6282_v62 = vpack.i.bf16 %v9170_v34, %v9168_v27 }
 0x3c7   : > { %5966 = vmatmul.msk.f32.gmra.mxu2 %vm279_vm0, %v9070_v33 }
 0x3c8   : > { %6233 = vrot.lane.b32.xlu1 %v6232_v61, %s6646_s20  ;;  %v9148_v61 = vld [vmem:[#allocation2 + $0xd8] sm:$0xff] }
 0x3c9   : > { %6223 = vrot.lane.b32.xlu2 %v6222_v26, %s6646_s20  ;;  %6213 = vrot.lane.b32.xlu0 %v6212_v46, %s6646_s20  ;;  %v6277_v26 = vpack.i.bf16 %v9144_v37, %v9148_v61  ;;  %v9152_v46 = vpack.i.bf16 %v2869_v3, %v2868_v51 }
 0x3ca   : > { %v9187_v3 = vpop.permute.xlu1 %6083 }
 0x3cf   : > { %5967 = vmatmul.msk.f32.gmra.mxu2 %vm279_vm0, %v9045_v40 }
 0x3d0   : > { %6248 = vrot.lane.b32.xlu1 %v9115_v21, %s6647_s21 }
 0x3d1   : > { %6238 = vrot.lane.b32.xlu2 %v6237_v36, %s6647_s21  ;;  %6228 = vrot.lane.b32.xlu0 %v6227_v1, %s6646_s20  ;;  %v9164_v36 = vld [vmem:[#allocation2 + $0xc0] sm:$0xff]  ;;  %v9166_v1 = vpop.permute.xlu2 %6103 }
 0x3d2   : > { %v6272_v51 = vpack.i.bf16 %v9172_v42, %v9164_v36 }
 0x3d7   : > { %5968 = vmatmul.msk.f32.gmra.mxu2 %vm279_vm0, %v9047_v41 }
 0x3d8   : > { %6263 = vrot.lane.b32.xlu1 %v9131_v35, %s6647_s21 }
 0x3d9   : > { %6253 = vrot.lane.b32.xlu2 %v9133_v60, %s6647_s21  ;;  %6243 = vrot.lane.b32.xlu0 %v6242_v16, %s6647_s21 }
 0x3db   : > { %v9189_v18 = vpop.permute.xlu2 %6118 }
 0x3df   : > { %5969 = vmatmul.msk.f32.gmra.mxu2 %vm279_vm0, %v2844_v29  ;;  %v9174_v29 = vld [vmem:[#allocation2 + $0x120] sm:$0xff] }
 0x3e0   : > { %6278 = vrot.lane.b32.xlu1 %v6277_v26, %s6647_s21  ;;  %11822 = vst [vmem:[#allocation56_spill] sm:$0xff] %v9174_v29  ;;  %v6292_v38 = vpack.i.bf16 %v9162_v13, %v9174_v29  ;;  %v9191_v26 = vld [vmem:[#allocation2 + $0x108] sm:$0xff]  ;;  %v9193_v13 = vld [vmem:[#allocation2 + $0x110] sm:$0xff] }
 0x3e1   : > { %6268 = vrot.lane.b32.xlu2 %v9152_v46, %s6647_s21  ;;  %6258 = vrot.lane.b32.xlu0 %v9154_v23, %s6647_s21  ;;  %11823 = vst [vmem:[#allocation61_spill] sm:$0xff] %v9193_v13  ;;  %v6287_v25 = vpack.i.bf16 %v9193_v13, %v9191_v26 }
 0x3e7   : > { %5970 = vmatmul.msk.f32.gmra.mxu2 %vm279_vm0, %v9074_v57  ;;  %v4026_v57 = vld [vmem:[%s11194_s3 + $0x78] sm:$0xff] }
 0x3e8   : > { %6293 = vrot.lane.b32.xlu1 %v6292_v38, %s6647_s21  ;;  %v9204_v38 = vpop.permute.xlu0 %6078  ;;  %4147 = vmatpush.msra.mxu0 %v4026_v57 }
 0x3e9   : > { %6283 = vrot.lane.b32.xlu2 %v6282_v62, %s6647_s21  ;;  %6273 = vrot.lane.b32.xlu0 %v6272_v51, %s6647_s21  ;;  %v4025_v62 = vld [vmem:[%s11194_s3 + $0x70] sm:$0xff]  ;;  %v9212_v51 = vpop.permute.xlu1 %6098 }
 0x3ea   : > { %5991 = vmatpush.msra.mxu3 %v4026_v57  ;;  %4148 = vmatpush.msra.mxu0 %v4025_v62 }
 0x3ec   : > { %5992 = vmatpush.msra.mxu3 %v4025_v62 }
 0x3ef   : > { %5971 = vmatmul.msk.f32.gmra.mxu2 %vm279_vm0, %v9090_v52  ;;  %v4024_v52 = vld [vmem:[%s11194_s3 + $0x68] sm:$0xff] }
 0x3f0   : > { %6308 = vrot.lane.b32.xlu1 %v8736_v56, %s6647_s21  ;;  %v9214_v56 = vpop.permute.xlu2 %6133  ;;  %4149 = vmatpush.msra.mxu0 %v4024_v52  ;;  %v9234_v62 = vpop.permute.xlu0 %6093 }
 0x3f1   : > { %6298 = vrot.lane.b32.xlu2 %v9015_v39, %s6645_s17  ;;  %6288 = vrot.lane.b32.xlu0 %v6287_v25, %s6647_s21  ;;  %v4023_v39 = vld [vmem:[%s11194_s3 + $0x60] sm:$0xff]  ;;  %v4022_v25 = vld [vmem:[%s11194_s3 + $0x58] sm:$0xff]  ;;  %v9232_v57 = vpop.permute.xlu1 %6113 }
 0x3f2   : > { %5993 = vmatpush.msra.mxu3 %v4024_v52  ;;  %4150 = vmatpush.msra.mxu0 %v4023_v39  ;;  %v9241_v52 = vld [vmem:[#allocation2 + $0x138] sm:$0xff] }
 0x3f3   : > { %11824 = vst [vmem:[#allocation62_spill] sm:$0xff] %v9241_v52 }
 0x3f4   : > { %5994 = vmatpush.msra.mxu3 %v4023_v39  ;;  %4151 = vmatpush.msra.mxu0 %v4022_v25  ;;  %v4019_v39 = vld [vmem:[%s11194_s3 + $0x40] sm:$0xff] }
 0x3f6   : > { %5995 = vmatpush.msra.mxu3 %v4022_v25  ;;  %v6085_v25 = vunpack.i.l.bf16 %v9187_v3 }
 0x3f7   : > { %5972 = vmatmul.msk.f32.gmra.mxu2 %vm279_vm0, %v9092_v43  ;;  %v4021_v43 = vld [vmem:[%s11194_s3 + $0x50] sm:$0xff] }
 0x3f8   : > { %6323 = vrot.lane.b32.xlu1 %v8779_v49, %s6647_s21  ;;  %4152 = vmatpush.msra.mxu0 %v4021_v43 }
 0x3f9   : > { %6313 = vrot.lane.b32.xlu2 %v9035_v32, %s6645_s17  ;;  %6303 = vrot.lane.b32.xlu0 %v6242_v16, %s6646_s20  ;;  %v6327_v32 = vpack.i.bf16 %v8764_v9, %v9241_v52  ;;  %v4020_v16 = vld [vmem:[%s11194_s3 + $0x48] sm:$0xff]  ;;  %v6086_v9 = vunpack.i.h.bf16 %v9187_v3  ;;  %v3819_v3 = vsel %vm279_vm0, %v9107_v53, %v6085_v25  ;;  %v6101_v53 = vunpack.i.h.bf16 %v9212_v51 }
 0x3fa   : > { %5996 = vmatpush.msra.mxu3 %v4021_v43  ;;  %v9260_v43 = vpop.permute.xlu1 %6128  ;;  %4153 = vmatpush.msra.mxu0 %v4020_v16 }
 0x3fb   : > { %v9239_v49 = vpop.permute.xlu2 %6148 }
 0x3fc   : > { %5997 = vmatpush.msra.mxu3 %v4020_v16  ;;  %4154 = vmatpush.msra.mxu0 %v4019_v39  ;;  %v3820_v16 = vsel %vm279_vm0, %v9109_v6, %v6086_v9  ;;  %v6100_v6 = vunpack.i.l.bf16 %v9212_v51  ;;  %v2768_v51 = vld [vmem:[#allocation2 + $0x60] sm:$0xff] }
 0x3fe   : > { %5998 = vmatpush.msra.mxu3 %v4019_v39 }
 0x3ff   : > { %5973 = vmatmul.msk.f32.gmra.mxu2 %vm279_vm0, %v9064_v30  ;;  %v9262_v30 = vpop.permute.xlu0 %6108 }
 0x400   : > { %6338 = vrot.lane.b32.xlu1 %v9133_v60, %s6646_s20  ;;  %v4018_v60 = vld [vmem:[%s11194_s3 + $0x38] sm:$0xff] }
 0x401   : > { %6328 = vrot.lane.b32.xlu2 %v6327_v32, %s6647_s21  ;;  %6318 = vrot.lane.b32.xlu0 %v9115_v21, %s6646_s20  ;;  %v9267_v21 = vld [vmem:[#allocation2 + $0x140] sm:$0xff] }
 0x402   : > { %11825 = vst [vmem:[#allocation66_spill] sm:$0xff] %v9267_v21  ;;  %4155 = vmatpush.msra.mxu0 %v4018_v60  ;;  %5999 = vmatpush.msra.mxu3 %v4018_v60  ;;  %v6342_v29 = vpack.i.bf16 %v8766_v48, %v9267_v21  ;;  %v4016_v48 = vld [vmem:[%s11194_s3 + $0x28] sm:$0xff] }
 0x403   : > { %v6164_v32 = vpop.permute.xlu2 %6163  ;;  %v2769_v60 = vld [vmem:[#allocation2 + $0x68] sm:$0xff] }
 0x404   : > { %v6166_v52 = vunpack.i.h.bf16 %v6164_v32  ;;  %v6165_v13 = vunpack.i.l.bf16 %v6164_v32  ;;  %4156 = vmatpush.msra.mxu0 %v4017_v50  ;;  %6000 = vmatpush.msra.mxu3 %v4017_v50  ;;  %v3825_v32 = vsel %vm279_vm0, %v2768_v51, %v6100_v6  ;;  %v9342_v51 = vld [vmem:[#allocation2 + $0x158] sm:$0xff] }
 0x406   : > { %v9279_v41 = vsel %vm3849_vm2, %v3819_v3, %v6165_v13  ;;  %v9282_v39 = vsel %vm3849_vm2, %v3820_v16, %v6166_v52  ;;  %v9305_v52 = vld [vmem:[#allocation2 + $0x150] sm:$0xff]  ;;  %4157 = vmatpush.msra.mxu0 %v4016_v48  ;;  %6001 = vmatpush.msra.mxu3 %v4016_v48  ;;  %v3826_v3 = vsel %vm279_vm0, %v2769_v60, %v6101_v53  ;;  %v4014_v48 = vld [vmem:[%s11194_s3 + $0x18] sm:$0xff]  ;;  %v6115_v53 = vunpack.i.l.bf16 %v9232_v57 }
 0x407   : > { %5974 = vmatmul.msk.f32.gmra.mxu2 %vm279_vm0, %v9066_v0  ;;  %v9298_v0 = vpop.permute.xlu0 %6123  ;;  %v6347_v16 = vpack.i.bf16 %v8817_v12, %v9305_v52  ;;  %v4013_v12 = vld [vmem:[%s11194_s3 + $0x10] sm:$0xff] }
 0x408   : > { %6353 = vrot.lane.b32.xlu1 %v9031_v59, %s6645_s17  ;;  %v9300_v59 = vld [vmem:[#allocation2 + $0x168] sm:$0xff] }
 0x409   : > { %6343 = vrot.lane.b32.xlu2 %v6342_v29, %s6647_s21  ;;  %6333 = vrot.lane.b32.xlu0 %v9009_v7, %s6645_s17  ;;  %v4015_v7 = vld [vmem:[%s11194_s3 + $0x20] sm:$0xff]  ;;  %v6367_v50 = vpack.i.bf16 %v8861_v10, %v9300_v59  ;;  %v6116_v10 = vunpack.i.h.bf16 %v9232_v57  ;;  %v2774_v57 = vld [vmem:[#allocation2 + $0xa8] sm:$0xff] }
 0x40a   : > { %v9296_v13 = vpop.permute.xlu1 %6143  ;;  %4158 = vmatpush.msra.mxu0 %v4015_v7  ;;  %6002 = vmatpush.msra.mxu3 %v4015_v7 }
 0x40b   : > { %v6179_v29 = vpop.permute.xlu2 %6178 }
 0x40c   : > { %v6181_v9 = vunpack.i.h.bf16 %v6179_v29  ;;  %v6180_v25 = vunpack.i.l.bf16 %v6179_v29  ;;  %4159 = vmatpush.msra.mxu0 %v4014_v48  ;;  %6003 = vmatpush.msra.mxu3 %v4014_v48 }
 0x40e   : > { %v9317_v29 = vsel %vm3849_vm2, %v3825_v32, %v6180_v25  ;;  %v9320_v21 = vsel %vm3849_vm2, %v3826_v3, %v6181_v9  ;;  %v9337_v9 = vld [vmem:[#allocation2 + $0x170] sm:$0xff]  ;;  %4160 = vmatpush.msra.mxu0 %v4013_v12  ;;  %6004 = vmatpush.msra.mxu3 %v4013_v12  ;;  %v4011_v12 = vld [vmem:[%s11194_s3] sm:$0xff] }
 0x40f   : > { %11826 = vst [vmem:[#allocation67_spill] sm:$0xff] %v9317_v29  ;;  %5975 = vmatmul.msk.f32.gmra.mxu2 %vm279_vm0, %v9088_v17  ;;  %v9335_v7 = vpop.permute.xlu0 %6138  ;;  %v2775_v32 = vld [vmem:[#allocation2 + $0xb0] sm:$0xff]  ;;  %v6382_v3 = vpack.i.bf16 %v8863_v4, %v9337_v9  ;;  %v6096_v4 = vunpack.i.h.bf16 %v9234_v62 }
 0x410   : > { %11827 = vst [vmem:[#allocation68_spill] sm:$0xff] %v9320_v21  ;;  %6368 = vrot.lane.b32.xlu1 %v6367_v50, %s6647_s21  ;;  %v3832_v48 = vsel %vm279_vm0, %v2775_v32, %v6116_v10  ;;  %v6362_v21 = vpack.i.bf16 %v8807_v2, %v9342_v51  ;;  %v6131_v2 = vunpack.i.h.bf16 %v9260_v43  ;;  %v6130_v10 = vunpack.i.l.bf16 %v9260_v43  ;;  %v2767_v32 = vld [vmem:[#allocation2 + $0x50] sm:$0xff] }
 0x411   : > { %6358 = vrot.lane.b32.xlu2 %v9154_v23, %s6646_s20  ;;  %6348 = vrot.lane.b32.xlu0 %v6347_v16, %s6647_s21  ;;  %11828 = vst [vmem:[#allocation72_spill] sm:$0xff] %v9335_v7  ;;  %v4012_v23 = vld [vmem:[%s11194_s3 + $0x8] sm:$0xff]  ;;  %v3831_v16 = vsel %vm279_vm0, %v2774_v57, %v6115_v53 }
 0x412   : > { %v9333_v6 = vpop.permute.xlu1 %6158  ;;  %4161 = vmatpush.msra.mxu0 %v4012_v23  ;;  %6005 = vmatpush.msra.mxu3 %v4012_v23  ;;  %v6095_v23 = vunpack.i.l.bf16 %v9234_v62  ;;  %v2766_v57 = vld [vmem:[#allocation2 + $0x48] sm:$0xff] }
 0x413   : > { %v6194_v25 = vpop.permute.xlu2 %6193 }
 0x414   : > { %v6196_v60 = vunpack.i.h.bf16 %v6194_v25  ;;  %v6195_v50 = vunpack.i.l.bf16 %v6194_v25  ;;  %4162 = vmatpush.msra.mxu0 %v4011_v12  ;;  %6006 = vmatpush.msra.mxu3 %v4011_v12 }
 0x416   : > { %v9354_v25 = vsel %vm3849_vm2, %v3831_v16, %v6195_v50  ;;  %v9357_v29 = vsel %vm3849_vm2, %v3832_v48, %v6196_v60  ;;  %v9371_v16 = vpop.f32.mrf.mxu2  ;;  %v9373_v48 = vld [vmem:[#allocation2 + $0x180] sm:$0xff] }
 0x417   : > { %11829 = vst [vmem:[#allocation73_spill] sm:$0xff] %v9354_v25  ;;  %5976 = vmatmul.msk.f32.gmra.mxu2 %vm279_vm0, %v9094_v54  ;;  %v6387_v55 = vpack.i.bf16 %v8849_v47, %v9373_v48  ;;  %v6146_v47 = vunpack.i.h.bf16 %v9296_v13 }
 0x418   : > { %11830 = vst [vmem:[#allocation74_spill] sm:$0xff] %v9357_v29  ;;  %6383 = vrot.lane.b32.xlu1 %v6382_v3, %s6647_s21 }
 0x419   : > { %6373 = vrot.lane.b32.xlu2 %v9056_v63, %s6645_s17  ;;  %6363 = vrot.lane.b32.xlu0 %v6362_v21, %s6647_s21  ;;  %11831 = vst [vmem:[#allocation78_spill] sm:$0xff] %v9371_v16  ;;  %v3823_v63 = vsel %vm279_vm0, %v2766_v57, %v6095_v23  ;;  %v3824_v21 = vsel %vm279_vm0, %v2767_v32, %v6096_v4  ;;  %v2772_v57 = vld [vmem:[#allocation2 + $0x90] sm:$0xff]  ;;  %v2773_v32 = vld [vmem:[#allocation2 + $0x98] sm:$0xff] }
 0x41a   : > { %v6174_v53 = vpop.permute.xlu1 %6173  ;;  %v3838_v16 = vsel %vm279_vm0, %v2781_v20, %v6131_v2  ;;  %v6145_v20 = vunpack.i.l.bf16 %v9296_v13  ;;  %v2786_v13 = vld [vmem:[#allocation2 + $0x138] sm:$0xff] }
 0x41b   : > { %v6176_v60 = vunpack.i.h.bf16 %v6174_v53  ;;  %v6175_v50 = vunpack.i.l.bf16 %v6174_v53  ;;  %v9369_v62 = vpop.permute.xlu0 %6153  ;;  %v6209_v3 = vpop.permute.xlu2 %6208  ;;  %v2780_v53 = vld [vmem:[#allocation2 + $0xf0] sm:$0xff] }
 0x41c   : > { %v6211_v29 = vunpack.i.h.bf16 %v6209_v3  ;;  %v6210_v43 = vunpack.i.l.bf16 %v6209_v3  ;;  %v3837_v7 = vsel %vm279_vm0, %v2780_v53, %v6130_v10 }
 0x41d   : > { %v9378_v25 = vsel %vm3849_vm2, %v3823_v63, %v6175_v50  ;;  %v9381_v12 = vsel %vm3849_vm2, %v3824_v21, %v6176_v60  ;;  %v6111_v50 = vunpack.i.h.bf16 %v9262_v30  ;;  %v6110_v60 = vunpack.i.l.bf16 %v9262_v30  ;;  %v9406_v30 = vld [vmem:[#allocation2 + $0x188] sm:$0xff]  ;;  %v2787_v21 = vld [vmem:[#allocation2 + $0x140] sm:$0xff] }
 0x41e   : > { %11832 = vst [vmem:[#allocation79_spill] sm:$0xff] %v9381_v12  ;;  %v9388_v23 = vsel %vm3849_vm2, %v3837_v7, %v6210_v43  ;;  %v9391_v4 = vsel %vm3849_vm2, %v3838_v16, %v6211_v29  ;;  %v9419_v12 = vpop.f32.mrf.mxu2 }
 0x41f   : > { %5977 = vmatmul.msk.f32.gmra.mxu2 %vm279_vm0, %v9111_v28  ;;  %11833 = vst [vmem:[#allocation80_spill] sm:$0xff] %v9419_v12 }
 0x420   : > { %6398 = vrot.lane.b32.xlu1 %v9152_v46, %s6646_s20  ;;  %v3829_v46 = vsel %vm279_vm0, %v2772_v57, %v6110_v60  ;;  %v6106_v60 = vunpack.i.h.bf16 %v9166_v1  ;;  %v6125_v57 = vunpack.i.l.bf16 %v9298_v0 }
 0x421   : > { %6388 = vrot.lane.b32.xlu2 %v6387_v55, %s6647_s21  ;;  %6378 = vrot.lane.b32.xlu0 %v9131_v35, %s6646_s20  ;;  %v6412_v55 = vpack.i.bf16 %v9164_v36, %v9305_v52  ;;  %v3830_v35 = vsel %vm279_vm0, %v2773_v32, %v6111_v50  ;;  %v6402_v36 = vpack.i.bf16 %v8851_v22, %v9406_v30  ;;  %v6126_v32 = vunpack.i.h.bf16 %v9298_v0  ;;  %v2771_v0 = vld [vmem:[#allocation2 + $0x80] sm:$0xff] }
 0x422   : > { %v6189_v29 = vpop.permute.xlu1 %6188  ;;  %v3843_v52 = vsel %vm279_vm0, %v2786_v13, %v6145_v20  ;;  %v3844_v50 = vsel %vm279_vm0, %v2787_v21, %v6146_v47  ;;  %v6080_v22 = vunpack.i.l.bf16 %v9204_v38  ;;  %v6160_v47 = vunpack.i.l.bf16 %v9333_v6 }
 0x423   : > { %v6191_v7 = vunpack.i.h.bf16 %v6189_v29  ;;  %v6190_v2 = vunpack.i.l.bf16 %v6189_v29  ;;  %v9404_v10 = vpop.permute.xlu0 %6168  ;;  %v6224_v16 = vpop.permute.xlu2 %6223  ;;  %v6105_v29 = vunpack.i.l.bf16 %v9166_v1  ;;  %v2770_v1 = vld [vmem:[#allocation2 + $0x78] sm:$0xff] }
 0x424   : > { %v6226_v3 = vunpack.i.h.bf16 %v6224_v16  ;;  %v6225_v63 = vunpack.i.l.bf16 %v6224_v16  ;;  %v2760_v16 = vld [vmem:[#allocation2] sm:$0xff] }
 0x425   : > { %v9413_v43 = vsel %vm3849_vm2, %v3829_v46, %v6190_v2  ;;  %v9416_v53 = vsel %vm3849_vm2, %v3830_v35, %v6191_v7  ;;  %v3827_v46 = vsel %vm279_vm0, %v2770_v1, %v6105_v29  ;;  %v2778_v35 = vld [vmem:[#allocation2 + $0xd8] sm:$0xff] }
 0x426   : > { %v9428_v2 = vsel %vm3849_vm2, %v3843_v52, %v6225_v63  ;;  %v9431_v7 = vsel %vm3849_vm2, %v3844_v50, %v6226_v3  ;;  %v3835_v21 = vsel %vm279_vm0, %v2778_v35, %v6125_v57 }
 0x427   : > { %11834 = vst [vmem:[#allocation84_spill] sm:$0xff] %v9428_v2  ;;  %5978 = vmatmul.msk.f32.gmra.mxu2 %vm279_vm0, %v9113_v15  ;;  %v3817_v2 = vsel %vm279_vm0, %v2760_v16, %v6080_v22  ;;  %v6427_v22 = vpack.i.bf16 %v9172_v42, %v9342_v51  ;;  %v9468_v16 = vpop.f32.mrf.mxu2  ;;  %v6161_v42 = vunpack.i.h.bf16 %v9333_v6  ;;  %v2777_v6 = vld [vmem:[#allocation2 + $0xc8] sm:$0xff] }
 0x428   : > { %11835 = vst [vmem:[#allocation85_spill] sm:$0xff] %v9431_v7  ;;  %6413 = vrot.lane.b32.xlu1 %v6412_v55, %s6646_s20  ;;  %v3828_v55 = vsel %vm279_vm0, %v2771_v0, %v6106_v60  ;;  %v3850_v60 = vsel %vm3849_vm2, %v3817_v2, %v6160_v47  ;;  %v6407_v2 = vpack.i.bf16 %v9027_v44, %v9088_v17  ;;  %v2761_v47 = vld [vmem:[#allocation2 + $0x8] sm:$0xff]  ;;  %v4041_v17 = vld [vmem:[%s11194_s3 + $0xf0] sm:$0xff] }
 0x429   : > { %6403 = vrot.lane.b32.xlu2 %v6402_v36, %s6647_s21  ;;  %6393 = vrot.lane.b32.xlu0 %v9025_v19, %s6645_s17  ;;  %v2779_v36 = vld [vmem:[#allocation2 + $0xe0] sm:$0xff] }
 0x42a   : > { %v6204_v20 = vpop.permute.xlu1 %6203  ;;  %v3836_v12 = vsel %vm279_vm0, %v2779_v36, %v6126_v32  ;;  %v6417_v32 = vpack.i.bf16 %v8903_v45, %v8999_v58  ;;  %v6121_v45 = vunpack.i.h.bf16 %v9189_v18  ;;  %v6120_v58 = vunpack.i.l.bf16 %v9189_v18 }
 0x42b   : > { %v6206_v3 = vunpack.i.h.bf16 %v6204_v20  ;;  %v6205_v63 = vunpack.i.l.bf16 %v6204_v20  ;;  %v6184_v13 = vpop.permute.xlu0 %6183  ;;  %v6239_v52 = vpop.permute.xlu2 %6238 }
 0x42c   : > { %v6186_v50 = vunpack.i.h.bf16 %v6184_v13  ;;  %v6185_v19 = vunpack.i.l.bf16 %v6184_v13  ;;  %v6240_v7 = vunpack.i.l.bf16 %v6239_v52  ;;  %v4040_v13 = vld [vmem:[%s11194_s3 + $0xe8] sm:$0xff] }
 0x42d   : > { %v9448_v29 = vsel %vm3849_vm2, %v3835_v21, %v6205_v63  ;;  %v9451_v1 = vsel %vm3849_vm2, %v3836_v12, %v6206_v3  ;;  %v4042_v12 = vld [vmem:[%s11194_s3 + $0xf8] sm:$0xff]  ;;  %v2776_v3 = vld [vmem:[#allocation2 + $0xc0] sm:$0xff]  ;;  %v3834_v21 = vsel %vm279_vm0, %v2777_v6, %v6121_v45  ;;  %v2782_v45 = vld [vmem:[#allocation2 + $0x108] sm:$0xff] }
 0x42e   : > { %v9455_v57 = vsel %vm3849_vm2, %v3827_v46, %v6185_v19  ;;  %v9458_v20 = vsel %vm3849_vm2, %v3828_v55, %v6186_v50  ;;  %v3883_v0 = vsel %vm3882_vm3, %v3850_v60, %v6240_v7  ;;  %v6081_v7 = vunpack.i.h.bf16 %v9204_v38  ;;  %4260 = vmatpush.msra.mxu1 %v4042_v12  ;;  %6007 = vmatpush.msrb.mxu3 %v4042_v12 }
 0x42f   : > { %4163 = vmatmul.f32.vlgmr.msra.gmra.mxu0 %v3883_v0  ;;  %5979 = vmatmul.msk.f32.gmra.mxu2 %vm279_vm0, %v9084_v31  ;;  %v6241_v46 = vunpack.i.h.bf16 %v6239_v52  ;;  %v3833_v55 = vsel %vm279_vm0, %v2776_v3, %v6120_v58  ;;  %v6442_v52 = vpack.i.bf16 %v9148_v61, %v9300_v59  ;;  %v6136_v60 = vunpack.i.h.bf16 %v9214_v56  ;;  %v4039_v61 = vld [vmem:[%s11194_s3 + $0xe0] sm:$0xff]  ;;  %v4038_v59 = vld [vmem:[%s11194_s3 + $0xd8] sm:$0xff]  ;;  %v2783_v58 = vld [vmem:[#allocation2 + $0x110] sm:$0xff] }
 0x430   : > { %6428 = vrot.lane.b32.xlu1 %v6427_v22, %s6646_s20  ;;  %4261 = vmatpush.msra.mxu1 %v4041_v17  ;;  %v3818_v63 = vsel %vm279_vm0, %v2761_v47, %v6081_v7  ;;  %v6135_v0 = vunpack.i.l.bf16 %v9214_v56  ;;  %v6561_v22 = vld [vmem:[#allocation2 + $0xc9] sm:$0xff]  ;;  %v6155_v7 = vunpack.i.l.bf16 %v9369_v62  ;;  %v6422_v56 = vpack.i.bf16 %v9049_v24, %v9094_v54 }
 0x431   : > { %6418 = vrot.lane.b32.xlu2 %v6417_v32, %s6647_s21  ;;  %6408 = vrot.lane.b32.xlu0 %v6407_v2, %s6645_s17  ;;  %v3851_v36 = vsel %vm3849_vm2, %v3818_v63, %v6161_v42  ;;  %v6432_v12 = vpack.i.bf16 %v6561_v22, %v8996_v8  ;;  %v6156_v2 = vunpack.i.h.bf16 %v9369_v62  ;;  %v4037_v62 = vld [vmem:[%s11194_s3 + $0xd0] sm:$0xff]  ;;  %v2790_v24 = vld [vmem:[#allocation2 + $0x168] sm:$0xff] }
 0x432   : > { %v9481_v51 = vpop.permute.xlu1 %6218  ;;  %6008 = vmatpush.msrb.mxu3 %v4041_v17  ;;  %4262 = vmatpush.msra.mxu1 %v4040_v13  ;;  %v3884_v32 = vsel %vm3882_vm3, %v3851_v36, %v6241_v46  ;;  %v2791_v54 = vld [vmem:[#allocation2 + $0x170] sm:$0xff]  ;;  %v3840_v17 = vsel %vm279_vm0, %v2783_v58, %v6136_v60  ;;  %v3847_v6 = vsel %vm279_vm0, %v2790_v24, %v6155_v7  ;;  %v4035_v7 = vld [vmem:[%s11194_s3 + $0xc0] sm:$0xff] }
 0x433   : > { %v6199_v44 = vpop.permute.xlu0 %6198  ;;  %v9486_v18 = vpop.permute.xlu2 %6253  ;;  %v3848_v63 = vsel %vm279_vm0, %v2791_v54, %v6156_v2  ;;  %v6437_v2 = vpack.i.bf16 %v9068_v11, %v9111_v28  ;;  %v4033_v28 = vld [vmem:[%s11194_s3 + $0xb0] sm:$0xff] }
 0x434   : > { %v6201_v38 = vunpack.i.h.bf16 %v6199_v44  ;;  %v6200_v35 = vunpack.i.l.bf16 %v6199_v44  ;;  %6009 = vmatpush.msrb.mxu3 %v4040_v13  ;;  %4263 = vmatpush.msra.mxu1 %v4039_v61  ;;  %v3839_v44 = vsel %vm279_vm0, %v2782_v45, %v6135_v0  ;;  %v2789_v45 = vld [vmem:[#allocation2 + $0x158] sm:$0xff] }
 0x436   : > { %v9498_v50 = vsel %vm3849_vm2, %v3833_v55, %v6200_v35  ;;  %v9501_v19 = vsel %vm3849_vm2, %v3834_v21, %v6201_v38  ;;  %4264 = vmatpush.msra.mxu1 %v4038_v59  ;;  %6010 = vmatpush.msrb.mxu3 %v4039_v61  ;;  %v4036_v21 = vld [vmem:[%s11194_s3 + $0xc8] sm:$0xff] }
 0x437   : > { %4166 = vmatmul.f32.gmra.mxu0 %v3884_v32  ;;  %v6562_v32 = vld [vmem:[#allocation2 + $0xd9] sm:$0xff] }
 0x438   : > { %6443 = vrot.lane.b32.xlu1 %v6442_v52, %s6646_s20  ;;  %4265 = vmatpush.msra.mxu1 %v4037_v62  ;;  %v6447_v22 = vpack.i.bf16 %v6562_v32, %v9011_v5  ;;  %v6151_v5 = vunpack.i.h.bf16 %v9239_v49 }
 0x439   : > { %6433 = vrot.lane.b32.xlu2 %v6432_v12, %s6647_s21  ;;  %6423 = vrot.lane.b32.xlu0 %v6422_v56, %s6645_s17  ;;  %v6457_v12 = vpack.i.bf16 %v9144_v37, %v9337_v9  ;;  %v6150_v37 = vunpack.i.l.bf16 %v9239_v49  ;;  %v4034_v9 = vld [vmem:[%s11194_s3 + $0xb8] sm:$0xff] }
 0x43a   : > { %v6234_v8 = vpop.permute.xlu1 %6233  ;;  %6011 = vmatpush.msrb.mxu3 %v4038_v59  ;;  %4266 = vmatpush.msra.mxu1 %v4036_v21 }
 0x43b   : > { %v6236_v42 = vunpack.i.h.bf16 %v6234_v8  ;;  %v6235_v47 = vunpack.i.l.bf16 %v6234_v8  ;;  %v6214_v46 = vpop.permute.xlu0 %6213  ;;  %v6269_v38 = vpop.permute.xlu2 %6268  ;;  %v2788_v8 = vld [vmem:[#allocation2 + $0x150] sm:$0xff] }
 0x43c   : > { %v6216_v35 = vunpack.i.h.bf16 %v6214_v46  ;;  %v6215_v3 = vunpack.i.l.bf16 %v6214_v46  ;;  %v6271_v13 = vunpack.i.h.bf16 %v6269_v38  ;;  %v6270_v55 = vunpack.i.l.bf16 %v6269_v38  ;;  %6012 = vmatpush.msrb.mxu3 %v4037_v62  ;;  %4267 = vmatpush.msra.mxu1 %v4035_v7 }
 0x43d   : > { %v9531_v36 = vsel %vm3849_vm2, %v3847_v6, %v6235_v47  ;;  %v9534_v52 = vsel %vm3849_vm2, %v3848_v63, %v6236_v42  ;;  %v4032_v47 = vld [vmem:[%s11194_s3 + $0xa8] sm:$0xff]  ;;  %v3845_v46 = vsel %vm279_vm0, %v2788_v8, %v6150_v37  ;;  %v3846_v62 = vsel %vm279_vm0, %v2789_v45, %v6151_v5 }
 0x43e   : > { %v9537_v60 = vsel %vm3849_vm2, %v3839_v44, %v6215_v3  ;;  %v9540_v0 = vsel %vm3849_vm2, %v3840_v17, %v6216_v35  ;;  %v9547_v61 = vsel %vm3882_vm3, %v9413_v43, %v6270_v55  ;;  %v9551_v59 = vsel %vm3882_vm3, %v9416_v53, %v6271_v13  ;;  %6013 = vmatpush.msrb.mxu3 %v4036_v21  ;;  %v6563_v44 = vld [vmem:[#allocation2 + $0xe1] sm:$0xff]  ;;  %v3001_v21 = vld [vmem:[#allocation2 + $0xf1] sm:$0xff]  ;;  %v11836_v8 = vld [vmem:[#allocation50_spill] sm:$0xff] }
 0x43f   : > { %4268 = vmatpush.msra.mxu1 %v4034_v9  ;;  %v6462_v17 = vpack.i.bf16 %v6563_v44, %v9013_v14  ;;  %v6472_v38 = vpack.i.bf16 %v9168_v27, %v9373_v48  ;;  %v6452_v6 = vpack.i.bf16 %v9070_v33, %v9113_v15  ;;  %v4031_v14 = vld [vmem:[%s11194_s3 + $0xa0] sm:$0xff]  ;;  %v4030_v27 = vld [vmem:[%s11194_s3 + $0x98] sm:$0xff]  ;;  %v4029_v33 = vld [vmem:[%s11194_s3 + $0x90] sm:$0xff]  ;;  %v6090_v45 = vunpack.i.l.bf16 %v11836_v8 }
 0x440   : > { %6458 = vrot.lane.b32.xlu1 %v6457_v12, %s6646_s20  ;;  %6014 = vmatpush.msrb.mxu3 %v4035_v7  ;;  %v3013_v63 = vld [vmem:[#allocation2 + $0x181] sm:$0xff] }
 0x441   : > { %6448 = vrot.lane.b32.xlu2 %v6447_v22, %s6647_s21  ;;  %6438 = vrot.lane.b32.xlu0 %v6437_v2, %s6645_s17  ;;  %v4028_v13 = vld [vmem:[%s11194_s3 + $0x88] sm:$0xff]  ;;  %v6477_v32 = vpack.i.bf16 %v3001_v21, %v3013_v63  ;;  %v6487_v22 = vpack.i.bf16 %v9170_v34, %v9406_v30  ;;  %v4027_v12 = vld [vmem:[%s11194_s3 + $0x80] sm:$0xff]  ;;  %v6467_v2 = vpack.i.bf16 %v9045_v40, %v9084_v31 }
 0x442   : > { %v9566_v43 = vpop.permute.xlu1 %6248  ;;  %4269 = vmatpush.msra.mxu1 %v4033_v28  ;;  %6015 = vmatpush.msrb.mxu3 %v4034_v9  ;;  %v3014_v9 = vld [vmem:[#allocation2 + $0x189] sm:$0xff]  ;;  %v2984_v21 = vld [vmem:[#allocation2 + $0x1a0] sm:$0xff] }
 0x443   : > { %v6229_v11 = vpop.permute.xlu0 %6228  ;;  %v6284_v49 = vpop.permute.xlu2 %6283 }
 0x444   : > { %v6231_v53 = vunpack.i.h.bf16 %v6229_v11  ;;  %v6230_v56 = vunpack.i.l.bf16 %v6229_v11  ;;  %v6286_v58 = vunpack.i.h.bf16 %v6284_v49  ;;  %v6285_v42 = vunpack.i.l.bf16 %v6284_v49  ;;  %4270 = vmatpush.msra.mxu1 %v4032_v47  ;;  %6016 = vmatpush.msrb.mxu3 %v4033_v28  ;;  %v2983_v11 = vld [vmem:[#allocation2 + $0x198] sm:$0xff] }
 0x445   : > { %v3002_v49 = vld [vmem:[#allocation2 + $0xf9] sm:$0xff] }
 0x446   : > { %v9577_v24 = vsel %vm3849_vm2, %v3845_v46, %v6230_v56  ;;  %v9580_v54 = vsel %vm3849_vm2, %v3846_v62, %v6231_v53  ;;  %v9587_v35 = vsel %vm3882_vm3, %v9448_v29, %v6285_v42  ;;  %v9591_v3 = vsel %vm3882_vm3, %v9451_v1, %v6286_v58  ;;  %4271 = vmatpush.msra.mxu1 %v4031_v14  ;;  %v11837_v58 = vld [vmem:[#allocation72_spill] sm:$0xff] }
 0x447   : > { %6017 = vmatpush.msrb.mxu3 %v4032_v47  ;;  %v6492_v53 = vpack.i.bf16 %v3002_v49, %v3014_v9  ;;  %v6502_v56 = vpack.i.bf16 %v9191_v26, %v2983_v11  ;;  %v6140_v42 = vunpack.i.l.bf16 %v11837_v58  ;;  %v11838_v47 = vld [vmem:[#allocation43_spill] sm:$0xff]  ;;  %v6170_v62 = vunpack.i.l.bf16 %v9404_v10  ;;  %v11843_v11 = vld [vmem:[#allocation74_spill] sm:$0xff] }
 0x448   : > { %6473 = vrot.lane.b32.xlu1 %v6472_v38, %s6646_s20  ;;  %4272 = vmatpush.msra.mxu1 %v4030_v27 }
 0x449   : > { %6463 = vrot.lane.b32.xlu2 %v6462_v17, %s6647_s21  ;;  %6453 = vrot.lane.b32.xlu0 %v6452_v6, %s6645_s17 }
 0x44a   : > { %v9604_v48 = vpop.permute.xlu1 %6263  ;;  %4273 = vmatpush.msra.mxu1 %v4029_v33  ;;  %6018 = vmatpush.msrb.mxu3 %v4031_v14 }
 0x44b   : > { %v6244_v29 = vpop.permute.xlu0 %6243  ;;  %v9609_v15 = vpop.permute.xlu2 %6298 }
 0x44c   : > { %v6245_v1 = vunpack.i.l.bf16 %v6244_v29  ;;  %4274 = vmatpush.msra.mxu1 %v4028_v13  ;;  %6019 = vmatpush.msrb.mxu3 %v4030_v27 }
 0x44e   : > { %v3885_v55 = vsel %vm3882_vm3, %v9279_v41, %v6245_v1  ;;  %v6246_v41 = vunpack.i.h.bf16 %v6244_v29  ;;  %4275 = vmatpush.msra.mxu1 %v4027_v12  ;;  %6020 = vmatpush.msrb.mxu3 %v4029_v33  ;;  %v11840_v29 = vld [vmem:[#allocation44_spill] sm:$0xff] }
 0x44f   : > { %4169 = vmatmul.f32.gmra.mxu0 %v3885_v55  ;;  %v3821_v33 = vsel %vm279_vm0, %v11840_v29, %v6090_v45  ;;  %v11841_v1 = vld [vmem:[#allocation56_spill] sm:$0xff]  ;;  %v6091_v45 = vunpack.i.h.bf16 %v11836_v8  ;;  %v11846_v29 = vld [vmem:[#allocation55_spill] sm:$0xff] }
 0x450   : > { %6488 = vrot.lane.b32.xlu1 %v6487_v22, %s6646_s20  ;;  %v3886_v28 = vsel %vm3882_vm3, %v9282_v39, %v6246_v41  ;;  %6021 = vmatpush.msrb.mxu3 %v4028_v13  ;;  %v6220_v39 = vunpack.i.l.bf16 %v9481_v51  ;;  %v3841_v63 = vsel %vm279_vm0, %v11841_v1, %v6140_v42  ;;  %v3003_v13 = vld [vmem:[#allocation2 + $0x109] sm:$0xff]  ;;  %v3015_v55 = vld [vmem:[#allocation2 + $0x199] sm:$0xff]  ;;  %v3854_v22 = vsel %vm3849_vm2, %v3821_v33, %v6170_v62 }
 0x451   : > { %6478 = vrot.lane.b32.xlu2 %v6477_v32, %s6647_s21  ;;  %6468 = vrot.lane.b32.xlu0 %v6467_v2, %s6645_s17  ;;  %v6507_v49 = vpack.i.bf16 %v3003_v13, %v3015_v55  ;;  %v6251_v62 = vunpack.i.h.bf16 %v9566_v43  ;;  %v6564_v8 = vld [vmem:[%s11194_s3 + $0x118] sm:$0xff]  ;;  %v9707_v13 = vpop.f32.mrf.mxu2 }
 0x452   : > { %v6279_v7 = vpop.permute.xlu1 %6278  ;;  %6022 = vmatpush.msrb.mxu3 %v4027_v12  ;;  %v2950_v12 = vld [vmem:[#allocation2 + $0x182] sm:$0xff] }
 0x453   : > { %v6281_v5 = vunpack.i.h.bf16 %v6279_v7  ;;  %v6280_v34 = vunpack.i.l.bf16 %v6279_v7  ;;  %v9626_v30 = vpop.permute.xlu0 %6258  ;;  %v9628_v37 = vpop.permute.xlu2 %6313 }
 0x455   : > { %v9632_v40 = vsel %vm3882_vm3, %v9498_v50, %v6280_v34  ;;  %v9636_v31 = vsel %vm3882_vm3, %v9501_v19, %v6281_v5  ;;  %v11839_v50 = vld [vmem:[#allocation60_spill] sm:$0xff]  ;;  %v6250_v19 = vunpack.i.l.bf16 %v9566_v43  ;;  %v3874_v5 = vsel %vm3849_vm2, %v3841_v63, %v6220_v39  ;;  %v11842_v34 = vld [vmem:[#allocation73_spill] sm:$0xff]  ;;  %v9705_v63 = vld [vmem:[#allocation2 + $0x18a] sm:$0xff] }
 0x456   : > { %v6482_v46 = vpack.i.bf16 %v11839_v50, %v11838_v47  ;;  %v6141_v47 = vunpack.i.h.bf16 %v11837_v58  ;;  %v6171_v50 = vunpack.i.h.bf16 %v9404_v10  ;;  %v3016_v43 = vld [vmem:[#allocation2 + $0x1a1] sm:$0xff] }
 0x457   : > { %4172 = vmatmul.f32.gmra.mxu0 %v3886_v28  ;;  %v3887_v7 = vsel %vm3882_vm3, %v3854_v22, %v6250_v19 }
 0x458   : > { %6503 = vrot.lane.b32.xlu1 %v6502_v56, %s6646_s20  ;;  %v3842_v33 = vsel %vm279_vm0, %v11846_v29, %v6141_v47  ;;  %v2940_v47 = vld [vmem:[#allocation2 + $0x10a] sm:$0xff] }
 0x459   : > { %6493 = vrot.lane.b32.xlu2 %v6492_v53, %s6647_s21  ;;  %6483 = vrot.lane.b32.xlu0 %v6482_v46, %s6645_s17  ;;  %v11844_v53 = vld [vmem:[#allocation61_spill] sm:$0xff]  ;;  %v6221_v46 = vunpack.i.h.bf16 %v9481_v51  ;;  %v9696_v51 = vld [vmem:[#allocation2 + $0x111] sm:$0xff] }
 0x45a   : > { %v6294_v26 = vpop.permute.xlu1 %6293  ;;  %v6517_v56 = vpack.i.bf16 %v11844_v53, %v2984_v21 }
 0x45b   : > { %v6296_v44 = vunpack.i.h.bf16 %v6294_v26  ;;  %v6295_v17 = vunpack.i.l.bf16 %v6294_v26  ;;  %v6274_v38 = vpop.permute.xlu0 %6273  ;;  %v9651_v6 = vpop.permute.xlu2 %6328  ;;  %v3875_v21 = vsel %vm3849_vm2, %v3842_v33, %v6221_v46  ;;  %v11847_v33 = vld [vmem:[#allocation79_spill] sm:$0xff] }
 0x45c   : > { %v6276_v14 = vunpack.i.h.bf16 %v6274_v38  ;;  %v6275_v27 = vunpack.i.l.bf16 %v6274_v38  ;;  %v6330_v32 = vunpack.i.l.bf16 %v9651_v6  ;;  %v6565_v38 = vld [vmem:[%s11194_s3 + $0x110] sm:$0xff] }
 0x45d   : > { %v9661_v2 = vsel %vm3882_vm3, %v9537_v60, %v6295_v17  ;;  %v9665_v41 = vsel %vm3882_vm3, %v9540_v0, %v6296_v44  ;;  %v2938_v0 = vld [vmem:[#allocation2 + $0xf2] sm:$0xff]  ;;  %v11845_v44 = vld [vmem:[#allocation49_spill] sm:$0xff] }
 0x45e   : > { %v9671_v9 = vsel %vm3882_vm3, %v11842_v34, %v6275_v27  ;;  %v9675_v28 = vsel %vm3882_vm3, %v11843_v11, %v6276_v14  ;;  %v3907_v60 = vsel %vm3882_vm3, %v3874_v5, %v6330_v32  ;;  %v6497_v42 = vpack.i.bf16 %v2938_v0, %v2950_v12  ;;  %v6566_v12 = vld [vmem:[%s11194_s3 + $0x108] sm:$0xff]  ;;  %v2939_v34 = vld [vmem:[#allocation2 + $0xfa] sm:$0xff] }
 0x45f   : > { %4175 = vmatmul.f32.gmra.mxu0 %v3887_v7  ;;  %4235 = vmatmul.f32.vlgmr.msra.gmra.mxu3 %v3907_v60  ;;  %v3822_v17 = vsel %vm279_vm0, %v11845_v44, %v6091_v45  ;;  %v6522_v5 = vpack.i.bf16 %v9696_v51, %v3016_v43  ;;  %v6512_v11 = vpack.i.bf16 %v2939_v34, %v9705_v63  ;;  %v2888_v0 = vld [vmem:[#allocation2 + $0x19] sm:$0xff]  ;;  %v3006_v44 = vld [vmem:[#allocation2 + $0x129] sm:$0xff]  ;;  %v2889_v43 = vld [vmem:[#allocation2 + $0x21] sm:$0xff] }
 0x460   : > { %6518 = vrot.lane.b32.xlu1 %v6517_v56, %s6646_s20  ;;  %6023 = vmatpush.msra.mxu3 %v6564_v8  ;;  %v3855_v27 = vsel %vm3849_vm2, %v3822_v17, %v6171_v50  ;;  %v2974_v34 = vld [vmem:[#allocation2 + $0x128] sm:$0xff] }
 0x461   : > { %6508 = vrot.lane.b32.xlu2 %v6507_v49, %s6647_s21  ;;  %6498 = vrot.lane.b32.xlu0 %v6497_v42, %s6645_s17  ;;  %v3888_v55 = vsel %vm3882_vm3, %v3855_v27, %v6251_v62  ;;  %v6567_v49 = vld [vmem:[%s11194_s3 + $0x100] sm:$0xff]  ;;  %v6301_v62 = vunpack.i.h.bf16 %v9609_v15 }
 0x462   : > { %v9687_v39 = vpop.permute.xlu1 %6308  ;;  %6024 = vmatpush.msra.mxu3 %v6565_v38 }
 0x463   : > { %v6289_v58 = vpop.permute.xlu0 %6288  ;;  %v9692_v19 = vpop.permute.xlu2 %6343  ;;  %v6310_v45 = vunpack.i.l.bf16 %v9687_v39  ;;  %v6311_v29 = vunpack.i.h.bf16 %v9687_v39 }
 0x464   : > { %v6291_v10 = vunpack.i.h.bf16 %v6289_v58  ;;  %v6290_v26 = vunpack.i.l.bf16 %v6289_v58  ;;  %v6345_v14 = vunpack.i.l.bf16 %v9692_v19  ;;  %6025 = vmatpush.msra.mxu3 %v6566_v12  ;;  %v9743_v58 = vpop.f32.mrf.mxu2 }
 0x466   : > { %v9713_v32 = vsel %vm3882_vm3, %v9388_v23, %v6290_v26  ;;  %v9717_v22 = vsel %vm3882_vm3, %v9391_v4, %v6291_v10  ;;  %v3908_v7 = vsel %vm3882_vm3, %v3875_v21, %v6345_v14  ;;  %v6300_v23 = vunpack.i.l.bf16 %v9609_v15  ;;  %6026 = vmatpush.msra.mxu3 %v6567_v49  ;;  %v9745_v26 = vld [vmem:[#allocation2 + $0x121] sm:$0xff] }
 0x467   : > { %4178 = vmatmul.f32.gmra.mxu0 %v3888_v55  ;;  %4238 = vmatmul.f32.gmra.mxu3 %v3908_v7  ;;  %v6255_v4 = vunpack.i.l.bf16 %v9486_v18  ;;  %v3916_v14 = vsel %vm279_vm0, %v2889_v43, %v6301_v62  ;;  %v6315_v21 = vunpack.i.l.bf16 %v9628_v37  ;;  %v2942_v7 = vld [vmem:[#allocation2 + $0x122] sm:$0xff]  ;;  %v2943_v62 = vld [vmem:[#allocation2 + $0x12a] sm:$0xff] }
 0x468   : > { %3633 = vrot.lane.b32.xlu1 %v11841_v1, %s6646_s20  ;;  %v3915_v42 = vsel %vm279_vm0, %v2888_v0, %v6300_v23  ;;  %v2941_v1 = vld [vmem:[#allocation2 + $0x112] sm:$0xff] }
 0x469   : > { %6523 = vrot.lane.b32.xlu2 %v6522_v5, %s6647_s21  ;;  %6513 = vrot.lane.b32.xlu0 %v6512_v11, %s6645_s17  ;;  %v3889_v50 = vsel %vm3882_vm3, %v9378_v25, %v6255_v4  ;;  %v6527_v17 = vpack.i.bf16 %v2941_v1, %v2940_v47  ;;  %v6256_v25 = vunpack.i.h.bf16 %v9486_v18  ;;  %v9761_v5 = vld [vmem:[#allocation2 + $0x139] sm:$0xff]  ;;  %v6260_v11 = vunpack.i.l.bf16 %v9626_v30  ;;  %v2890_v4 = vld [vmem:[#allocation2 + $0x31] sm:$0xff] }
 0x46a   : > { %v9731_v60 = vpop.permute.xlu1 %6323  ;;  %v6316_v1 = vunpack.i.h.bf16 %v9628_v37  ;;  %v2891_v37 = vld [vmem:[#allocation2 + $0x39] sm:$0xff] }
 0x46b   : > { %v6304_v53 = vpop.permute.xlu0 %6303  ;;  %v3890_v55 = vsel %vm3882_vm3, %v11847_v33, %v6256_v25  ;;  %v9772_v49 = vpop.permute.xlu2 %6358 }
 0x46c   : > { %v6305_v56 = vunpack.i.l.bf16 %v6304_v53  ;;  %v6306_v10 = vunpack.i.h.bf16 %v6304_v53  ;;  %v9766_v39 = vpop.f32.mrf.mxu2  ;;  %v3918_v43 = vsel %vm279_vm0, %v2891_v37, %v6316_v1  ;;  %v6331_v1 = vunpack.i.h.bf16 %v9651_v6 }
 0x46d   : > { %v6266_v6 = vunpack.i.h.bf16 %v9604_v48 }
 0x46e   : > { %v3947_v46 = vsel %vm3849_vm2, %v3915_v42, %v6305_v56  ;;  %v3948_v27 = vsel %vm3849_vm2, %v3916_v14, %v6306_v10  ;;  %v3917_v56 = vsel %vm279_vm0, %v2890_v4, %v6315_v21  ;;  %v11848_v42 = vld [vmem:[#allocation67_spill] sm:$0xff]  ;;  %v6261_v10 = vunpack.i.h.bf16 %v9626_v30 }
 0x46f   : > { %4181 = vmatmul.f32.gmra.mxu0 %v3889_v50  ;;  %v3979_v8 = vsel %vm3882_vm3, %v3947_v46, %v6310_v45  ;;  %v3980_v18 = vsel %vm3882_vm3, %v3948_v27, %v6311_v29  ;;  %v6325_v45 = vunpack.i.l.bf16 %v9731_v60  ;;  %v3891_v47 = vsel %vm3882_vm3, %v11848_v42, %v6260_v11 }
 0x470   : > { %4276 = vmatmul.f32.vlgmr.msra.gmra.mxu1 %v3979_v8  ;;  %3763 = vrot.lane.b32.xlu1 %v3006_v44, %s6647_s21  ;;  %v9781_v8 = vld [vmem:[#allocation2 + $0x141] sm:$0xff]  ;;  %v11849_v44 = vld [vmem:[#allocation62_spill] sm:$0xff]  ;;  %v6326_v29 = vunpack.i.h.bf16 %v9731_v60  ;;  %v6265_v4 = vunpack.i.l.bf16 %v9604_v48 }
 0x471   : > { %3761 = vrot.lane.b32.xlu2 %v9745_v26, %s6647_s21  ;;  %6528 = vrot.lane.b32.xlu0 %v6527_v17, %s6645_s17 }
 0x472   : > { %v9752_v15 = vpop.permute.xlu1 %6338 }
 0x473   : > { %v6319_v38 = vpop.permute.xlu0 %6318  ;;  %v9799_v33 = vpop.permute.xlu2 %6373  ;;  %v6340_v60 = vunpack.i.l.bf16 %v9752_v15 }
 0x474   : > { %v6320_v12 = vunpack.i.l.bf16 %v6319_v38  ;;  %v6321_v46 = vunpack.i.h.bf16 %v6319_v38  ;;  %v9794_v38 = vpop.f32.mrf.mxu2 }
 0x476   : > { %v3949_v0 = vsel %vm3849_vm2, %v3917_v56, %v6320_v12  ;;  %v3950_v27 = vsel %vm3849_vm2, %v3918_v43, %v6321_v46  ;;  %v11852_v56 = vld [vmem:[#allocation66_spill] sm:$0xff] }
 0x477   : > { %4184 = vmatmul.f32.gmra.mxu0 %v3890_v55  ;;  %v3981_v50 = vsel %vm3882_vm3, %v3949_v0, %v6325_v45  ;;  %v11850_v55 = vld [vmem:[#allocation68_spill] sm:$0xff] }
 0x478   : > { %4279 = vmatmul.f32.gmra.mxu1 %v3980_v18  ;;  %3765 = vrot.lane.b32.xlu1 %v9761_v5, %s6647_s21  ;;  %v3892_v21 = vsel %vm3882_vm3, %v11850_v55, %v6261_v10  ;;  %v11851_v18 = vld [vmem:[#allocation84_spill] sm:$0xff]  ;;  %v11853_v10 = vld [vmem:[#allocation85_spill] sm:$0xff]  ;;  %v6346_v55 = vunpack.i.h.bf16 %v9692_v19 }
 0x479   : > { %3509 = vrot.lane.b32.xlu2 %v2942_v7, %s6645_s17  ;;  %3635 = vrot.lane.b32.xlu0 %v2974_v34, %s6646_s20  ;;  %v3982_v7 = vsel %vm3882_vm3, %v3950_v27, %v6326_v29  ;;  %v2892_v34 = vld [vmem:[#allocation2 + $0x49] sm:$0xff] }
 0x47a   : > { %v9770_v23 = vpop.permute.xlu1 %6353 }
 0x47b   : > { %v6334_v53 = vpop.permute.xlu0 %6333  ;;  %v9821_v37 = vpop.permute.xlu2 %6388  ;;  %v6355_v48 = vunpack.i.l.bf16 %v9770_v23 }
 0x47c   : > { %v6335_v30 = vunpack.i.l.bf16 %v6334_v53  ;;  %v9815_v46 = vpop.f32.mrf.mxu2 }
 0x47e   : > { %v3919_v11 = vsel %vm279_vm0, %v2892_v34, %v6335_v30 }
 0x47f   : > { %4187 = vmatmul.f32.gmra.mxu0 %v3891_v47  ;;  %v3951_v47 = vsel %vm3849_vm2, %v3919_v11, %v6340_v60  ;;  %v2894_v11 = vld [vmem:[#allocation2 + $0x61] sm:$0xff]  ;;  %v6360_v60 = vunpack.i.l.bf16 %v9772_v49 }
 0x480   : > { %4282 = vmatmul.f32.gmra.mxu1 %v3981_v50  ;;  %3767 = vrot.lane.b32.xlu1 %v9781_v8, %s6647_s21  ;;  %v6336_v50 = vunpack.i.h.bf16 %v6334_v53  ;;  %v3983_v43 = vsel %vm3882_vm3, %v3951_v47, %v6331_v1  ;;  %v6341_v53 = vunpack.i.h.bf16 %v9752_v15  ;;  %v6356_v47 = vunpack.i.h.bf16 %v9770_v23 }
 0x481   : > { %3511 = vrot.lane.b32.xlu2 %v2943_v62, %s6645_s17  ;;  %3637 = vrot.lane.b32.xlu0 %v11849_v44, %s6646_s20  ;;  %v3893_v62 = vsel %vm3882_vm3, %v9455_v57, %v6265_v4  ;;  %v6361_v23 = vunpack.i.h.bf16 %v9772_v49  ;;  %s5689_s17 = scalar_lea.hbm %s11198_s7, %s5990_s18 }
 0x482   : > { %v9789_v17 = vpop.permute.xlu1 %6368  ;;  %s5692_s21 = sshll.u32 %s5689_s17, 4  ;;  %s5693_s21 = int_to_ptr.hbm [resolvable:$true] %s5692_s21 }
 0x483   : > { %v9791_v25 = vpop.permute.xlu0 %6348  ;;  %v6370_v29 = vunpack.i.l.bf16 %v9789_v17  ;;  %v9842_v34 = vpop.permute.xlu2 %6403  ;;  %s6593_s23 = sshra.s32 %s5693_s21, 4  ;;  %s6594_s23 = int_to_ptr.hbm [resolvable:$true] %s6593_s23 }
 0x484   : > { %v6350_v14 = vunpack.i.l.bf16 %v9791_v25  ;;  %v6351_v4 = vunpack.i.h.bf16 %v9791_v25  ;;  %s6595_s24 = scalar_lea.hbm %s6594_s23, 16  ;;  %p6600_p0 = scmp.lt.s32.totalorder %s6594_s23, %s11198_s7 }
 0x485   : > { %p6596_p11 = scmp.ne.s32.totalorder %s6594_s23, %s6595_s24  ;;  %p6601_p1 = scmp.lt.s32.totalorder %s6599_s9, %s6595_s24 }
 0x486   : > { %v3909_v12 = vsel %vm3882_vm3, %v11851_v18, %v6350_v14  ;;  %v2893_v14 = vld [vmem:[#allocation2 + $0x51] sm:$0xff]  ;;  %v3894_v18 = vsel %vm3882_vm3, %v9458_v20, %v6266_v6  ;;  %v6375_v6 = vunpack.i.l.bf16 %v9799_v33 }
 0x487   : > { %4190 = vmatmul.f32.gmra.mxu0 %v3892_v21  ;;  %4241 = vmatmul.f32.gmra.mxu3 %v3909_v12  ;;  %v3920_v27 = vsel %vm279_vm0, %v2893_v14, %v6336_v50  ;;  %v3911_v12 = vsel %vm3882_vm3, %v9577_v24, %v6370_v29  ;;  %v3921_v24 = vsel %vm279_vm0, %v2894_v11, %v6355_v48  ;;  %v6405_v29 = vunpack.i.l.bf16 %v9842_v34  ;;  %p6597_p12 = pnand %p6596_p11, %p6731_p5  ;;  %p6602_p2 = por %p6601_p1, %p6600_p0 }
 0x488   : > { %4285 = vmatmul.f32.gmra.mxu1 %v3982_v7  ;;  %v3952_v30 = vsel %vm3849_vm2, %v3920_v27, %v6341_v53  ;;  %v9840_v7 = vpop.f32.mrf.mxu2  ;;  %v6371_v48 = vunpack.i.h.bf16 %v9789_v17  ;;  %v6376_v11 = vunpack.i.h.bf16 %v9799_v33 }
 0x489   : > { %3639 = vrot.lane.b32.xlu0 %v11852_v56, %s6646_s20  ;;  %v3984_v15 = vsel %vm3882_vm3, %v3952_v30, %v6346_v55  ;;  %v2896_v30 = vld [vmem:[#allocation2 + $0x79] sm:$0xff]  ;;  %s5690_s20 = sshll.u32 %s11099_s16, 4  ;;  %p6598_p13 = pneg %p6597_p12  ;;  %s5691_s20 = int_to_ptr.vmem [resolvable:$true] %s5690_s20 }
 0x48a   : > { %v9811_v45 = vpop.permute.xlu1 %6383  ;;  %v3923_v55 = vsel %vm279_vm0, %v2896_v30, %v6375_v6 }
 0x48b   : > { %v6364_v0 = vpop.permute.xlu0 %6363  ;;  %v6385_v19 = vunpack.i.l.bf16 %v9811_v45  ;;  %p6603_p3 = pnand %p6602_p2, %p6598_p13 }
 0x48c   : > { %v6365_v42 = vunpack.i.l.bf16 %v6364_v0 }
 0x48d   : > { %v3912_v56 = vsel %vm3882_vm3, %v9580_v54, %v6385_v19  ;;  %v6366_v54 = vunpack.i.h.bf16 %v6364_v0  ;;  %v3914_v19 = vsel %vm3882_vm3, %v9534_v52, %v6405_v29 }
 0x48e   : > { %v3910_v44 = vsel %vm3882_vm3, %v11853_v10, %v6365_v42  ;;  %v3953_v42 = vsel %vm3849_vm2, %v3921_v24, %v6360_v60  ;;  %v2895_v10 = vld [vmem:[#allocation2 + $0x69] sm:$0xff] }
 0x48f   : > { %4193 = vmatmul.f32.gmra.mxu0 %v3893_v62  ;;  %4244 = vmatmul.f32.gmra.mxu3 %v3910_v44  ;;  %v3985_v1 = vsel %vm3882_vm3, %v3953_v42, %v6351_v4  ;;  %v6390_v62 = vunpack.i.l.bf16 %v9821_v37  ;;  %v9861_v44 = vpop.permute.xlu2 %6418 }
 0x490   : > { %4288 = vmatmul.f32.gmra.mxu1 %v3983_v43  ;;  %v9858_v25 = vpop.f32.mrf.mxu2  ;;  %v3922_v43 = vsel %vm279_vm0, %v2895_v10, %v6356_v47  ;;  %v6420_v33 = vunpack.i.l.bf16 %v9861_v44 }
 0x491   : > { %v3954_v27 = vsel %vm3849_vm2, %v3922_v43, %v6361_v23 }
 0x492   : > { %v9832_v21 = vpop.permute.xlu1 %6398  ;;  %v3986_v53 = vsel %vm3882_vm3, %v3954_v27, %v6366_v54  ;;  %v2898_v27 = vld [vmem:[#allocation2 + $0x91] sm:$0xff] }
 0x493   : > { %v9828_v57 = vpop.permute.xlu0 %6378 }
 0x494   : > { %v6380_v0 = vunpack.i.l.bf16 %v9828_v57  ;;  %v6381_v24 = vunpack.i.h.bf16 %v9828_v57 }
 0x497   : > { %4196 = vmatmul.f32.gmra.mxu0 %v3894_v18  ;;  %4247 = vmatmul.f32.gmra.mxu3 %v3911_v12 }
 0x498   : > { %4291 = vmatmul.f32.gmra.mxu1 %v3984_v15  ;;  %v9885_v15 = vpop.permute.xlu2 %6433 }
 0x499   : > { %v6435_v29 = vunpack.i.l.bf16 %v9885_v15 }
 0x49a   : > { %v9856_v50 = vpop.permute.xlu1 %6413 }
 0x49b   : > { %v9846_v20 = vpop.permute.xlu0 %6393  ;;  %v6415_v17 = vunpack.i.l.bf16 %v9856_v50 }
 0x49f   : > { %4199 = vmatmul.f32.gmra.mxu0 %v9547_v61  ;;  %4250 = vmatmul.f32.gmra.mxu3 %v3912_v56  ;;  %v3913_v61 = vsel %vm3882_vm3, %v9531_v36, %v6390_v62  ;;  %v9878_v36 = vpop.f32.mrf.mxu2  ;;  %v2897_v56 = vld [vmem:[#allocation2 + $0x81] sm:$0xff]  ;;  %v6386_v62 = vunpack.i.h.bf16 %v9811_v45 }
 0x4a0   : > { %4294 = vmatmul.f32.gmra.mxu1 %v3985_v1  ;;  %v3924_v52 = vsel %vm279_vm0, %v2897_v56, %v6376_v11  ;;  %v9910_v43 = vpop.permute.xlu2 %6448 }
 0x4a1   : > { %v3956_v57 = vsel %vm3849_vm2, %v3924_v52, %v6381_v24  ;;  %v6450_v52 = vunpack.i.l.bf16 %v9910_v43 }
 0x4a2   : > { %v9875_v49 = vpop.permute.xlu1 %6428  ;;  %v3988_v23 = vsel %vm3882_vm3, %v3956_v57, %v6386_v62  ;;  %v6406_v62 = vunpack.i.h.bf16 %v9842_v34 }
 0x4a3   : > { %v9865_v14 = vpop.permute.xlu0 %6408  ;;  %v6430_v45 = vunpack.i.l.bf16 %v9875_v49 }
 0x4a4   : > { %v6410_v18 = vunpack.i.l.bf16 %v9865_v14 }
 0x4a6   : > { %v3939_v60 = vsel %vm279_vm0, %v9761_v5, %v6410_v18  ;;  %v6395_v5 = vunpack.i.l.bf16 %v9846_v20 }
 0x4a7   : > { %4202 = vmatmul.f32.gmra.mxu0 %v9551_v59  ;;  %4253 = vmatmul.f32.gmra.mxu3 %v3913_v61  ;;  %v3955_v59 = vsel %vm3849_vm2, %v3923_v55, %v6380_v0  ;;  %v3971_v42 = vsel %vm3849_vm2, %v3939_v60, %v6415_v17  ;;  %v9907_v10 = vpop.f32.mrf.mxu2  ;;  %v2899_v17 = vld [vmem:[#allocation2 + $0x99] sm:$0xff] }
 0x4a8   : > { %4297 = vmatmul.f32.gmra.mxu1 %v3986_v53  ;;  %v3987_v4 = vsel %vm3882_vm3, %v3955_v59, %v6371_v48  ;;  %v4003_v54 = vsel %vm3882_vm3, %v3971_v42, %v6420_v33  ;;  %v3925_v6 = vsel %vm279_vm0, %v2898_v27, %v6395_v5  ;;  %v6400_v53 = vunpack.i.l.bf16 %v9832_v21  ;;  %v9937_v56 = vpop.permute.xlu2 %6463 }
 0x4a9   : > { %v6396_v59 = vunpack.i.h.bf16 %v9846_v20  ;;  %v6401_v42 = vunpack.i.h.bf16 %v9832_v21  ;;  %v6411_v5 = vunpack.i.h.bf16 %v9865_v14 }
 0x4aa   : > { %v9899_v47 = vpop.permute.xlu1 %6443  ;;  %v3957_v18 = vsel %vm3849_vm2, %v3925_v6, %v6400_v53  ;;  %v2900_v6 = vld [vmem:[#allocation2 + $0xa9] sm:$0xff] }
 0x4ab   : > { %v9881_v12 = vpop.permute.xlu0 %6423  ;;  %v3926_v20 = vsel %vm279_vm0, %v2899_v17, %v6396_v59  ;;  %v3927_v14 = vsel %vm279_vm0, %v2900_v6, %v6411_v5  ;;  %v6421_v59 = vunpack.i.h.bf16 %v9861_v44  ;;  %v2916_v17 = vld [vmem:[#allocation2 + $0x169] sm:$0xff]  ;;  %v6436_v5 = vunpack.i.h.bf16 %v9885_v15  ;;  %v2917_v6 = vld [vmem:[#allocation2 + $0x171] sm:$0xff]  ;;  %v2902_v15 = vld [vmem:[#allocation2 + $0xc1] sm:$0xff] }
 0x4ac   : > { %v9921_v30 = vpop.f32.mrf.mxu0  ;;  %v3958_v57 = vsel %vm3849_vm2, %v3926_v20, %v6401_v42  ;;  %v2901_v20 = vld [vmem:[#allocation2 + $0xb1] sm:$0xff]  ;;  %v6431_v42 = vunpack.i.h.bf16 %v9875_v49 }
 0x4ad   : > { %v3990_v21 = vsel %vm3882_vm3, %v3958_v57, %v6406_v62 }
 0x4af   : > { %4205 = vmatmul.f32.gmra.mxu0 %v9671_v9  ;;  %4256 = vmatmul.f32.gmra.mxu3 %v3914_v19  ;;  %v6425_v9 = vunpack.i.l.bf16 %v9881_v12  ;;  %v9934_v24 = vpop.f32.mrf.mxu2 }
 0x4b0   : > { %4300 = vmatmul.f32.gmra.mxu1 %v3987_v4  ;;  %v2914_v4 = vld [vmem:[#allocation2 + $0x151] sm:$0xff] }
 0x4b1   : > { %v3940_v61 = vsel %vm279_vm0, %v9781_v8, %v6425_v9  ;;  %v6391_v8 = vunpack.i.h.bf16 %v9821_v37  ;;  %v6445_v37 = vunpack.i.l.bf16 %v9899_v47 }
 0x4b2   : > { %v3972_v0 = vsel %vm3849_vm2, %v3940_v61, %v6430_v45  ;;  %v9929_v48 = vpop.permute.xlu1 %6458  ;;  %v2915_v61 = vld [vmem:[#allocation2 + $0x159] sm:$0xff] }
 0x4b3   : > { %v9902_v1 = vpop.permute.xlu0 %6438  ;;  %v4004_v19 = vsel %vm3882_vm3, %v3972_v0, %v6435_v29  ;;  %v3989_v11 = vsel %vm3882_vm3, %v3957_v18, %v6391_v8  ;;  %v6460_v34 = vunpack.i.l.bf16 %v9929_v48  ;;  %v6416_v0 = vunpack.i.h.bf16 %v9856_v50  ;;  %v9963_v29 = vpop.permute.xlu2 %6478 }
 0x4b5   : > { %v3959_v8 = vsel %vm3849_vm2, %v3927_v14, %v6416_v0 }
 0x4b7   : > { %4208 = vmatmul.f32.gmra.mxu0 %v9675_v28  ;;  %4348 = vmatmul.f32.vlgmr.msrb.gmra.mxu3 %v4003_v54  ;;  %v6440_v28 = vunpack.i.l.bf16 %v9902_v1  ;;  %v9950_v54 = vpop.f32.mrf.mxu0  ;;  %v9960_v53 = vpop.f32.mrf.mxu2 }
 0x4b8   : > { %4303 = vmatmul.f32.gmra.mxu1 %v3988_v23 }
 0x4b9   : > { %v3941_v60 = vsel %vm279_vm0, %v2914_v4, %v6440_v28  ;;  %v6465_v28 = vunpack.i.l.bf16 %v9937_v56 }
 0x4ba   : > { %v9955_v27 = vpop.permute.xlu1 %6473 }
 0x4bb   : > { %v9924_v55 = vpop.permute.xlu0 %6453  ;;  %v6475_v44 = vunpack.i.l.bf16 %v9955_v27 }
 0x4bc   : > { %v6455_v33 = vunpack.i.l.bf16 %v9924_v55 }
 0x4be   : > { %v3942_v45 = vsel %vm279_vm0, %v2915_v61, %v6455_v33 }
 0x4bf   : > { %4211 = vmatmul.f32.gmra.mxu0 %v9632_v40  ;;  %4351 = vmatmul.f32.gmra.mxu3 %v4004_v19  ;;  %v3973_v40 = vsel %vm3849_vm2, %v3941_v60, %v6445_v37  ;;  %v6426_v19 = vunpack.i.h.bf16 %v9881_v12  ;;  %v3991_v60 = vsel %vm3882_vm3, %v3959_v8, %v6421_v59  ;;  %v9985_v33 = vpop.f32.mrf.mxu2 }
 0x4c0   : > { %4306 = vmatmul.f32.gmra.mxu1 %v3989_v11  ;;  %v4005_v23 = vsel %vm3882_vm3, %v3973_v40, %v6450_v52 }
 0x4c1   : > { %v3928_v12 = vsel %vm279_vm0, %v2901_v20, %v6426_v19  ;;  %v6451_v19 = vunpack.i.h.bf16 %v9910_v43  ;;  %v2918_v20 = vld [vmem:[#allocation2 + $0x181] sm:$0xff] }
 0x4c2   : > { %v9982_v40 = vpop.permute.xlu1 %6488  ;;  %v3960_v62 = vsel %vm3849_vm2, %v3928_v12, %v6431_v42  ;;  %v2903_v12 = vld [vmem:[#allocation2 + $0xc9] sm:$0xff] }
 0x4c3   : > { %v9945_v9 = vpop.permute.xlu0 %6468  ;;  %v6490_v0 = vunpack.i.l.bf16 %v9982_v40 }
 0x4c4   : > { %v6470_v18 = vunpack.i.l.bf16 %v9945_v9 }
 0x4c6   : > { %v3943_v37 = vsel %vm279_vm0, %v2916_v17, %v6470_v18 }
 0x4c7   : > { %4214 = vmatmul.f32.gmra.mxu0 %v9636_v31  ;;  %4354 = vmatmul.f32.gmra.mxu3 %v4005_v23  ;;  %v3974_v31 = vsel %vm3849_vm2, %v3942_v45, %v6460_v34  ;;  %v3975_v52 = vsel %vm3849_vm2, %v3943_v37, %v6475_v44  ;;  %v9991_v23 = vpop.permute.xlu2 %6493  ;;  %v3992_v45 = vsel %vm3882_vm3, %v3960_v62, %v6436_v5 }
 0x4c8   : > { %4309 = vmatmul.f32.gmra.mxu1 %v3990_v21  ;;  %v4006_v50 = vsel %vm3882_vm3, %v3974_v31, %v6465_v28  ;;  %v6441_v21 = vunpack.i.h.bf16 %v9902_v1  ;;  %v6446_v31 = vunpack.i.h.bf16 %v9899_v47 }
 0x4ca   : > { %v3929_v1 = vsel %vm279_vm0, %v2902_v15, %v6441_v21  ;;  %v10007_v18 = vpop.permute.xlu1 %6503  ;;  %v6466_v21 = vunpack.i.h.bf16 %v9937_v56 }
 0x4cb   : > { %v9971_v11 = vpop.permute.xlu0 %6483  ;;  %v3961_v59 = vsel %vm3849_vm2, %v3929_v1, %v6446_v31  ;;  %v6505_v43 = vunpack.i.l.bf16 %v10007_v18 }
 0x4cc   : > { %v9973_v4 = vpop.f32.mrf.mxu0  ;;  %v6485_v57 = vunpack.i.l.bf16 %v9971_v11  ;;  %v3993_v47 = vsel %vm3882_vm3, %v3961_v59, %v6451_v19 }
 0x4ce   : > { %v3944_v14 = vsel %vm279_vm0, %v2917_v6, %v6485_v57 }
 0x4cf   : > { %4217 = vmatmul.f32.gmra.mxu0 %v9587_v35  ;;  %4357 = vmatmul.f32.gmra.mxu3 %v4006_v50  ;;  %v6480_v35 = vunpack.i.l.bf16 %v9963_v29  ;;  %v3976_v28 = vsel %vm3849_vm2, %v3944_v14, %v6490_v0  ;;  %v6456_v50 = vunpack.i.h.bf16 %v9924_v55  ;;  %v10016_v37 = vpop.permute.xlu2 %6508  ;;  %v2919_v14 = vld [vmem:[#allocation2 + $0x189] sm:$0xff]  ;;  %v10044_v0 = vld [vmem:[%s11195_s4] ss:$0 sm:$0xff] }
 0x4d0   : > { %4312 = vmatmul.f32.gmra.mxu1 %v3991_v60  ;;  %v10013_v60 = vpop.f32.mrf.mxu2  ;;  %v6510_v57 = vunpack.i.l.bf16 %v10016_v37 }
 0x4d1   : > { %v4007_v49 = vsel %vm3882_vm3, %v3975_v52, %v6480_v35  ;;  %v3930_v55 = vsel %vm279_vm0, %v2903_v12, %v6456_v50  ;;  %v6461_v52 = vunpack.i.h.bf16 %v9929_v48 }
 0x4d3   : > { %v9995_v61 = vpop.permute.xlu0 %6498  ;;  %v3962_v5 = vsel %vm3849_vm2, %v3930_v55, %v6461_v52  ;;  %v2905_v55 = vld [vmem:[#allocation2 + $0xe1] sm:$0xff] }
 0x4d4   : > { %v9999_v34 = vpop.f32.mrf.mxu0  ;;  %v6500_v8 = vunpack.i.l.bf16 %v9995_v61  ;;  %v3994_v48 = vsel %vm3882_vm3, %v3962_v5, %v6466_v21  ;;  %v6501_v5 = vunpack.i.h.bf16 %v9995_v61  ;;  %v10091_v61 = vld [vmem:[%s11196_s5 + $0x1] ss:$0 sm:$0xff] }
 0x4d6   : > { %v3945_v44 = vsel %vm279_vm0, %v2918_v20, %v6500_v8  ;;  %v4165_v8 = vadd.f32 %v10044_v0, %v9921_v30  ;;  %v11854_v30 = vld [vmem:[#allocation78_spill] sm:$0xff] }
 0x4d7   : > { %4220 = vmatmul.f32.gmra.mxu0 %v9591_v3  ;;  %4360 = vmatmul.f32.gmra.mxu3 %v4007_v49  ;;  %v6495_v3 = vunpack.i.l.bf16 %v9991_v23  ;;  %v6471_v49 = vunpack.i.h.bf16 %v9945_v9  ;;  %v2904_v9 = vld [vmem:[#allocation2 + $0xd9] sm:$0xff]  ;;  %v10047_v1 = vpop.permute.xlu2 %6523 }
 0x4d8   : > { %4315 = vmatmul.f32.gmra.mxu1 %v3992_v45  ;;  %v10034_v45 = vpop.permute.xlu1 %6518  ;;  %v10039_v15 = vpop.f32.mrf.mxu2  ;;  %v6525_v59 = vunpack.i.l.bf16 %v10047_v1 }
 0x4d9   : > { %v4008_v17 = vsel %vm3882_vm3, %v3976_v28, %v6495_v3  ;;  %v6520_v31 = vunpack.i.l.bf16 %v10034_v45  ;;  %v6476_v28 = vunpack.i.h.bf16 %v9955_v27 }
 0x4db   : > { %v10022_v42 = vpop.permute.xlu0 %6513 }
 0x4dc   : > { %v10026_v35 = vpop.f32.mrf.mxu0  ;;  %v6515_v62 = vunpack.i.l.bf16 %v10022_v42 }
 0x4de   : > { %v3946_v56 = vsel %vm279_vm0, %v2919_v14, %v6515_v62  ;;  %v6496_v62 = vunpack.i.h.bf16 %v9991_v23  ;;  %v11856_v14 = vld [vmem:[#allocation80_spill] sm:$0xff] }
 0x4df   : > { %4223 = vmatmul.f32.gmra.mxu0 %v9713_v32  ;;  %4363 = vmatmul.f32.gmra.mxu3 %v4008_v17  ;;  %v3977_v32 = vsel %vm3849_vm2, %v3945_v44, %v6505_v43  ;;  %v3978_v3 = vsel %vm3849_vm2, %v3946_v56, %v6520_v31  ;;  %v6481_v17 = vunpack.i.h.bf16 %v9963_v29  ;;  %v6491_v29 = vunpack.i.h.bf16 %v9982_v40  ;;  %v10086_v23 = vld [vmem:[%s11196_s5] ss:$0 sm:$0xff] }
 0x4e0   : > { %4318 = vmatmul.f32.gmra.mxu1 %v3993_v47  ;;  %v4009_v6 = vsel %vm3882_vm3, %v3977_v32, %v6510_v57  ;;  %v6486_v47 = vunpack.i.h.bf16 %v9971_v11  ;;  %v4010_v12 = vsel %vm3882_vm3, %v3978_v3, %v6525_v59  ;;  %v10066_v32 = vpop.f32.mrf.mxu2  ;;  %v4168_v57 = vadd.f32 %v10044_v0, %v9950_v54  ;;  %v4551_v31 = vld [vmem:[#allocation2] sm:$0xff] }
 0x4e1   : > { %11855 = vst [vmem:[#allocation86_spill] sm:$0xff] %v10066_v32  ;;  %v10099_v59 = vld [vmem:[%s11196_s5 + $0x2] ss:$0 sm:$0xff] }
 0x4e2   : > { %v3932_v52 = vsel %vm279_vm0, %v2905_v55, %v6486_v47  ;;  %v10080_v54 = vpop.f32.mrf.mxu3  ;;  %v3045_v55 = vld [vmem:[#allocation2 + $0x182] sm:$0xff] }
 0x4e4   : > { %v10056_v19 = vpop.f32.mrf.mxu0 }
 0x4e7   : > { %4226 = vmatmul.f32.gmra.mxu0 %v9717_v22  ;;  %4366 = vmatmul.f32.gmra.mxu3 %v4009_v6  ;;  %v3931_v22 = vsel %vm279_vm0, %v2904_v9, %v6471_v49  ;;  %v2906_v9 = vld [vmem:[#allocation2 + $0xf1] sm:$0xff] }
 0x4e8   : > { %4321 = vmatmul.f32.gmra.mxu1 %v3994_v48  ;;  %v3963_v50 = vsel %vm3849_vm2, %v3931_v22, %v6476_v28  ;;  %v3044_v48 = vld [vmem:[#allocation2 + $0x172] sm:$0xff]  ;;  %v4649_v22 = vld [vmem:[#allocation2 + $0x1] sm:$0xff]  ;;  %v6506_v28 = vunpack.i.h.bf16 %v10007_v18 }
 0x4e9   : > { %v3995_v27 = vsel %vm3882_vm3, %v3963_v50, %v6481_v17  ;;  %v10101_v50 = vpop.f32.mrf.mxu2  ;;  %v4171_v17 = vadd.f32 %v10044_v0, %v9973_v4  ;;  %v4682_v18 = vmul.f32 %v10091_v61, %v4649_v22 }
 0x4ea   : > { %11857 = vst [vmem:[#allocation89_spill] sm:$0xff] %v10101_v50 }
 0x4ec   : > { %v10075_v49 = vpop.f32.mrf.mxu0 }
 0x4ed   : > { %v4277_v20 = vpop.f32.mrf.mxu1 }
 0x4ee   : > { %v4278_v44 = vadd.f32 %v4277_v20, %v4165_v8  ;;  %v6516_v8 = vunpack.i.h.bf16 %v10022_v42  ;;  %v4584_v20 = vmul.f32 %v10086_v23, %v4551_v31  ;;  %v6511_v42 = vunpack.i.h.bf16 %v10016_v37 }
 0x4ef   : > { %4229 = vmatmul.f32.gmra.mxu0 %v9661_v2  ;;  %4369 = vmatmul.f32.gmra.mxu3 %v4010_v12  ;;  %v3964_v2 = vsel %vm3849_vm2, %v3932_v52, %v6491_v29  ;;  %v2907_v52 = vld [vmem:[#allocation2 + $0xf9] sm:$0xff] }
 0x4f0   : > { %v4391_v43 = vadd.f32 %v11854_v30, %v4278_v44  ;;  %4324 = vmatmul.f32.gmra.mxu1 %v3995_v27  ;;  %v3996_v40 = vsel %vm3882_vm3, %v3964_v2, %v6496_v62  ;;  %v4747_v44 = vld [vmem:[#allocation2 + $0x2] sm:$0xff]  ;;  %v3934_v29 = vsel %vm279_vm0, %v2907_v52, %v6516_v8  ;;  %v4714_v37 = vadd.f32 %v4682_v18, %v4584_v20 }
 0x4f1   : > { %v4552_v27 = vld [vmem:[#allocation2 + $0x8] sm:$0xff]  ;;  %v10120_v62 = vld [vmem:[%s11196_s5 + $0x3] ss:$0 sm:$0xff]  ;;  %v10137_v20 = vpop.f32.mrf.mxu2  ;;  %v10156_v52 = vld [vmem:[%s11196_s5 + $0x6] ss:$0 sm:$0xff] }
 0x4f2   : > { %v4486_v11 = vmax.f32 %v4391_v43, 0.0  ;;  %v4650_v30 = vld [vmem:[#allocation2 + $0x9] sm:$0xff]  ;;  %11858 = vst [vmem:[#allocation90_spill] sm:$0xff] %v10137_v20 }
 0x4f4   : > { %4518 = vst.msk [vmem:[#allocation2 + $0x19] sm:$0xff] %vm279_vm0, %v4486_v11  ;;  %v4780_v11 = vmul.f32 %v10099_v59, %v4747_v44  ;;  %v10147_v44 = vld [vmem:[%s11196_s5 + $0x5] ss:$0 sm:$0xff] }
 0x4f5   : > { %v4280_v21 = vpop.f32.mrf.mxu1 }
 0x4f6   : > { %v4281_v6 = vadd.f32 %v4280_v21, %v4168_v57  ;;  %v10114_v57 = vpop.f32.mrf.mxu0  ;;  %v4683_v21 = vmul.f32 %v10091_v61, %v4650_v30  ;;  %v4812_v31 = vadd.f32 %v4780_v11, %v4714_v37 }
 0x4f7   : > { %4232 = vmatmul.f32.gmra.mxu0 %v9665_v41  ;;  %5980 = vmatmul.msk.f32.vlgmr.msra.gmra.mxu3 %vm279_vm0, %v3044_v48  ;;  %v3933_v41 = vsel %vm279_vm0, %v2906_v9, %v6501_v5  ;;  %v4585_v5 = vmul.f32 %v10086_v23, %v4552_v27  ;;  %v4174_v9 = vadd.f32 %v10044_v0, %v9999_v34  ;;  %v10142_v34 = vld [vmem:[%s11196_s5 + $0x4] ss:$0 sm:$0xff]  ;;  %v3634_v27 = vpop.permute.xlu1 %3633 }
 0x4f8   : > { %v4394_v56 = vadd.f32 %v11856_v14, %v4281_v6  ;;  %4327 = vmatmul.f32.gmra.mxu1 %v3996_v40  ;;  %v3965_v47 = vsel %vm3849_vm2, %v3933_v41, %v6506_v28  ;;  %v6521_v6 = vunpack.i.h.bf16 %v10034_v45  ;;  %v4748_v40 = vld [vmem:[#allocation2 + $0xa] sm:$0xff]  ;;  %v10125_v14 = vpop.permute.xlu0 %6528 }
 0x4f9   : > { %v3997_v4 = vsel %vm3882_vm3, %v3965_v47, %v6511_v42  ;;  %v4715_v28 = vadd.f32 %v4683_v21, %v4585_v5  ;;  %v4781_v45 = vmul.f32 %v10099_v59, %v4748_v40  ;;  %v6530_v8 = vunpack.i.l.bf16 %v10125_v14  ;;  %v3762_v21 = vpop.permute.xlu2 %3761 }
 0x4fa   : > { %v4487_v3 = vmax.f32 %v4394_v56, 0.0  ;;  %v10127_v56 = vpop.f32.mrf.mxu3  ;;  %v3966_v41 = vsel %vm3849_vm2, %v3934_v29, %v6521_v6  ;;  %v4177_v6 = vadd.f32 %v10044_v0, %v10026_v35  ;;  %v10178_v35 = vld [vmem:[%s11196_s5 + $0x7] ss:$0 sm:$0xff] }
 0x4fb   : > { %v4845_v48 = vld [vmem:[#allocation2 + $0x18] sm:$0xff] }
 0x4fc   : > { %4519 = vst.msk [vmem:[#allocation2 + $0x21] sm:$0xff] %vm279_vm0, %v4487_v3  ;;  %v4878_v22 = vmul.f32 %v10120_v62, %v4845_v48  ;;  %v6526_v3 = vunpack.i.h.bf16 %v10047_v1  ;;  %v4943_v42 = vld [vmem:[#allocation2 + $0x19] sm:$0xff] }
 0x4fd   : > { %v4283_v12 = vpop.f32.mrf.mxu1 }
 0x4fe   : > { %v4284_v43 = vadd.f32 %v4283_v12, %v4171_v17  ;;  %v3998_v1 = vsel %vm3882_vm3, %v3966_v41, %v6526_v3  ;;  %v10160_v11 = vpop.f32.mrf.mxu0  ;;  %v3047_v41 = vld [vmem:[#allocation2 + $0x19a] sm:$0xff] }
 0x4ff   : > { %5981 = vmatmul.msk.f32.gmra.mxu3 %vm279_vm0, %v3045_v55  ;;  %v4910_v55 = vadd.f32 %v4878_v22, %v4812_v31 }
 0x500   : > { %v4397_v2 = vadd.f32 %v9468_v16, %v4284_v43  ;;  %4330 = vmatmul.f32.gmra.mxu1 %v3997_v4  ;;  %v2908_v43 = vld [vmem:[#allocation2 + $0x109] sm:$0xff]  ;;  %v4813_v4 = vadd.f32 %v4781_v45, %v4715_v28 }
 0x502   : > { %v4488_v16 = vmax.f32 %v4397_v2, 0.0 }
 0x503   : > { %v4846_v47 = vld [vmem:[#allocation2 + $0x20] sm:$0xff] }
 0x504   : > { %4520 = vst.msk [vmem:[#allocation2 + $0x31] sm:$0xff] %vm279_vm0, %v4488_v16  ;;  %v5041_v12 = vld [vmem:[#allocation2 + $0x1a] sm:$0xff]  ;;  %v4879_v29 = vmul.f32 %v10120_v62, %v4846_v47 }
 0x505   : > { %v4286_v17 = vpop.f32.mrf.mxu1  ;;  %v5074_v5 = vmul.f32 %v10147_v44, %v5041_v12  ;;  %v4944_v16 = vld [vmem:[#allocation2 + $0x21] sm:$0xff] }
 0x506   : > { %v4287_v18 = vadd.f32 %v4286_v17, %v4174_v9  ;;  %v3636_v9 = vpop.permute.xlu0 %3635  ;;  %v4911_v45 = vadd.f32 %v4879_v29, %v4813_v4  ;;  %v10187_v4 = vpop.f32.mrf.mxu2 }
 0x507   : > { %5982 = vmatmul.msk.f32.gmra.mxu3 %vm279_vm0, %v9705_v63  ;;  %v3935_v63 = vsel %vm279_vm0, %v2908_v43, %v6530_v8  ;;  %v6531_v8 = vunpack.i.h.bf16 %v10125_v14  ;;  %v5042_v43 = vld [vmem:[#allocation2 + $0x22] sm:$0xff]  ;;  %v4684_v14 = vmul.f32 %v10091_v61, %v4943_v42  ;;  %11859 = vst [vmem:[#allocation91_spill] sm:$0xff] %v10187_v4 }
 0x508   : > { %v4400_v30 = vadd.f32 %v9707_v13, %v4287_v18  ;;  %4333 = vmatmul.f32.gmra.mxu1 %v3998_v1  ;;  %v4976_v13 = vmul.f32 %v10142_v34, %v4943_v42  ;;  %v3967_v31 = vsel %vm3849_vm2, %v3935_v63, %v3634_v27  ;;  %v4977_v1 = vmul.f32 %v10142_v34, %v4944_v16 }
 0x509   : > { %v3999_v27 = vsel %vm3882_vm3, %v3967_v31, %v3762_v21  ;;  %v4587_v21 = vmul.f32 %v10086_v23, %v4846_v47  ;;  %v3936_v42 = vsel %vm279_vm0, %v9696_v51, %v6531_v8  ;;  %v10216_v8 = vpop.f32.mrf.mxu0 }
 0x50a   : > { %v4489_v2 = vmax.f32 %v4400_v30, 0.0  ;;  %v10162_v37 = vpop.f32.mrf.mxu3  ;;  %v5008_v22 = vadd.f32 %v4976_v13, %v4910_v55  ;;  %v4586_v55 = vmul.f32 %v10086_v23, %v4845_v48  ;;  %v5009_v13 = vadd.f32 %v4977_v1, %v4911_v45 }
 0x50b   : > { %v10168_v40 = vld [vmem:[#allocation2 + $0x30] sm:$0xff]  ;;  %v4685_v48 = vmul.f32 %v10091_v61, %v4944_v16 }
 0x50c   : > { %4521 = vst.msk [vmem:[#allocation2 + $0x39] sm:$0xff] %vm279_vm0, %v4489_v2  ;;  %v5172_v28 = vmul.f32 %v10156_v52, %v10168_v40  ;;  %v5106_v18 = vadd.f32 %v5074_v5, %v5008_v22  ;;  %v10183_v30 = vld [vmem:[#allocation2 + $0x31] sm:$0xff]  ;;  %v10193_v2 = vld [vmem:[%s11196_s5 + $0x8] ss:$0 sm:$0xff]  ;;  %v4782_v5 = vmul.f32 %v10099_v59, %v5041_v12  ;;  %v5075_v22 = vmul.f32 %v10147_v44, %v5042_v43 }
 0x50d   : > { %v4289_v3 = vpop.f32.mrf.mxu1  ;;  %v5270_v31 = vmul.f32 %v10178_v35, %v10183_v30  ;;  %v3968_v12 = vsel %vm3849_vm2, %v3936_v42, %v3636_v9  ;;  %v4716_v51 = vadd.f32 %v4684_v14, %v4586_v55  ;;  %v4717_v42 = vadd.f32 %v4685_v48, %v4587_v21 }
 0x50e   : > { %v4290_v17 = vadd.f32 %v4289_v3, %v4177_v6  ;;  %v5204_v63 = vadd.f32 %v5172_v28, %v5106_v18  ;;  %v3764_v6 = vpop.permute.xlu1 %3763  ;;  %v4180_v28 = vadd.f32 %v10044_v0, %v10056_v19  ;;  %v4880_v3 = vmul.f32 %v10120_v62, %v10168_v40  ;;  %v3638_v4 = vpop.permute.xlu0 %3637 }
 0x50f   : > { %5983 = vmatmul.msk.f32.gmra.mxu3 %vm279_vm0, %v3047_v41  ;;  %v5107_v9 = vadd.f32 %v5075_v22, %v5009_v13  ;;  %v4814_v14 = vadd.f32 %v4782_v5, %v4716_v51  ;;  %v4000_v13 = vsel %vm3882_vm3, %v3968_v12, %v3764_v6  ;;  %v4783_v22 = vmul.f32 %v10099_v59, %v5042_v43  ;;  %v10238_v12 = vpop.f32.mrf.mxu2 }
 0x510   : > { %v4403_v29 = vadd.f32 %v9743_v58, %v4290_v17  ;;  %4336 = vmatmul.f32.gmra.mxu1 %v3999_v27  ;;  %v3048_v17 = vld [vmem:[#allocation2 + $0x1a2] sm:$0xff]  ;;  %v5302_v18 = vadd.f32 %v5270_v31, %v5204_v63 }
 0x511   : > { %v4912_v31 = vadd.f32 %v4880_v3, %v4814_v14  ;;  %v4815_v6 = vadd.f32 %v4783_v22, %v4717_v42  ;;  %v10255_v14 = vpop.f32.mrf.mxu0  ;;  %v4686_v22 = vmul.f32 %v10091_v61, %v10183_v30 }
 0x512   : > { %v4490_v41 = vmax.f32 %v4403_v29, 0.0  ;;  %v10200_v58 = vpop.f32.mrf.mxu3  ;;  %v3510_v29 = vpop.permute.xlu2 %3509 }
 0x513   : > { %v10208_v47 = vld [vmem:[#allocation2 + $0x32] sm:$0xff]  ;;  %v10223_v27 = vld [vmem:[#allocation2 + $0x3a] sm:$0xff]  ;;  %v3937_v51 = vsel %vm279_vm0, %v9745_v26, %v3510_v29 }
 0x514   : > { %v10210_v16 = vld [vmem:[#allocation2 + $0x38] sm:$0xff]  ;;  %4522 = vst.msk [vmem:[#allocation2 + $0x49] sm:$0xff] %vm279_vm0, %v4490_v41  ;;  %v5368_v19 = vmul.f32 %v10193_v2, %v10208_v47  ;;  %v5369_v41 = vmul.f32 %v10193_v2, %v10223_v27 }
 0x515   : > { %v10212_v45 = vld [vmem:[#allocation2 + $0x39] sm:$0xff]  ;;  %v5173_v1 = vmul.f32 %v10156_v52, %v10210_v16  ;;  %v4292_v55 = vpop.f32.mrf.mxu1 }
 0x516   : > { %v4293_v20 = vadd.f32 %v4292_v55, %v4180_v28  ;;  %v5400_v50 = vadd.f32 %v5368_v19, %v5302_v18  ;;  %v5271_v63 = vmul.f32 %v10178_v35, %v10212_v45  ;;  %v4881_v28 = vmul.f32 %v10120_v62, %v10210_v16  ;;  %v3766_v18 = vpop.permute.xlu1 %3765 }
 0x517   : > { %v5205_v32 = vadd.f32 %v5173_v1, %v5107_v9  ;;  %5984 = vmatmul.msk.f32.gmra.mxu3 %vm279_vm0, %v3048_v17 }
 0x518   : > { %v4406_v5 = vadd.f32 %v9766_v39, %v4293_v20  ;;  %4339 = vmatmul.f32.gmra.mxu1 %v4000_v13  ;;  %v5432_v21 = vsel %vm279_vm0, %v5400_v50, 0.0  ;;  %v4978_v39 = vmul.f32 %v10142_v34, %v10183_v30  ;;  %v4183_v50 = vadd.f32 %v10044_v0, %v10075_v49 }
 0x519   : > { %v5303_v48 = vadd.f32 %v5271_v63, %v5205_v32  ;;  %5433 = vadd.xlane.f32.xlu2 %v5432_v21  ;;  %v5076_v32 = vmul.f32 %v10147_v44, %v10208_v47  ;;  %v3969_v20 = vsel %vm3849_vm2, %v3937_v51, %v3638_v4  ;;  %v4913_v29 = vadd.f32 %v4881_v28, %v4815_v6 }
 0x51a   : > { %v4491_v17 = vmax.f32 %v4406_v5, 0.0  ;;  %v10240_v3 = vpop.f32.mrf.mxu3  ;;  %v5010_v9 = vadd.f32 %v4978_v39, %v4912_v31  ;;  %v4979_v4 = vmul.f32 %v10142_v34, %v10212_v45  ;;  %v3512_v63 = vpop.permute.xlu2 %3511  ;;  %v4001_v13 = vsel %vm3882_vm3, %v3969_v20, %v3766_v18 }
 0x51b   : > { %v5401_v43 = vadd.f32 %v5369_v41, %v5303_v48  ;;  %v10249_v26 = vld [vmem:[#allocation2 + $0x48] sm:$0xff]  ;;  %v4588_v31 = vmul.f32 %v10086_v23, %v10168_v40  ;;  %v3640_v5 = vpop.permute.xlu0 %3639  ;;  %v4784_v51 = vmul.f32 %v10099_v59, %v10208_v47  ;;  %v4589_v6 = vmul.f32 %v10086_v23, %v10210_v16 }
 0x51c   : > { %4523 = vst.msk [vmem:[#allocation2 + $0x51] sm:$0xff] %vm279_vm0, %v4491_v17  ;;  %v5174_v1 = vmul.f32 %v10156_v52, %v10249_v26  ;;  %v5108_v49 = vadd.f32 %v5076_v32, %v5010_v9  ;;  %v10260_v41 = vld [vmem:[#allocation2 + $0x49] sm:$0xff]  ;;  %v5011_v28 = vadd.f32 %v4979_v4, %v4913_v29  ;;  %v4687_v17 = vmul.f32 %v10091_v61, %v10212_v45  ;;  %v10285_v9 = vpop.f32.mrf.mxu2 }
 0x51d   : > { %v5435_v19 = vsel %vm279_vm0, %v5401_v43, 0.0  ;;  %v4295_v55 = vpop.f32.mrf.mxu1  ;;  %v6568_v43 = vld [vmem:[#allocation2 + $0x129] sm:$0xff]  ;;  %v5077_v32 = vmul.f32 %v10147_v44, %v10223_v27  ;;  %v4186_v47 = vadd.f32 %v10044_v0, %v10114_v57  ;;  %v4718_v18 = vadd.f32 %v4686_v22, %v4588_v31 }
 0x51e   : > { %5436 = vadd.xlane.f32.xlu0 %v5435_v19  ;;  %v4296_v42 = vadd.f32 %v4295_v55, %v4183_v50  ;;  %v5206_v48 = vadd.f32 %v5174_v1, %v5108_v49  ;;  %v3938_v40 = vsel %vm279_vm0, %v6568_v43, %v3512_v63  ;;  %v4882_v19 = vmul.f32 %v10120_v62, %v10249_v26 }
 0x51f   : > { %v3970_v16 = vsel %vm3849_vm2, %v3938_v40, %v3640_v5  ;;  %v5109_v55 = vadd.f32 %v5077_v32, %v5011_v28  ;;  %v4816_v4 = vadd.f32 %v4784_v51, %v4718_v18  ;;  %v4719_v63 = vadd.f32 %v4687_v17, %v4589_v6 }
 0x520   : > { %v4409_v21 = vadd.f32 %v9794_v38, %v4296_v42  ;;  %4342 = vmatmul.f32.gmra.mxu1 %v4001_v13  ;;  %v5272_v38 = vmul.f32 %v10178_v35, %v10260_v41  ;;  %v3768_v13 = vpop.permute.xlu1 %3767  ;;  %v4785_v28 = vmul.f32 %v10099_v59, %v10223_v27  ;;  %v4980_v32 = vmul.f32 %v10142_v34, %v10260_v41 }
 0x521   : > { %v4002_v43 = vsel %vm3882_vm3, %v3970_v16, %v3768_v13  ;;  %v4914_v40 = vadd.f32 %v4882_v19, %v4816_v4 }
 0x522   : > { %v4492_v39 = vmax.f32 %v4409_v21, 0.0  ;;  %v10274_v30 = vpop.f32.mrf.mxu3  ;;  %v5304_v1 = vadd.f32 %v5272_v38, %v5206_v48  ;;  %v4817_v19 = vadd.f32 %v4785_v28, %v4719_v63 }
 0x523   : > { %v5337_v50 = vld [vmem:[#allocation2 + $0x4a] sm:$0xff]  ;;  %v10290_v57 = vld [vmem:[#allocation2 + $0x52] sm:$0xff] }
 0x524   : > { %v5142_v20 = vld [vmem:[#allocation2 + $0x50] sm:$0xff]  ;;  %4524 = vst.msk [vmem:[#allocation2 + $0x61] sm:$0xff] %vm279_vm0, %v4492_v39  ;;  %v5370_v29 = vmul.f32 %v10193_v2, %v5337_v50  ;;  %v5371_v48 = vmul.f32 %v10193_v2, %v10290_v57  ;;  %v10298_v39 = vpop.f32.mrf.mxu0  ;;  %v5078_v27 = vmul.f32 %v10147_v44, %v5337_v50  ;;  %v10316_v13 = vpop.f32.mrf.mxu2  ;;  %v4786_v28 = vmul.f32 %v10099_v59, %v5337_v50 }
 0x525   : > { %v5240_v45 = vld [vmem:[#allocation2 + $0x51] sm:$0xff]  ;;  %v5175_v42 = vmul.f32 %v10156_v52, %v5142_v20  ;;  %v4298_v49 = vpop.f32.mrf.mxu1  ;;  %v4883_v38 = vmul.f32 %v10120_v62, %v5142_v20 }
 0x526   : > { %v4299_v31 = vadd.f32 %v4298_v49, %v4186_v47  ;;  %v5402_v22 = vadd.f32 %v5370_v29, %v5304_v1  ;;  %v5273_v21 = vmul.f32 %v10178_v35, %v5240_v45 }
 0x527   : > { %v5207_v5 = vadd.f32 %v5175_v42, %v5109_v55  ;;  %v5012_v55 = vadd.f32 %v4980_v32, %v4914_v40  ;;  %v4915_v49 = vadd.f32 %v4883_v38, %v4817_v19 }
 0x528   : > { %v4412_v51 = vadd.f32 %v9815_v46, %v4299_v31  ;;  %4345 = vmatmul.f32.gmra.mxu1 %v4002_v43  ;;  %v5438_v6 = vsel %vm279_vm0, %v5402_v22, 0.0  ;;  %v4189_v46 = vadd.f32 %v10044_v0, %v10160_v11  ;;  %v4981_v22 = vmul.f32 %v10142_v34, %v5240_v45 }
 0x529   : > { %v5305_v17 = vadd.f32 %v5273_v21, %v5207_v5  ;;  %5439 = vadd.xlane.f32.xlu1 %v5438_v6  ;;  %v5110_v63 = vadd.f32 %v5078_v27, %v5012_v55  ;;  %v4590_v5 = vmul.f32 %v10086_v23, %v10249_v26  ;;  %v4688_v21 = vmul.f32 %v10091_v61, %v10260_v41 }
 0x52a   : > { %v4493_v47 = vmax.f32 %v4412_v51, 0.0  ;;  %v10305_v16 = vpop.f32.mrf.mxu3  ;;  %v5013_v40 = vadd.f32 %v4981_v22, %v4915_v49  ;;  %v4591_v51 = vmul.f32 %v10086_v23, %v5142_v20  ;;  %v4689_v6 = vmul.f32 %v10091_v61, %v5240_v45 }
 0x52b   : > { %v5403_v18 = vadd.f32 %v5371_v48, %v5305_v17  ;;  %v10310_v1 = vld [vmem:[#allocation2 + $0x60] sm:$0xff]  ;;  %v5079_v41 = vmul.f32 %v10147_v44, %v10290_v57  ;;  %v4720_v20 = vadd.f32 %v4688_v21, %v4590_v5 }
 0x52c   : > { %4525 = vst.msk [vmem:[#allocation2 + $0x69] sm:$0xff] %vm279_vm0, %v4493_v47  ;;  %v5176_v42 = vmul.f32 %v10156_v52, %v10310_v1  ;;  %v10319_v11 = vld [vmem:[#allocation2 + $0x61] sm:$0xff]  ;;  %v10329_v17 = vpop.f32.mrf.mxu0  ;;  %v4884_v45 = vmul.f32 %v10120_v62, %v10310_v1 }
 0x52d   : > { %v5441_v29 = vsel %vm279_vm0, %v5403_v18, 0.0  ;;  %v4301_v4 = vpop.f32.mrf.mxu1  ;;  %v5274_v26 = vmul.f32 %v10178_v35, %v10319_v11  ;;  %v4818_v49 = vadd.f32 %v4786_v28, %v4720_v20 }
 0x52e   : > { %5442 = vadd.xlane.f32.xlu2 %v5441_v29  ;;  %v4302_v31 = vadd.f32 %v4301_v4, %v4189_v46  ;;  %v5208_v48 = vadd.f32 %v5176_v42, %v5110_v63  ;;  %v5111_v46 = vadd.f32 %v5079_v41, %v5013_v40 }
 0x52f   : > { %v4916_v21 = vadd.f32 %v4884_v45, %v4818_v49 }
 0x530   : > { %v4415_v43 = vadd.f32 %v9840_v7, %v4302_v31  ;;  %v4192_v7 = vadd.f32 %v10044_v0, %v10216_v8  ;;  %v5306_v27 = vadd.f32 %v5274_v26, %v5208_v48  ;;  %v4721_v8 = vadd.f32 %v4689_v6, %v4591_v51  ;;  %v4462_v48 = vpop.f32.mrf.mxu2 }
 0x531   : > { %v4237_v51 = vadd.f32 %v10044_v0, %v10080_v54  ;;  %v4982_v6 = vmul.f32 %v10142_v34, %v10319_v11 }
 0x532   : > { %v4494_v38 = vmax.f32 %v4415_v43, 0.0  ;;  %v10331_v32 = vpop.f32.mrf.mxu3  ;;  %v4787_v43 = vmul.f32 %v10099_v59, %v10290_v57 }
 0x533   : > { %v5339_v47 = vld [vmem:[#allocation2 + $0x62] sm:$0xff]  ;;  %v10344_v55 = vld [vmem:[#allocation2 + $0x6a] sm:$0xff] }
 0x534   : > { %v5144_v50 = vld [vmem:[#allocation2 + $0x68] sm:$0xff]  ;;  %4526 = vst.msk [vmem:[#allocation2 + $0x79] sm:$0xff] %vm279_vm0, %v4494_v38  ;;  %v5372_v19 = vmul.f32 %v10193_v2, %v5339_v47  ;;  %v5373_v5 = vmul.f32 %v10193_v2, %v10344_v55  ;;  %v5080_v57 = vmul.f32 %v10147_v44, %v5339_v47  ;;  %v4819_v45 = vadd.f32 %v4787_v43, %v4721_v8 }
 0x535   : > { %v5242_v18 = vld [vmem:[#allocation2 + $0x69] sm:$0xff]  ;;  %v5177_v29 = vmul.f32 %v10156_v52, %v5144_v50  ;;  %v4304_v42 = vpop.f32.mrf.mxu1  ;;  %v4885_v28 = vmul.f32 %v10120_v62, %v5144_v50  ;;  %v4592_v43 = vmul.f32 %v10086_v23, %v10310_v1 }
 0x536   : > { %v4305_v4 = vadd.f32 %v4304_v42, %v4192_v7  ;;  %v5404_v31 = vadd.f32 %v5372_v19, %v5306_v27  ;;  %v5275_v22 = vmul.f32 %v10178_v35, %v5242_v18 }
 0x537   : > { %v5209_v63 = vadd.f32 %v5177_v29, %v5111_v46  ;;  %v10363_v46 = vpop.f32.mrf.mxu0  ;;  %v5014_v29 = vadd.f32 %v4982_v6, %v4916_v21  ;;  %v4917_v49 = vadd.f32 %v4885_v28, %v4819_v45  ;;  %v4690_v21 = vmul.f32 %v10091_v61, %v10319_v11 }
 0x538   : > { %v4418_v40 = vadd.f32 %v9858_v25, %v4305_v4  ;;  %v5444_v38 = vsel %vm279_vm0, %v5404_v31, 0.0  ;;  %v4195_v25 = vadd.f32 %v10044_v0, %v10255_v14  ;;  %v4983_v14 = vmul.f32 %v10142_v34, %v5242_v18 }
 0x539   : > { %v5307_v26 = vadd.f32 %v5275_v22, %v5209_v63  ;;  %5445 = vadd.xlane.f32.xlu2 %v5444_v38  ;;  %v5112_v63 = vadd.f32 %v5080_v57, %v5014_v29  ;;  %v4788_v28 = vmul.f32 %v10099_v59, %v5339_v47  ;;  %v4691_v6 = vmul.f32 %v10091_v61, %v5242_v18 }
 0x53a   : > { %v4495_v41 = vmax.f32 %v4418_v40, 0.0  ;;  %v4349_v7 = vpop.f32.mrf.mxu3 }
 0x53b   : > { %v5405_v20 = vadd.f32 %v5373_v5, %v5307_v26  ;;  %v4350_v27 = vadd.f32 %v4349_v7, %v4237_v51  ;;  %v10361_v19 = vld [vmem:[#allocation2 + $0x78] sm:$0xff]  ;;  %v5015_v26 = vadd.f32 %v4983_v14, %v4917_v49  ;;  %v4593_v51 = vmul.f32 %v10086_v23, %v5144_v50 }
 0x53c   : > { %4527 = vst.msk [vmem:[#allocation2 + $0x81] sm:$0xff] %vm279_vm0, %v4495_v41  ;;  %v5178_v42 = vmul.f32 %v10156_v52, %v10361_v19  ;;  %v10370_v5 = vld [vmem:[#allocation2 + $0x79] sm:$0xff]  ;;  %v4465_v41 = vpop.f32.mrf.mxu2  ;;  %v4886_v50 = vmul.f32 %v10120_v62, %v10361_v19 }
 0x53d   : > { %v5447_v54 = vsel %vm279_vm0, %v5405_v20, 0.0  ;;  %v4463_v4 = vadd.f32 %v4462_v48, %v4350_v27  ;;  %v4307_v31 = vpop.f32.mrf.mxu1  ;;  %v4240_v48 = vadd.f32 %v10044_v0, %v10127_v56  ;;  %v5276_v11 = vmul.f32 %v10178_v35, %v10370_v5 }
 0x53e   : > { %5448 = vadd.xlane.f32.xlu0 %v5447_v54  ;;  %v4308_v8 = vadd.f32 %v4307_v31, %v4195_v25  ;;  %v5210_v38 = vadd.f32 %v5178_v42, %v5112_v63  ;;  %v4198_v56 = vadd.f32 %v10044_v0, %v10298_v39  ;;  %v4722_v25 = vadd.f32 %v4690_v21, %v4592_v43 }
 0x53f   : > { %v4510_v22 = vmax.f32 %v4463_v4, 0.0  ;;  %v4723_v31 = vadd.f32 %v4691_v6, %v4593_v51 }
 0x540   : > { %v4421_v40 = vadd.f32 %v9878_v36, %v4308_v8  ;;  %v5081_v36 = vmul.f32 %v10147_v44, %v10344_v55  ;;  %v5308_v18 = vadd.f32 %v5276_v11, %v5210_v38  ;;  %v4820_v4 = vadd.f32 %v4788_v28, %v4722_v25  ;;  %v10396_v8 = vpop.f32.mrf.mxu0 }
 0x541   : > { %4542 = vst.msk [vmem:[#allocation2 + $0x139] sm:$0xff] %vm279_vm0, %v4510_v22 }
 0x542   : > { %v4496_v1 = vmax.f32 %v4421_v40, 0.0  ;;  %v4352_v7 = vpop.f32.mrf.mxu3  ;;  %v5113_v54 = vadd.f32 %v5081_v36, %v5015_v26  ;;  %v4918_v38 = vadd.f32 %v4886_v50, %v4820_v4  ;;  %v4789_v26 = vmul.f32 %v10099_v59, %v10344_v55 }
 0x543   : > { %v4353_v20 = vadd.f32 %v4352_v7, %v4240_v48  ;;  %v5341_v57 = vld [vmem:[#allocation2 + $0x7a] sm:$0xff]  ;;  %v10394_v42 = vld [vmem:[#allocation2 + $0x82] sm:$0xff] }
 0x544   : > { %v5146_v45 = vld [vmem:[#allocation2 + $0x80] sm:$0xff]  ;;  %4528 = vst.msk [vmem:[#allocation2 + $0x91] sm:$0xff] %vm279_vm0, %v4496_v1  ;;  %v5374_v27 = vmul.f32 %v10193_v2, %v5341_v57  ;;  %v5375_v40 = vmul.f32 %v10193_v2, %v10394_v42  ;;  %v4984_v1 = vmul.f32 %v10142_v34, %v10370_v5  ;;  %v5082_v55 = vmul.f32 %v10147_v44, %v5341_v57  ;;  %v4468_v50 = vpop.f32.mrf.mxu2 }
 0x545   : > { %v5244_v47 = vld [vmem:[#allocation2 + $0x81] sm:$0xff]  ;;  %v5179_v29 = vmul.f32 %v10156_v52, %v5146_v45  ;;  %v4466_v49 = vadd.f32 %v4465_v41, %v4353_v20  ;;  %v4310_v39 = vpop.f32.mrf.mxu1  ;;  %v4887_v6 = vmul.f32 %v10120_v62, %v5146_v45  ;;  %v4243_v41 = vadd.f32 %v10044_v0, %v10162_v37 }
 0x546   : > { %v4311_v63 = vadd.f32 %v4310_v39, %v4198_v56  ;;  %v5406_v14 = vadd.f32 %v5374_v27, %v5308_v18  ;;  %v5277_v43 = vmul.f32 %v10178_v35, %v5244_v47  ;;  %v4201_v56 = vadd.f32 %v10044_v0, %v10329_v17 }
 0x547   : > { %v5211_v22 = vadd.f32 %v5179_v29, %v5113_v54  ;;  %v4511_v21 = vmax.f32 %v4466_v49, 0.0  ;;  %v5016_v18 = vadd.f32 %v4984_v1, %v4918_v38  ;;  %v4985_v17 = vmul.f32 %v10142_v34, %v5244_v47 }
 0x548   : > { %v4424_v48 = vadd.f32 %v9907_v10, %v4311_v63  ;;  %v5450_v28 = vsel %vm279_vm0, %v5406_v14, 0.0  ;;  %v4821_v10 = vadd.f32 %v4789_v26, %v4723_v31  ;;  %v4594_v14 = vmul.f32 %v10086_v23, %v10361_v19 }
 0x549   : > { %v5309_v51 = vadd.f32 %v5277_v43, %v5211_v22  ;;  %4543 = vst.msk [vmem:[#allocation2 + $0x141] sm:$0xff] %vm279_vm0, %v4511_v21  ;;  %5451 = vadd.xlane.f32.xlu1 %v5450_v28  ;;  %v5114_v4 = vadd.f32 %v5082_v55, %v5016_v18  ;;  %v4692_v22 = vmul.f32 %v10091_v61, %v10370_v5  ;;  %v10427_v43 = vpop.f32.mrf.mxu0 }
 0x54a   : > { %v4497_v7 = vmax.f32 %v4424_v48, 0.0  ;;  %v4355_v11 = vpop.f32.mrf.mxu3  ;;  %v4919_v54 = vadd.f32 %v4887_v6, %v4821_v10  ;;  %v4790_v26 = vmul.f32 %v10099_v59, %v5341_v57  ;;  %v4595_v48 = vmul.f32 %v10086_v23, %v5146_v45 }
 0x54b   : > { %v5407_v36 = vadd.f32 %v5375_v40, %v5309_v51  ;;  %v4356_v20 = vadd.f32 %v4355_v11, %v4243_v41  ;;  %v10414_v25 = vld [vmem:[#allocation2 + $0x90] sm:$0xff]  ;;  %v4693_v28 = vmul.f32 %v10091_v61, %v5244_v47  ;;  %v5083_v5 = vmul.f32 %v10147_v44, %v10394_v42 }
 0x54c   : > { %4529 = vst.msk [vmem:[#allocation2 + $0x99] sm:$0xff] %vm279_vm0, %v4497_v7  ;;  %v5180_v27 = vmul.f32 %v10156_v52, %v10414_v25  ;;  %v10421_v63 = vld [vmem:[#allocation2 + $0x91] sm:$0xff]  ;;  %v5017_v38 = vadd.f32 %v4985_v17, %v4919_v54  ;;  %v4724_v57 = vadd.f32 %v4692_v22, %v4594_v14  ;;  %v4888_v45 = vmul.f32 %v10120_v62, %v10414_v25 }
 0x54d   : > { %v5453_v37 = vsel %vm279_vm0, %v5407_v36, 0.0  ;;  %v4469_v29 = vadd.f32 %v4468_v50, %v4356_v20  ;;  %v4313_v49 = vpop.f32.mrf.mxu1  ;;  %v5278_v19 = vmul.f32 %v10178_v35, %v10421_v63  ;;  %v4986_v14 = vmul.f32 %v10142_v34, %v10421_v63 }
 0x54e   : > { %5454 = vadd.xlane.f32.xlu2 %v5453_v37  ;;  %v4314_v39 = vadd.f32 %v4313_v49, %v4201_v56  ;;  %v5212_v40 = vadd.f32 %v5180_v27, %v5114_v4  ;;  %v5115_v36 = vadd.f32 %v5083_v5, %v5017_v38  ;;  %v4822_v20 = vadd.f32 %v4790_v26, %v4724_v57 }
 0x54f   : > { %v4512_v31 = vmax.f32 %v4469_v29, 0.0  ;;  %v4791_v49 = vmul.f32 %v10099_v59, %v10394_v42 }
 0x550   : > { %v4427_v21 = vadd.f32 %v9934_v24, %v4314_v39  ;;  %v4204_v24 = vadd.f32 %v10044_v0, %v10363_v46  ;;  %v5310_v47 = vadd.f32 %v5278_v19, %v5212_v40  ;;  %v4725_v46 = vadd.f32 %v4693_v28, %v4595_v48 }
 0x551   : > { %4544 = vst.msk [vmem:[#allocation2 + $0x151] sm:$0xff] %vm279_vm0, %v4512_v31  ;;  %v4920_v29 = vadd.f32 %v4888_v45, %v4822_v20  ;;  %v10459_v22 = vpop.f32.mrf.mxu0 }
 0x552   : > { %v4498_v51 = vmax.f32 %v4427_v21, 0.0  ;;  %v10434_v6 = vpop.f32.mrf.mxu3  ;;  %v4823_v42 = vadd.f32 %v4791_v49, %v4725_v46 }
 0x553   : > { %v5343_v41 = vld [vmem:[#allocation2 + $0x92] sm:$0xff]  ;;  %v10447_v10 = vld [vmem:[#allocation2 + $0x9a] sm:$0xff] }
 0x554   : > { %v5148_v1 = vld [vmem:[#allocation2 + $0x98] sm:$0xff]  ;;  %4530 = vst.msk [vmem:[#allocation2 + $0xa9] sm:$0xff] %vm279_vm0, %v4498_v51  ;;  %v5376_v11 = vmul.f32 %v10193_v2, %v5343_v41  ;;  %v5377_v54 = vmul.f32 %v10193_v2, %v10447_v10  ;;  %v5084_v26 = vmul.f32 %v10147_v44, %v5343_v41  ;;  %v5018_v51 = vadd.f32 %v4986_v14, %v4920_v29 }
 0x555   : > { %v5246_v7 = vld [vmem:[#allocation2 + $0x99] sm:$0xff]  ;;  %v5181_v55 = vmul.f32 %v10156_v52, %v5148_v1  ;;  %v4316_v56 = vpop.f32.mrf.mxu1  ;;  %v4889_v31 = vmul.f32 %v10120_v62, %v5148_v1  ;;  %v4792_v46 = vmul.f32 %v10099_v59, %v5343_v41 }
 0x556   : > { %v4317_v50 = vadd.f32 %v4316_v56, %v4204_v24  ;;  %v5408_v37 = vadd.f32 %v5376_v11, %v5310_v47  ;;  %v5279_v27 = vmul.f32 %v10178_v35, %v5246_v7  ;;  %v5116_v45 = vadd.f32 %v5084_v26, %v5018_v51 }
 0x557   : > { %v5213_v18 = vadd.f32 %v5181_v55, %v5115_v36  ;;  %v4921_v5 = vadd.f32 %v4889_v31, %v4823_v42  ;;  %v4987_v47 = vmul.f32 %v10142_v34, %v5246_v7  ;;  %v4694_v36 = vmul.f32 %v10091_v61, %v10421_v63 }
 0x558   : > { %v4430_v39 = vadd.f32 %v9960_v53, %v4317_v50  ;;  %v5456_v4 = vsel %vm279_vm0, %v5408_v37, 0.0  ;;  %v4207_v53 = vadd.f32 %v10044_v0, %v10396_v8  ;;  %v4596_v8 = vmul.f32 %v10086_v23, %v10414_v25 }
 0x559   : > { %v5311_v17 = vadd.f32 %v5279_v27, %v5213_v18  ;;  %5457 = vadd.xlane.f32.xlu0 %v5456_v4  ;;  %v5019_v20 = vadd.f32 %v4987_v47, %v4921_v5  ;;  %v4597_v50 = vmul.f32 %v10086_v23, %v5148_v1  ;;  %v4695_v37 = vmul.f32 %v10091_v61, %v5246_v7  ;;  %v4215_v7 = vpop.f32.mrf.mxu0 }
 0x55a   : > { %v4499_v21 = vmax.f32 %v4430_v39, 0.0  ;;  %v10461_v40 = vpop.f32.mrf.mxu3  ;;  %v5085_v25 = vmul.f32 %v10147_v44, %v10447_v10  ;;  %v4726_v41 = vadd.f32 %v4694_v36, %v4596_v8 }
 0x55b   : > { %v5409_v38 = vadd.f32 %v5377_v54, %v5311_v17  ;;  %v10466_v48 = vld [vmem:[#allocation2 + $0xa8] sm:$0xff] }
 0x55c   : > { %4531 = vst.msk [vmem:[#allocation2 + $0xb1] sm:$0xff] %vm279_vm0, %v4499_v21  ;;  %v5182_v19 = vmul.f32 %v10156_v52, %v10466_v48  ;;  %v10473_v11 = vld [vmem:[#allocation2 + $0xa9] sm:$0xff]  ;;  %v4890_v1 = vmul.f32 %v10120_v62, %v10466_v48  ;;  %v5117_v17 = vadd.f32 %v5085_v25, %v5019_v20 }
 0x55d   : > { %v5459_v28 = vsel %vm279_vm0, %v5409_v38, 0.0  ;;  %v4319_v24 = vpop.f32.mrf.mxu1  ;;  %v5280_v54 = vmul.f32 %v10178_v35, %v10473_v11  ;;  %v4988_v47 = vmul.f32 %v10142_v34, %v10473_v11 }
 0x55e   : > { %5460 = vadd.xlane.f32.xlu1 %v5459_v28  ;;  %v4320_v57 = vadd.f32 %v4319_v24, %v4207_v53  ;;  %v5214_v56 = vadd.f32 %v5182_v19, %v5116_v45  ;;  %v4793_v19 = vmul.f32 %v10099_v59, %v10447_v10 }
 0x560   : > { %v4433_v55 = vadd.f32 %v9985_v33, %v4320_v57  ;;  %v4210_v33 = vadd.f32 %v10044_v0, %v10427_v43  ;;  %v5312_v39 = vadd.f32 %v5280_v54, %v5214_v56  ;;  %v4824_v0 = vadd.f32 %v4792_v46, %v4726_v41 }
 0x561   : > { %v4727_v43 = vadd.f32 %v4695_v37, %v4597_v50 }
 0x562   : > { %v4500_v18 = vmax.f32 %v4433_v55, 0.0  ;;  %v10483_v27 = vpop.f32.mrf.mxu3  ;;  %v4922_v51 = vadd.f32 %v4890_v1, %v4824_v0 }
 0x563   : > { %v5345_v63 = vld [vmem:[#allocation2 + $0xaa] sm:$0xff]  ;;  %v10496_v14 = vld [vmem:[#allocation2 + $0xb2] sm:$0xff]  ;;  %v4825_v20 = vadd.f32 %v4793_v19, %v4727_v43 }
 0x564   : > { %v5150_v29 = vld [vmem:[#allocation2 + $0xb0] sm:$0xff]  ;;  %4532 = vst.msk [vmem:[#allocation2 + $0xc1] sm:$0xff] %vm279_vm0, %v4500_v18  ;;  %v5378_v4 = vmul.f32 %v10193_v2, %v5345_v63  ;;  %v5379_v28 = vmul.f32 %v10193_v2, %v10496_v14  ;;  %v5086_v56 = vmul.f32 %v10147_v44, %v5345_v63  ;;  %v5020_v37 = vadd.f32 %v4988_v47, %v4922_v51 }
 0x565   : > { %v5248_v49 = vld [vmem:[#allocation2 + $0xb1] sm:$0xff]  ;;  %v5183_v31 = vmul.f32 %v10156_v52, %v5150_v29  ;;  %v4322_v21 = vpop.f32.mrf.mxu1  ;;  %v4891_v45 = vmul.f32 %v10120_v62, %v5150_v29  ;;  %v4794_v43 = vmul.f32 %v10099_v59, %v5345_v63 }
 0x566   : > { %v4323_v38 = vadd.f32 %v4322_v21, %v4210_v33  ;;  %v5410_v26 = vadd.f32 %v5378_v4, %v5312_v39  ;;  %v5281_v53 = vmul.f32 %v10178_v35, %v5248_v49  ;;  %v4218_v33 = vpop.f32.mrf.mxu0  ;;  %v5118_v1 = vadd.f32 %v5086_v56, %v5020_v37 }
 0x567   : > { %v5215_v42 = vadd.f32 %v5183_v31, %v5117_v17  ;;  %v4923_v54 = vadd.f32 %v4891_v45, %v4825_v20  ;;  %v4989_v39 = vmul.f32 %v10142_v34, %v5248_v49  ;;  %v4696_v17 = vmul.f32 %v10091_v61, %v10473_v11 }
 0x568   : > { %v4436_v5 = vadd.f32 %v10013_v60, %v4323_v38  ;;  %v5462_v24 = vsel %vm279_vm0, %v5410_v26, 0.0  ;;  %v10514_v60 = vld [vmem:[%s11195_s4] ss:$0 sm:$0xff]  ;;  %v4599_v38 = vmul.f32 %v10086_v23, %v5150_v29  ;;  %v4697_v26 = vmul.f32 %v10091_v61, %v5248_v49 }
 0x569   : > { %v5313_v57 = vadd.f32 %v5281_v53, %v5215_v42  ;;  %5463 = vadd.xlane.f32.xlu2 %v5462_v24  ;;  %v4213_v10 = vadd.f32 %v10514_v60, %v10459_v22  ;;  %v4598_v22 = vmul.f32 %v10086_v23, %v10466_v48  ;;  %v5021_v0 = vadd.f32 %v4989_v39, %v4923_v54  ;;  %v11860_v54 = vld [vmem:[#allocation86_spill] sm:$0xff] }
 0x56a   : > { %v4501_v8 = vmax.f32 %v4436_v5, 0.0  ;;  %v10508_v36 = vpop.f32.mrf.mxu3  ;;  %v5087_v48 = vmul.f32 %v10147_v44, %v10496_v14  ;;  %v4216_v11 = vadd.f32 %v10514_v60, %v4215_v7  ;;  %v4729_v7 = vadd.f32 %v4697_v26, %v4599_v38 }
 0x56b   : > { %v5411_v55 = vadd.f32 %v5379_v28, %v5313_v57  ;;  %v10518_v46 = vld [vmem:[#allocation2 + $0xc0] sm:$0xff]  ;;  %v4728_v5 = vadd.f32 %v4696_v17, %v4598_v22  ;;  %v4246_v56 = vadd.f32 %v10514_v60, %v10200_v58 }
 0x56c   : > { %4533 = vst.msk [vmem:[#allocation2 + $0xc9] sm:$0xff] %vm279_vm0, %v4501_v8  ;;  %v5184_v18 = vmul.f32 %v10156_v52, %v10518_v46  ;;  %v10525_v4 = vld [vmem:[#allocation2 + $0xc1] sm:$0xff]  ;;  %v4892_v23 = vmul.f32 %v10120_v62, %v10518_v46  ;;  %v5119_v63 = vadd.f32 %v5087_v48, %v5021_v0 }
 0x56d   : > { %v5465_v50 = vsel %vm279_vm0, %v5411_v55, 0.0  ;;  %v4325_v25 = vpop.f32.mrf.mxu1  ;;  %v5282_v28 = vmul.f32 %v10178_v35, %v10525_v4  ;;  %v4826_v57 = vadd.f32 %v4794_v43, %v4728_v5  ;;  %v4359_v39 = vadd.f32 %v10434_v6, %v4246_v56 }
 0x56e   : > { %5466 = vadd.xlane.f32.xlu0 %v5465_v50  ;;  %v4326_v41 = vadd.f32 %v4325_v25, %v4213_v10  ;;  %v5216_v21 = vadd.f32 %v5184_v18, %v5118_v1  ;;  %v10557_v50 = vld [vmem:[%s11196_s5 + $0x2] ss:$0 sm:$0xff]  ;;  %v4221_v18 = vpop.f32.mrf.mxu0  ;;  %v4990_v22 = vmul.f32 %v10142_v34, %v10525_v4  ;;  %v4219_v43 = vadd.f32 %v10514_v60, %v4218_v33 }
 0x56f   : > { %v4924_v10 = vadd.f32 %v4892_v23, %v4826_v57  ;;  %v4795_v37 = vmul.f32 %v10557_v50, %v10496_v14  ;;  %v4249_v33 = vadd.f32 %v10514_v60, %v10240_v3  ;;  %v11861_v3 = vld [vmem:[#allocation89_spill] sm:$0xff] }
 0x570   : > { %v4439_v31 = vadd.f32 %v10039_v15, %v4326_v41  ;;  %v5314_v61 = vadd.f32 %v5282_v28, %v5216_v21 }
 0x571   : > { %v4827_v14 = vadd.f32 %v4795_v37, %v4729_v7  ;;  %v5022_v6 = vadd.f32 %v4990_v22, %v4924_v10  ;;  %v4362_v7 = vadd.f32 %v10461_v40, %v4249_v33 }
 0x572   : > { %v4502_v42 = vmax.f32 %v4439_v31, 0.0  ;;  %v10535_v53 = vpop.f32.mrf.mxu3 }
 0x573   : > { %v5347_v15 = vld [vmem:[#allocation2 + $0xc2] sm:$0xff]  ;;  %v10547_v49 = vld [vmem:[#allocation2 + $0xca] sm:$0xff] }
 0x574   : > { %v5152_v51 = vld [vmem:[#allocation2 + $0xc8] sm:$0xff]  ;;  %4534 = vst.msk [vmem:[#allocation2 + $0xd9] sm:$0xff] %vm279_vm0, %v4502_v42  ;;  %v5380_v59 = vmul.f32 %v10193_v2, %v5347_v15  ;;  %v5381_v20 = vmul.f32 %v10193_v2, %v10547_v49  ;;  %v5088_v0 = vmul.f32 %v10147_v44, %v5347_v15 }
 0x575   : > { %v5250_v19 = vld [vmem:[#allocation2 + $0xc9] sm:$0xff]  ;;  %v5185_v29 = vmul.f32 %v10156_v52, %v5152_v51  ;;  %v4328_v24 = vpop.f32.mrf.mxu1  ;;  %v4893_v58 = vmul.f32 %v10120_v62, %v5152_v51 }
 0x576   : > { %v4329_v45 = vadd.f32 %v4328_v24, %v4216_v11  ;;  %v5412_v47 = vadd.f32 %v5380_v59, %v5314_v61  ;;  %v5283_v55 = vmul.f32 %v10178_v35, %v5250_v19  ;;  %v5120_v44 = vadd.f32 %v5088_v0, %v5022_v6  ;;  %v10584_v59 = vld [vmem:[%s11196_s5] ss:$0 sm:$0xff] }
 0x577   : > { %v5217_v8 = vadd.f32 %v5185_v29, %v5119_v63  ;;  %v4925_v28 = vadd.f32 %v4893_v58, %v4827_v14  ;;  %v4991_v23 = vmul.f32 %v10142_v34, %v5250_v19  ;;  %v10591_v63 = vld [vmem:[%s11196_s5 + $0x1] ss:$0 sm:$0xff] }
 0x578   : > { %v4442_v25 = vadd.f32 %v11860_v54, %v4329_v45  ;;  %v5468_v41 = vsel %vm279_vm0, %v5412_v47, 0.0  ;;  %v4698_v34 = vmul.f32 %v10591_v63, %v10525_v4  ;;  %v4796_v45 = vmul.f32 %v10557_v50, %v5347_v15  ;;  %v10605_v4 = vld [vmem:[%s11196_s5 + $0x5] ss:$0 sm:$0xff] }
 0x579   : > { %v5315_v1 = vadd.f32 %v5283_v55, %v5217_v8  ;;  %5469 = vadd.xlane.f32.xlu1 %v5468_v41  ;;  %v5023_v57 = vadd.f32 %v4991_v23, %v4925_v28  ;;  %v4601_v47 = vmul.f32 %v10584_v59, %v5152_v51  ;;  %v4224_v8 = vpop.f32.mrf.mxu0  ;;  %v5089_v40 = vmul.f32 %v10605_v4, %v10547_v49 }
 0x57a   : > { %v4503_v17 = vmax.f32 %v4442_v25, 0.0  ;;  %v4471_v31 = vpop.f32.mrf.mxu3  ;;  %v4222_v15 = vadd.f32 %v10514_v60, %v4221_v18  ;;  %v10619_v25 = vld [vmem:[%s11196_s5 + $0x3] ss:$0 sm:$0xff] }
 0x57b   : > { %v5413_v21 = vadd.f32 %v5381_v20, %v5315_v1  ;;  %v4472_v38 = vadd.f32 %v4471_v31, %v4359_v39  ;;  %v10569_v26 = vld [vmem:[#allocation2 + $0xd8] sm:$0xff]  ;;  %v5121_v58 = vadd.f32 %v5089_v40, %v5023_v57  ;;  %v10629_v39 = vld [vmem:[%s11196_s5 + $0x6] ss:$0 sm:$0xff] }
 0x57c   : > { %4535 = vst.msk [vmem:[#allocation2 + $0xe1] sm:$0xff] %vm279_vm0, %v4503_v17  ;;  %v5186_v42 = vmul.f32 %v10156_v52, %v10569_v26  ;;  %v10579_v61 = vld [vmem:[#allocation2 + $0xd9] sm:$0xff]  ;;  %v4600_v52 = vmul.f32 %v10584_v59, %v10518_v46  ;;  %v4699_v46 = vmul.f32 %v10591_v63, %v5250_v19  ;;  %v4894_v41 = vmul.f32 %v10619_v25, %v10569_v26 }
 0x57d   : > { %v5471_v62 = vsel %vm279_vm0, %v5413_v21, 0.0  ;;  %v4513_v48 = vmax.f32 %v4472_v38, 0.0  ;;  %v4331_v11 = vpop.f32.mrf.mxu1  ;;  %v5284_v20 = vmul.f32 %v10178_v35, %v10579_v61  ;;  %v10658_v57 = vld [vmem:[#allocation2 + $0x138] sm:$0xff] }
 0x57e   : > { %5472 = vadd.xlane.f32.xlu2 %v5471_v62  ;;  %v4332_v5 = vadd.f32 %v4331_v11, %v4219_v43  ;;  %v5218_v24 = vadd.f32 %v5186_v42, %v5120_v44  ;;  %v4730_v54 = vadd.f32 %v4698_v34, %v4600_v52  ;;  %v4731_v14 = vadd.f32 %v4699_v46, %v4601_v47 }
 0x57f   : > { %4545 = vst.msk [vmem:[#allocation2 + $0x159] sm:$0xff] %vm279_vm0, %v4513_v48  ;;  %v4252_v42 = vadd.f32 %v10514_v60, %v10274_v30  ;;  %v4797_v11 = vmul.f32 %v10557_v50, %v10547_v49  ;;  %v10652_v30 = vld [vmem:[%s11196_s5 + $0x4] ss:$0 sm:$0xff] }
 0x580   : > { %v4445_v29 = vadd.f32 %v11861_v3, %v4332_v5  ;;  %v5316_v1 = vadd.f32 %v5284_v20, %v5218_v24  ;;  %v4828_v0 = vadd.f32 %v4796_v45, %v4730_v54  ;;  %v11862_v5 = vld [vmem:[#allocation90_spill] sm:$0xff]  ;;  %v4225_v45 = vadd.f32 %v10514_v60, %v4224_v8 }
 0x581   : > { %v4365_v52 = vadd.f32 %v10483_v27, %v4252_v42  ;;  %v4829_v24 = vadd.f32 %v4797_v11, %v4731_v14  ;;  %v4255_v27 = vadd.f32 %v10514_v60, %v10305_v16  ;;  %v10675_v16 = vadd.f32 %v10514_v60, %v10331_v32 }
 0x582   : > { %v4504_v55 = vmax.f32 %v4445_v29, 0.0  ;;  %v4474_v56 = vpop.f32.mrf.mxu3  ;;  %v4926_v48 = vadd.f32 %v4894_v41, %v4828_v0  ;;  %v10679_v41 = vmul.f32 %v10629_v39, %v10658_v57  ;;  %v4602_v14 = vmul.f32 %v10584_v59, %v10569_v26 }
 0x583   : > { %v4475_v10 = vadd.f32 %v4474_v56, %v4362_v7  ;;  %v10610_v51 = vld [vmem:[#allocation2 + $0xda] sm:$0xff]  ;;  %v10633_v17 = vld [vmem:[#allocation2 + $0xe2] sm:$0xff] }
 0x584   : > { %v10612_v19 = vld [vmem:[#allocation2 + $0xe0] sm:$0xff]  ;;  %4536 = vst.msk [vmem:[#allocation2 + $0xf1] sm:$0xff] %vm279_vm0, %v4504_v55  ;;  %v5382_v18 = vmul.f32 %v10193_v2, %v10610_v51  ;;  %v5383_v28 = vmul.f32 %v10193_v2, %v10633_v17  ;;  %v4992_v2 = vmul.f32 %v10652_v30, %v10579_v61  ;;  %v5090_v29 = vmul.f32 %v10605_v4, %v10610_v51  ;;  %v4227_v55 = vpop.f32.mrf.mxu0 }
 0x585   : > { %v10614_v37 = vld [vmem:[#allocation2 + $0xe1] sm:$0xff]  ;;  %v5187_v22 = vmul.f32 %v10629_v39, %v10612_v19  ;;  %v4514_v31 = vmax.f32 %v4475_v10, 0.0  ;;  %v4334_v21 = vpop.f32.mrf.mxu1  ;;  %v10660_v7 = vld [vmem:[#allocation2 + $0x139] sm:$0xff] }
 0x586   : > { %v4335_v43 = vadd.f32 %v4334_v21, %v4222_v15  ;;  %v5414_v38 = vadd.f32 %v5382_v18, %v5316_v1  ;;  %v5285_v6 = vmul.f32 %v10178_v35, %v10614_v37  ;;  %v4895_v35 = vmul.f32 %v10619_v25, %v10612_v19  ;;  %v10671_v10 = vld [vmem:[#allocation2 + $0x13a] sm:$0xff]  ;;  %v10684_v1 = vld [vmem:[%s11196_s5 + $0x7] ss:$0 sm:$0xff] }
 0x587   : > { %v5219_v62 = vadd.f32 %v5187_v22, %v5121_v58  ;;  %4546 = vst.msk [vmem:[#allocation2 + $0x169] sm:$0xff] %vm279_vm0, %v4514_v31  ;;  %v5024_v20 = vadd.f32 %v4992_v2, %v4926_v48  ;;  %v10688_v18 = vmul.f32 %v10684_v1, %v10660_v7  ;;  %v10690_v58 = vld [vmem:[#allocation2 + $0x140] sm:$0xff]  ;;  %v4993_v31 = vmul.f32 %v10652_v30, %v10614_v37 }
 0x588   : > { %v4448_v44 = vadd.f32 %v11862_v5, %v4335_v43  ;;  %v5474_v23 = vsel %vm279_vm0, %v5414_v38, 0.0  ;;  %v4927_v15 = vadd.f32 %v4895_v35, %v4829_v24  ;;  %11863 = vst [vmem:[#allocation93_spill] sm:$0xff] %v10684_v1  ;;  %v10696_v21 = vmul.f32 %v10619_v25, %v10658_v57  ;;  %v10708_v38 = vld [vmem:[%s11196_s5 + $0x8] ss:$0 sm:$0xff] }
 0x589   : > { %v5317_v33 = vadd.f32 %v5285_v6, %v5219_v62  ;;  %5475 = vadd.xlane.f32.xlu0 %v5474_v23  ;;  %v5122_v22 = vadd.f32 %v5090_v29, %v5024_v20  ;;  %v4700_v43 = vmul.f32 %v10591_v63, %v10579_v61  ;;  %11864 = vst [vmem:[#allocation94_spill] sm:$0xff] %v10708_v38  ;;  %v10714_v6 = vld [vmem:[#allocation2 + $0x141] sm:$0xff] }
 0x58a   : > { %v4505_v49 = vmax.f32 %v4448_v44, 0.0  ;;  %v4477_v34 = vpop.f32.mrf.mxu3  ;;  %v10712_v62 = vmul.f32 %v10708_v38, %v10671_v10  ;;  %v10718_v42 = vmul.f32 %v10652_v30, %v10660_v7  ;;  %v5025_v11 = vadd.f32 %v4993_v31, %v4927_v15 }
 0x58b   : > { %v5415_v3 = vadd.f32 %v5383_v28, %v5317_v33  ;;  %v4478_v47 = vadd.f32 %v4477_v34, %v4365_v52  ;;  %v10665_v46 = vld [vmem:[#allocation2 + $0xf0] sm:$0xff]  ;;  %v10723_v61 = vmul.f32 %v10629_v39, %v10690_v58  ;;  %v4368_v5 = vadd.f32 %v10508_v36, %v4255_v27  ;;  %v10740_v34 = vld [vmem:[#allocation2 + $0x142] sm:$0xff] }
 0x58c   : > { %4537 = vst.msk [vmem:[#allocation2 + $0xf9] sm:$0xff] %vm279_vm0, %v4505_v49  ;;  %v5188_v40 = vmul.f32 %v10629_v39, %v10665_v46  ;;  %v10699_v0 = vld [vmem:[#allocation2 + $0xf1] sm:$0xff]  ;;  %v4798_v44 = vmul.f32 %v10557_v50, %v10610_v51  ;;  %v4603_v23 = vmul.f32 %v10584_v59, %v10612_v19  ;;  %v4701_v33 = vmul.f32 %v10591_v63, %v10614_v37 }
 0x58d   : > { %v5477_v56 = vsel %vm279_vm0, %v5415_v3, 0.0  ;;  %v4515_v8 = vmax.f32 %v4478_v47, 0.0  ;;  %v4337_v54 = vpop.f32.mrf.mxu1  ;;  %v11865_v28 = vld [vmem:[#allocation91_spill] sm:$0xff]  ;;  %v5286_v2 = vmul.f32 %v10684_v1, %v10699_v0  ;;  %v5091_v49 = vmul.f32 %v10605_v4, %v10633_v17 }
 0x58e   : > { %5478 = vadd.xlane.f32.xlu1 %v5477_v56  ;;  %v4338_v32 = vadd.f32 %v4337_v54, %v4225_v45  ;;  %v5220_v48 = vadd.f32 %v5188_v40, %v5122_v22  ;;  %v10738_v36 = vmul.f32 %v10684_v1, %v10714_v6  ;;  %v4228_v51 = vadd.f32 %v10514_v60, %v4227_v55  ;;  %v4230_v22 = vpop.f32.mrf.mxu0 }
 0x58f   : > { %4547 = vst.msk [vmem:[#allocation2 + $0x171] sm:$0xff] %vm279_vm0, %v4515_v8  ;;  %v4732_v24 = vadd.f32 %v4700_v43, %v4602_v14  ;;  %v4896_v27 = vmul.f32 %v10619_v25, %v10665_v46  ;;  %v5123_v56 = vadd.f32 %v5091_v49, %v5025_v11  ;;  %v4733_v54 = vadd.f32 %v4701_v33, %v4603_v23 }
 0x590   : > { %v4451_v26 = vadd.f32 %v11865_v28, %v4338_v32  ;;  %v5318_v45 = vadd.f32 %v5286_v2, %v5220_v48  ;;  %v10760_v32 = vmul.f32 %v10708_v38, %v10740_v34  ;;  %v4799_v11 = vmul.f32 %v10557_v50, %v10633_v17 }
 0x591   : > { %v4830_v8 = vadd.f32 %v4798_v44, %v4732_v24  ;;  %v4994_v2 = vmul.f32 %v10652_v30, %v10699_v0  ;;  %v10783_v17 = vmul.f32 %v10619_v25, %v10690_v58 }
 0x592   : > { %v4506_v35 = vmax.f32 %v4451_v26, 0.0  ;;  %v4480_v52 = vpop.f32.mrf.mxu3 }
 0x593   : > { %v4481_v19 = vadd.f32 %v4480_v52, %v4368_v5  ;;  %v10743_v3 = vld [vmem:[#allocation2 + $0xf2] sm:$0xff]  ;;  %v10756_v20 = vld [vmem:[#allocation2 + $0xfa] sm:$0xff]  ;;  %v4928_v48 = vadd.f32 %v4896_v27, %v4830_v8  ;;  %v10771_v5 = vmul.f32 %v10605_v4, %v10671_v10  ;;  %v4371_v52 = vadd.f32 %v10535_v53, %v10675_v16 }
 0x594   : > { %v10745_v37 = vld [vmem:[#allocation2 + $0xf8] sm:$0xff]  ;;  %4538 = vst.msk [vmem:[#allocation2 + $0x109] sm:$0xff] %vm279_vm0, %v4506_v35  ;;  %v5384_v47 = vmul.f32 %v10708_v38, %v10743_v3  ;;  %v5385_v26 = vmul.f32 %v10708_v38, %v10756_v20  ;;  %v5092_v24 = vmul.f32 %v10605_v4, %v10743_v3  ;;  %v4831_v27 = vadd.f32 %v4799_v11, %v4733_v54  ;;  %v10791_v53 = vld [vmem:[#allocation2 + $0x150] sm:$0xff] }
 0x595   : > { %v10747_v29 = vld [vmem:[#allocation2 + $0xf9] sm:$0xff]  ;;  %v5189_v55 = vmul.f32 %v10629_v39, %v10745_v37  ;;  %v4516_v40 = vmax.f32 %v4481_v19, 0.0  ;;  %v4340_v15 = vpop.f32.mrf.mxu1  ;;  %v4897_v35 = vmul.f32 %v10619_v25, %v10745_v37  ;;  %11866 = vst [vmem:[#allocation14_spill] sm:$0xff] %v10791_v53  ;;  %v10793_v16 = vld [vmem:[#allocation2 + $0x151] sm:$0xff]  ;;  %v5026_v8 = vadd.f32 %v4994_v2, %v4928_v48 }
 0x596   : > { %v4341_v31 = vadd.f32 %v4340_v15, %v4228_v51  ;;  %v5416_v14 = vadd.f32 %v5384_v47, %v5318_v45  ;;  %v5287_v28 = vmul.f32 %v10684_v1, %v10747_v29  ;;  %11867 = vst [vmem:[#allocation95_spill] sm:$0xff] %v10793_v16  ;;  %v4231_v45 = vadd.f32 %v10514_v60, %v4230_v22  ;;  %v4233_v2 = vpop.f32.mrf.mxu0 }
 0x597   : > { %v5221_v43 = vadd.f32 %v5189_v55, %v5123_v56  ;;  %4548 = vst.msk [vmem:[#allocation2 + $0x181] sm:$0xff] %vm279_vm0, %v4516_v40  ;;  %v4610_v55 = vmul.f32 %v10584_v59, %v10658_v57  ;;  %v4708_v40 = vmul.f32 %v10591_v63, %v10660_v7  ;;  %v10805_v22 = vmul.f32 %v10629_v39, %v10791_v53 }
 0x598   : > { %v4454_v44 = vadd.f32 %v10238_v12, %v4341_v31  ;;  %v5480_v23 = vsel %vm279_vm0, %v5416_v14, 0.0  ;;  %v10787_v12 = vmul.f32 %v10652_v30, %v10714_v6  ;;  %v4929_v31 = vadd.f32 %v4897_v35, %v4831_v27 }
 0x599   : > { %v5319_v33 = vadd.f32 %v5287_v28, %v5221_v43  ;;  %5481 = vadd.xlane.f32.xlu2 %v5480_v23  ;;  %v10809_v57 = vmul.f32 %v10684_v1, %v10793_v16  ;;  %v10813_v7 = vmul.f32 %v10605_v4, %v10740_v34  ;;  %v4995_v48 = vmul.f32 %v10652_v30, %v10747_v29 }
 0x59a   : > { %v4507_v49 = vmax.f32 %v4454_v44, 0.0  ;;  %v4483_v51 = vpop.f32.mrf.mxu3  ;;  %v4806_v11 = vmul.f32 %v10557_v50, %v10671_v10  ;;  %v4604_v23 = vmul.f32 %v10584_v59, %v10665_v46  ;;  %v4740_v35 = vadd.f32 %v4708_v40, %v4610_v55 }
 0x59b   : > { %v5417_v19 = vadd.f32 %v5385_v26, %v5319_v33  ;;  %v4484_v47 = vadd.f32 %v4483_v51, %v4371_v52  ;;  %v5157_v56 = vld [vmem:[#allocation2 + $0x108] sm:$0xff]  ;;  %v5124_v26 = vadd.f32 %v5092_v24, %v5026_v8  ;;  %v4702_v33 = vmul.f32 %v10591_v63, %v10699_v0 }
 0x59c   : > { %4539 = vst.msk [vmem:[#allocation2 + $0x111] sm:$0xff] %vm279_vm0, %v4507_v49  ;;  %v5190_v54 = vmul.f32 %v10629_v39, %v5157_v56  ;;  %v5255_v44 = vld [vmem:[#allocation2 + $0x109] sm:$0xff]  ;;  %v4904_v52 = vmul.f32 %v10619_v25, %v10791_v53  ;;  %v10829_v10 = vmul.f32 %v10652_v30, %v10793_v16  ;;  %v4800_v24 = vmul.f32 %v10557_v50, %v10743_v3 }
 0x59d   : > { %v5483_v15 = vsel %vm279_vm0, %v5417_v19, 0.0  ;;  %v4517_v14 = vmax.f32 %v4484_v47, 0.0  ;;  %v4343_v43 = vpop.f32.mrf.mxu1  ;;  %v5027_v19 = vadd.f32 %v4995_v48, %v4929_v31  ;;  %v4605_v46 = vmul.f32 %v10584_v59, %v10745_v37 }
 0x59e   : > { %5484 = vadd.xlane.f32.xlu0 %v5483_v15  ;;  %v4344_v28 = vadd.f32 %v4343_v43, %v4231_v45  ;;  %v5222_v51 = vadd.f32 %v5190_v54, %v5124_v26  ;;  %v4703_v0 = vmul.f32 %v10591_v63, %v10747_v29  ;;  %v4611_v27 = vmul.f32 %v10584_v59, %v10690_v58 }
 0x59f   : > { %4549 = vst.msk [vmem:[#allocation2 + $0x189] sm:$0xff] %vm279_vm0, %v4517_v14  ;;  %v5093_v47 = vmul.f32 %v10605_v4, %v10756_v20  ;;  %v4838_v55 = vadd.f32 %v4806_v11, %v4740_v35  ;;  %v4234_v40 = vadd.f32 %v10514_v60, %v4233_v2  ;;  %v4734_v54 = vadd.f32 %v4702_v33, %v4604_v23 }
 0x5a0   : > { %v4457_v49 = vadd.f32 %v10285_v9, %v4344_v28  ;;  %v5288_v9 = vmul.f32 %v10684_v1, %v5255_v44  ;;  %v4898_v37 = vmul.f32 %v10619_v25, %v5157_v56  ;;  %v4709_v29 = vmul.f32 %v10591_v63, %v10714_v6 }
 0x5a1   : > { %v5125_v14 = vadd.f32 %v5093_v47, %v5027_v19  ;;  %v4832_v60 = vadd.f32 %v4800_v24, %v4734_v54  ;;  %v4735_v48 = vadd.f32 %v4703_v0, %v4605_v46  ;;  %v4801_v11 = vmul.f32 %v10557_v50, %v10756_v20 }
 0x5a2   : > { %v4508_v45 = vmax.f32 %v4457_v49, 0.0  ;;  %v5320_v58 = vadd.f32 %v5288_v9, %v5222_v51  ;;  %v4936_v23 = vadd.f32 %v4904_v52, %v4838_v55  ;;  %v4606_v19 = vmul.f32 %v10584_v59, %v5157_v56 }
 0x5a3   : > { %v5353_v15 = vld [vmem:[#allocation2 + $0x10a] sm:$0xff]  ;;  %v5354_v26 = vld [vmem:[#allocation2 + $0x112] sm:$0xff]  ;;  %v4930_v49 = vadd.f32 %v4898_v37, %v4832_v60  ;;  %v4996_v52 = vmul.f32 %v10652_v30, %v5255_v44  ;;  %v4833_v47 = vadd.f32 %v4801_v11, %v4735_v48  ;;  %v4741_v55 = vadd.f32 %v4709_v29, %v4611_v27 }
 0x5a4   : > { %v5158_v3 = vld [vmem:[#allocation2 + $0x110] sm:$0xff]  ;;  %4540 = vst.msk [vmem:[#allocation2 + $0x121] sm:$0xff] %vm279_vm0, %v4508_v45  ;;  %v5386_v31 = vmul.f32 %v10708_v38, %v5353_v15  ;;  %v4704_v45 = vmul.f32 %v10591_v63, %v5255_v44  ;;  %v5387_v20 = vmul.f32 %v10708_v38, %v5354_v26  ;;  %v5094_v0 = vmul.f32 %v10605_v4, %v5353_v15  ;;  %v10867_v60 = vld [vmem:[#allocation2 + $0x159] sm:$0xff] }
 0x5a5   : > { %v5256_v8 = vld [vmem:[#allocation2 + $0x111] sm:$0xff]  ;;  %v5191_v43 = vmul.f32 %v10629_v39, %v5158_v3  ;;  %v4346_v28 = vpop.f32.mrf.mxu1  ;;  %v4899_v51 = vmul.f32 %v10619_v25, %v5158_v3  ;;  %v4802_v56 = vmul.f32 %v10557_v50, %v5353_v15 }
 0x5a6   : > { %v4347_v33 = vadd.f32 %v4346_v28, %v4234_v40  ;;  %v5418_v35 = vadd.f32 %v5386_v31, %v5320_v58  ;;  %v5289_v6 = vmul.f32 %v10684_v1, %v5256_v8  ;;  %v10861_v37 = vld [vmem:[#allocation2 + $0x152] sm:$0xff]  ;;  %v5028_v58 = vadd.f32 %v4996_v52, %v4930_v49 }
 0x5a7   : > { %v5223_v2 = vadd.f32 %v5191_v43, %v5125_v14  ;;  %11868 = vst [vmem:[#allocation10_spill] sm:$0xff] %v10861_v37  ;;  %v4931_v14 = vadd.f32 %v4899_v51, %v4833_v47  ;;  %v4607_v43 = vmul.f32 %v10584_v59, %v5158_v3  ;;  %v4705_v44 = vmul.f32 %v10591_v63, %v5256_v8  ;;  %v5164_v28 = vld [vmem:[#allocation2 + $0x158] sm:$0xff] }
 0x5a8   : > { %v4460_v9 = vadd.f32 %v10316_v13, %v4347_v33  ;;  %v5486_v24 = vsel %vm279_vm0, %v5418_v35, 0.0  ;;  %v4807_v13 = vmul.f32 %v10557_v50, %v10740_v34  ;;  %v4736_v29 = vadd.f32 %v4704_v45, %v4606_v19  ;;  %v10873_v34 = vld [vmem:[#allocation2 + $0x15a] sm:$0xff]  ;;  %v10877_v35 = vld [vmem:[#allocation2 + $0x168] sm:$0xff] }
 0x5a9   : > { %v5321_v46 = vadd.f32 %v5289_v6, %v5223_v2  ;;  %5487 = vadd.xlane.f32.xlu1 %v5486_v24  ;;  %v5126_v11 = vadd.f32 %v5094_v0, %v5028_v58  ;;  %v4997_v3 = vmul.f32 %v10652_v30, %v5256_v8  ;;  %v5034_v33 = vadd.f32 %v10829_v10, %v4936_v23  ;;  %v10894_v23 = vld [vmem:[#allocation2 + $0x169] sm:$0xff] }
 0x5aa   : > { %v4509_v40 = vmax.f32 %v4460_v9, 0.0  ;;  %v4839_v2 = vadd.f32 %v4807_v13, %v4741_v55  ;;  %v4834_v49 = vadd.f32 %v4802_v56, %v4736_v29  ;;  %v10881_v51 = vmul.f32 %v10708_v38, %v10861_v37 }
 0x5ab   : > { %v5419_v54 = vadd.f32 %v5387_v20, %v5321_v46  ;;  %v5159_v31 = vld [vmem:[#allocation2 + $0x120] sm:$0xff]  ;;  %v10884_v19 = vmul.f32 %v10629_v39, %v5164_v28  ;;  %v10888_v45 = vmul.f32 %v10684_v1, %v10867_v60  ;;  %v5029_v8 = vadd.f32 %v4997_v3, %v4931_v14 }
 0x5ac   : > { %4541 = vst.msk [vmem:[#allocation2 + $0x129] sm:$0xff] %vm279_vm0, %v4509_v40  ;;  %v5192_v15 = vmul.f32 %v10629_v39, %v5159_v31  ;;  %v4900_v48 = vmul.f32 %v10619_v25, %v5159_v31  ;;  %v5257_v6 = vld [vmem:[#allocation2 + $0x121] sm:$0xff]  ;;  %v4737_v24 = vadd.f32 %v4705_v44, %v4607_v43  ;;  %v10892_v10 = vmul.f32 %v10708_v38, %v10873_v34 }
 0x5ad   : > { %v5489_v27 = vsel %vm279_vm0, %v5419_v54, 0.0  ;;  %v5095_v46 = vmul.f32 %v10605_v4, %v5354_v26  ;;  %v5100_v52 = vmul.f32 %v10605_v4, %v10861_v37  ;;  %v10901_v0 = vmul.f32 %v10629_v39, %v10877_v35 }
 0x5ae   : > { %5490 = vadd.xlane.f32.xlu2 %v5489_v27  ;;  %v5224_v9 = vadd.f32 %v5192_v15, %v5126_v11  ;;  %11869 = vst [vmem:[#allocation15_spill] sm:$0xff] %v10892_v10  ;;  %v4932_v20 = vadd.f32 %v4900_v48, %v4834_v49  ;;  %v5290_v47 = vmul.f32 %v10684_v1, %v5257_v6 }
 0x5af   : > { %v4803_v55 = vmul.f32 %v10557_v50, %v5354_v26  ;;  %v4608_v40 = vmul.f32 %v10584_v59, %v5159_v31  ;;  %v4706_v54 = vmul.f32 %v10591_v63, %v5257_v6  ;;  %v4998_v56 = vmul.f32 %v10652_v30, %v5257_v6 }
 0x5b0   : > { %v10910_v13 = vmul.f32 %v10684_v1, %v10894_v23  ;;  %v4905_v58 = vmul.f32 %v10619_v25, %v5164_v28  ;;  %v4613_v14 = vmul.f32 %v10584_v59, %v5164_v28  ;;  %v5322_v43 = vadd.f32 %v5290_v47, %v5224_v9 }
 0x5b1   : > { %v5127_v27 = vadd.f32 %v5095_v46, %v5029_v8  ;;  %v4835_v26 = vadd.f32 %v4803_v55, %v4737_v24  ;;  %v4711_v31 = vmul.f32 %v10591_v63, %v10867_v60  ;;  %v5030_v6 = vadd.f32 %v4998_v56, %v4932_v20 }
 0x5b2   : > { %11870 = vst [vmem:[#allocation96_spill] sm:$0xff] %v10910_v13  ;;  %v4738_v8 = vadd.f32 %v4706_v54, %v4608_v40 }
 0x5b3   : > { %v5355_v44 = vld [vmem:[#allocation2 + $0x122] sm:$0xff]  ;;  %v5356_v3 = vld [vmem:[#allocation2 + $0x12a] sm:$0xff] }
 0x5b4   : > { %v5160_v15 = vld [vmem:[#allocation2 + $0x128] sm:$0xff]  ;;  %v5388_v48 = vmul.f32 %v10708_v38, %v5355_v44  ;;  %v5096_v49 = vmul.f32 %v10605_v4, %v5355_v44  ;;  %v5389_v28 = vmul.f32 %v10708_v38, %v5356_v3  ;;  %v4804_v55 = vmul.f32 %v10557_v50, %v5355_v44 }
 0x5b5   : > { %v5258_v29 = vld [vmem:[#allocation2 + $0x129] sm:$0xff]  ;;  %v5193_v11 = vmul.f32 %v10629_v39, %v5160_v15  ;;  %v4901_v9 = vmul.f32 %v10619_v25, %v5160_v15  ;;  %v4609_v13 = vmul.f32 %v10584_v59, %v5160_v15  ;;  %v5097_v54 = vmul.f32 %v10605_v4, %v5356_v3 }
 0x5b6   : > { %v5291_v37 = vmul.f32 %v10684_v1, %v5258_v29  ;;  %v5420_v46 = vadd.f32 %v5388_v48, %v5322_v43  ;;  %v5128_v47 = vadd.f32 %v5096_v49, %v5030_v6  ;;  %v4999_v53 = vmul.f32 %v10652_v30, %v5258_v29  ;;  %v10932_v49 = vld [vmem:[#allocation2 + $0x171] sm:$0xff] }
 0x5b7   : > { %v5225_v24 = vadd.f32 %v5193_v11, %v5127_v27  ;;  %v4933_v16 = vadd.f32 %v4901_v9, %v4835_v26  ;;  %v4707_v20 = vmul.f32 %v10591_v63, %v5258_v29  ;;  %v4836_v38 = vadd.f32 %v4804_v55, %v4738_v8 }
 0x5b8   : > { %v5492_v56 = vsel %vm279_vm0, %v5420_v46, 0.0  ;;  %v5226_v10 = vadd.f32 %v10679_v41, %v5128_v47  ;;  %v4805_v44 = vmul.f32 %v10557_v50, %v5356_v3  ;;  %v5132_v48 = vadd.f32 %v5100_v52, %v5034_v33  ;;  %v5362_v46 = vld [vmem:[#allocation2 + $0x172] sm:$0xff] }
 0x5b9   : > { %v5323_v1 = vadd.f32 %v5291_v37, %v5225_v24  ;;  %5493 = vadd.xlane.f32.xlu0 %v5492_v56  ;;  %v5031_v40 = vadd.f32 %v4999_v53, %v4933_v16  ;;  %v4739_v43 = vadd.f32 %v4707_v20, %v4609_v13  ;;  %v4934_v15 = vadd.f32 %v10696_v21, %v4836_v38  ;;  %v5166_v37 = vld [vmem:[#allocation2 + $0x170] sm:$0xff]  ;;  %v5168_v24 = vld [vmem:[#allocation2 + $0x188] sm:$0xff] }
 0x5ba   : > { %v5324_v26 = vadd.f32 %v10688_v18, %v5226_v10  ;;  %v4937_v6 = vadd.f32 %v4905_v58, %v4839_v2  ;;  %v4809_v41 = vmul.f32 %v10557_v50, %v10873_v34  ;;  %v10939_v13 = vld [vmem:[#allocation2 + $0x16a] sm:$0xff]  ;;  %v4743_v18 = vadd.f32 %v4711_v31, %v4613_v14  ;;  %v10958_v31 = vld [vmem:[#allocation2 + $0x180] sm:$0xff] }
 0x5bb   : > { %v5421_v27 = vadd.f32 %v5389_v28, %v5323_v1  ;;  %v5129_v29 = vadd.f32 %v5097_v54, %v5031_v40  ;;  %v4837_v11 = vadd.f32 %v4805_v44, %v4739_v43  ;;  %v5032_v1 = vadd.f32 %v10718_v42, %v4934_v15  ;;  %v10975_v44 = vld [vmem:[#allocation2 + $0x181] sm:$0xff] }
 0x5bc   : > { %v5422_v16 = vadd.f32 %v10712_v62, %v5324_v26  ;;  %v4614_v33 = vmul.f32 %v10584_v59, %v10877_v35  ;;  %v4712_v2 = vmul.f32 %v10591_v63, %v10894_v23  ;;  %v4907_v62 = vmul.f32 %v10619_v25, %v5166_v37 }
 0x5bd   : > { %v5495_v53 = vsel %vm279_vm0, %v5421_v27, 0.0  ;;  %v5227_v21 = vadd.f32 %v10723_v61, %v5129_v29  ;;  %v4935_v38 = vadd.f32 %v10783_v17, %v4837_v11  ;;  %v5130_v10 = vadd.f32 %v10771_v5, %v5032_v1  ;;  %v10981_v29 = vld [vmem:[#allocation2 + $0x182] sm:$0xff] }
 0x5be   : > { %5496 = vadd.xlane.f32.xlu1 %v5495_v53  ;;  %v4615_v42 = vmul.f32 %v10584_v59, %v5166_v37  ;;  %v4713_v52 = vmul.f32 %v10591_v63, %v10932_v49  ;;  %v5003_v17 = vmul.f32 %v10652_v30, %v10867_v60  ;;  %v4810_v14 = vmul.f32 %v10557_v50, %v10939_v13  ;;  %v11871_v11 = vld [vmem:[#allocation94_spill] sm:$0xff] }
 0x5bf   : > { %v5325_v58 = vadd.f32 %v10738_v36, %v5227_v21  ;;  %v5033_v61 = vadd.f32 %v10787_v12, %v4935_v38  ;;  %v5498_v5 = vsel %vm279_vm0, %v5422_v16, 0.0  ;;  %v5228_v3 = vadd.f32 %v10805_v22, %v5130_v10  ;;  %v6552_v36 = vld [vmem:[#allocation3] ss:$0 sm:$0xff]  ;;  %v11873_v10 = vld [vmem:[#allocation96_spill] sm:$0xff] }
 0x5c0   : > { %v5101_v28 = vmul.f32 %v10605_v4, %v10873_v34  ;;  %v4841_v9 = vadd.f32 %v4809_v41, %v4743_v18  ;;  %v5035_v60 = vadd.f32 %v5003_v17, %v4937_v6  ;;  %v4744_v47 = vadd.f32 %v4712_v2, %v4614_v33  ;;  %v5266_v18 = vld [vmem:[#allocation2 + $0x189] sm:$0xff]  ;;  %v5169_v33 = vld [vmem:[#allocation2 + $0x198] sm:$0xff] }
 0x5c1   : > { %5499 = vadd.xlane.f32.xlu0 %v5498_v5  ;;  %v5423_v12 = vadd.f32 %v10760_v32, %v5325_v58  ;;  %v5131_v8 = vadd.f32 %v10813_v7, %v5033_v61  ;;  %v5326_v55 = vadd.f32 %v10809_v57, %v5228_v3  ;;  %v4908_v22 = vmul.f32 %v10619_v25, %v10958_v31  ;;  %v5364_v3 = vld [vmem:[#allocation2 + $0x18a] sm:$0xff] }
 0x5c2   : > { %v4939_v20 = vadd.f32 %v4907_v62, %v4841_v9  ;;  %v4745_v56 = vadd.f32 %v4713_v52, %v4615_v42  ;;  %v5199_v40 = vmul.f32 %v10629_v39, %v5166_v37  ;;  %v5005_v32 = vmul.f32 %v10652_v30, %v10932_v49  ;;  %v11874_v42 = vld [vmem:[#allocation93_spill] sm:$0xff] }
 0x5c3   : > { %v5229_v34 = vadd.f32 %v10884_v19, %v5131_v8  ;;  %v4842_v54 = vadd.f32 %v4810_v14, %v4744_v47  ;;  %v5501_v7 = vsel %vm279_vm0, %v5423_v12, 0.0  ;;  %v5424_v43 = vadd.f32 %v10881_v51, %v5326_v55  ;;  %v5267_v8 = vld [vmem:[#allocation2 + $0x199] sm:$0xff] }
 0x5c4   : > { %v4811_v57 = vmul.f32 %v10557_v50, %v5362_v46  ;;  %v4909_v27 = vmul.f32 %v10619_v25, %v5168_v24  ;;  %v5230_v26 = vadd.f32 %v10901_v0, %v5132_v48  ;;  %v5133_v15 = vadd.f32 %v5101_v28, %v5035_v60  ;;  %v11872_v48 = vld [vmem:[#allocation15_spill] sm:$0xff]  ;;  %v5170_v47 = vld [vmem:[#allocation2 + $0x1a0] sm:$0xff] }
 0x5c5   : > { %v5327_v19 = vadd.f32 %v10888_v45, %v5229_v34  ;;  %v5394_v6 = vmul.f32 %v11871_v11, %v10939_v13  ;;  %v5037_v37 = vadd.f32 %v5005_v32, %v4939_v20  ;;  %v4940_v51 = vadd.f32 %v4908_v22, %v4842_v54  ;;  %v5365_v32 = vld [vmem:[#allocation2 + $0x19a] sm:$0xff] }
 0x5c6   : > { %5532 = vperm.xlu2 %6076, %v6552_v36   ;;  %5502 = vadd.xlane.f32.xlu1 %v5501_v7  ;;  %v4843_v41 = vadd.f32 %v4811_v57, %v4745_v56  ;;  %v5231_v53 = vadd.f32 %v5199_v40, %v5133_v15  ;;  %v5103_v16 = vmul.f32 %v10605_v4, %v5362_v46  ;;  %v5504_v0 = vsel %vm279_vm0, %v5424_v43, 0.0  ;;  %v5268_v43 = vld [vmem:[#allocation2 + $0x1a1] sm:$0xff]  ;;  %v11876_v15 = vld [vmem:[#allocation95_spill] sm:$0xff] }
 0x5c7   : > { %v5201_v1 = vmul.f32 %v10629_v39, %v5168_v24  ;;  %v5006_v45 = vmul.f32 %v10652_v30, %v10975_v44  ;;  %v5425_v21 = vadd.f32 %v11872_v48, %v5327_v19  ;;  %v5104_v38 = vmul.f32 %v10605_v4, %v10981_v29  ;;  %v11875_v19 = vld [vmem:[#allocation14_spill] sm:$0xff] }
 0x5c8   : > { %v4941_v2 = vadd.f32 %v4909_v27, %v4843_v41  ;;  %v5328_v62 = vadd.f32 %v11873_v10, %v5230_v26  ;;  %v5297_v52 = vmul.f32 %v11874_v42, %v10932_v49  ;;  %v5135_v58 = vadd.f32 %v5103_v16, %v5037_v37  ;;  %v5366_v16 = vld [vmem:[#allocation2 + $0x1a2] sm:$0xff] }
 0x5c9   : > { %5505 = vadd.xlane.f32.xlu0 %v5504_v0  ;;  %v5038_v61 = vadd.f32 %v5006_v45, %v4940_v51  ;;  %v5007_v17 = vmul.f32 %v10652_v30, %v5266_v18  ;;  %v5202_v28 = vmul.f32 %v10629_v39, %v5169_v33  ;;  %v5507_v9 = vsel %vm279_vm0, %v5425_v21, 0.0 }
 0x5ca   : > { %v5426_v14 = vadd.f32 %v5394_v6, %v5328_v62  ;;  %v5329_v5 = vadd.f32 %v5297_v52, %v5231_v53  ;;  %v5233_v36 = vadd.f32 %v5201_v1, %v5135_v58  ;;  %v5395_v24 = vmul.f32 %v11871_v11, %v5362_v46  ;;  %v11877_v1 = vld [vmem:[#allocation10_spill] sm:$0xff] }
 0x5cb   : > { %v5136_v12 = vadd.f32 %v5104_v38, %v5038_v61  ;;  %v5039_v60 = vadd.f32 %v5007_v17, %v4941_v2  ;;  %v5299_v49 = vmul.f32 %v11874_v42, %v5266_v18  ;;  %v5105_v55 = vmul.f32 %v10605_v4, %v5364_v3 }
 0x5cc   : > { %v5510_v20 = vsel %vm279_vm0, %v5426_v14, 0.0  ;;  %v5427_v22 = vadd.f32 %v5395_v24, %v5329_v5  ;;  %v5300_v56 = vmul.f32 %v11874_v42, %v5267_v8  ;;  %v5203_v7 = vmul.f32 %v10629_v39, %v5170_v47 }
 0x5cd   : > { %v5331_v34 = vadd.f32 %v5299_v49, %v5233_v36  ;;  %v5234_v40 = vadd.f32 %v5202_v28, %v5136_v12  ;;  %v5137_v54 = vadd.f32 %v5105_v55, %v5039_v60  ;;  %v5397_v46 = vmul.f32 %v11871_v11, %v5364_v3 }
 0x5ce   : > { %5508 = vadd.xlane.f32.xlu1 %v5507_v9  ;;  %v5513_v57 = vsel %vm279_vm0, %v5427_v22, 0.0  ;;  %v5398_v27 = vmul.f32 %v11871_v11, %v5365_v32  ;;  %v4612_v26 = vmul.f32 %v10584_v59, %v11875_v19  ;;  %v4710_v6 = vmul.f32 %v10591_v63, %v11876_v15  ;;  %v5440_v9 = vpop.xlane.xlu1 %5439 }
 0x5cf   : > { %v5429_v37 = vadd.f32 %v5397_v46, %v5331_v34  ;;  %v5332_v51 = vadd.f32 %v5300_v56, %v5234_v40  ;;  %v5235_v41 = vadd.f32 %v5203_v7, %v5137_v54  ;;  %v5301_v53 = vmul.f32 %v11874_v42, %v5268_v43 }
 0x5d0   : > { %v4808_v18 = vmul.f32 %v10557_v50, %v11877_v1  ;;  %v4742_v45 = vadd.f32 %v4710_v6, %v4612_v26  ;;  %v4906_v0 = vmul.f32 %v10619_v25, %v10877_v35  ;;  %v5399_v63 = vmul.f32 %v11871_v11, %v5366_v16 }
 0x5d1   : > { %5511 = vadd.xlane.f32.xlu0 %v5510_v20  ;;  %v5519_v48 = vsel %vm279_vm0, %v5429_v37, 0.0  ;;  %v5430_v59 = vadd.f32 %v5398_v27, %v5332_v51  ;;  %v5333_v21 = vadd.f32 %v5301_v53, %v5235_v41  ;;  %v5004_v50 = vmul.f32 %v10652_v30, %v10894_v23  ;;  %v5434_v30 = vpop.xlane.xlu2 %5433 }
 0x5d2   : > { %v4840_v38 = vadd.f32 %v4808_v18, %v4742_v45  ;;  %v5102_v62 = vmul.f32 %v10605_v4, %v10939_v13  ;;  %v5200_v35 = vmul.f32 %v10629_v39, %v10958_v31  ;;  %v5298_v17 = vmul.f32 %v11874_v42, %v10975_v44  ;;  %v5437_v39 = vpop.xlane.xlu0 %5436 }
 0x5d3   : > { %v5522_v2 = vsel %vm279_vm0, %v5430_v59, 0.0  ;;  %v5431_v10 = vadd.f32 %v5399_v63, %v5333_v21  ;;  %v5396_v14 = vmul.f32 %v11871_v11, %v10981_v29  ;;  %v5599_v49 = vlaneseq }
 0x5d4   : > { %v4938_v33 = vadd.f32 %v4906_v0, %v4840_v38 }
 0x5d5   : > { %v5525_v52 = vsel %vm279_vm0, %v5431_v10, 0.0  ;;  %v11038_v22 = vand.u32 127, %v5599_v49 }
 0x5d6   : > { %5514 = vadd.xlane.f32.xlu1 %v5513_v57  ;;  %v5036_v25 = vadd.f32 %v5004_v50, %v4938_v33  ;;  %v5452_v8 = vpop.xlane.xlu1 %5451 }
 0x5d7   : > { %v11043_v34 = vadd.s32 4294967288, %v11038_v22 }
 0x5d8   : > { %v5134_v58 = vadd.f32 %v5102_v62, %v5036_v25 }
 0x5d9   : > { %5520 = vadd.xlane.f32.xlu0 %v5519_v48  ;;  %v5443_v13 = vpop.xlane.xlu2 %5442 }
 0x5da   : > { %v5232_v61 = vadd.f32 %v5200_v35, %v5134_v58  ;;  %v5449_v28 = vpop.xlane.xlu0 %5448 }
 0x5dc   : > { %v5330_v5 = vadd.f32 %v5298_v17, %v5232_v61 }
 0x5de   : > { %5523 = vadd.xlane.f32.xlu1 %v5522_v2  ;;  %v5428_v23 = vadd.f32 %v5396_v14, %v5330_v5  ;;  %v5461_v42 = vpop.xlane.xlu1 %5460 }
 0x5e0   : > { %v5516_v4 = vsel %vm279_vm0, %v5428_v23, 0.0 }
 0x5e1   : > { %5526 = vadd.xlane.f32.xlu0 %v5525_v52  ;;  %v5446_v3 = vpop.xlane.xlu2 %5445 }
 0x5e2   : > { %v5458_v12 = vpop.xlane.xlu0 %5457 }
 0x5e9   : > { %v5455_v31 = vpop.xlane.xlu2 %5454 }
 0x5ea   : > { %v5467_v44 = vpop.xlane.xlu0 %5466 }
 0x5ec   : > { %v5470_v11 = vpop.xlane.xlu1 %5469 }
 0x5ef   : > { %5517 = vadd.xlane.f32.xlu2 %v5516_v4 }
 0x5f1   : > { %v5464_v36 = vpop.xlane.xlu2 %5463 }
 0x5f9   : > { %v5473_v60 = vpop.xlane.xlu2 %5472 }
 0x5fc   : > { %v5476_v29 = vpop.xlane.xlu0 %5475 }
 0x601   : > { %v5479_v20 = vpop.xlane.xlu1 %5478 }
 0x60c   : > { %v11032_v24 = vpop.xlane.xlu2 %5481 }
 0x611   : > { %v11036_v55 = vpop.xlane.xlu0 %5484 }
 0x61c   : > { %v11051_v46 = vpop.xlane.xlu1 %5487 }
 0x621   : > { %v11034_v47 = vpop.xlane.xlu2 %5490 }
 0x629   : > { %v11040_v56 = vpop.permute.xlu2 %5532 }
 0x62a   : > { %v5535_v40 = vadd.f32 %v11040_v56, %v5434_v30  ;;  %v5536_v32 = vadd.f32 %v11040_v56, %v5437_v39  ;;  %v5537_v54 = vadd.f32 %v11040_v56, %v5440_v9  ;;  %v5538_v7 = vadd.f32 %v11040_v56, %v5443_v13 }
 0x62b   : > { %v5539_v57 = vadd.f32 %v11040_v56, %v5446_v3  ;;  %v5540_v27 = vadd.f32 %v11040_v56, %v5449_v28  ;;  %v5541_v16 = vadd.f32 %v11040_v56, %v5452_v8  ;;  %v5542_v1 = vadd.f32 %v11040_v56, %v5455_v31 }
 0x62c   : > { %v11049_v43 = vpop.xlane.xlu0 %5493  ;;  %v5601_v19 = vperm.slane %v5535_v40, %v11038_v22  ;;  %v5603_v26 = vperm.slane %v5536_v32, %v11043_v34  ;;  %v5606_v15 = vperm.slane %v5537_v54, %v11038_v22  ;;  %v5607_v6 = vperm.slane %v5538_v7, %v11043_v34 }
 0x62d   : > { %v5609_v37 = vperm.slane %v5539_v57, %v11038_v22  ;;  %v5610_v51 = vperm.slane %v5540_v27, %v11043_v34  ;;  %v5543_v59 = vadd.f32 %v11040_v56, %v5458_v12  ;;  %v5544_v21 = vadd.f32 %v11040_v56, %v5461_v42 }
 0x62e   : > { %v5605_v41 = vsel %vm5604_vm4, %v5603_v26, %v5601_v19  ;;  %v5608_v53 = vsel %vm5604_vm4, %v5607_v6, %v5606_v15  ;;  %v5612_v63 = vperm.slane %v5541_v16, %v11038_v22  ;;  %v5613_v38 = vperm.slane %v5542_v1, %v11043_v34 }
 0x62f   : > { %v5611_v45 = vsel %vm5604_vm4, %v5610_v51, %v5609_v37  ;;  %v5652_v0 = vsel %vm5651_vm5, %v5608_v53, %v5605_v41  ;;  %v5545_v33 = vadd.f32 %v11040_v56, %v5464_v36  ;;  %v5546_v2 = vadd.f32 %v11040_v56, %v5467_v44 }
 0x630   : > { %v5654_v10 = vsel %vm5653_vm6, %v5611_v45, %v5652_v0  ;;  %v5615_v50 = vperm.slane %v5543_v59, %v11038_v22  ;;  %v5616_v62 = vperm.slane %v5544_v21, %v11043_v34  ;;  %v5614_v25 = vsel %vm5604_vm4, %v5613_v38, %v5612_v63 }
 0x631   : > { %v5497_v48 = vpop.xlane.xlu1 %5496  ;;  %v5656_v35 = vsel %vm5655_vm7, %v5614_v25, %v5654_v10  ;;  %v5618_v52 = vperm.slane %v5545_v33, %v11038_v22  ;;  %v5619_v58 = vperm.slane %v5546_v2, %v11043_v34  ;;  %v5548_v61 = vadd.f32 %v11040_v56, %v5473_v60 }
 0x632   : > { %v5617_v14 = vsel %vm5604_vm4, %v5616_v62, %v5615_v50  ;;  %v5547_v13 = vadd.f32 %v11040_v56, %v5470_v11  ;;  %v5549_v3 = vadd.f32 %v11040_v56, %v5476_v29  ;;  %v5550_v39 = vadd.f32 %v11040_v56, %v5479_v20 }
 0x633   : > { %v5658_v5 = vsel %vm5657_vm8, %v5617_v14, %v5656_v35  ;;  %v5620_v23 = vsel %vm5604_vm4, %v5619_v58, %v5618_v52  ;;  %v5622_v4 = vperm.slane %v5548_v61, %v11043_v34  ;;  %v5551_v20 = vadd.f32 %v11040_v56, %v11032_v24 }
 0x634   : > { %v5500_v18 = vpop.xlane.xlu0 %5499  ;;  %v5660_v31 = vsel %vm5659_vm9, %v5620_v23, %v5658_v5  ;;  %v5621_v28 = vperm.slane %v5547_v13, %v11038_v22  ;;  %v5624_v9 = vperm.slane %v5549_v3, %v11038_v22  ;;  %v5625_v36 = vperm.slane %v5550_v39, %v11043_v34 }
 0x635   : > { %v5552_v40 = vadd.f32 %v11040_v56, %v11036_v55  ;;  %v5553_v32 = vadd.f32 %v11040_v56, %v11051_v46  ;;  %v5554_v54 = vadd.f32 %v11040_v56, %v11034_v47  ;;  %v5556_v7 = vadd.f32 %v11040_v56, %v5497_v48 }
 0x636   : > { %v5623_v12 = vsel %vm5604_vm4, %v5622_v4, %v5621_v28  ;;  %v5626_v60 = vsel %vm5604_vm4, %v5625_v36, %v5624_v9  ;;  %v5555_v27 = vadd.f32 %v11040_v56, %v11049_v43  ;;  %v5627_v19 = vperm.slane %v5551_v20, %v11038_v22 }
 0x637   : > { %v5662_v8 = vsel %vm5661_vm10, %v5623_v12, %v5660_v31  ;;  %v5628_v24 = vperm.slane %v5552_v40, %v11043_v34  ;;  %v5630_v26 = vperm.slane %v5553_v32, %v11038_v22  ;;  %v5631_v46 = vperm.slane %v5554_v54, %v11043_v34 }
 0x638   : > { %v5664_v42 = vsel %vm5663_vm11, %v5626_v60, %v5662_v8  ;;  %v5557_v47 = vadd.f32 %v11040_v56, %v5500_v18  ;;  %v5634_v6 = vperm.slane %v5556_v7, %v11043_v34  ;;  %v5633_v53 = vperm.slane %v5555_v27, %v11038_v22 }
 0x639   : > { %v5503_v30 = vpop.xlane.xlu1 %5502  ;;  %5675 = vst.msk [vmem:[%s11099_s16] sm:$0xff] %vm5674_vm12, %v5664_v42  ;;  %v5629_v16 = vsel %vm5604_vm4, %v5628_v24, %v5627_v19  ;;  %v5632_v18 = vsel %vm5604_vm4, %v5631_v46, %v5630_v26 }
 0x63a   : > { %v5558_v57 = vadd.f32 %v11040_v56, %v5503_v30  ;;  %v5636_v0 = vperm.slane %v5557_v47, %v11038_v22  ;;  %v5635_v21 = vsel %vm5604_vm4, %v5634_v6, %v5633_v53  ;;  %v5665_v62 = vsel %vm5651_vm5, %v5632_v18, %v5629_v16 }
 0x63b   : > { %v5666_v52 = vsel %vm5653_vm6, %v5635_v21, %v5665_v62 }
 0x63c   : > { %v5506_v17 = vpop.xlane.xlu0 %5505  ;;  %v5637_v43 = vperm.slane %v5558_v57, %v11043_v34 }
 0x63d   : > { %v5559_v37 = vadd.f32 %v11040_v56, %v5506_v17 }
 0x63e   : > { %v5638_v33 = vsel %vm5604_vm4, %v5637_v43, %v5636_v0 }
 0x63f   : > { %v5639_v63 = vperm.slane %v5559_v37, %v11038_v22  ;;  %v5667_v17 = vsel %vm5655_vm7, %v5638_v33, %v5666_v52 }
 0x641   : > { %v5509_v29 = vpop.xlane.xlu1 %5508 }
 0x642   : > { %v5560_v55 = vadd.f32 %v11040_v56, %v5509_v29 }
 0x644   : > { %v5512_v44 = vpop.xlane.xlu0 %5511  ;;  %v5640_v1 = vperm.slane %v5560_v55, %v11043_v34 }
 0x645   : > { %v5561_v41 = vadd.f32 %v11040_v56, %v5512_v44 }
 0x646   : > { %v5641_v25 = vsel %vm5604_vm4, %v5640_v1, %v5639_v63 }
 0x647   : > { %v5642_v2 = vperm.slane %v5561_v41, %v11038_v22  ;;  %v5668_v30 = vsel %vm5657_vm8, %v5641_v25, %v5667_v17 }
 0x649   : > { %v5515_v49 = vpop.xlane.xlu1 %5514 }
 0x64a   : > { %v5562_v15 = vadd.f32 %v11040_v56, %v5515_v49 }
 0x64c   : > { %v5521_v11 = vpop.xlane.xlu0 %5520  ;;  %v5643_v48 = vperm.slane %v5562_v15, %v11043_v34 }
 0x64d   : > { %v5564_v38 = vadd.f32 %v11040_v56, %v5521_v11 }
 0x64e   : > { %v5644_v58 = vsel %vm5604_vm4, %v5643_v48, %v5642_v2 }
 0x64f   : > { %v5646_v14 = vperm.slane %v5564_v38, %v11043_v34  ;;  %v5669_v23 = vsel %vm5659_vm9, %v5644_v58, %v5668_v30 }
 0x651   : > { %v5524_v45 = vpop.xlane.xlu1 %5523 }
 0x652   : > { %v5565_v10 = vadd.f32 %v11040_v56, %v5524_v45 }
 0x654   : > { %v5527_v51 = vpop.xlane.xlu0 %5526 }
 0x655   : > { %v5566_v59 = vadd.f32 %v11040_v56, %v5527_v51 }
 0x657   : > { %v5649_v61 = vperm.slane %v5566_v59, %v11043_v34 }
 0x662   : > { %v5518_v50 = vpop.xlane.xlu2 %5517 }
 0x663   : > { %v5563_v35 = vadd.f32 %v11040_v56, %v5518_v50  ;;  %v5648_v56 = vperm.slane %v5565_v10, %v11038_v22 }
 0x665   : > { %v5645_v5 = vperm.slane %v5563_v35, %v11038_v22  ;;  %v5650_v13 = vsel %vm5604_vm4, %v5649_v61, %v5648_v56 }
 0x667   : > { %v5647_v4 = vsel %vm5604_vm4, %v5646_v14, %v5645_v5 }
 0x668   : > { %v5670_v3 = vsel %vm5661_vm10, %v5647_v4, %v5669_v23 }
 0x669   : > { %v5671_v39 = vsel %vm5663_vm11, %v5650_v13, %v5670_v3 }
 0x66a   : > { %5676 = vst.msk [vmem:[%s11099_s16 + $0x8] sm:$0xff] %vm5674_vm12, %v5671_v39 }
 0x66b   : > { %6606 = shalt.err (!%p6603_p3)
}
 0x66c   : > { %s6648_s14 = smov 128   ;;  %s6649_s16 = smov 8  }
 0x66d   : > { %6028 = dma.vmem_to_hbm [thread:$0]  (%p6731_p5), %s5691_s20, 256, %s5693_s21, %s5678_s22, %s6648_s14, %s6648_s14, %s6649_s16  }
 0x66e PF: > { %p6034_p4 = scmp.ge.s32.totalorder %s6641_s29, 2  ;;  %s5707_s18 = sand.u32 1, %s6629_s26  }
 0x66f   : > { %s5708_s6 = scalar_lea.sflag [#allocation5], %s5707_s18 }
 0x670   : > { %p6031_p7 = pnand %p6034_p4, %p6735_p6 }
 0x672   : > { %p6032_p8 = pneg %p6031_p7 }
 0x674   : > { %6624 = dma.done.wait (%p6032_p8), %s5708_s6, 256  }
 0x675   : > { %6626 = vsyncadd (%p6032_p8), %s5708_s6, 4294967040  ;;  %p19_p9 = scmp.ge.s32.totalorder %s6718_s8, 4   ;;  %s11878_s26 = smov %s6633_s27 }
 0x676   : > { %s11879_s27 = smov %s6637_s28  ;;  %s11880_s28 = smov %s6729_s11 }
 0x677   : > { %s11881_s29 = smov %s6718_s8  ;;  %21 = sbr.rel (!%p19_p9) target bundleno = 6 (0x6), region = 87 }
 0x67c   :  { %5714 = vsyncpa [#allocation5], 1 }
 0x67d   :  { %5716 = vsyncpa [#allocation5 + $0x1], 1 }

</bundles_post_ra>
